<compile_context>
chip_gen: v7x
topology: tpu7x:2x2x1
jax: 0.10.0
libtpu: 0.0.40
codegen_flags: <defaults>
</compile_context>

<pallas_src>
import functools

import jax
import jax.numpy as jnp
from jax.experimental import pallas as pl
from jax.experimental.pallas import tpu as pltpu

EPS = 1e-5            # nn.LayerNorm default eps
_NEG = -1e30          # additive mask for padded key positions
_SQRT1_2 = 0.7071067811865476


def _round_up(x, m):
    return ((x + m - 1) // m) * m


def _batch_tile_count(total):
    # 2-way batch split only where there are two TensorCores to feed (v7x).
    # On single-TC v5e/v6e it would just re-stream the depth-stacked weights.
    try:
        kind = jax.devices()[0].device_kind.lower()
    except Exception:
        kind = ""
    n = 2 if "v7" in kind else 1
    return n if (total % n == 0) else 1


# ---------------------------------------------------------------- in-kernel helpers
def _mm(x, w):
    # bf16 MXU operands (weights are already bf16), f32 accumulation.
    return jnp.dot(x.astype(jnp.bfloat16), w.astype(jnp.bfloat16),
                   preferred_element_type=jnp.float32)


def _layernorm(x, g, b):
    mu = jnp.mean(x, axis=-1, keepdims=True)
    var = jnp.mean((x - mu) ** 2, axis=-1, keepdims=True)
    return (x - mu) * jax.lax.rsqrt(var + EPS) * g + b


def _softmax(s):
    m = jnp.max(s, axis=-1, keepdims=True)
    e = jnp.exp(s - m)
    return e * pl.reciprocal(jnp.sum(e, axis=-1, keepdims=True), approx=True)


def _erf_approx(x):
    # Abramowitz & Stegun 7.1.26, |err| <= 1.5e-7 (VPU + EUP ops only).
    p = 0.3275911
    a1, a2, a3, a4, a5 = 0.254829592, -0.284496736, 1.421413741, -1.453152027, 1.061405429
    ax = jnp.abs(x)
    t = 1.0 / (1.0 + p * ax)
    poly = ((((a5 * t + a4) * t + a3) * t + a2) * t + a1) * t
    y = 1.0 - poly * jnp.exp(-ax * ax)
    return jnp.where(x >= 0, y, -y)


def _gelu(x):
    # Exact-erf GELU (PyTorch nn.GELU default), via the approximation above.
    return 0.5 * x * (1.0 + _erf_approx(x * _SQRT1_2))


def _key_bias(seq_len, seq_pad):
    idx = jax.lax.broadcasted_iota(jnp.int32, (1, 1, seq_pad), 2)
    return jnp.where(idx < seq_len, 0.0, _NEG).astype(jnp.float32)


def _mha_from_qkv(qkv_ref, key_bias, out_ref, num_heads, D):
    # qkv_ref: (n_seq, S_pad, 3D) VMEM scratch -> out_ref: (n_seq, S_pad, D).
    hd = D // num_heads
    scale = hd ** -0.5
    for h in range(num_heads):
        qh = qkv_ref[:, :, h * hd:(h + 1) * hd]
        kh = qkv_ref[:, :, D + h * hd:D + (h + 1) * hd]
        vh = qkv_ref[:, :, 2 * D + h * hd:2 * D + (h + 1) * hd]
        s = jnp.einsum('bqd,bkd->bqk', qh, kh,
                       preferred_element_type=jnp.float32) * scale + key_bias
        a = _softmax(s)
        out_ref[:, :, h * hd:(h + 1) * hd] = jnp.einsum(
            'bqk,bkd->bqd', a, vh, preferred_element_type=jnp.float32)


# ---------------------------------------------------------------- patch embedding
def _patch_embed_kernel(p_ref, w_ref, b_ref, o_ref):
    o_ref[...] = _mm(p_ref[...], w_ref[...]) + b_ref[...]


def patch_embed(patches_bf16, w_bf16, b, *, tile_m=512):
    M, K = patches_bf16.shape
    D = w_bf16.shape[1]
    tm = min(tile_m, _round_up(M, 16))
    Mp = _round_up(M, tm)
    if Mp != M:
        patches_bf16 = jnp.pad(patches_bf16, ((0, Mp - M), (0, 0)))
    out = pl.pallas_call(
        _patch_embed_kernel,
        out_shape=jax.ShapeDtypeStruct((Mp, D), jnp.float32),
        grid=(Mp // tm,),
        in_specs=[pl.BlockSpec((tm, K), lambda i: (i, 0)),
                  pl.BlockSpec((K, D), lambda i: (0, 0)),
                  pl.BlockSpec((1, D), lambda i: (0, 0))],
        out_specs=pl.BlockSpec((tm, D), lambda i: (i, 0)),
        compiler_params=pltpu.CompilerParams(dimension_semantics=("parallel",)),
    )(patches_bf16, w_bf16, b)
    return out[:M]


# ---------------------------------------------------------------- fused transformer stack
def _stack_kernel(x_ref, ln1g_ref, ln1b_ref, wqkv_ref, bqkv_ref, wo_ref, bo_ref,
                  ln2g_ref, ln2b_ref, w1_ref, b1_ref, w2_ref, b2_ref,
                  o_ref, qkv_s, attn_s, *, num_heads, seq_len, seq_pad):
    # Activation block stays resident in o_ref (VMEM) across the depth axis.
    @pl.when(pl.program_id(1) == 0)
    def _():
        o_ref[...] = x_ref[...]

    R, D = o_ref.shape[1], o_ref.shape[2]
    n_seq = R // seq_pad
    kb = _key_bias(seq_len, seq_pad)

    # --- attention sublayer (pre-norm) ---
    x = o_ref[0]                                               # (R, D)
    xn = _layernorm(x, ln1g_ref[0], ln1b_ref[0])
    qkv_s[...] = (_mm(xn, wqkv_ref[0]) + bqkv_ref[0]).reshape(n_seq, seq_pad, 3 * D)
    _mha_from_qkv(qkv_s, kb, attn_s, num_heads, D)
    o_ref[0] = x + (_mm(attn_s[...].reshape(R, D), wo_ref[0]) + bo_ref[0])

    # --- MLP sublayer (pre-norm) ---
    x = o_ref[0]
    xn2 = _layernorm(x, ln2g_ref[0], ln2b_ref[0])
    h = _gelu(_mm(xn2, w1_ref[0]) + b1_ref[0])
    o_ref[0] = x + (_mm(h, w2_ref[0]) + b2_ref[0])


def transformer_stack(x, bp, *, num_heads, seq_len):
    # x: (BB, S_pad, D) with BB = 3*B stacked streams (sequence already padded).
    BB, S_pad, D = x.shape
    depth = bp['wqkv'].shape[0]
    Dh = bp['w1'].shape[2]

    n_bt = _batch_tile_count(BB)                 # 2 only on dual-TC (v7x)
    n_seq = BB // n_bt
    R = n_seq * S_pad
    x2 = x.reshape(n_bt, R, D)

    kernel = functools.partial(_stack_kernel, num_heads=num_heads,
                               seq_len=seq_len, seq_pad=S_pad)

    def wspec(s1, s2):
        return pl.BlockSpec((1, s1, s2), lambda b, d: (d, 0, 0))

    # VMEM budget: double-buffered bf16 weights + resident activation + scratch.
    w_bytes = 2 * ((D * 3 * D + D * D + D * Dh + Dh * D) * 2
                   + (3 * D + D + Dh + D + 4 * D) * 4)
    a_bytes = 4 * R * D * 4                       # x block + resident out block
    s_bytes = n_seq * S_pad * (3 * D + D) * 4
    est = w_bytes + a_bytes + s_bytes
    cp = dict(dimension_semantics=("parallel", "arbitrary"))
    if est > 30 * 1024 * 1024:                    # raise above scoped default only if needed
        cp["vmem_limit_bytes"] = int(min(est * 2, 96 * 1024 * 1024))

    out = pl.pallas_call(
        kernel,
        out_shape=jax.ShapeDtypeStruct((n_bt, R, D), jnp.float32),
        grid=(n_bt, depth),
        in_specs=[pl.BlockSpec((1, R, D), lambda b, d: (b, 0, 0)),
                  wspec(1, D), wspec(1, D),
                  wspec(D, 3 * D), wspec(1, 3 * D),
                  wspec(D, D), wspec(1, D),
                  wspec(1, D), wspec(1, D),
                  wspec(D, Dh), wspec(1, Dh),
                  wspec(Dh, D), wspec(1, D)],
        out_specs=pl.BlockSpec((1, R, D), lambda b, d: (b, 0, 0)),
        scratch_shapes=[pltpu.VMEM((n_seq, S_pad, 3 * D), jnp.float32),
                        pltpu.VMEM((n_seq, S_pad, D), jnp.float32)],
        input_output_aliases={0: 0},
        compiler_params=pltpu.CompilerParams(**cp),
    )(x2, bp['ln1_g'], bp['ln1_b'], bp['wqkv'], bp['bqkv'],
      bp['wo'], bp['bo'], bp['ln2_g'], bp['ln2_b'],
      bp['w1'], bp['b1'], bp['w2'], bp['b2'])
    return out.reshape(BB, S_pad, D)


# ---------------------------------------------------------------- fused dual cross-attention
def _xattn_kernel(a_ref, src_ref, wq_ref, bq_ref, wk_ref, bk_ref, wv_ref, bv_ref,
                  wo_ref, bo_ref, o_ref, qkv_s, attn_s, *, num_heads, seq_len, seq_pad):
    br = pl.program_id(0)                    # 0: positive_xattn, 1: negative_xattn
    R, D = a_ref.shape
    n_seq = R // seq_pad
    kb = _key_bias(seq_len, seq_pad)

    @pl.when(br == 0)
    def _():
        o_ref[...] = jnp.zeros_like(o_ref)

    a2 = a_ref[...]                          # query source (anchor), same for both
    src = src_ref[0]                         # key/value source (positive or negative)
    qkv_s[:, :, 0:D] = (_mm(a2, wq_ref[0]) + bq_ref[0]).reshape(n_seq, seq_pad, D)
    qkv_s[:, :, D:2 * D] = (_mm(src, wk_ref[0]) + bk_ref[0]).reshape(n_seq, seq_pad, D)
    qkv_s[:, :, 2 * D:3 * D] = (_mm(src, wv_ref[0]) + bv_ref[0]).reshape(n_seq, seq_pad, D)
    _mha_from_qkv(qkv_s, kb, attn_s, num_heads, D)
    o_ref[...] += _mm(attn_s[...].reshape(R, D), wo_ref[0]) + bo_ref[0]


def dual_cross_attention(a, p, n, xp, *, num_heads, seq_len):
    B, S_pad, D = a.shape
    R = B * S_pad
    a2 = a.reshape(R, D)
    src = jnp.stack([p.reshape(R, D), n.reshape(R, D)], axis=0)   # (2, R, D)

    kernel = functools.partial(_xattn_kernel, num_heads=num_heads,
                               seq_len=seq_len, seq_pad=S_pad)
    full = pl.BlockSpec((R, D), lambda i: (0, 0))
    per_branch = pl.BlockSpec((1, R, D), lambda i: (i, 0, 0))
    wsp = pl.BlockSpec((1, D, D), lambda i: (i, 0, 0))
    bsp = pl.BlockSpec((1, 1, D), lambda i: (i, 0, 0))

    out = pl.pallas_call(
        kernel,
        out_shape=jax.ShapeDtypeStruct((R, D), jnp.float32),
        grid=(2,),
        in_specs=[full, per_branch, wsp, bsp, wsp, bsp, wsp, bsp, wsp, bsp],
        out_specs=full,
        scratch_shapes=[pltpu.VMEM((B, S_pad, 3 * D), jnp.float32),
                        pltpu.VMEM((B, S_pad, D), jnp.float32)],
        compiler_params=pltpu.CompilerParams(dimension_semantics=("arbitrary",)),
    )(a2, src, xp['wq'], xp['bq'], xp['wk'], xp['bk'],
      xp['wv'], xp['bv'], xp['wo'], xp['bo'])
    return out.reshape(B, S_pad, D)


# ---------------------------------------------------------------- glue (plain JAX)
def extract_patches(x, patch_dim):
    # x: NCHW -> (B, N, C*p*p), matching Conv2d(k=stride=p) weight flattening order.
    B, C, H, W = x.shape
    p = patch_dim
    x = x.reshape(B, C, H // p, p, W // p, p)
    x = x.transpose(0, 2, 4, 1, 3, 5)              # (B, Hp, Wp, C, p, p)
    return x.reshape(B, (H // p) * (W // p), C * p * p)


def init_params(key, embed_dim, in_channels, patch_dim, depth, mlp_ratio, n_patches):
    D = embed_dim
    K = in_channels * patch_dim * patch_dim
    Dh = int(D * mlp_ratio)
    S = n_patches + 1
    keys = iter(jax.random.split(key, 64))

    def nrm(shape, s=0.02, dtype=jnp.float32):
        return (jax.random.normal(next(keys), shape, jnp.float32) * s).astype(dtype)

    bf = jnp.bfloat16   # matmul weights pre-cast to bf16 (halved DMA / VMEM)
    params = {
        'patch_w': nrm((K, D), dtype=bf),          # Conv2d weight (D,C,p,p) -> (K,D)
        'patch_b': jnp.zeros((1, D), jnp.float32),
        'cls': nrm((3, 1, D)),                     # [anchor, positive, negative]
        'pos': nrm((3, S, D)),
    }
    params['blocks'] = {                           # weights stacked along depth
        'ln1_g': jnp.ones((depth, 1, D), jnp.float32),
        'ln1_b': jnp.zeros((depth, 1, D), jnp.float32),
        'wqkv': nrm((depth, D, 3 * D), dtype=bf),
        'bqkv': jnp.zeros((depth, 1, 3 * D), jnp.float32),
        'wo': nrm((depth, D, D), dtype=bf),
        'bo': jnp.zeros((depth, 1, D), jnp.float32),
        'ln2_g': jnp.ones((depth, 1, D), jnp.float32),
        'ln2_b': jnp.zeros((depth, 1, D), jnp.float32),
        'w1': nrm((depth, D, Dh), dtype=bf),
        'b1': jnp.zeros((depth, 1, Dh), jnp.float32),
        'w2': nrm((depth, Dh, D), dtype=bf),
        'b2': jnp.zeros((depth, 1, D), jnp.float32),
    }
    params['xattn'] = {                            # [positive_xattn, negative_xattn]
        'wq': nrm((2, D, D), dtype=bf), 'bq': jnp.zeros((2, 1, D), jnp.float32),
        'wk': nrm((2, D, D), dtype=bf), 'bk': jnp.zeros((2, 1, D), jnp.float32),
        'wv': nrm((2, D, D), dtype=bf), 'bv': jnp.zeros((2, 1, D), jnp.float32),
        'wo': nrm((2, D, D), dtype=bf), 'bo': jnp.zeros((2, 1, D), jnp.float32),
    }
    return params


def tcait_extractor_forward(params, anchor, positive, negative, *, num_heads, patch_dim):
    D = params['patch_w'].shape[1]
    B = anchor.shape[0]

    # ---- patch embedding: one row-tiled kernel for all three streams ----
    patches = jnp.stack([extract_patches(anchor, patch_dim),
                         extract_patches(positive, patch_dim),
                         extract_patches(negative, patch_dim)], axis=0)   # (3,B,N,K)
    _, _, N, K = patches.shape
    S = N + 1
    S_pad = _round_up(S, 8)                  # sublane-aligned sequence length
    emb = patch_embed(patches.reshape(3 * B * N, K).astype(jnp.bfloat16),
                      params['patch_w'], params['patch_b'])               # (3BN, D)
    emb = emb.reshape(3, B, N, D)

    # ---- cls tokens + positional encoding + seq padding (tiny glue, fused by XLA) ----
    cls = jnp.broadcast_to(params['cls'][:, None, :, :], (3, B, 1, D))
    x = jnp.concatenate([cls, emb], axis=2) + params['pos'][:, None, :, :]  # (3,B,S,D)
    x = jnp.pad(x, ((0, 0), (0, 0), (0, S_pad - S), (0, 0)))                # (3,B,S_pad,D)

    # ---- fused transformer stack: one pallas_call over (batch_tiles, depth) ----
    x = x.reshape(3 * B, S_pad, D)
    x = transformer_stack(x, params['blocks'], num_heads=num_heads, seq_len=S)
    x = x.reshape(3, B, S_pad, D)
    a, p, n = x[0], x[1], x[2]

    # ---- fused dual cross-attention: positive_xattn(a,p) + negative_xattn(a,n) ----
    a_out = dual_cross_attention(a, p, n, params['xattn'],
                                 num_heads=num_heads, seq_len=S)
    return a_out[:, :S], p[:, :S], n[:, :S]


# ---------------------------------------------------------------- main
if __name__ == "__main__":
    B, C, HW = 2, 3, 16
    embed_dim, num_heads, patch_dim, depth, mlp_ratio = 32, 4, 4, 2, 4.0
    n_patches = (HW // patch_dim) ** 2             # 16 patches -> seq len 17

    key = jax.random.PRNGKey(0)
    k_par, k_a, k_p, k_n = jax.random.split(key, 4)
    params = init_params(k_par, embed_dim, C, patch_dim, depth, mlp_ratio, n_patches)

    anchor = jax.random.normal(k_a, (B, C, HW, HW), jnp.float32)
    positive = jax.random.normal(k_p, (B, C, HW, HW), jnp.float32)
    negative = jax.random.normal(k_n, (B, C, HW, HW), jnp.float32)

    fwd = jax.jit(functools.partial(tcait_extractor_forward,
                                    num_heads=num_heads, patch_dim=patch_dim))
    a_out, p_out, n_out = fwd(params, anchor, positive, negative)
    jax.block_until_ready((a_out, p_out, n_out))

    assert a_out.shape == (B, n_patches + 1, embed_dim)
    assert p_out.shape == (B, n_patches + 1, embed_dim)
    assert n_out.shape == (B, n_patches + 1, embed_dim)
    print("KERNEL_OK")
</pallas_src>

<mosaic_0001>
module attributes {stable_mosaic.version = 11 : i64} {
  func.func @_patch_embed_kernel(%arg0: i32, %arg1: memref<96x48xbf16, #tpu.memory_space<vmem>>, %arg2: memref<48x32xbf16, #tpu.memory_space<vmem>>, %arg3: memref<1x32xf32, #tpu.memory_space<vmem>>, %arg4: memref<96x32xf32, #tpu.memory_space<vmem>>) attributes {dimension_semantics = [#tpu.dimension_semantics<parallel>], iteration_bounds = array<i64: 1>, scalar_prefetch = 0 : i64, scratch_operands = 0 : i64, tpu.core_type = #tpu.core_type<tc>, window_params = [{transform_indices = @transform_0, window_bounds = array<i64: 96, 48>}, {pipeline_mode = #tpu.pipeline_mode<synchronous>, transform_indices = @transform_1, window_bounds = array<i64: 48, 32>}, {pipeline_mode = #tpu.pipeline_mode<synchronous>, transform_indices = @transform_2, window_bounds = array<i64: 1, 32>}, {transform_indices = @transform_3, window_bounds = array<i64: 96, 32>}]} {
    %c0 = arith.constant 0 : index
    %c0_0 = arith.constant 0 : index
    %0 = vector.load %arg1[%c0, %c0_0] : memref<96x48xbf16, #tpu.memory_space<vmem>>, vector<96x48xbf16>
    %c0_1 = arith.constant 0 : index
    %c0_2 = arith.constant 0 : index
    %1 = vector.load %arg2[%c0_1, %c0_2] : memref<48x32xbf16, #tpu.memory_space<vmem>>, vector<48x32xbf16>
    %cst = arith.constant dense<0.000000e+00> : vector<96x32xf32>
    %2 = tpu.matmul %0, %1, %cst {dimension_numbers = #tpu.dot_dimension_numbers<[1], [0], [0], [1], [0, 0, 1, 1], [], []>} : vector<96x48xbf16>, vector<48x32xbf16>, vector<96x32xf32> -> vector<96x32xf32>
    %c0_3 = arith.constant 0 : index
    %c0_4 = arith.constant 0 : index
    %3 = vector.load %arg3[%c0_3, %c0_4] : memref<1x32xf32, #tpu.memory_space<vmem>>, vector<1x32xf32>
    %4 = vector.broadcast %3 : vector<1x32xf32> to vector<96x32xf32>
    %5 = arith.addf %2, %4 : vector<96x32xf32>
    %c0_5 = arith.constant 0 : index
    %c0_6 = arith.constant 0 : index
    %6 = vector.load %arg4[%c0_5, %c0_6] : memref<96x32xf32, #tpu.memory_space<vmem>>, vector<96x32xf32>
    tpu.vector_store %arg4[%c0_5, %c0_6], %5 {strides = array<i32>} : memref<96x32xf32, #tpu.memory_space<vmem>>, vector<96x32xf32>,
    return
  }
  func.func @transform_0(%arg0: i32) -> (i32, i32) {
    %c0_i32 = arith.constant 0 : i32
    %c0_i32_0 = arith.constant 0 : i32
    return %arg0, %c0_i32 : i32, i32
  }
  func.func @transform_1(%arg0: i32) -> (i32, i32) {
    %c0_i32 = arith.constant 0 : i32
    %c0_i32_0 = arith.constant 0 : i32
    %c0_i32_1 = arith.constant 0 : i32
    return %c0_i32, %c0_i32_0 : i32, i32
  }
  func.func @transform_2(%arg0: i32) -> (i32, i32) {
    %c0_i32 = arith.constant 0 : i32
    %c0_i32_0 = arith.constant 0 : i32
    %c0_i32_1 = arith.constant 0 : i32
    return %c0_i32, %c0_i32_0 : i32, i32
  }
  func.func @transform_3(%arg0: i32) -> (i32, i32) {
    %c0_i32 = arith.constant 0 : i32
    %c0_i32_0 = arith.constant 0 : i32
    return %arg0, %c0_i32 : i32, i32
  }
}

module attributes {stable_mosaic.version = 11 : i64} {
  func.func @_stack_kernel(%arg0: i32, %arg1: i32, %arg2: memref<1x144x32xf32, #tpu.memory_space<vmem>>, %arg3: memref<1x1x32xf32, #tpu.memory_space<vmem>>, %arg4: memref<1x1x32xf32, #tpu.memory_space<vmem>>, %arg5: memref<1x32x96xbf16, #tpu.memory_space<vmem>>, %arg6: memref<1x1x96xf32, #tpu.memory_space<vmem>>, %arg7: memref<1x32x32xbf16, #tpu.memory_space<vmem>>, %arg8: memref<1x1x32xf32, #tpu.memory_space<vmem>>, %arg9: memref<1x1x32xf32, #tpu.memory_space<vmem>>, %arg10: memref<1x1x32xf32, #tpu.memory_space<vmem>>, %arg11: memref<1x32x128xbf16, #tpu.memory_space<vmem>>, %arg12: memref<1x1x128xf32, #tpu.memory_space<vmem>>, %arg13: memref<1x128x32xbf16, #tpu.memory_space<vmem>>, %arg14: memref<1x1x32xf32, #tpu.memory_space<vmem>>, %arg15: memref<1x144x32xf32, #tpu.memory_space<vmem>>, %arg16: memref<6x24x96xf32, #tpu.memory_space<vmem>>, %arg17: memref<6x24x32xf32, #tpu.memory_space<vmem>>) attributes {dimension_semantics = [#tpu.dimension_semantics<parallel>, #tpu.dimension_semantics<arbitrary>], iteration_bounds = array<i64: 1, 2>, scalar_prefetch = 0 : i64, scratch_operands = 2 : i64, tpu.core_type = #tpu.core_type<tc>, window_params = [{transform_indices = @transform_0, window_bounds = array<i64: 1, 144, 32>}, {transform_indices = @transform_1, window_bounds = array<i64: 1, 1, 32>}, {transform_indices = @transform_2, window_bounds = array<i64: 1, 1, 32>}, {transform_indices = @transform_3, window_bounds = array<i64: 1, 32, 96>}, {transform_indices = @transform_4, window_bounds = array<i64: 1, 1, 96>}, {transform_indices = @transform_5, window_bounds = array<i64: 1, 32, 32>}, {transform_indices = @transform_6, window_bounds = array<i64: 1, 1, 32>}, {transform_indices = @transform_7, window_bounds = array<i64: 1, 1, 32>}, {transform_indices = @transform_8, window_bounds = array<i64: 1, 1, 32>}, {transform_indices = @transform_9, window_bounds = array<i64: 1, 32, 128>}, {transform_indices = @transform_10, window_bounds = array<i64: 1, 1, 128>}, {transform_indices = @transform_11, window_bounds = array<i64: 1, 128, 32>}, {transform_indices = @transform_12, window_bounds = array<i64: 1, 1, 32>}, {transform_indices = @transform_13, window_bounds = array<i64: 1, 144, 32>}]} {
    %c0_i32 = arith.constant 0 : i32
    %0 = arith.cmpi eq, %arg1, %c0_i32 : i32
    %1 = arith.extui %0 : i1 to i32
    %c0_i32_0 = arith.constant 0 : i32
    %2 = arith.cmpi ne, %1, %c0_i32_0 : i32
    scf.if %2 {
      %c0_141 = arith.constant 0 : index
      %c0_142 = arith.constant 0 : index
      %c0_143 = arith.constant 0 : index
      %229 = vector.load %arg2[%c0_141, %c0_142, %c0_143] : memref<1x144x32xf32, #tpu.memory_space<vmem>>, vector<1x144x32xf32>
      %c0_144 = arith.constant 0 : index
      %c0_145 = arith.constant 0 : index
      %c0_146 = arith.constant 0 : index
      %230 = vector.load %arg15[%c0_144, %c0_145, %c0_146] : memref<1x144x32xf32, #tpu.memory_space<vmem>>, vector<1x144x32xf32>
      tpu.vector_store %arg15[%c0_144, %c0_145, %c0_146], %229 {strides = array<i32>} : memref<1x144x32xf32, #tpu.memory_space<vmem>>, vector<1x144x32xf32>,
    } else {
    }
    %3 = tpu.iota {dimensions = array<i32: 2>} : vector<1x1x24xi32>
    %c17_i32 = arith.constant 17 : i32
    %4 = vector.broadcast %c17_i32 : i32 to vector<1x1x24xi32>
    %5 = arith.cmpi slt, %3, %4 : vector<1x1x24xi32>
    %cst = arith.constant 0.000000e+00 : f32
    %cst_1 = arith.constant -1.000000e+30 : f32
    %6 = vector.broadcast %cst : f32 to vector<1x1x24xf32>
    %7 = vector.broadcast %cst_1 : f32 to vector<1x1x24xf32>
    %8 = arith.select %5, %6, %7 : vector<1x1x24xi1>, vector<1x1x24xf32>
    %c0 = arith.constant 0 : index
    %c0_2 = arith.constant 0 : index
    %c0_3 = arith.constant 0 : index
    %9 = vector.load %arg15[%c0, %c0_2, %c0_3] : memref<1x144x32xf32, #tpu.memory_space<vmem>>, vector<1x144x32xf32>
    %10 = vector.shape_cast %9 : vector<1x144x32xf32> to vector<144x32xf32>
    %c0_4 = arith.constant 0 : index
    %c0_5 = arith.constant 0 : index
    %c0_6 = arith.constant 0 : index
    %11 = vector.load %arg3[%c0_4, %c0_5, %c0_6] : memref<1x1x32xf32, #tpu.memory_space<vmem>>, vector<1x1x32xf32>
    %12 = vector.shape_cast %11 : vector<1x1x32xf32> to vector<1x32xf32>
    %c0_7 = arith.constant 0 : index
    %c0_8 = arith.constant 0 : index
    %c0_9 = arith.constant 0 : index
    %13 = vector.load %arg4[%c0_7, %c0_8, %c0_9] : memref<1x1x32xf32, #tpu.memory_space<vmem>>, vector<1x1x32xf32>
    %14 = vector.shape_cast %13 : vector<1x1x32xf32> to vector<1x32xf32>
    %cst_10 = arith.constant dense<0.000000e+00> : vector<144xf32>
    %15 = vector.multi_reduction <add>, %10, %cst_10 [1] : vector<144x32xf32> to vector<144xf32>
    %16 = vector.shape_cast %15 : vector<144xf32> to vector<144x1xf32>
    %cst_11 = arith.constant 3.200000e+01 : f32
    %17 = vector.broadcast %cst_11 : f32 to vector<144x1xf32>
    %18 = arith.divf %16, %17 : vector<144x1xf32>
    %19 = vector.broadcast %18 : vector<144x1xf32> to vector<144x32xf32>
    %20 = arith.subf %10, %19 : vector<144x32xf32>
    %21 = arith.mulf %20, %20 : vector<144x32xf32>
    %cst_12 = arith.constant dense<0.000000e+00> : vector<144xf32>
    %22 = vector.multi_reduction <add>, %21, %cst_12 [1] : vector<144x32xf32> to vector<144xf32>
    %23 = vector.shape_cast %22 : vector<144xf32> to vector<144x1xf32>
    %cst_13 = arith.constant 3.200000e+01 : f32
    %24 = vector.broadcast %cst_13 : f32 to vector<144x1xf32>
    %25 = arith.divf %23, %24 : vector<144x1xf32>
    %26 = vector.broadcast %18 : vector<144x1xf32> to vector<144x32xf32>
    %27 = arith.subf %10, %26 : vector<144x32xf32>
    %cst_14 = arith.constant 9.99999974E-6 : f32
    %28 = vector.broadcast %cst_14 : f32 to vector<144x1xf32>
    %29 = arith.addf %25, %28 : vector<144x1xf32>
    %30 = math.rsqrt %29 : vector<144x1xf32>
    %31 = vector.broadcast %30 : vector<144x1xf32> to vector<144x32xf32>
    %32 = arith.mulf %27, %31 : vector<144x32xf32>
    %33 = vector.broadcast %12 : vector<1x32xf32> to vector<144x32xf32>
    %34 = arith.mulf %32, %33 : vector<144x32xf32>
    %35 = vector.broadcast %14 : vector<1x32xf32> to vector<144x32xf32>
    %36 = arith.addf %34, %35 : vector<144x32xf32>
    %c0_15 = arith.constant 0 : index
    %c0_16 = arith.constant 0 : index
    %c0_17 = arith.constant 0 : index
    %37 = vector.load %arg5[%c0_15, %c0_16, %c0_17] : memref<1x32x96xbf16, #tpu.memory_space<vmem>>, vector<1x32x96xbf16>
    %38 = vector.shape_cast %37 : vector<1x32x96xbf16> to vector<32x96xbf16>
    %39 = arith.truncf %36 : vector<144x32xf32> to vector<144x32xbf16>
    %cst_18 = arith.constant dense<0.000000e+00> : vector<144x96xf32>
    %40 = tpu.matmul %39, %38, %cst_18 {dimension_numbers = #tpu.dot_dimension_numbers<[1], [0], [0], [1], [0, 0, 1, 1], [], []>} : vector<144x32xbf16>, vector<32x96xbf16>, vector<144x96xf32> -> vector<144x96xf32>
    %c0_19 = arith.constant 0 : index
    %c0_20 = arith.constant 0 : index
    %c0_21 = arith.constant 0 : index
    %41 = vector.load %arg6[%c0_19, %c0_20, %c0_21] : memref<1x1x96xf32, #tpu.memory_space<vmem>>, vector<1x1x96xf32>
    %42 = vector.shape_cast %41 : vector<1x1x96xf32> to vector<1x96xf32>
    %43 = vector.broadcast %42 : vector<1x96xf32> to vector<144x96xf32>
    %44 = arith.addf %40, %43 : vector<144x96xf32>
    %45 = vector.shape_cast %44 : vector<144x96xf32> to vector<6x24x96xf32>
    %c0_22 = arith.constant 0 : index
    %c0_23 = arith.constant 0 : index
    %c0_24 = arith.constant 0 : index
    %46 = vector.load %arg16[%c0_22, %c0_23, %c0_24] : memref<6x24x96xf32, #tpu.memory_space<vmem>>, vector<6x24x96xf32>
    tpu.vector_store %arg16[%c0_22, %c0_23, %c0_24], %45 {strides = array<i32>} : memref<6x24x96xf32, #tpu.memory_space<vmem>>, vector<6x24x96xf32>,
    %c0_25 = arith.constant 0 : index
    %c0_26 = arith.constant 0 : index
    %c0_27 = arith.constant 0 : index
    %47 = vector.load %arg16[%c0_25, %c0_26, %c0_27] : memref<6x24x96xf32, #tpu.memory_space<vmem>>, vector<6x24x8xf32>
    %c0_28 = arith.constant 0 : index
    %c0_29 = arith.constant 0 : index
    %c32 = arith.constant 32 : index
    %48 = vector.load %arg16[%c0_28, %c0_29, %c32] : memref<6x24x96xf32, #tpu.memory_space<vmem>>, vector<6x24x8xf32>
    %c0_30 = arith.constant 0 : index
    %c0_31 = arith.constant 0 : index
    %c64 = arith.constant 64 : index
    %49 = vector.load %arg16[%c0_30, %c0_31, %c64] : memref<6x24x96xf32, #tpu.memory_space<vmem>>, vector<6x24x8xf32>
    "tpu.trace_start"() <{level = 10 : i32, message = "bqd,bkd->bqk"}> : () -> ()
    %cst_32 = arith.constant dense<0.000000e+00> : vector<6x24x24xf32>
    %50 = tpu.matmul %47, %48, %cst_32 {dimension_numbers = #tpu.dot_dimension_numbers<[2], [2], [1], [1], [0, 0, 0, 1, 1, 1], [0], [0]>} : vector<6x24x8xf32>, vector<6x24x8xf32>, vector<6x24x24xf32> -> vector<6x24x24xf32>
    "tpu.trace_stop"() : () -> ()
    %cst_33 = arith.constant 0.353553385 : f32
    %51 = vector.broadcast %cst_33 : f32 to vector<6x24x24xf32>
    %52 = arith.mulf %50, %51 : vector<6x24x24xf32>
    %53 = vector.broadcast %8 : vector<1x1x24xf32> to vector<6x24x24xf32>
    %54 = arith.addf %52, %53 : vector<6x24x24xf32>
    %cst_34 = arith.constant dense<0xFF800000> : vector<6x24xf32>
    %55 = vector.multi_reduction <maximumf>, %54, %cst_34 [2] : vector<6x24x24xf32> to vector<6x24xf32>
    %56 = vector.shape_cast %55 : vector<6x24xf32> to vector<6x24x1xf32>
    %57 = vector.broadcast %56 : vector<6x24x1xf32> to vector<6x24x24xf32>
    %58 = arith.subf %54, %57 : vector<6x24x24xf32>
    %59 = math.exp %58 : vector<6x24x24xf32>
    %cst_35 = arith.constant dense<0.000000e+00> : vector<6x24xf32>
    %60 = vector.multi_reduction <add>, %59, %cst_35 [2] : vector<6x24x24xf32> to vector<6x24xf32>
    %61 = vector.shape_cast %60 : vector<6x24xf32> to vector<6x24x1xf32>
    %62 = tpu.reciprocal %61 {approx = true} : vector<6x24x1xf32> -> vector<6x24x1xf32>
    %63 = vector.broadcast %62 : vector<6x24x1xf32> to vector<6x24x24xf32>
    %64 = arith.mulf %59, %63 : vector<6x24x24xf32>
    "tpu.trace_start"() <{level = 10 : i32, message = "bqk,bkd->bqd"}> : () -> ()
    %cst_36 = arith.constant dense<0.000000e+00> : vector<6x24x8xf32>
    %65 = tpu.matmul %64, %49, %cst_36 {dimension_numbers = #tpu.dot_dimension_numbers<[2], [1], [1], [2], [0, 0, 0, 1, 1, 2], [0], [0]>} : vector<6x24x24xf32>, vector<6x24x8xf32>, vector<6x24x8xf32> -> vector<6x24x8xf32>
    "tpu.trace_stop"() : () -> ()
    %c0_37 = arith.constant 0 : index
    %c0_38 = arith.constant 0 : index
    %c0_39 = arith.constant 0 : index
    %66 = vector.load %arg17[%c0_37, %c0_38, %c0_39] : memref<6x24x32xf32, #tpu.memory_space<vmem>>, vector<6x24x8xf32>
    tpu.vector_store %arg17[%c0_37, %c0_38, %c0_39], %65 {strides = array<i32>} : memref<6x24x32xf32, #tpu.memory_space<vmem>>, vector<6x24x8xf32>,
    %c0_40 = arith.constant 0 : index
    %c0_41 = arith.constant 0 : index
    %c8 = arith.constant 8 : index
    %67 = vector.load %arg16[%c0_40, %c0_41, %c8] : memref<6x24x96xf32, #tpu.memory_space<vmem>>, vector<6x24x8xf32>
    %c0_42 = arith.constant 0 : index
    %c0_43 = arith.constant 0 : index
    %c40 = arith.constant 40 : index
    %68 = vector.load %arg16[%c0_42, %c0_43, %c40] : memref<6x24x96xf32, #tpu.memory_space<vmem>>, vector<6x24x8xf32>
    %c0_44 = arith.constant 0 : index
    %c0_45 = arith.constant 0 : index
    %c72 = arith.constant 72 : index
    %69 = vector.load %arg16[%c0_44, %c0_45, %c72] : memref<6x24x96xf32, #tpu.memory_space<vmem>>, vector<6x24x8xf32>
    "tpu.trace_start"() <{level = 10 : i32, message = "bqd,bkd->bqk"}> : () -> ()
    %cst_46 = arith.constant dense<0.000000e+00> : vector<6x24x24xf32>
    %70 = tpu.matmul %67, %68, %cst_46 {dimension_numbers = #tpu.dot_dimension_numbers<[2], [2], [1], [1], [0, 0, 0, 1, 1, 1], [0], [0]>} : vector<6x24x8xf32>, vector<6x24x8xf32>, vector<6x24x24xf32> -> vector<6x24x24xf32>
    "tpu.trace_stop"() : () -> ()
    %cst_47 = arith.constant 0.353553385 : f32
    %71 = vector.broadcast %cst_47 : f32 to vector<6x24x24xf32>
    %72 = arith.mulf %70, %71 : vector<6x24x24xf32>
    %73 = vector.broadcast %8 : vector<1x1x24xf32> to vector<6x24x24xf32>
    %74 = arith.addf %72, %73 : vector<6x24x24xf32>
    %cst_48 = arith.constant dense<0xFF800000> : vector<6x24xf32>
    %75 = vector.multi_reduction <maximumf>, %74, %cst_48 [2] : vector<6x24x24xf32> to vector<6x24xf32>
    %76 = vector.shape_cast %75 : vector<6x24xf32> to vector<6x24x1xf32>
    %77 = vector.broadcast %76 : vector<6x24x1xf32> to vector<6x24x24xf32>
    %78 = arith.subf %74, %77 : vector<6x24x24xf32>
    %79 = math.exp %78 : vector<6x24x24xf32>
    %cst_49 = arith.constant dense<0.000000e+00> : vector<6x24xf32>
    %80 = vector.multi_reduction <add>, %79, %cst_49 [2] : vector<6x24x24xf32> to vector<6x24xf32>
    %81 = vector.shape_cast %80 : vector<6x24xf32> to vector<6x24x1xf32>
    %82 = tpu.reciprocal %81 {approx = true} : vector<6x24x1xf32> -> vector<6x24x1xf32>
    %83 = vector.broadcast %82 : vector<6x24x1xf32> to vector<6x24x24xf32>
    %84 = arith.mulf %79, %83 : vector<6x24x24xf32>
    "tpu.trace_start"() <{level = 10 : i32, message = "bqk,bkd->bqd"}> : () -> ()
    %cst_50 = arith.constant dense<0.000000e+00> : vector<6x24x8xf32>
    %85 = tpu.matmul %84, %69, %cst_50 {dimension_numbers = #tpu.dot_dimension_numbers<[2], [1], [1], [2], [0, 0, 0, 1, 1, 2], [0], [0]>} : vector<6x24x24xf32>, vector<6x24x8xf32>, vector<6x24x8xf32> -> vector<6x24x8xf32>
    "tpu.trace_stop"() : () -> ()
    %c0_51 = arith.constant 0 : index
    %c0_52 = arith.constant 0 : index
    %c8_53 = arith.constant 8 : index
    %86 = vector.load %arg17[%c0_51, %c0_52, %c8_53] : memref<6x24x32xf32, #tpu.memory_space<vmem>>, vector<6x24x8xf32>
    tpu.vector_store %arg17[%c0_51, %c0_52, %c8_53], %85 {strides = array<i32>} : memref<6x24x32xf32, #tpu.memory_space<vmem>>, vector<6x24x8xf32>,
    %c0_54 = arith.constant 0 : index
    %c0_55 = arith.constant 0 : index
    %c16 = arith.constant 16 : index
    %87 = vector.load %arg16[%c0_54, %c0_55, %c16] : memref<6x24x96xf32, #tpu.memory_space<vmem>>, vector<6x24x8xf32>
    %c0_56 = arith.constant 0 : index
    %c0_57 = arith.constant 0 : index
    %c48 = arith.constant 48 : index
    %88 = vector.load %arg16[%c0_56, %c0_57, %c48] : memref<6x24x96xf32, #tpu.memory_space<vmem>>, vector<6x24x8xf32>
    %c0_58 = arith.constant 0 : index
    %c0_59 = arith.constant 0 : index
    %c80 = arith.constant 80 : index
    %89 = vector.load %arg16[%c0_58, %c0_59, %c80] : memref<6x24x96xf32, #tpu.memory_space<vmem>>, vector<6x24x8xf32>
    "tpu.trace_start"() <{level = 10 : i32, message = "bqd,bkd->bqk"}> : () -> ()
    %cst_60 = arith.constant dense<0.000000e+00> : vector<6x24x24xf32>
    %90 = tpu.matmul %87, %88, %cst_60 {dimension_numbers = #tpu.dot_dimension_numbers<[2], [2], [1], [1], [0, 0, 0, 1, 1, 1], [0], [0]>} : vector<6x24x8xf32>, vector<6x24x8xf32>, vector<6x24x24xf32> -> vector<6x24x24xf32>
    "tpu.trace_stop"() : () -> ()
    %cst_61 = arith.constant 0.353553385 : f32
    %91 = vector.broadcast %cst_61 : f32 to vector<6x24x24xf32>
    %92 = arith.mulf %90, %91 : vector<6x24x24xf32>
    %93 = vector.broadcast %8 : vector<1x1x24xf32> to vector<6x24x24xf32>
    %94 = arith.addf %92, %93 : vector<6x24x24xf32>
    %cst_62 = arith.constant dense<0xFF800000> : vector<6x24xf32>
    %95 = vector.multi_reduction <maximumf>, %94, %cst_62 [2] : vector<6x24x24xf32> to vector<6x24xf32>
    %96 = vector.shape_cast %95 : vector<6x24xf32> to vector<6x24x1xf32>
    %97 = vector.broadcast %96 : vector<6x24x1xf32> to vector<6x24x24xf32>
    %98 = arith.subf %94, %97 : vector<6x24x24xf32>
    %99 = math.exp %98 : vector<6x24x24xf32>
    %cst_63 = arith.constant dense<0.000000e+00> : vector<6x24xf32>
    %100 = vector.multi_reduction <add>, %99, %cst_63 [2] : vector<6x24x24xf32> to vector<6x24xf32>
    %101 = vector.shape_cast %100 : vector<6x24xf32> to vector<6x24x1xf32>
    %102 = tpu.reciprocal %101 {approx = true} : vector<6x24x1xf32> -> vector<6x24x1xf32>
    %103 = vector.broadcast %102 : vector<6x24x1xf32> to vector<6x24x24xf32>
    %104 = arith.mulf %99, %103 : vector<6x24x24xf32>
    "tpu.trace_start"() <{level = 10 : i32, message = "bqk,bkd->bqd"}> : () -> ()
    %cst_64 = arith.constant dense<0.000000e+00> : vector<6x24x8xf32>
    %105 = tpu.matmul %104, %89, %cst_64 {dimension_numbers = #tpu.dot_dimension_numbers<[2], [1], [1], [2], [0, 0, 0, 1, 1, 2], [0], [0]>} : vector<6x24x24xf32>, vector<6x24x8xf32>, vector<6x24x8xf32> -> vector<6x24x8xf32>
    "tpu.trace_stop"() : () -> ()
    %c0_65 = arith.constant 0 : index
    %c0_66 = arith.constant 0 : index
    %c16_67 = arith.constant 16 : index
    %106 = vector.load %arg17[%c0_65, %c0_66, %c16_67] : memref<6x24x32xf32, #tpu.memory_space<vmem>>, vector<6x24x8xf32>
    tpu.vector_store %arg17[%c0_65, %c0_66, %c16_67], %105 {strides = array<i32>} : memref<6x24x32xf32, #tpu.memory_space<vmem>>, vector<6x24x8xf32>,
    %c0_68 = arith.constant 0 : index
    %c0_69 = arith.constant 0 : index
    %c24 = arith.constant 24 : index
    %107 = vector.load %arg16[%c0_68, %c0_69, %c24] : memref<6x24x96xf32, #tpu.memory_space<vmem>>, vector<6x24x8xf32>
    %c0_70 = arith.constant 0 : index
    %c0_71 = arith.constant 0 : index
    %c56 = arith.constant 56 : index
    %108 = vector.load %arg16[%c0_70, %c0_71, %c56] : memref<6x24x96xf32, #tpu.memory_space<vmem>>, vector<6x24x8xf32>
    %c0_72 = arith.constant 0 : index
    %c0_73 = arith.constant 0 : index
    %c88 = arith.constant 88 : index
    %109 = vector.load %arg16[%c0_72, %c0_73, %c88] : memref<6x24x96xf32, #tpu.memory_space<vmem>>, vector<6x24x8xf32>
    "tpu.trace_start"() <{level = 10 : i32, message = "bqd,bkd->bqk"}> : () -> ()
    %cst_74 = arith.constant dense<0.000000e+00> : vector<6x24x24xf32>
    %110 = tpu.matmul %107, %108, %cst_74 {dimension_numbers = #tpu.dot_dimension_numbers<[2], [2], [1], [1], [0, 0, 0, 1, 1, 1], [0], [0]>} : vector<6x24x8xf32>, vector<6x24x8xf32>, vector<6x24x24xf32> -> vector<6x24x24xf32>
    "tpu.trace_stop"() : () -> ()
    %cst_75 = arith.constant 0.353553385 : f32
    %111 = vector.broadcast %cst_75 : f32 to vector<6x24x24xf32>
    %112 = arith.mulf %110, %111 : vector<6x24x24xf32>
    %113 = vector.broadcast %8 : vector<1x1x24xf32> to vector<6x24x24xf32>
    %114 = arith.addf %112, %113 : vector<6x24x24xf32>
    %cst_76 = arith.constant dense<0xFF800000> : vector<6x24xf32>
    %115 = vector.multi_reduction <maximumf>, %114, %cst_76 [2] : vector<6x24x24xf32> to vector<6x24xf32>
    %116 = vector.shape_cast %115 : vector<6x24xf32> to vector<6x24x1xf32>
    %117 = vector.broadcast %116 : vector<6x24x1xf32> to vector<6x24x24xf32>
    %118 = arith.subf %114, %117 : vector<6x24x24xf32>
    %119 = math.exp %118 : vector<6x24x24xf32>
    %cst_77 = arith.constant dense<0.000000e+00> : vector<6x24xf32>
    %120 = vector.multi_reduction <add>, %119, %cst_77 [2] : vector<6x24x24xf32> to vector<6x24xf32>
    %121 = vector.shape_cast %120 : vector<6x24xf32> to vector<6x24x1xf32>
    %122 = tpu.reciprocal %121 {approx = true} : vector<6x24x1xf32> -> vector<6x24x1xf32>
    %123 = vector.broadcast %122 : vector<6x24x1xf32> to vector<6x24x24xf32>
    %124 = arith.mulf %119, %123 : vector<6x24x24xf32>
    "tpu.trace_start"() <{level = 10 : i32, message = "bqk,bkd->bqd"}> : () -> ()
    %cst_78 = arith.constant dense<0.000000e+00> : vector<6x24x8xf32>
    %125 = tpu.matmul %124, %109, %cst_78 {dimension_numbers = #tpu.dot_dimension_numbers<[2], [1], [1], [2], [0, 0, 0, 1, 1, 2], [0], [0]>} : vector<6x24x24xf32>, vector<6x24x8xf32>, vector<6x24x8xf32> -> vector<6x24x8xf32>
    "tpu.trace_stop"() : () -> ()
    %c0_79 = arith.constant 0 : index
    %c0_80 = arith.constant 0 : index
    %c24_81 = arith.constant 24 : index
    %126 = vector.load %arg17[%c0_79, %c0_80, %c24_81] : memref<6x24x32xf32, #tpu.memory_space<vmem>>, vector<6x24x8xf32>
    tpu.vector_store %arg17[%c0_79, %c0_80, %c24_81], %125 {strides = array<i32>} : memref<6x24x32xf32, #tpu.memory_space<vmem>>, vector<6x24x8xf32>,
    %c0_82 = arith.constant 0 : index
    %c0_83 = arith.constant 0 : index
    %c0_84 = arith.constant 0 : index
    %127 = vector.load %arg17[%c0_82, %c0_83, %c0_84] : memref<6x24x32xf32, #tpu.memory_space<vmem>>, vector<6x24x32xf32>
    %128 = vector.shape_cast %127 : vector<6x24x32xf32> to vector<144x32xf32>
    %c0_85 = arith.constant 0 : index
    %c0_86 = arith.constant 0 : index
    %c0_87 = arith.constant 0 : index
    %129 = vector.load %arg7[%c0_85, %c0_86, %c0_87] : memref<1x32x32xbf16, #tpu.memory_space<vmem>>, vector<1x32x32xbf16>
    %130 = vector.shape_cast %129 : vector<1x32x32xbf16> to vector<32x32xbf16>
    %131 = arith.truncf %128 : vector<144x32xf32> to vector<144x32xbf16>
    %cst_88 = arith.constant dense<0.000000e+00> : vector<144x32xf32>
    %132 = tpu.matmul %131, %130, %cst_88 {dimension_numbers = #tpu.dot_dimension_numbers<[1], [0], [0], [1], [0, 0, 1, 1], [], []>} : vector<144x32xbf16>, vector<32x32xbf16>, vector<144x32xf32> -> vector<144x32xf32>
    %c0_89 = arith.constant 0 : index
    %c0_90 = arith.constant 0 : index
    %c0_91 = arith.constant 0 : index
    %133 = vector.load %arg8[%c0_89, %c0_90, %c0_91] : memref<1x1x32xf32, #tpu.memory_space<vmem>>, vector<1x1x32xf32>
    %134 = vector.shape_cast %133 : vector<1x1x32xf32> to vector<1x32xf32>
    %135 = vector.broadcast %134 : vector<1x32xf32> to vector<144x32xf32>
    %136 = arith.addf %132, %135 : vector<144x32xf32>
    %137 = arith.addf %10, %136 : vector<144x32xf32>
    %c0_92 = arith.constant 0 : index
    %c0_93 = arith.constant 0 : index
    %c0_94 = arith.constant 0 : index
    %138 = vector.load %arg15[%c0_92, %c0_93, %c0_94] : memref<1x144x32xf32, #tpu.memory_space<vmem>>, vector<1x144x32xf32>
    %139 = vector.shape_cast %138 : vector<1x144x32xf32> to vector<144x32xf32>
    %140 = vector.shape_cast %137 : vector<144x32xf32> to vector<1x144x32xf32>
    tpu.vector_store %arg15[%c0_92, %c0_93, %c0_94], %140 {strides = array<i32>} : memref<1x144x32xf32, #tpu.memory_space<vmem>>, vector<1x144x32xf32>,
    %c0_95 = arith.constant 0 : index
    %c0_96 = arith.constant 0 : index
    %c0_97 = arith.constant 0 : index
    %141 = vector.load %arg15[%c0_95, %c0_96, %c0_97] : memref<1x144x32xf32, #tpu.memory_space<vmem>>, vector<1x144x32xf32>
    %142 = vector.shape_cast %141 : vector<1x144x32xf32> to vector<144x32xf32>
    %c0_98 = arith.constant 0 : index
    %c0_99 = arith.constant 0 : index
    %c0_100 = arith.constant 0 : index
    %143 = vector.load %arg9[%c0_98, %c0_99, %c0_100] : memref<1x1x32xf32, #tpu.memory_space<vmem>>, vector<1x1x32xf32>
    %144 = vector.shape_cast %143 : vector<1x1x32xf32> to vector<1x32xf32>
    %c0_101 = arith.constant 0 : index
    %c0_102 = arith.constant 0 : index
    %c0_103 = arith.constant 0 : index
    %145 = vector.load %arg10[%c0_101, %c0_102, %c0_103] : memref<1x1x32xf32, #tpu.memory_space<vmem>>, vector<1x1x32xf32>
    %146 = vector.shape_cast %145 : vector<1x1x32xf32> to vector<1x32xf32>
    %cst_104 = arith.constant dense<0.000000e+00> : vector<144xf32>
    %147 = vector.multi_reduction <add>, %142, %cst_104 [1] : vector<144x32xf32> to vector<144xf32>
    %148 = vector.shape_cast %147 : vector<144xf32> to vector<144x1xf32>
    %cst_105 = arith.constant 3.200000e+01 : f32
    %149 = vector.broadcast %cst_105 : f32 to vector<144x1xf32>
    %150 = arith.divf %148, %149 : vector<144x1xf32>
    %151 = vector.broadcast %150 : vector<144x1xf32> to vector<144x32xf32>
    %152 = arith.subf %142, %151 : vector<144x32xf32>
    %153 = arith.mulf %152, %152 : vector<144x32xf32>
    %cst_106 = arith.constant dense<0.000000e+00> : vector<144xf32>
    %154 = vector.multi_reduction <add>, %153, %cst_106 [1] : vector<144x32xf32> to vector<144xf32>
    %155 = vector.shape_cast %154 : vector<144xf32> to vector<144x1xf32>
    %cst_107 = arith.constant 3.200000e+01 : f32
    %156 = vector.broadcast %cst_107 : f32 to vector<144x1xf32>
    %157 = arith.divf %155, %156 : vector<144x1xf32>
    %158 = vector.broadcast %150 : vector<144x1xf32> to vector<144x32xf32>
    %159 = arith.subf %142, %158 : vector<144x32xf32>
    %cst_108 = arith.constant 9.99999974E-6 : f32
    %160 = vector.broadcast %cst_108 : f32 to vector<144x1xf32>
    %161 = arith.addf %157, %160 : vector<144x1xf32>
    %162 = math.rsqrt %161 : vector<144x1xf32>
    %163 = vector.broadcast %162 : vector<144x1xf32> to vector<144x32xf32>
    %164 = arith.mulf %159, %163 : vector<144x32xf32>
    %165 = vector.broadcast %144 : vector<1x32xf32> to vector<144x32xf32>
    %166 = arith.mulf %164, %165 : vector<144x32xf32>
    %167 = vector.broadcast %146 : vector<1x32xf32> to vector<144x32xf32>
    %168 = arith.addf %166, %167 : vector<144x32xf32>
    %c0_109 = arith.constant 0 : index
    %c0_110 = arith.constant 0 : index
    %c0_111 = arith.constant 0 : index
    %169 = vector.load %arg11[%c0_109, %c0_110, %c0_111] : memref<1x32x128xbf16, #tpu.memory_space<vmem>>, vector<1x32x128xbf16>
    %170 = vector.shape_cast %169 : vector<1x32x128xbf16> to vector<32x128xbf16>
    %171 = arith.truncf %168 : vector<144x32xf32> to vector<144x32xbf16>
    %cst_112 = arith.constant dense<0.000000e+00> : vector<144x128xf32>
    %172 = tpu.matmul %171, %170, %cst_112 {dimension_numbers = #tpu.dot_dimension_numbers<[1], [0], [0], [1], [0, 0, 1, 1], [], []>} : vector<144x32xbf16>, vector<32x128xbf16>, vector<144x128xf32> -> vector<144x128xf32>
    %c0_113 = arith.constant 0 : index
    %c0_114 = arith.constant 0 : index
    %c0_115 = arith.constant 0 : index
    %173 = vector.load %arg12[%c0_113, %c0_114, %c0_115] : memref<1x1x128xf32, #tpu.memory_space<vmem>>, vector<1x1x128xf32>
    %174 = vector.shape_cast %173 : vector<1x1x128xf32> to vector<1x128xf32>
    %175 = vector.broadcast %174 : vector<1x128xf32> to vector<144x128xf32>
    %176 = arith.addf %172, %175 : vector<144x128xf32>
    %cst_116 = arith.constant 5.000000e-01 : f32
    %177 = vector.broadcast %cst_116 : f32 to vector<144x128xf32>
    %178 = arith.mulf %177, %176 : vector<144x128xf32>
    %cst_117 = arith.constant 0.707106769 : f32
    %179 = vector.broadcast %cst_117 : f32 to vector<144x128xf32>
    %180 = arith.mulf %176, %179 : vector<144x128xf32>
    %181 = math.absf %180 : vector<144x128xf32>
    %cst_118 = arith.constant 0.327591091 : f32
    %182 = vector.broadcast %cst_118 : f32 to vector<144x128xf32>
    %183 = arith.mulf %182, %181 : vector<144x128xf32>
    %cst_119 = arith.constant 1.000000e+00 : f32
    %184 = vector.broadcast %cst_119 : f32 to vector<144x128xf32>
    %185 = arith.addf %184, %183 : vector<144x128xf32>
    %cst_120 = arith.constant 1.000000e+00 : f32
    %186 = vector.broadcast %cst_120 : f32 to vector<144x128xf32>
    %187 = arith.divf %186, %185 : vector<144x128xf32>
    %cst_121 = arith.constant 1.06140542 : f32
    %188 = vector.broadcast %cst_121 : f32 to vector<144x128xf32>
    %189 = arith.mulf %188, %187 : vector<144x128xf32>
    %cst_122 = arith.constant -1.45315206 : f32
    %190 = vector.broadcast %cst_122 : f32 to vector<144x128xf32>
    %191 = arith.addf %189, %190 : vector<144x128xf32>
    %192 = arith.mulf %191, %187 : vector<144x128xf32>
    %cst_123 = arith.constant 1.42141378 : f32
    %193 = vector.broadcast %cst_123 : f32 to vector<144x128xf32>
    %194 = arith.addf %192, %193 : vector<144x128xf32>
    %195 = arith.mulf %194, %187 : vector<144x128xf32>
    %cst_124 = arith.constant -0.284496725 : f32
    %196 = vector.broadcast %cst_124 : f32 to vector<144x128xf32>
    %197 = arith.addf %195, %196 : vector<144x128xf32>
    %198 = arith.mulf %197, %187 : vector<144x128xf32>
    %cst_125 = arith.constant 0.254829586 : f32
    %199 = vector.broadcast %cst_125 : f32 to vector<144x128xf32>
    %200 = arith.addf %198, %199 : vector<144x128xf32>
    %201 = arith.mulf %200, %187 : vector<144x128xf32>
    %cst_126 = arith.constant 0.000000e+00 : f32
    %202 = vector.broadcast %cst_126 : f32 to vector<144x128xf32>
    %203 = arith.subf %202, %181 : vector<144x128xf32>
    %204 = arith.mulf %203, %181 : vector<144x128xf32>
    %205 = math.exp %204 : vector<144x128xf32>
    %206 = arith.mulf %201, %205 : vector<144x128xf32>
    %cst_127 = arith.constant 1.000000e+00 : f32
    %207 = vector.broadcast %cst_127 : f32 to vector<144x128xf32>
    %208 = arith.subf %207, %206 : vector<144x128xf32>
    %cst_128 = arith.constant 0.000000e+00 : f32
    %209 = vector.broadcast %cst_128 : f32 to vector<144x128xf32>
    %210 = arith.cmpf oge, %180, %209 : vector<144x128xf32>
    %cst_129 = arith.constant 0.000000e+00 : f32
    %211 = vector.broadcast %cst_129 : f32 to vector<144x128xf32>
    %212 = arith.subf %211, %208 : vector<144x128xf32>
    %213 = arith.select %210, %208, %212 : vector<144x128xi1>, vector<144x128xf32>
    %cst_130 = arith.constant 1.000000e+00 : f32
    %214 = vector.broadcast %cst_130 : f32 to vector<144x128xf32>
    %215 = arith.addf %214, %213 : vector<144x128xf32>
    %216 = arith.mulf %178, %215 : vector<144x128xf32>
    %c0_131 = arith.constant 0 : index
    %c0_132 = arith.constant 0 : index
    %c0_133 = arith.constant 0 : index
    %217 = vector.load %arg13[%c0_131, %c0_132, %c0_133] : memref<1x128x32xbf16, #tpu.memory_space<vmem>>, vector<1x128x32xbf16>
    %218 = vector.shape_cast %217 : vector<1x128x32xbf16> to vector<128x32xbf16>
    %219 = arith.truncf %216 : vector<144x128xf32> to vector<144x128xbf16>
    %cst_134 = arith.constant dense<0.000000e+00> : vector<144x32xf32>
    %220 = tpu.matmul %219, %218, %cst_134 {dimension_numbers = #tpu.dot_dimension_numbers<[1], [0], [0], [1], [0, 0, 1, 1], [], []>} : vector<144x128xbf16>, vector<128x32xbf16>, vector<144x32xf32> -> vector<144x32xf32>
    %c0_135 = arith.constant 0 : index
    %c0_136 = arith.constant 0 : index
    %c0_137 = arith.constant 0 : index
    %221 = vector.load %arg14[%c0_135, %c0_136, %c0_137] : memref<1x1x32xf32, #tpu.memory_space<vmem>>, vector<1x1x32xf32>
    %222 = vector.shape_cast %221 : vector<1x1x32xf32> to vector<1x32xf32>
    %223 = vector.broadcast %222 : vector<1x32xf32> to vector<144x32xf32>
    %224 = arith.addf %220, %223 : vector<144x32xf32>
    %225 = arith.addf %142, %224 : vector<144x32xf32>
    %c0_138 = arith.constant 0 : index
    %c0_139 = arith.constant 0 : index
    %c0_140 = arith.constant 0 : index
    %226 = vector.load %arg15[%c0_138, %c0_139, %c0_140] : memref<1x144x32xf32, #tpu.memory_space<vmem>>, vector<1x144x32xf32>
    %227 = vector.shape_cast %226 : vector<1x144x32xf32> to vector<144x32xf32>
    %228 = vector.shape_cast %225 : vector<144x32xf32> to vector<1x144x32xf32>
    tpu.vector_store %arg15[%c0_138, %c0_139, %c0_140], %228 {strides = array<i32>} : memref<1x144x32xf32, #tpu.memory_space<vmem>>, vector<1x144x32xf32>,
    return
  }
  func.func @transform_0(%arg0: i32, %arg1: i32) -> (i32, i32, i32) {
    %c0_i32 = arith.constant 0 : i32
    %c0_i32_0 = arith.constant 0 : i32
    %c0_i32_1 = arith.constant 0 : i32
    return %arg0, %c0_i32, %c0_i32_0 : i32, i32, i32
  }
  func.func @transform_1(%arg0: i32, %arg1: i32) -> (i32, i32, i32) {
    %c0_i32 = arith.constant 0 : i32
    %c0_i32_0 = arith.constant 0 : i32
    %c0_i32_1 = arith.constant 0 : i32
    return %arg1, %c0_i32, %c0_i32_0 : i32, i32, i32
  }
  func.func @transform_2(%arg0: i32, %arg1: i32) -> (i32, i32, i32) {
    %c0_i32 = arith.constant 0 : i32
    %c0_i32_0 = arith.constant 0 : i32
    %c0_i32_1 = arith.constant 0 : i32
    return %arg1, %c0_i32, %c0_i32_0 : i32, i32, i32
  }
  func.func @transform_3(%arg0: i32, %arg1: i32) -> (i32, i32, i32) {
    %c0_i32 = arith.constant 0 : i32
    %c0_i32_0 = arith.constant 0 : i32
    %c0_i32_1 = arith.constant 0 : i32
    return %arg1, %c0_i32, %c0_i32_0 : i32, i32, i32
  }
  func.func @transform_4(%arg0: i32, %arg1: i32) -> (i32, i32, i32) {
    %c0_i32 = arith.constant 0 : i32
    %c0_i32_0 = arith.constant 0 : i32
    %c0_i32_1 = arith.constant 0 : i32
    return %arg1, %c0_i32, %c0_i32_0 : i32, i32, i32
  }
  func.func @transform_5(%arg0: i32, %arg1: i32) -> (i32, i32, i32) {
    %c0_i32 = arith.constant 0 : i32
    %c0_i32_0 = arith.constant 0 : i32
    %c0_i32_1 = arith.constant 0 : i32
    return %arg1, %c0_i32, %c0_i32_0 : i32, i32, i32
  }
  func.func @transform_6(%arg0: i32, %arg1: i32) -> (i32, i32, i32) {
    %c0_i32 = arith.constant 0 : i32
    %c0_i32_0 = arith.constant 0 : i32
    %c0_i32_1 = arith.constant 0 : i32
    return %arg1, %c0_i32, %c0_i32_0 : i32, i32, i32
  }
  func.func @transform_7(%arg0: i32, %arg1: i32) -> (i32, i32, i32) {
    %c0_i32 = arith.constant 0 : i32
    %c0_i32_0 = arith.constant 0 : i32
    %c0_i32_1 = arith.constant 0 : i32
    return %arg1, %c0_i32, %c0_i32_0 : i32, i32, i32
  }
  func.func @transform_8(%arg0: i32, %arg1: i32) -> (i32, i32, i32) {
    %c0_i32 = arith.constant 0 : i32
    %c0_i32_0 = arith.constant 0 : i32
    %c0_i32_1 = arith.constant 0 : i32
    return %arg1, %c0_i32, %c0_i32_0 : i32, i32, i32
  }
  func.func @transform_9(%arg0: i32, %arg1: i32) -> (i32, i32, i32) {
    %c0_i32 = arith.constant 0 : i32
    %c0_i32_0 = arith.constant 0 : i32
    %c0_i32_1 = arith.constant 0 : i32
    return %arg1, %c0_i32, %c0_i32_0 : i32, i32, i32
  }
  func.func @transform_10(%arg0: i32, %arg1: i32) -> (i32, i32, i32) {
    %c0_i32 = arith.constant 0 : i32
    %c0_i32_0 = arith.constant 0 : i32
    %c0_i32_1 = arith.constant 0 : i32
    return %arg1, %c0_i32, %c0_i32_0 : i32, i32, i32
  }
  func.func @transform_11(%arg0: i32, %arg1: i32) -> (i32, i32, i32) {
    %c0_i32 = arith.constant 0 : i32
    %c0_i32_0 = arith.constant 0 : i32
    %c0_i32_1 = arith.constant 0 : i32
    return %arg1, %c0_i32, %c0_i32_0 : i32, i32, i32
  }
  func.func @transform_12(%arg0: i32, %arg1: i32) -> (i32, i32, i32) {
    %c0_i32 = arith.constant 0 : i32
    %c0_i32_0 = arith.constant 0 : i32
    %c0_i32_1 = arith.constant 0 : i32
    return %arg1, %c0_i32, %c0_i32_0 : i32, i32, i32
  }
  func.func @transform_13(%arg0: i32, %arg1: i32) -> (i32, i32, i32) {
    %c0_i32 = arith.constant 0 : i32
    %c0_i32_0 = arith.constant 0 : i32
    %c0_i32_1 = arith.constant 0 : i32
    return %arg0, %c0_i32, %c0_i32_0 : i32, i32, i32
  }
}

module attributes {stable_mosaic.version = 11 : i64} {
  func.func @_xattn_kernel(%arg0: i32, %arg1: memref<48x32xf32, #tpu.memory_space<vmem>>, %arg2: memref<1x48x32xf32, #tpu.memory_space<vmem>>, %arg3: memref<1x32x32xbf16, #tpu.memory_space<vmem>>, %arg4: memref<1x1x32xf32, #tpu.memory_space<vmem>>, %arg5: memref<1x32x32xbf16, #tpu.memory_space<vmem>>, %arg6: memref<1x1x32xf32, #tpu.memory_space<vmem>>, %arg7: memref<1x32x32xbf16, #tpu.memory_space<vmem>>, %arg8: memref<1x1x32xf32, #tpu.memory_space<vmem>>, %arg9: memref<1x32x32xbf16, #tpu.memory_space<vmem>>, %arg10: memref<1x1x32xf32, #tpu.memory_space<vmem>>, %arg11: memref<48x32xf32, #tpu.memory_space<vmem>>, %arg12: memref<2x24x96xf32, #tpu.memory_space<vmem>>, %arg13: memref<2x24x32xf32, #tpu.memory_space<vmem>>) attributes {dimension_semantics = [#tpu.dimension_semantics<arbitrary>], iteration_bounds = array<i64: 2>, scalar_prefetch = 0 : i64, scratch_operands = 2 : i64, tpu.core_type = #tpu.core_type<tc>, window_params = [{pipeline_mode = #tpu.pipeline_mode<synchronous>, transform_indices = @transform_0, window_bounds = array<i64: 48, 32>}, {transform_indices = @transform_1, window_bounds = array<i64: 1, 48, 32>}, {transform_indices = @transform_2, window_bounds = array<i64: 1, 32, 32>}, {transform_indices = @transform_3, window_bounds = array<i64: 1, 1, 32>}, {transform_indices = @transform_4, window_bounds = array<i64: 1, 32, 32>}, {transform_indices = @transform_5, window_bounds = array<i64: 1, 1, 32>}, {transform_indices = @transform_6, window_bounds = array<i64: 1, 32, 32>}, {transform_indices = @transform_7, window_bounds = array<i64: 1, 1, 32>}, {transform_indices = @transform_8, window_bounds = array<i64: 1, 32, 32>}, {transform_indices = @transform_9, window_bounds = array<i64: 1, 1, 32>}, {pipeline_mode = #tpu.pipeline_mode<synchronous>, transform_indices = @transform_10, window_bounds = array<i64: 48, 32>}]} {
    %0 = tpu.iota {dimensions = array<i32: 2>} : vector<1x1x24xi32>
    %c17_i32 = arith.constant 17 : i32
    %1 = vector.broadcast %c17_i32 : i32 to vector<1x1x24xi32>
    %2 = arith.cmpi slt, %0, %1 : vector<1x1x24xi32>
    %cst = arith.constant 0.000000e+00 : f32
    %cst_0 = arith.constant -1.000000e+30 : f32
    %3 = vector.broadcast %cst : f32 to vector<1x1x24xf32>
    %4 = vector.broadcast %cst_0 : f32 to vector<1x1x24xf32>
    %5 = arith.select %2, %3, %4 : vector<1x1x24xi1>, vector<1x1x24xf32>
    %c0_i32 = arith.constant 0 : i32
    %6 = arith.cmpi eq, %arg0, %c0_i32 : i32
    %7 = arith.extui %6 : i1 to i32
    %c0_i32_1 = arith.constant 0 : i32
    %8 = arith.cmpi ne, %7, %c0_i32_1 : i32
    scf.if %8 {
      %cst_107 = arith.constant 0.000000e+00 : f32
      %135 = vector.broadcast %cst_107 : f32 to vector<48x32xf32>
      %c0_108 = arith.constant 0 : index
      %c0_109 = arith.constant 0 : index
      %136 = vector.load %arg11[%c0_108, %c0_109] : memref<48x32xf32, #tpu.memory_space<vmem>>, vector<48x32xf32>
      tpu.vector_store %arg11[%c0_108, %c0_109], %135 {strides = array<i32>} : memref<48x32xf32, #tpu.memory_space<vmem>>, vector<48x32xf32>,
    } else {
    }
    %c0 = arith.constant 0 : index
    %c0_2 = arith.constant 0 : index
    %9 = vector.load %arg1[%c0, %c0_2] : memref<48x32xf32, #tpu.memory_space<vmem>>, vector<48x32xf32>
    %c0_3 = arith.constant 0 : index
    %c0_4 = arith.constant 0 : index
    %c0_5 = arith.constant 0 : index
    %10 = vector.load %arg2[%c0_3, %c0_4, %c0_5] : memref<1x48x32xf32, #tpu.memory_space<vmem>>, vector<1x48x32xf32>
    %11 = vector.shape_cast %10 : vector<1x48x32xf32> to vector<48x32xf32>
    %c0_6 = arith.constant 0 : index
    %c0_7 = arith.constant 0 : index
    %c0_8 = arith.constant 0 : index
    %12 = vector.load %arg3[%c0_6, %c0_7, %c0_8] : memref<1x32x32xbf16, #tpu.memory_space<vmem>>, vector<1x32x32xbf16>
    %13 = vector.shape_cast %12 : vector<1x32x32xbf16> to vector<32x32xbf16>
    %14 = arith.truncf %9 : vector<48x32xf32> to vector<48x32xbf16>
    %cst_9 = arith.constant dense<0.000000e+00> : vector<48x32xf32>
    %15 = tpu.matmul %14, %13, %cst_9 {dimension_numbers = #tpu.dot_dimension_numbers<[1], [0], [0], [1], [0, 0, 1, 1], [], []>} : vector<48x32xbf16>, vector<32x32xbf16>, vector<48x32xf32> -> vector<48x32xf32>
    %c0_10 = arith.constant 0 : index
    %c0_11 = arith.constant 0 : index
    %c0_12 = arith.constant 0 : index
    %16 = vector.load %arg4[%c0_10, %c0_11, %c0_12] : memref<1x1x32xf32, #tpu.memory_space<vmem>>, vector<1x1x32xf32>
    %17 = vector.shape_cast %16 : vector<1x1x32xf32> to vector<1x32xf32>
    %18 = vector.broadcast %17 : vector<1x32xf32> to vector<48x32xf32>
    %19 = arith.addf %15, %18 : vector<48x32xf32>
    %20 = vector.shape_cast %19 : vector<48x32xf32> to vector<2x24x32xf32>
    %c0_13 = arith.constant 0 : index
    %c0_14 = arith.constant 0 : index
    %c0_15 = arith.constant 0 : index
    %21 = vector.load %arg12[%c0_13, %c0_14, %c0_15] : memref<2x24x96xf32, #tpu.memory_space<vmem>>, vector<2x24x32xf32>
    tpu.vector_store %arg12[%c0_13, %c0_14, %c0_15], %20 {strides = array<i32>} : memref<2x24x96xf32, #tpu.memory_space<vmem>>, vector<2x24x32xf32>,
    %c0_16 = arith.constant 0 : index
    %c0_17 = arith.constant 0 : index
    %c0_18 = arith.constant 0 : index
    %22 = vector.load %arg5[%c0_16, %c0_17, %c0_18] : memref<1x32x32xbf16, #tpu.memory_space<vmem>>, vector<1x32x32xbf16>
    %23 = vector.shape_cast %22 : vector<1x32x32xbf16> to vector<32x32xbf16>
    %24 = arith.truncf %11 : vector<48x32xf32> to vector<48x32xbf16>
    %cst_19 = arith.constant dense<0.000000e+00> : vector<48x32xf32>
    %25 = tpu.matmul %24, %23, %cst_19 {dimension_numbers = #tpu.dot_dimension_numbers<[1], [0], [0], [1], [0, 0, 1, 1], [], []>} : vector<48x32xbf16>, vector<32x32xbf16>, vector<48x32xf32> -> vector<48x32xf32>
    %c0_20 = arith.constant 0 : index
    %c0_21 = arith.constant 0 : index
    %c0_22 = arith.constant 0 : index
    %26 = vector.load %arg6[%c0_20, %c0_21, %c0_22] : memref<1x1x32xf32, #tpu.memory_space<vmem>>, vector<1x1x32xf32>
    %27 = vector.shape_cast %26 : vector<1x1x32xf32> to vector<1x32xf32>
    %28 = vector.broadcast %27 : vector<1x32xf32> to vector<48x32xf32>
    %29 = arith.addf %25, %28 : vector<48x32xf32>
    %30 = vector.shape_cast %29 : vector<48x32xf32> to vector<2x24x32xf32>
    %c0_23 = arith.constant 0 : index
    %c0_24 = arith.constant 0 : index
    %c32 = arith.constant 32 : index
    %31 = vector.load %arg12[%c0_23, %c0_24, %c32] : memref<2x24x96xf32, #tpu.memory_space<vmem>>, vector<2x24x32xf32>
    tpu.vector_store %arg12[%c0_23, %c0_24, %c32], %30 {strides = array<i32>} : memref<2x24x96xf32, #tpu.memory_space<vmem>>, vector<2x24x32xf32>,
    %c0_25 = arith.constant 0 : index
    %c0_26 = arith.constant 0 : index
    %c0_27 = arith.constant 0 : index
    %32 = vector.load %arg7[%c0_25, %c0_26, %c0_27] : memref<1x32x32xbf16, #tpu.memory_space<vmem>>, vector<1x32x32xbf16>
    %33 = vector.shape_cast %32 : vector<1x32x32xbf16> to vector<32x32xbf16>
    %34 = arith.truncf %11 : vector<48x32xf32> to vector<48x32xbf16>
    %cst_28 = arith.constant dense<0.000000e+00> : vector<48x32xf32>
    %35 = tpu.matmul %34, %33, %cst_28 {dimension_numbers = #tpu.dot_dimension_numbers<[1], [0], [0], [1], [0, 0, 1, 1], [], []>} : vector<48x32xbf16>, vector<32x32xbf16>, vector<48x32xf32> -> vector<48x32xf32>
    %c0_29 = arith.constant 0 : index
    %c0_30 = arith.constant 0 : index
    %c0_31 = arith.constant 0 : index
    %36 = vector.load %arg8[%c0_29, %c0_30, %c0_31] : memref<1x1x32xf32, #tpu.memory_space<vmem>>, vector<1x1x32xf32>
    %37 = vector.shape_cast %36 : vector<1x1x32xf32> to vector<1x32xf32>
    %38 = vector.broadcast %37 : vector<1x32xf32> to vector<48x32xf32>
    %39 = arith.addf %35, %38 : vector<48x32xf32>
    %40 = vector.shape_cast %39 : vector<48x32xf32> to vector<2x24x32xf32>
    %c0_32 = arith.constant 0 : index
    %c0_33 = arith.constant 0 : index
    %c64 = arith.constant 64 : index
    %41 = vector.load %arg12[%c0_32, %c0_33, %c64] : memref<2x24x96xf32, #tpu.memory_space<vmem>>, vector<2x24x32xf32>
    tpu.vector_store %arg12[%c0_32, %c0_33, %c64], %40 {strides = array<i32>} : memref<2x24x96xf32, #tpu.memory_space<vmem>>, vector<2x24x32xf32>,
    %c0_34 = arith.constant 0 : index
    %c0_35 = arith.constant 0 : index
    %c0_36 = arith.constant 0 : index
    %42 = vector.load %arg12[%c0_34, %c0_35, %c0_36] : memref<2x24x96xf32, #tpu.memory_space<vmem>>, vector<2x24x8xf32>
    %c0_37 = arith.constant 0 : index
    %c0_38 = arith.constant 0 : index
    %c32_39 = arith.constant 32 : index
    %43 = vector.load %arg12[%c0_37, %c0_38, %c32_39] : memref<2x24x96xf32, #tpu.memory_space<vmem>>, vector<2x24x8xf32>
    %c0_40 = arith.constant 0 : index
    %c0_41 = arith.constant 0 : index
    %c64_42 = arith.constant 64 : index
    %44 = vector.load %arg12[%c0_40, %c0_41, %c64_42] : memref<2x24x96xf32, #tpu.memory_space<vmem>>, vector<2x24x8xf32>
    "tpu.trace_start"() <{level = 10 : i32, message = "bqd,bkd->bqk"}> : () -> ()
    %cst_43 = arith.constant dense<0.000000e+00> : vector<2x24x24xf32>
    %45 = tpu.matmul %42, %43, %cst_43 {dimension_numbers = #tpu.dot_dimension_numbers<[2], [2], [1], [1], [0, 0, 0, 1, 1, 1], [0], [0]>} : vector<2x24x8xf32>, vector<2x24x8xf32>, vector<2x24x24xf32> -> vector<2x24x24xf32>
    "tpu.trace_stop"() : () -> ()
    %cst_44 = arith.constant 0.353553385 : f32
    %46 = vector.broadcast %cst_44 : f32 to vector<2x24x24xf32>
    %47 = arith.mulf %45, %46 : vector<2x24x24xf32>
    %48 = vector.broadcast %5 : vector<1x1x24xf32> to vector<2x24x24xf32>
    %49 = arith.addf %47, %48 : vector<2x24x24xf32>
    %cst_45 = arith.constant dense<0xFF800000> : vector<2x24xf32>
    %50 = vector.multi_reduction <maximumf>, %49, %cst_45 [2] : vector<2x24x24xf32> to vector<2x24xf32>
    %51 = vector.shape_cast %50 : vector<2x24xf32> to vector<2x24x1xf32>
    %52 = vector.broadcast %51 : vector<2x24x1xf32> to vector<2x24x24xf32>
    %53 = arith.subf %49, %52 : vector<2x24x24xf32>
    %54 = math.exp %53 : vector<2x24x24xf32>
    %cst_46 = arith.constant dense<0.000000e+00> : vector<2x24xf32>
    %55 = vector.multi_reduction <add>, %54, %cst_46 [2] : vector<2x24x24xf32> to vector<2x24xf32>
    %56 = vector.shape_cast %55 : vector<2x24xf32> to vector<2x24x1xf32>
    %57 = tpu.reciprocal %56 {approx = true} : vector<2x24x1xf32> -> vector<2x24x1xf32>
    %58 = vector.broadcast %57 : vector<2x24x1xf32> to vector<2x24x24xf32>
    %59 = arith.mulf %54, %58 : vector<2x24x24xf32>
    "tpu.trace_start"() <{level = 10 : i32, message = "bqk,bkd->bqd"}> : () -> ()
    %cst_47 = arith.constant dense<0.000000e+00> : vector<2x24x8xf32>
    %60 = tpu.matmul %59, %44, %cst_47 {dimension_numbers = #tpu.dot_dimension_numbers<[2], [1], [1], [2], [0, 0, 0, 1, 1, 2], [0], [0]>} : vector<2x24x24xf32>, vector<2x24x8xf32>, vector<2x24x8xf32> -> vector<2x24x8xf32>
    "tpu.trace_stop"() : () -> ()
    %c0_48 = arith.constant 0 : index
    %c0_49 = arith.constant 0 : index
    %c0_50 = arith.constant 0 : index
    %61 = vector.load %arg13[%c0_48, %c0_49, %c0_50] : memref<2x24x32xf32, #tpu.memory_space<vmem>>, vector<2x24x8xf32>
    tpu.vector_store %arg13[%c0_48, %c0_49, %c0_50], %60 {strides = array<i32>} : memref<2x24x32xf32, #tpu.memory_space<vmem>>, vector<2x24x8xf32>,
    %c0_51 = arith.constant 0 : index
    %c0_52 = arith.constant 0 : index
    %c8 = arith.constant 8 : index
    %62 = vector.load %arg12[%c0_51, %c0_52, %c8] : memref<2x24x96xf32, #tpu.memory_space<vmem>>, vector<2x24x8xf32>
    %c0_53 = arith.constant 0 : index
    %c0_54 = arith.constant 0 : index
    %c40 = arith.constant 40 : index
    %63 = vector.load %arg12[%c0_53, %c0_54, %c40] : memref<2x24x96xf32, #tpu.memory_space<vmem>>, vector<2x24x8xf32>
    %c0_55 = arith.constant 0 : index
    %c0_56 = arith.constant 0 : index
    %c72 = arith.constant 72 : index
    %64 = vector.load %arg12[%c0_55, %c0_56, %c72] : memref<2x24x96xf32, #tpu.memory_space<vmem>>, vector<2x24x8xf32>
    "tpu.trace_start"() <{level = 10 : i32, message = "bqd,bkd->bqk"}> : () -> ()
    %cst_57 = arith.constant dense<0.000000e+00> : vector<2x24x24xf32>
    %65 = tpu.matmul %62, %63, %cst_57 {dimension_numbers = #tpu.dot_dimension_numbers<[2], [2], [1], [1], [0, 0, 0, 1, 1, 1], [0], [0]>} : vector<2x24x8xf32>, vector<2x24x8xf32>, vector<2x24x24xf32> -> vector<2x24x24xf32>
    "tpu.trace_stop"() : () -> ()
    %cst_58 = arith.constant 0.353553385 : f32
    %66 = vector.broadcast %cst_58 : f32 to vector<2x24x24xf32>
    %67 = arith.mulf %65, %66 : vector<2x24x24xf32>
    %68 = vector.broadcast %5 : vector<1x1x24xf32> to vector<2x24x24xf32>
    %69 = arith.addf %67, %68 : vector<2x24x24xf32>
    %cst_59 = arith.constant dense<0xFF800000> : vector<2x24xf32>
    %70 = vector.multi_reduction <maximumf>, %69, %cst_59 [2] : vector<2x24x24xf32> to vector<2x24xf32>
    %71 = vector.shape_cast %70 : vector<2x24xf32> to vector<2x24x1xf32>
    %72 = vector.broadcast %71 : vector<2x24x1xf32> to vector<2x24x24xf32>
    %73 = arith.subf %69, %72 : vector<2x24x24xf32>
    %74 = math.exp %73 : vector<2x24x24xf32>
    %cst_60 = arith.constant dense<0.000000e+00> : vector<2x24xf32>
    %75 = vector.multi_reduction <add>, %74, %cst_60 [2] : vector<2x24x24xf32> to vector<2x24xf32>
    %76 = vector.shape_cast %75 : vector<2x24xf32> to vector<2x24x1xf32>
    %77 = tpu.reciprocal %76 {approx = true} : vector<2x24x1xf32> -> vector<2x24x1xf32>
    %78 = vector.broadcast %77 : vector<2x24x1xf32> to vector<2x24x24xf32>
    %79 = arith.mulf %74, %78 : vector<2x24x24xf32>
    "tpu.trace_start"() <{level = 10 : i32, message = "bqk,bkd->bqd"}> : () -> ()
    %cst_61 = arith.constant dense<0.000000e+00> : vector<2x24x8xf32>
    %80 = tpu.matmul %79, %64, %cst_61 {dimension_numbers = #tpu.dot_dimension_numbers<[2], [1], [1], [2], [0, 0, 0, 1, 1, 2], [0], [0]>} : vector<2x24x24xf32>, vector<2x24x8xf32>, vector<2x24x8xf32> -> vector<2x24x8xf32>
    "tpu.trace_stop"() : () -> ()
    %c0_62 = arith.constant 0 : index
    %c0_63 = arith.constant 0 : index
    %c8_64 = arith.constant 8 : index
    %81 = vector.load %arg13[%c0_62, %c0_63, %c8_64] : memref<2x24x32xf32, #tpu.memory_space<vmem>>, vector<2x24x8xf32>
    tpu.vector_store %arg13[%c0_62, %c0_63, %c8_64], %80 {strides = array<i32>} : memref<2x24x32xf32, #tpu.memory_space<vmem>>, vector<2x24x8xf32>,
    %c0_65 = arith.constant 0 : index
    %c0_66 = arith.constant 0 : index
    %c16 = arith.constant 16 : index
    %82 = vector.load %arg12[%c0_65, %c0_66, %c16] : memref<2x24x96xf32, #tpu.memory_space<vmem>>, vector<2x24x8xf32>
    %c0_67 = arith.constant 0 : index
    %c0_68 = arith.constant 0 : index
    %c48 = arith.constant 48 : index
    %83 = vector.load %arg12[%c0_67, %c0_68, %c48] : memref<2x24x96xf32, #tpu.memory_space<vmem>>, vector<2x24x8xf32>
    %c0_69 = arith.constant 0 : index
    %c0_70 = arith.constant 0 : index
    %c80 = arith.constant 80 : index
    %84 = vector.load %arg12[%c0_69, %c0_70, %c80] : memref<2x24x96xf32, #tpu.memory_space<vmem>>, vector<2x24x8xf32>
    "tpu.trace_start"() <{level = 10 : i32, message = "bqd,bkd->bqk"}> : () -> ()
    %cst_71 = arith.constant dense<0.000000e+00> : vector<2x24x24xf32>
    %85 = tpu.matmul %82, %83, %cst_71 {dimension_numbers = #tpu.dot_dimension_numbers<[2], [2], [1], [1], [0, 0, 0, 1, 1, 1], [0], [0]>} : vector<2x24x8xf32>, vector<2x24x8xf32>, vector<2x24x24xf32> -> vector<2x24x24xf32>
    "tpu.trace_stop"() : () -> ()
    %cst_72 = arith.constant 0.353553385 : f32
    %86 = vector.broadcast %cst_72 : f32 to vector<2x24x24xf32>
    %87 = arith.mulf %85, %86 : vector<2x24x24xf32>
    %88 = vector.broadcast %5 : vector<1x1x24xf32> to vector<2x24x24xf32>
    %89 = arith.addf %87, %88 : vector<2x24x24xf32>
    %cst_73 = arith.constant dense<0xFF800000> : vector<2x24xf32>
    %90 = vector.multi_reduction <maximumf>, %89, %cst_73 [2] : vector<2x24x24xf32> to vector<2x24xf32>
    %91 = vector.shape_cast %90 : vector<2x24xf32> to vector<2x24x1xf32>
    %92 = vector.broadcast %91 : vector<2x24x1xf32> to vector<2x24x24xf32>
    %93 = arith.subf %89, %92 : vector<2x24x24xf32>
    %94 = math.exp %93 : vector<2x24x24xf32>
    %cst_74 = arith.constant dense<0.000000e+00> : vector<2x24xf32>
    %95 = vector.multi_reduction <add>, %94, %cst_74 [2] : vector<2x24x24xf32> to vector<2x24xf32>
    %96 = vector.shape_cast %95 : vector<2x24xf32> to vector<2x24x1xf32>
    %97 = tpu.reciprocal %96 {approx = true} : vector<2x24x1xf32> -> vector<2x24x1xf32>
    %98 = vector.broadcast %97 : vector<2x24x1xf32> to vector<2x24x24xf32>
    %99 = arith.mulf %94, %98 : vector<2x24x24xf32>
    "tpu.trace_start"() <{level = 10 : i32, message = "bqk,bkd->bqd"}> : () -> ()
    %cst_75 = arith.constant dense<0.000000e+00> : vector<2x24x8xf32>
    %100 = tpu.matmul %99, %84, %cst_75 {dimension_numbers = #tpu.dot_dimension_numbers<[2], [1], [1], [2], [0, 0, 0, 1, 1, 2], [0], [0]>} : vector<2x24x24xf32>, vector<2x24x8xf32>, vector<2x24x8xf32> -> vector<2x24x8xf32>
    "tpu.trace_stop"() : () -> ()
    %c0_76 = arith.constant 0 : index
    %c0_77 = arith.constant 0 : index
    %c16_78 = arith.constant 16 : index
    %101 = vector.load %arg13[%c0_76, %c0_77, %c16_78] : memref<2x24x32xf32, #tpu.memory_space<vmem>>, vector<2x24x8xf32>
    tpu.vector_store %arg13[%c0_76, %c0_77, %c16_78], %100 {strides = array<i32>} : memref<2x24x32xf32, #tpu.memory_space<vmem>>, vector<2x24x8xf32>,
    %c0_79 = arith.constant 0 : index
    %c0_80 = arith.constant 0 : index
    %c24 = arith.constant 24 : index
    %102 = vector.load %arg12[%c0_79, %c0_80, %c24] : memref<2x24x96xf32, #tpu.memory_space<vmem>>, vector<2x24x8xf32>
    %c0_81 = arith.constant 0 : index
    %c0_82 = arith.constant 0 : index
    %c56 = arith.constant 56 : index
    %103 = vector.load %arg12[%c0_81, %c0_82, %c56] : memref<2x24x96xf32, #tpu.memory_space<vmem>>, vector<2x24x8xf32>
    %c0_83 = arith.constant 0 : index
    %c0_84 = arith.constant 0 : index
    %c88 = arith.constant 88 : index
    %104 = vector.load %arg12[%c0_83, %c0_84, %c88] : memref<2x24x96xf32, #tpu.memory_space<vmem>>, vector<2x24x8xf32>
    "tpu.trace_start"() <{level = 10 : i32, message = "bqd,bkd->bqk"}> : () -> ()
    %cst_85 = arith.constant dense<0.000000e+00> : vector<2x24x24xf32>
    %105 = tpu.matmul %102, %103, %cst_85 {dimension_numbers = #tpu.dot_dimension_numbers<[2], [2], [1], [1], [0, 0, 0, 1, 1, 1], [0], [0]>} : vector<2x24x8xf32>, vector<2x24x8xf32>, vector<2x24x24xf32> -> vector<2x24x24xf32>
    "tpu.trace_stop"() : () -> ()
    %cst_86 = arith.constant 0.353553385 : f32
    %106 = vector.broadcast %cst_86 : f32 to vector<2x24x24xf32>
    %107 = arith.mulf %105, %106 : vector<2x24x24xf32>
    %108 = vector.broadcast %5 : vector<1x1x24xf32> to vector<2x24x24xf32>
    %109 = arith.addf %107, %108 : vector<2x24x24xf32>
    %cst_87 = arith.constant dense<0xFF800000> : vector<2x24xf32>
    %110 = vector.multi_reduction <maximumf>, %109, %cst_87 [2] : vector<2x24x24xf32> to vector<2x24xf32>
    %111 = vector.shape_cast %110 : vector<2x24xf32> to vector<2x24x1xf32>
    %112 = vector.broadcast %111 : vector<2x24x1xf32> to vector<2x24x24xf32>
    %113 = arith.subf %109, %112 : vector<2x24x24xf32>
    %114 = math.exp %113 : vector<2x24x24xf32>
    %cst_88 = arith.constant dense<0.000000e+00> : vector<2x24xf32>
    %115 = vector.multi_reduction <add>, %114, %cst_88 [2] : vector<2x24x24xf32> to vector<2x24xf32>
    %116 = vector.shape_cast %115 : vector<2x24xf32> to vector<2x24x1xf32>
    %117 = tpu.reciprocal %116 {approx = true} : vector<2x24x1xf32> -> vector<2x24x1xf32>
    %118 = vector.broadcast %117 : vector<2x24x1xf32> to vector<2x24x24xf32>
    %119 = arith.mulf %114, %118 : vector<2x24x24xf32>
    "tpu.trace_start"() <{level = 10 : i32, message = "bqk,bkd->bqd"}> : () -> ()
    %cst_89 = arith.constant dense<0.000000e+00> : vector<2x24x8xf32>
    %120 = tpu.matmul %119, %104, %cst_89 {dimension_numbers = #tpu.dot_dimension_numbers<[2], [1], [1], [2], [0, 0, 0, 1, 1, 2], [0], [0]>} : vector<2x24x24xf32>, vector<2x24x8xf32>, vector<2x24x8xf32> -> vector<2x24x8xf32>
    "tpu.trace_stop"() : () -> ()
    %c0_90 = arith.constant 0 : index
    %c0_91 = arith.constant 0 : index
    %c24_92 = arith.constant 24 : index
    %121 = vector.load %arg13[%c0_90, %c0_91, %c24_92] : memref<2x24x32xf32, #tpu.memory_space<vmem>>, vector<2x24x8xf32>
    tpu.vector_store %arg13[%c0_90, %c0_91, %c24_92], %120 {strides = array<i32>} : memref<2x24x32xf32, #tpu.memory_space<vmem>>, vector<2x24x8xf32>,
    %c0_93 = arith.constant 0 : index
    %c0_94 = arith.constant 0 : index
    %122 = vector.load %arg11[%c0_93, %c0_94] : memref<48x32xf32, #tpu.memory_space<vmem>>, vector<48x32xf32>
    %c0_95 = arith.constant 0 : index
    %c0_96 = arith.constant 0 : index
    %c0_97 = arith.constant 0 : index
    %123 = vector.load %arg13[%c0_95, %c0_96, %c0_97] : memref<2x24x32xf32, #tpu.memory_space<vmem>>, vector<2x24x32xf32>
    %124 = vector.shape_cast %123 : vector<2x24x32xf32> to vector<48x32xf32>
    %c0_98 = arith.constant 0 : index
    %c0_99 = arith.constant 0 : index
    %c0_100 = arith.constant 0 : index
    %125 = vector.load %arg9[%c0_98, %c0_99, %c0_100] : memref<1x32x32xbf16, #tpu.memory_space<vmem>>, vector<1x32x32xbf16>
    %126 = vector.shape_cast %125 : vector<1x32x32xbf16> to vector<32x32xbf16>
    %127 = arith.truncf %124 : vector<48x32xf32> to vector<48x32xbf16>
    %cst_101 = arith.constant dense<0.000000e+00> : vector<48x32xf32>
    %128 = tpu.matmul %127, %126, %cst_101 {dimension_numbers = #tpu.dot_dimension_numbers<[1], [0], [0], [1], [0, 0, 1, 1], [], []>} : vector<48x32xbf16>, vector<32x32xbf16>, vector<48x32xf32> -> vector<48x32xf32>
    %c0_102 = arith.constant 0 : index
    %c0_103 = arith.constant 0 : index
    %c0_104 = arith.constant 0 : index
    %129 = vector.load %arg10[%c0_102, %c0_103, %c0_104] : memref<1x1x32xf32, #tpu.memory_space<vmem>>, vector<1x1x32xf32>
    %130 = vector.shape_cast %129 : vector<1x1x32xf32> to vector<1x32xf32>
    %131 = vector.broadcast %130 : vector<1x32xf32> to vector<48x32xf32>
    %132 = arith.addf %128, %131 : vector<48x32xf32>
    %133 = arith.addf %122, %132 : vector<48x32xf32>
    %c0_105 = arith.constant 0 : index
    %c0_106 = arith.constant 0 : index
    %134 = vector.load %arg11[%c0_105, %c0_106] : memref<48x32xf32, #tpu.memory_space<vmem>>, vector<48x32xf32>
    tpu.vector_store %arg11[%c0_105, %c0_106], %133 {strides = array<i32>} : memref<48x32xf32, #tpu.memory_space<vmem>>, vector<48x32xf32>,
    return
  }
  func.func @transform_0(%arg0: i32) -> (i32, i32) {
    %c0_i32 = arith.constant 0 : i32
    %c0_i32_0 = arith.constant 0 : i32
    %c0_i32_1 = arith.constant 0 : i32
    return %c0_i32, %c0_i32_0 : i32, i32
  }
  func.func @transform_1(%arg0: i32) -> (i32, i32, i32) {
    %c0_i32 = arith.constant 0 : i32
    %c0_i32_0 = arith.constant 0 : i32
    %c0_i32_1 = arith.constant 0 : i32
    return %arg0, %c0_i32, %c0_i32_0 : i32, i32, i32
  }
  func.func @transform_2(%arg0: i32) -> (i32, i32, i32) {
    %c0_i32 = arith.constant 0 : i32
    %c0_i32_0 = arith.constant 0 : i32
    %c0_i32_1 = arith.constant 0 : i32
    return %arg0, %c0_i32, %c0_i32_0 : i32, i32, i32
  }
  func.func @transform_3(%arg0: i32) -> (i32, i32, i32) {
    %c0_i32 = arith.constant 0 : i32
    %c0_i32_0 = arith.constant 0 : i32
    %c0_i32_1 = arith.constant 0 : i32
    return %arg0, %c0_i32, %c0_i32_0 : i32, i32, i32
  }
  func.func @transform_4(%arg0: i32) -> (i32, i32, i32) {
    %c0_i32 = arith.constant 0 : i32
    %c0_i32_0 = arith.constant 0 : i32
    %c0_i32_1 = arith.constant 0 : i32
    return %arg0, %c0_i32, %c0_i32_0 : i32, i32, i32
  }
  func.func @transform_5(%arg0: i32) -> (i32, i32, i32) {
    %c0_i32 = arith.constant 0 : i32
    %c0_i32_0 = arith.constant 0 : i32
    %c0_i32_1 = arith.constant 0 : i32
    return %arg0, %c0_i32, %c0_i32_0 : i32, i32, i32
  }
  func.func @transform_6(%arg0: i32) -> (i32, i32, i32) {
    %c0_i32 = arith.constant 0 : i32
    %c0_i32_0 = arith.constant 0 : i32
    %c0_i32_1 = arith.constant 0 : i32
    return %arg0, %c0_i32, %c0_i32_0 : i32, i32, i32
  }
  func.func @transform_7(%arg0: i32) -> (i32, i32, i32) {
    %c0_i32 = arith.constant 0 : i32
    %c0_i32_0 = arith.constant 0 : i32
    %c0_i32_1 = arith.constant 0 : i32
    return %arg0, %c0_i32, %c0_i32_0 : i32, i32, i32
  }
  func.func @transform_8(%arg0: i32) -> (i32, i32, i32) {
    %c0_i32 = arith.constant 0 : i32
    %c0_i32_0 = arith.constant 0 : i32
    %c0_i32_1 = arith.constant 0 : i32
    return %arg0, %c0_i32, %c0_i32_0 : i32, i32, i32
  }
  func.func @transform_9(%arg0: i32) -> (i32, i32, i32) {
    %c0_i32 = arith.constant 0 : i32
    %c0_i32_0 = arith.constant 0 : i32
    %c0_i32_1 = arith.constant 0 : i32
    return %arg0, %c0_i32, %c0_i32_0 : i32, i32, i32
  }
  func.func @transform_10(%arg0: i32) -> (i32, i32) {
    %c0_i32 = arith.constant 0 : i32
    %c0_i32_0 = arith.constant 0 : i32
    %c0_i32_1 = arith.constant 0 : i32
    return %c0_i32, %c0_i32_0 : i32, i32
  }
}

</mosaic_0001>

<bundles_post_ra>
// kernel: tcait_extractor_forward.3
= control target key start
LH: loop header
LB: loop body
LE: loop exit
PB: predicated region body
PF: predicated region fallthrough
CT: control target
= control target key end

     0   :  { %vm88_vm0 = vcmask 392192   ;;  %vm188_vm1 = vcmask 261120   ;;  %s367_s1 = inlined_call_operand.vmem [shape: bf16[48,32], index: 1, kind: input, shape index: {}]   ;;  %s368_s0 = inlined_call_operand.vmem [shape: bf16[96,48], index: 0, kind: input, shape index: {}]   ;;  %s369_s2 = inlined_call_operand.vmem [shape: f32[1,32], index: 2, kind: input, shape index: {}]   ;;  %s370_s3 = inlined_call_operand.vmem [shape: f32[96,32], index: 3, kind: output, shape index: {}]  }
   0x1   :  { %v254_v0 = vld [vmem:[%s367_s1] sm:$0xff]   ;;  %v255_v1 = vld [vmem:[%s367_s1 + $0x8] sm:$0xff]   ;;  %v257_v2 = vld [vmem:[%s368_s0 + $0x10] sm:$0xff]  }
   0x2   :  { %248 = vmatprep.subr.bf16.mxu1 %v254_v0  ;;  %230 = vmatprep.subr.bf16.mxu0 %v254_v0  ;;  %v256_v3 = vld [vmem:[%s367_s1 + $0x10] sm:$0xff]   ;;  %v259_v4 = vld [vmem:[%s368_s0] sm:$0xff]   ;;  %v258_v5 = vld [vmem:[%s368_s0 + $0x18] sm:$0xff]  }
   0x3   :  { %251 = vmatpush3.bf16.msra.mxu1 %v254_v0  ;;  %231 = vmatpush3.bf16.msra.mxu0 %v254_v0  ;;  %v260_v6 = vld [vmem:[%s368_s0 + $0x8] sm:$0xff]   ;;  %v261_v7 = vld [vmem:[%s368_s0 + $0x20] sm:$0xff]  }
   0x4   :  { %249 = vmatprep.subr.bf16.mxu1 %v255_v1  ;;  %232 = vmatprep.subr.bf16.mxu0 %v255_v1  ;;  %v262_v8 = vld [vmem:[%s368_s0 + $0x28] sm:$0xff]   ;;  %v205_v9 = vld [vmem:[%s369_s2] ss:$0 sm:$0xff] }
   0x5   :  { %240 = vmatprep.mubr.msk.bf16.mxu1 %vm88_vm0, %v257_v2  ;;  %236 = vmatprep.mubr.msk.bf16.mxu0 %vm88_vm0, %v259_v4 }
   0x7   :  { %252 = vmatpush3.bf16.msra.mxu1 %v255_v1  ;;  %233 = vmatpush3.bf16.msra.mxu0 %v255_v1 }
   0x8   :  { %250 = vmatprep.subr.bf16.mxu1 %v256_v3  ;;  %234 = vmatprep.subr.bf16.mxu0 %v256_v3 }
   0xb   :  { %253 = vmatpush3.bf16.msra.mxu1 %v256_v3  ;;  %235 = vmatpush3.bf16.msra.mxu0 %v256_v3 }
   0xe   :  { %241 = vmatmul.mubr.msk.bf16.vlgmr.msra.gmra.mrb[0].mxu1 %vm88_vm0, %v258_v5  ;;  %237 = vmatmul.mubr.msk.bf16.vlgmr.msra.gmra.mrb[0].mxu0 %vm88_vm0, %v260_v6 }
   0xf   :  { %244 = vmatprep.mubr.msk.bf16.mxu1 %vm88_vm0, %v261_v7 }
  0x16   :  { %245 = vmatmul.mubr.msk.bf16.gmra.mrb[4].mxu1 %vm88_vm0, %v262_v8 }
  0xe1   :  { %v242_v10 = vpop.f32.mrb[0].mxu1  ;;  %v238_v11 = vpop.f32.mrb[0].mxu0 }
  0xe2   :  { %v166_v12 = vadd.f32 %v242_v10, %v205_v9  ;;  %v157_v13 = vpop.f32.mrb[1].mxu1  ;;  %v150_v14 = vadd.f32 %v238_v11, %v205_v9  ;;  %v141_v15 = vpop.f32.mrb[1].mxu0 }
  0xe3   :  { %v158_v16 = vadd.f32 %v205_v9, %v157_v13  ;;  %v243_v17 = vpop.f32.mrb[2].mxu1  ;;  %v142_v18 = vadd.f32 %v205_v9, %v141_v15  ;;  %v239_v19 = vpop.f32.mrb[2].mxu0 }
  0xe4   :  { %195 = vst.msk [vmem:[%s370_s3 + $0x30] sm:$0xff] %vm188_vm1, %v166_v12  ;;  %v169_v20 = vadd.f32 %v243_v17, %v205_v9  ;;  %v160_v21 = vpop.f32.mrb[3].mxu1  ;;  %191 = vst.msk [vmem:[%s370_s3 + $0x10] sm:$0xff] %vm188_vm1, %v150_v14  ;;  %v153_v22 = vadd.f32 %v239_v19, %v205_v9  ;;  %v144_v23 = vpop.f32.mrb[3].mxu0 }
  0xe5   :  { %193 = vst.msk [vmem:[%s370_s3 + $0x20] sm:$0xff] %vm188_vm1, %v158_v16  ;;  %v161_v24 = vadd.f32 %v205_v9, %v160_v21  ;;  %189 = vst.msk [vmem:[%s370_s3] sm:$0xff] %vm188_vm1, %v142_v18  ;;  %v145_v25 = vadd.f32 %v205_v9, %v144_v23 }
  0xe6   :  { %196 = vst.msk [vmem:[%s370_s3 + $0x38] sm:$0xff] %vm188_vm1, %v169_v20  ;;  %192 = vst.msk [vmem:[%s370_s3 + $0x18] sm:$0xff] %vm188_vm1, %v153_v22 }
  0xe7   :  { %194 = vst.msk [vmem:[%s370_s3 + $0x28] sm:$0xff] %vm188_vm1, %v161_v24  ;;  %190 = vst.msk [vmem:[%s370_s3 + $0x8] sm:$0xff] %vm188_vm1, %v145_v25 }
  0xe9   :  { %v246_v26 = vpop.f32.mrb[4].mxu1 }
  0xea   :  { %v182_v27 = vadd.f32 %v246_v26, %v205_v9  ;;  %v173_v28 = vpop.f32.mrb[5].mxu1 }
  0xeb   :  { %v174_v29 = vadd.f32 %v205_v9, %v173_v28  ;;  %v247_v30 = vpop.f32.mrb[6].mxu1 }
  0xec   :  { %199 = vst.msk [vmem:[%s370_s3 + $0x50] sm:$0xff] %vm188_vm1, %v182_v27  ;;  %v185_v31 = vadd.f32 %v247_v30, %v205_v9  ;;  %v176_v32 = vpop.f32.mrb[7].mxu1 }
  0xed   :  { %197 = vst.msk [vmem:[%s370_s3 + $0x40] sm:$0xff] %vm188_vm1, %v174_v29  ;;  %v177_v33 = vadd.f32 %v205_v9, %v176_v32 }
  0xee   :  { %200 = vst.msk [vmem:[%s370_s3 + $0x58] sm:$0xff] %vm188_vm1, %v185_v31 }
  0xef   :  { %198 = vst.msk [vmem:[%s370_s3 + $0x48] sm:$0xff] %vm188_vm1, %v177_v33 }

// kernel: tcait_extractor_forward.5
= control target key start
LH: loop header
LB: loop body
LE: loop exit
PB: predicated region body
PF: predicated region fallthrough
CT: control target
= control target key end

     0   :  { %s4027_s13 = smov 0   ;;  %s4816_s0 = inlined_call_operand.vmem [shape: f32[48,32], index: 0, kind: input, shape index: {}]   ;;  %s4817_s1 = inlined_call_operand.vmem [shape: f32[2,48,32], index: 1, kind: input, shape index: {}]   ;;  %s4818_s2 = inlined_call_operand.vmem [shape: bf16[2,32,32], index: 2, kind: input, shape index: {}]   ;;  %s4819_s3 = inlined_call_operand.vmem [shape: f32[2,1,32], index: 3, kind: input, shape index: {}]   ;;  %s4820_s4 = inlined_call_operand.vmem [shape: bf16[2,32,32], index: 4, kind: input, shape index: {}]   ;;  %s4821_s5 = inlined_call_operand.vmem [shape: f32[2,1,32], index: 5, kind: input, shape index: {}]   ;;  %s4822_s6 = inlined_call_operand.vmem [shape: bf16[2,32,32], index: 6, kind: input, shape index: {}]   ;;  %s4823_s7 = inlined_call_operand.vmem [shape: f32[2,1,32], index: 7, kind: input, shape index: {}]   ;;  %s4824_s8 = inlined_call_operand.vmem [shape: bf16[2,32,32], index: 8, kind: input, shape index: {}]   ;;  %s4825_s9 = inlined_call_operand.vmem [shape: f32[2,1,32], index: 9, kind: input, shape index: {}]   ;;  %s4826_s10 = inlined_call_operand.vmem [shape: f32[48,32], index: 10, kind: output, shape index: {}]  }
   0x1   :  { %4827 = sst [smem:[#allocation4_spill]] %s4817_s1 }
   0x2   :  { %4828 = sst [smem:[#allocation5_spill]] %s4818_s2 }
   0x3 LB: > { %s3135_s14 = sadd.s32 4294967295, %s3950_s13   ;;  %p3138_p0 = scmp.ge.s32.totalorder %s3950_s13, 1  ;;  %s3950_s13 = sphi %s4027_s13, %s20_s13  }
   0x4   : > { %p379_p1 = scmp.lt.s32.totalorder %s3950_s13, 3 }
   0x6   : > { %p380_p2 = pnand %p3138_p0, %p379_p1 }
   0x7   : > { %p444_p3 = scmp.lt.s32.totalorder (!%p380_p2), %s3135_s14, 1  ;;  %v482_v0 = vlaneseq (!%p380_p2)  ;;  %s4829_s2 = sld [smem:[#allocation5_spill]] (!%p380_p2)  ;;  %v3952_v2 = vmov (!%p380_p2), -1e+30  }
   0x8   : > { %383 = sbr.rel (%p380_p2) target bundleno = 3354 (0xd1a), region = 60  ;;  %s4830_s1 = sld [smem:[#allocation4_spill]] (!%p380_p2) }
   0x9   : > { %v483_v1 = vand.u32 (!%p380_p2), 127, %v482_v0  ;;  %p3148_p4 = scmp.ne.s32.totalorder (!%p380_p2), %s3135_s14, 0 }
   0xb   : > { %vm484_vm0 = vcmp.lt.s32.totalorder (!%p380_p2), %v483_v1, 17 }
   0xc   : > { %v4046_v3 = vsel (!%p380_p2), %vm484_vm0, 0.0, %v3952_v2 }
   0xf   : > { %s4035_s15 = scalar_select %p444_p3, %s3135_s14, 1 }
  0x10   : > { %489 = sbr.rel (%p3148_p4) target bundleno = 23 (0x17), region = 64  ;;  %vm490_vm1 = vcmask (!%p3148_p4), 261120   ;;  %v3953_v4 = vmov (!%p3148_p4), 0.0  }
  0x11   : > { %s3727_s16 = smul.u32 48, %s4035_s15  ;;  %s3247_s17 = sshll.u32 %s4035_s15, 4  ;;  %491 = vst.msk [vmem:[%s4826_s10] sm:$0xff] (!%p3148_p4), %vm490_vm1, %v3953_v4  ;;  %492 = vst.msk [vmem:[%s4826_s10 + $0x8] sm:$0xff] (!%p3148_p4), %vm490_vm1, %v3953_v4 }
  0x12   : > { %s453_s20 = scalar_lea.vmem %s4829_s2, %s3247_s17  ;;  %s4056_s29 = scalar_lea.vmem %s4820_s4, %s3247_s17  ;;  %493 = vst.msk [vmem:[%s4826_s10 + $0x10] sm:$0xff] (!%p3148_p4), %vm490_vm1, %v3953_v4  ;;  %494 = vst.msk [vmem:[%s4826_s10 + $0x18] sm:$0xff] (!%p3148_p4), %vm490_vm1, %v3953_v4 }
  0x13   : > { %s4051_s26 = scalar_lea.vmem %s4830_s1, %s3727_s16  ;;  %s464_s12 = scalar_lea.vmem %s4821_s5, %s4035_s15  ;;  %495 = vst.msk [vmem:[%s4826_s10 + $0x20] sm:$0xff] (!%p3148_p4), %vm490_vm1, %v3953_v4  ;;  %496 = vst.msk [vmem:[%s4826_s10 + $0x28] sm:$0xff] (!%p3148_p4), %vm490_vm1, %v3953_v4 }
  0x14   : > { %s4065_s21 = scalar_lea.vmem %s4822_s6, %s3247_s17  ;;  %s472_s24 = scalar_lea.vmem %s4823_s7, %s4035_s15 }
  0x15   : > { %s4074_s1 = scalar_lea.vmem %s4824_s8, %s3247_s17  ;;  %s480_s2 = scalar_lea.vmem %s4825_s9, %s4035_s15 }
  0x17 PF: > { %v3836_v5 = vld [vmem:[%s453_s20] sm:$0xff]   ;;  %v3954_v6 = vmov 0.0   ;;  %v3837_v7 = vld [vmem:[%s453_s20 + $0x8] sm:$0xff]   ;;  %vm3955_vm2 = vmmov 0   ;;  %vm535_vm3 = vcmask 261120   ;;  %v499_v16 = vld [vmem:[%s4816_s0 + $0x10] sm:$0xff]  ;;  %s4831_s27 = scalar_lea.vmem %s4819_s3, %s4035_s15 }
  0x18   : > { %3367 = vmatprep.subr.bf16.mxu0 %v3954_v6  ;;  %3383 = vmatprep.subr.bf16.mxu1 %v3954_v6  ;;  %v497_v8 = vld [vmem:[%s4816_s0] sm:$0xff]  ;;  %v498_v9 = vld [vmem:[%s4816_s0 + $0x8] sm:$0xff]  ;;  %v500_v18 = vld [vmem:[%s4816_s0 + $0x18] sm:$0xff]  ;;  %s3956_s11 = smov 32   ;;  %s3957_s23 = smov 64   ;;  %vm724_vm4 = vcmask 523520  }
  0x19   : > { %3368 = vmatpush3.bf16.msra.mxu0 %v3836_v5  ;;  %3371 = vmatprep.mubr.msk.bf16.mxu0 %vm3955_vm2, %v3954_v6  ;;  %v3838_v10 = vld [vmem:[%s4056_s29] sm:$0xff]   ;;  %v513_v11 = vpack.c.bf16 %v498_v9, %v497_v8  ;;  %v3839_v12 = vld [vmem:[%s4056_s29 + $0x8] sm:$0xff]   ;;  %v514_v20 = vpack.c.bf16 %v500_v18, %v499_v16  ;;  %v505_v21 = vld [vmem:[%s4051_s26 + $0x10] sm:$0xff]  ;;  %vm835_vm5 = vcmask 785920   ;;  %s3960_s20 = smov 88   ;;  %vm857_vm6 = vcmask 64512  }
  0x1a   : > { %3369 = vmatprep.subr.bf16.mxu0 %v3954_v6  ;;  %3387 = vmatprep.mubr.msk.bf16.mxu1 %vm3955_vm2, %v3954_v6  ;;  %v3840_v13 = vld [vmem:[%s4065_s21] sm:$0xff]   ;;  %v504_v15 = vld [vmem:[%s4051_s26 + $0x8] sm:$0xff]  ;;  %v506_v22 = vld [vmem:[%s4051_s26 + $0x18] sm:$0xff]  ;;  %vm1063_vm8 = vcmask 195584   ;;  %s3961_s19 = smov 120   ;;  %s3962_s29 = smov 56  }
  0x1b   : > { %3384 = vmatpush3.bf16.msra.mxu1 %v3838_v10  ;;  %v503_v14 = vld [vmem:[%s4051_s26] sm:$0xff]  ;;  %v3841_v19 = vld [vmem:[%s4065_s21 + $0x8] sm:$0xff]   ;;  %v613_v23 = vpack.c.bf16 %v506_v22, %v505_v21  ;;  %vm4248_vm7 = vmpackc.low %vm857_vm6, %vm857_vm6  ;;  %s3963_s22 = smov 80   ;;  %s3964_s21 = smov 112   ;;  %vm1850_vm9 = vcmask 130112   ;;  %vm2375_vm10 = vcmask 195712  }
  0x1c   : > { %3385 = vmatprep.subr.bf16.mxu1 %v3954_v6  ;;  %v612_v17 = vpack.c.bf16 %v504_v15, %v503_v14  ;;  %v501_v24 = vld [vmem:[%s4816_s0 + $0x20] sm:$0xff]  ;;  %v502_v25 = vld [vmem:[%s4816_s0 + $0x28] sm:$0xff]  ;;  %s3965_s17 = smov 48   ;;  %s3966_s16 = smov 72   ;;  %vm2900_vm11 = vcmask 261312  }
  0x1d   : > { %3370 = vmatpush3.bf16.msra.mxu0 %v3837_v7  ;;  %v515_v26 = vpack.c.bf16 %v502_v25, %v501_v24  ;;  %v507_v27 = vld [vmem:[%s4051_s26 + $0x20] sm:$0xff]  ;;  %v508_v28 = vld [vmem:[%s4051_s26 + $0x28] sm:$0xff]  ;;  %s3967_s14 = smov 104   ;;  %s3968_s26 = smov 40  }
  0x1e   : > { %3399 = vmatprep.subr.bf16.mxu0 %v3954_v6  ;;  %v614_v29 = vpack.c.bf16 %v508_v28, %v507_v27  ;;  %v3149_v30 = vld [vmem:[%s4831_s27] ss:$0 sm:$0xff]  ;;  %s3969_s25 = smov 8   ;;  %s3970_s27 = smov 16  }
  0x1f   : > { %3386 = vmatpush3.bf16.msra.mxu1 %v3839_v12  ;;  %v3155_v35 = vld [vmem:[%s464_s12] ss:$0 sm:$0xff]  ;;  %s3971_s28 = smov 24  }
  0x20   : > { %3372 = vmatmul.mubr.msk.bf16.vlgmr.msra.gmra.mrb[0].mxu0 %vm535_vm3, %v513_v11  ;;  %v3161_v0 = vld [vmem:[%s472_s24] ss:$0 sm:$0xff]  ;;  %s3959_s24 = smov 96  }
  0x21   : > { %3375 = vmatprep.mubr.msk.bf16.mxu0 %vm3955_vm2, %v3954_v6  ;;  %3400 = vmatpush3.bf16.msra.mxu0 %v3840_v13 }
  0x22   : > { %3401 = vmatprep.subr.bf16.mxu0 %v3954_v6  ;;  %3388 = vmatmul.mubr.msk.bf16.vlgmr.msra.gmra.mrb[0].mxu1 %vm535_vm3, %v612_v17 }
  0x23   : > { %3391 = vmatprep.mubr.msk.bf16.mxu1 %vm3955_vm2, %v3954_v6 }
  0x25   : > { %3402 = vmatpush3.bf16.msra.mxu0 %v3841_v19 }
  0x28   : > { %3376 = vmatmul.mubr.msk.bf16.gmra.mrb[4].mxu0 %vm535_vm3, %v514_v20 }
  0x29   : > { %3379 = vmatprep.mubr.msk.bf16.mxu0 %vm3955_vm2, %v3954_v6 }
  0x2a   : > { %3392 = vmatmul.mubr.msk.bf16.gmra.mrb[4].mxu1 %vm535_vm3, %v613_v23 }
  0x2b   : > { %3395 = vmatprep.mubr.msk.bf16.mxu1 %vm3955_vm2, %v3954_v6 }
  0x30   : > { %3380 = vmatmul.mubr.msk.bf16.gmra.mrb[8].mxu0 %vm535_vm3, %v515_v26 }
  0x31   : > { %3403 = vmatprep.mubr.msk.bf16.mxu0 %vm3955_vm2, %v3954_v6 }
  0x32   : > { %3396 = vmatmul.mubr.msk.bf16.gmra.mrb[8].mxu1 %vm535_vm3, %v614_v29 }
  0x33   : > { %3421 = vmatprep.mubr.msk.f32.mxu1 %vm3955_vm2, %v3954_v6 }
  0x38   : > { %3404 = vmatmul.mubr.msk.bf16.vlgmr.msra.gmra.mrb[12].mxu0 %vm535_vm3, %v612_v17 }
  0x39   : > { %3407 = vmatprep.mubr.msk.bf16.mxu0 %vm3955_vm2, %v3954_v6 }
  0x40   : > { %3408 = vmatmul.mubr.msk.bf16.gmra.mrb[16].mxu0 %vm535_vm3, %v613_v23 }
  0x41   : > { %3411 = vmatprep.mubr.msk.bf16.mxu0 %vm3955_vm2, %v3954_v6 }
  0x48   : > { %3412 = vmatmul.mubr.msk.bf16.gmra.mrb[20].mxu0 %vm535_vm3, %v614_v29 }
  0x49   : > { %3481 = vmatprep.mubr.msk.f32.mxu0 %vm3955_vm2, %v3954_v6 }
  0xf3   : > { %v579_v31 = vpop.f32.mrb[0].mxu0 }
  0xf4   : > { %v580_v32 = vadd.f32 %v3149_v30, %v579_v31  ;;  %v3373_v33 = vpop.f32.mrb[1].mxu0  ;;  %v3958_v31 = vmov 0.0|0.0  }
  0xf5   : > { %v582_v34 = vpop.f32.mrb[2].mxu0  ;;  %v677_v38 = vpop.f32.mrb[0].mxu1  ;;  %3671 = vmatprep.subr.bf16.mxu1 %v3958_v31  ;;  %3685 = vmatprep.subr.bf16.mxu0 %v3958_v31 }
  0xf6   : > { %602 = vst.msk [vmem:[#allocation2] sm:$0xff] %vm535_vm3, %v580_v32  ;;  %v583_v36 = vadd.f32 %v3149_v30, %v582_v34  ;;  %v3374_v37 = vpop.f32.mrb[3].mxu0  ;;  %v678_v39 = vadd.f32 %v3155_v35, %v677_v38  ;;  %v3389_v40 = vpop.f32.mrb[1].mxu1 }
  0xf7   : > { %v680_v41 = vpop.f32.mrb[2].mxu1 }
  0xf8   : > { %603 = vst.msk [vmem:[#allocation2 + $0x8] sm:$0xff] %vm535_vm3, %v583_v36  ;;  %706 = vrot.lane.b32.xlu0 %v678_v39, %s3956_s11  ;;  %v681_v42 = vadd.f32 %v3155_v35, %v680_v41  ;;  %v3390_v43 = vpop.f32.mrb[3].mxu1 }
  0xfb   : > { %v587_v44 = vpop.f32.mrb[4].mxu0 }
  0xfc   : > { %v588_v45 = vadd.f32 %v3149_v30, %v587_v44  ;;  %v3377_v46 = vpop.f32.mrb[5].mxu0  ;;  %708 = vrot.lane.b32.xlu0 %v681_v42, %s3956_s11 }
  0xfd   : > { %v590_v47 = vpop.f32.mrb[6].mxu0  ;;  %v685_v50 = vpop.f32.mrb[4].mxu1 }
  0xfe   : > { %604 = vst.msk [vmem:[#allocation2 + $0x10] sm:$0xff] %vm535_vm3, %v588_v45  ;;  %v591_v48 = vadd.f32 %v3149_v30, %v590_v47  ;;  %v3378_v49 = vpop.f32.mrb[7].mxu0  ;;  %v686_v51 = vadd.f32 %v3155_v35, %v685_v50  ;;  %v3393_v52 = vpop.f32.mrb[5].mxu1 }
  0xff   : > { %v688_v53 = vpop.f32.mrb[6].mxu1 }
 0x100   : > { %605 = vst.msk [vmem:[#allocation2 + $0x18] sm:$0xff] %vm535_vm3, %v591_v48  ;;  %710 = vrot.lane.b32.xlu0 %v686_v51, %s3956_s11  ;;  %v689_v54 = vadd.f32 %v3155_v35, %v688_v53  ;;  %v3394_v55 = vpop.f32.mrb[7].mxu1 }
 0x103   : > { %v595_v56 = vpop.f32.mrb[8].mxu0 }
 0x104   : > { %v596_v57 = vadd.f32 %v3149_v30, %v595_v56  ;;  %v3381_v58 = vpop.f32.mrb[9].mxu0  ;;  %712 = vrot.lane.b32.xlu0 %v689_v54, %s3956_s11 }
 0x105   : > { %v598_v59 = vpop.f32.mrb[10].mxu0  ;;  %v693_v62 = vpop.f32.mrb[8].mxu1 }
 0x106   : > { %606 = vst.msk [vmem:[#allocation2 + $0x20] sm:$0xff] %vm535_vm3, %v596_v57  ;;  %v599_v60 = vadd.f32 %v3149_v30, %v598_v59  ;;  %v3382_v61 = vpop.f32.mrb[11].mxu0  ;;  %v3397_v63 = vpop.f32.mrb[9].mxu1  ;;  %v694_v11 = vadd.f32 %v3155_v35, %v693_v62 }
 0x107   : > { %v696_v1 = vpop.f32.mrb[10].mxu1 }
 0x108   : > { %607 = vst.msk [vmem:[#allocation2 + $0x28] sm:$0xff] %vm535_vm3, %v599_v60  ;;  %v3398_v2 = vpop.f32.mrb[11].mxu1  ;;  %v697_v18 = vadd.f32 %v3155_v35, %v696_v1 }
 0x10b   : > { %v788_v4 = vpop.f32.mrb[12].mxu0 }
 0x10c   : > { %v789_v5 = vadd.f32 %v3161_v0, %v788_v4  ;;  %v3405_v7 = vpop.f32.mrb[13].mxu0 }
 0x10d   : > { %v791_v8 = vpop.f32.mrb[14].mxu0 }
 0x10e   : > { %817 = vrot.lane.b32.xlu1 %v789_v5, %s3957_s23  ;;  %v3406_v9 = vpop.f32.mrb[15].mxu0  ;;  %v792_v10 = vadd.f32 %v3161_v0, %v791_v8 }
 0x112   : > { %819 = vrot.lane.b32.xlu1 %v792_v10, %s3957_s23 }
 0x113   : > { %v796_v12 = vpop.f32.mrb[16].mxu0 }
 0x114   : > { %v3409_v13 = vpop.f32.mrb[17].mxu0  ;;  %v797_v17 = vadd.f32 %v3161_v0, %v796_v12 }
 0x115   : > { %v799_v14 = vpop.f32.mrb[18].mxu0 }
 0x116   : > { %v800_v15 = vadd.f32 %v3161_v0, %v799_v14  ;;  %714 = vrot.lane.b32.xlu1 %v694_v11, %s3956_s11  ;;  %v3410_v16 = vpop.f32.mrb[19].mxu0 }
 0x118   : > { %823 = vrot.lane.b32.xlu0 %v800_v15, %s3957_s23 }
 0x11a   : > { %821 = vrot.lane.b32.xlu1 %v797_v17, %s3957_s23 }
 0x11b   : > { %v804_v19 = vpop.f32.mrb[20].mxu0 }
 0x11c   : > { %v805_v20 = vadd.f32 %v3161_v0, %v804_v19  ;;  %716 = vrot.lane.b32.xlu0 %v697_v18, %s3956_s11  ;;  %v3413_v21 = vpop.f32.mrb[21].mxu0 }
 0x11d   : > { %v807_v22 = vpop.f32.mrb[22].mxu0 }
 0x11e   : > { %825 = vrot.lane.b32.xlu1 %v805_v20, %s3957_s23  ;;  %v3414_v23 = vpop.f32.mrb[23].mxu0  ;;  %v808_v24 = vadd.f32 %v3161_v0, %v807_v22 }
 0x122   : > { %827 = vrot.lane.b32.xlu1 %v808_v24, %s3957_s23 }
 0x16a   : > { %v707_v25 = vpop.permute.xlu0 %706 }
 0x16b   : > { %725 = vst.msk [vmem:[#allocation2] sm:$0xff] %vm724_vm4, %v707_v25 }
 0x16e   : > { %v709_v26 = vpop.permute.xlu0 %708 }
 0x16f   : > { %726 = vst.msk [vmem:[#allocation2 + $0x8] sm:$0xff] %vm724_vm4, %v709_v26 }
 0x172   : > { %v711_v27 = vpop.permute.xlu0 %710 }
 0x173   : > { %727 = vst.msk [vmem:[#allocation2 + $0x10] sm:$0xff] %vm724_vm4, %v711_v27 }
 0x176   : > { %v713_v28 = vpop.permute.xlu0 %712 }
 0x177   : > { %728 = vst.msk [vmem:[#allocation2 + $0x18] sm:$0xff] %vm724_vm4, %v713_v28 }
 0x180   : > { %v818_v29 = vpop.permute.xlu1 %817 }
 0x181   : > { %836 = vst.msk [vmem:[#allocation2] sm:$0xff] %vm835_vm5, %v818_v29 }
 0x184   : > { %v820_v30 = vpop.permute.xlu1 %819 }
 0x185   : > { %837 = vst.msk [vmem:[#allocation2 + $0x8] sm:$0xff] %vm835_vm5, %v820_v30 }
 0x188   : > { %v715_v32 = vpop.permute.xlu1 %714  ;;  %v4206_v35 = vld [vmem:[#allocation2] sm:$0xff] }
 0x189   : > { %729 = vst.msk [vmem:[#allocation2 + $0x20] sm:$0xff] %vm724_vm4, %v715_v32 }
 0x18a   : > { %v824_v33 = vpop.permute.xlu0 %823 }
 0x18b   : > { %839 = vst.msk [vmem:[#allocation2 + $0x18] sm:$0xff] %vm835_vm5, %v824_v33 }
 0x18c   : > { %v822_v34 = vpop.permute.xlu1 %821  ;;  %v4208_v36 = vld [vmem:[#allocation2 + $0x8] sm:$0xff] }
 0x18d   : > { %838 = vst.msk [vmem:[#allocation2 + $0x10] sm:$0xff] %vm835_vm5, %v822_v34  ;;  %v4213_v37 = vpack.i.bf16 %v4208_v36, %v4206_v35 }
 0x18e   : > { %v717_v38 = vpop.permute.xlu0 %716 }
 0x18f   : > { %730 = vst.msk [vmem:[#allocation2 + $0x28] sm:$0xff] %vm724_vm4, %v717_v38  ;;  %3757 = vrot.lane.b32.xlu0 %v4213_v37, %s3959_s24 }
 0x190   : > { %v826_v39 = vpop.permute.xlu1 %825 }
 0x191   : > { %840 = vst.msk [vmem:[#allocation2 + $0x20] sm:$0xff] %vm835_vm5, %v826_v39 }
 0x192   : > { %v4222_v42 = vld [vmem:[#allocation2 + $0x18] sm:$0xff] }
 0x194   : > { %v828_v40 = vpop.permute.xlu1 %827  ;;  %v4218_v41 = vld [vmem:[#allocation2 + $0x10] sm:$0xff] }
 0x195   : > { %841 = vst.msk [vmem:[#allocation2 + $0x28] sm:$0xff] %vm835_vm5, %v828_v40  ;;  %855 = vrot.lane.b32.xlu1 %v4218_v41, %s3959_s24 }
 0x198   : > { %v4224_v43 = vld [vmem:[#allocation2 + $0x20] sm:$0xff] }
 0x199   : > { %v4228_v44 = vpack.i.bf16 %v4224_v43, %v4222_v42 }
 0x19b   : > { %3762 = vrot.lane.b32.xlu0 %v4228_v44, %s3959_s24 }
 0x19c   : > { %v4231_v45 = vld [vmem:[#allocation2 + $0x28] sm:$0xff] }
 0x19d   : > { %957 = vrot.lane.b32.xlu1 %v4231_v45, %s3959_s24 }
 0x19f   : > { %1134 = vrot.lane.b32.xlu0 %v4218_v41, %s3957_s23 }
 0x1a1   : > { %3767 = vrot.lane.b32.xlu1 %v4213_v37, %s3957_s23 }
 0x1a3   : > { %1232 = vrot.lane.b32.xlu0 %v4231_v45, %s3957_s23 }
 0x1a5   : > { %3772 = vrot.lane.b32.xlu1 %v4213_v37, %s3960_s20 }
 0x1a9   : > { %3777 = vrot.lane.b32.xlu1 %v4228_v44, %s3957_s23 }
 0x1ad   : > { %1351 = vrot.lane.b32.xlu1 %v4218_v41, %s3960_s20 }
 0x201   : > { %v3758_v46 = vpop.permute.xlu0 %3757 }
 0x202   : > { %v3760_v47 = vunpack.i.h.bf16 %v3758_v46  ;;  %v3759_v48 = vunpack.i.l.bf16 %v3758_v46 }
 0x204   : > { %v3672_v50 = vpack.c.bf16 %v3760_v47, %v3759_v48 }
 0x206   : > { %3674 = vmatpush3.bf16.xpose.msk.msra.mxu1 %vm4248_vm7, %v3672_v50 }
 0x207   : > { %3419 = vmatprep.subr.mxu1 %v3954_v6  ;;  %v856_v51 = vpop.permute.xlu1 %855 }
 0x20d   : > { %v3763_v52 = vpop.permute.xlu0 %3762 }
 0x20e   : > { %v3765_v53 = vunpack.i.h.bf16 %v3763_v52  ;;  %v3764_v54 = vunpack.i.l.bf16 %v3763_v52  ;;  %3420 = vmatpush3.xpose.msk.msra.mxu1 %vm857_vm6, %v856_v51 }
 0x20f   : > { %v958_v55 = vpop.permute.xlu1 %957  ;;  %3675 = vmatprep.subr.bf16.mxu1 %v3958_v31 }
 0x210   : > { %v3676_v56 = vpack.c.bf16 %v3765_v53, %v3764_v54 }
 0x211   : > { %3422 = vmatmul.mubr.msk.f32.vlgmr.msra.gmra.mrb[12].mxu1 %vm857_vm6, %v4206_v35  ;;  %v1135_v2 = vpop.permute.xlu0 %1134 }
 0x212   : > { %3678 = vmatpush3.bf16.xpose.msk.msra.mxu1 %vm4248_vm7, %v3676_v56  ;;  %3424 = vmatprep.mubr.msk.f32.mxu1 %vm3955_vm2, %v3954_v6 }
 0x213   : > { %v3768_v57 = vpop.permute.xlu1 %3767  ;;  %3434 = vmatprep.subr.mxu1 %v3954_v6 }
 0x214   : > { %v3770_v59 = vunpack.i.h.bf16 %v3768_v57  ;;  %v3769_v60 = vunpack.i.l.bf16 %v3768_v57 }
 0x215   : > { %3425 = vmatmul.mubr.msk.f32.gmra.mrb[14].mxu1 %vm857_vm6, %v4208_v36  ;;  %v4311_v40 = vpop.permute.xlu0 %1232 }
 0x216   : > { %3427 = vmatprep.mubr.msk.f32.mxu1 %vm3955_vm2, %v3954_v6  ;;  %v3680_v0 = vpack.c.bf16 %v3770_v59, %v3769_v60 }
 0x217   : > { %v3773_v58 = vpop.permute.xlu1 %3772 }
 0x218   : > { %v3775_v61 = vunpack.i.h.bf16 %v3773_v58  ;;  %v3774_v62 = vunpack.i.l.bf16 %v3773_v58 }
 0x219   : > { %3428 = vmatmul.mubr.msk.f32.gmra.mrb[16].mxu1 %vm857_vm6, %v4218_v41 }
 0x21a   : > { %v3686_v63 = vpack.c.bf16 %v3775_v61, %v3774_v62  ;;  %3435 = vmatpush3.xpose.msk.msra.mxu1 %vm857_vm6, %v958_v55  ;;  %3436 = vmatprep.mubr.msk.f32.mxu1 %vm3955_vm2, %v3954_v6 }
 0x21b   : > { %3679 = vmatprep.subr.bf16.mxu1 %v3958_v31  ;;  %v4276_v1 = vpop.permute.xlu1 %3777 }
 0x21c   : > { %3688 = vmatpush3.bf16.xpose.msk.msra.mxu0 %vm4248_vm7, %v3686_v63 }
 0x21d   : > { %3437 = vmatmul.mubr.msk.f32.vlgmr.msra.gmra.mrb[18].mxu1 %vm857_vm6, %v4222_v42  ;;  %3479 = vmatprep.subr.mxu0 %v3954_v6 }
 0x21e   : > { %3681 = vmatpush3.bf16.msra.mxu1 %v3680_v0  ;;  %3439 = vmatprep.mubr.msk.f32.mxu1 %vm3955_vm2, %v3954_v6 }
 0x21f   : > { %3449 = vmatprep.subr.mxu1 %v3954_v6  ;;  %v1352_v4 = vpop.permute.xlu1 %1351 }
 0x221   : > { %3440 = vmatmul.mubr.msk.f32.gmra.mrb[20].mxu1 %vm857_vm6, %v4224_v43 }
 0x222   : > { %3450 = vmatpush3.msra.mxu1 %v1135_v2  ;;  %3442 = vmatprep.mubr.msk.f32.mxu1 %vm3955_vm2, %v3954_v6 }
 0x223   : > { %3682 = vmatprep.subr.bf16.mxu1 %v3958_v31 }
 0x224   : > { %3480 = vmatpush3.xpose.msk.msra.mxu0 %vm857_vm6, %v1352_v4 }
 0x225   : > { %3443 = vmatmul.mubr.msk.f32.gmra.mrb[22].mxu1 %vm857_vm6, %v4231_v45  ;;  %3693 = vmatprep.subr.bf16.mxu0 %v3958_v31 }
 0x226   : > { %3451 = vmatprep.mubr.msk.f32.mxu1 %vm3955_vm2, %v3954_v6 }
 0x2e4   : > { %v936_v5 = vpop.f32.mrb[12].mxu1 }
 0x2e5   : > { %v1051_v7 = vmul.f32 0.35355338, %v936_v5  ;;  %v3423_v8 = vpop.f32.mrb[13].mxu1 }
 0x2e7   : > { %v1057_v9 = vadd.f32 %v1051_v7, %v4046_v3 }
 0x2e8   : > { %v941_v10 = vpop.f32.mrb[14].mxu1 }
 0x2e9   : > { %v1052_v11 = vmul.f32 0.35355338, %v941_v10  ;;  %v3426_v12 = vpop.f32.mrb[15].mxu1  ;;  %v1064_v13 = vsel %vm1063_vm8, %v1057_v9, -inf }
 0x2ea   : > { %1065 = vmax.xlane.f32.xlu0 %v1064_v13 }
 0x2eb   : > { %v1058_v14 = vadd.f32 %v1052_v11, %v4046_v3 }
 0x2ec   : > { %v946_v15 = vpop.f32.mrb[16].mxu1 }
 0x2ed   : > { %v1053_v16 = vmul.f32 0.35355338, %v946_v15  ;;  %v3429_v17 = vpop.f32.mrb[17].mxu1  ;;  %v1067_v18 = vsel %vm1063_vm8, %v1058_v14, -inf }
 0x2ee   : > { %1068 = vmax.xlane.f32.xlu1 %v1067_v18 }
 0x2ef   : > { %v1059_v19 = vadd.f32 %v1053_v16, %v4046_v3 }
 0x2f0   : > { %v1037_v20 = vpop.f32.mrb[18].mxu1 }
 0x2f1   : > { %v1054_v21 = vmul.f32 0.35355338, %v1037_v20  ;;  %v3438_v22 = vpop.f32.mrb[19].mxu1  ;;  %v1070_v23 = vsel %vm1063_vm8, %v1059_v19, -inf }
 0x2f2   : > { %1071 = vmax.xlane.f32.xlu0 %v1070_v23  ;;  %v3779_v22 = vunpack.i.l.bf16 %v4276_v1 }
 0x2f3   : > { %v1060_v24 = vadd.f32 %v1054_v21, %v4046_v3  ;;  %v3780_v21 = vunpack.i.h.bf16 %v4276_v1 }
 0x2f4   : > { %v1042_v25 = vpop.f32.mrb[20].mxu1 }
 0x2f5   : > { %v1055_v26 = vmul.f32 0.35355338, %v1042_v25  ;;  %v3441_v27 = vpop.f32.mrb[21].mxu1  ;;  %v1073_v28 = vsel %vm1063_vm8, %v1060_v24, -inf }
 0x2f6   : > { %1074 = vmax.xlane.f32.xlu0 %v1073_v28 }
 0x2f7   : > { %v1061_v29 = vadd.f32 %v1055_v26, %v4046_v3  ;;  %v3683_v26 = vpack.c.bf16 %v3780_v21, %v3779_v22 }
 0x2f8   : > { %v1047_v30 = vpop.f32.mrb[22].mxu1 }
 0x2f9   : > { %v1056_v32 = vmul.f32 0.35355338, %v1047_v30  ;;  %v3444_v33 = vpop.f32.mrb[23].mxu1  ;;  %v1076_v34 = vsel %vm1063_vm8, %v1061_v29, -inf }
 0x2fa   : > { %1077 = vmax.xlane.f32.xlu1 %v1076_v34 }
 0x2fb   : > { %v1062_v38 = vadd.f32 %v1056_v32, %v4046_v3 }
 0x2fd   : > { %v1079_v39 = vsel %vm1063_vm8, %v1062_v38, -inf }
 0x2fe   : > { %1080 = vmax.xlane.f32.xlu0 %v1079_v39 }
 0x30b   : > { %1341 = vrot.lane.b32.xlu1 %v4206_v35, %s3961_s19 }
 0x314   : > { %3782 = vrot.lane.b32.xlu0 %v4228_v44, %s3960_s20 }
 0x377   : > { %v1066_v46 = vpop.xlane.xlu0 %1065 }
 0x378   : > { %v1082_v47 = vsub.f32 %v1057_v9, %v1066_v46 }
 0x37a   : > { %v1088_v48 = vmul.f32 1.442695, %v1082_v47 }
 0x37b   : > { %v1069_v50 = vpop.xlane.xlu1 %1068 }
 0x37c   : > { %3844 = vpow2.f32 %v1088_v48  ;;  %v1083_v51 = vsub.f32 %v1058_v14, %v1069_v50 }
 0x37e   : > { %v1090_v52 = vmul.f32 1.442695, %v1083_v51 }
 0x37f   : > { %v1072_v53 = vpop.xlane.xlu0 %1071 }
 0x380   : > { %3846 = vpow2.f32 %v1090_v52  ;;  %v1084_v54 = vsub.f32 %v1059_v19, %v1072_v53 }
 0x382   : > { %v1092_v55 = vmul.f32 1.442695, %v1084_v54 }
 0x383   : > { %v1075_v56 = vpop.xlane.xlu0 %1074 }
 0x384   : > { %3848 = vpow2.f32 %v1092_v55  ;;  %v1085_v57 = vsub.f32 %v1060_v24, %v1075_v56 }
 0x386   : > { %v3845_v58 = vpop.eup %3844  ;;  %v1094_v59 = vmul.f32 1.442695, %v1085_v57 }
 0x387   : > { %v1078_v60 = vpop.xlane.xlu1 %1077  ;;  %v1100_v61 = vsel %vm1063_vm8, %v3845_v58, 0.0 }
 0x388   : > { %3850 = vpow2.f32 %v1094_v59  ;;  %1101 = vadd.xlane.f32.xlu1 %v1100_v61  ;;  %v1086_v8 = vsub.f32 %v1061_v29, %v1078_v60 }
 0x38a   : > { %v3847_v62 = vpop.eup %3846  ;;  %v1096_v10 = vmul.f32 1.442695, %v1086_v8 }
 0x38b   : > { %v1342_v63 = vpop.permute.xlu1 %1341  ;;  %v1103_v0 = vsel %vm1063_vm8, %v3847_v62, 0.0  ;;  %v1081_v9 = vpop.xlane.xlu0 %1080 }
 0x38c   : > { %1104 = vadd.xlane.f32.xlu0 %v1103_v0  ;;  %3482 = vmatmul.mubr.msk.f32.vlgmr.msra.gmra.mrb[24].mxu0 %vm857_vm6, %v1342_v63  ;;  %v1087_v11 = vsub.f32 %v1062_v38, %v1081_v9  ;;  %3852 = vpow2.f32 %v1096_v10 }
 0x38d   : > { %3484 = vmatprep.mubr.msk.f32.mxu0 %vm3955_vm2, %v3954_v6 }
 0x38e   : > { %v3849_v2 = vpop.eup %3848  ;;  %v1098_v12 = vmul.f32 1.442695, %v1087_v11 }
 0x38f   : > { %v1106_v4 = vsel %vm1063_vm8, %v3849_v2, 0.0  ;;  %v3783_v17 = vpop.permute.xlu0 %3782 }
 0x390   : > { %1107 = vadd.xlane.f32.xlu1 %v1106_v4  ;;  %3854 = vpow2.f32 %v1098_v12  ;;  %v3785_v33 = vunpack.i.h.bf16 %v3783_v17  ;;  %v3784_v34 = vunpack.i.l.bf16 %v3783_v17 }
 0x392   : > { %v3851_v5 = vpop.eup %3850 }
 0x393   : > { %v1109_v7 = vsel %vm1063_vm8, %v3851_v5, 0.0 }
 0x394   : > { %1110 = vadd.xlane.f32.xlu0 %v1109_v7 }
 0x396   : > { %v3853_v13 = vpop.eup %3852 }
 0x397   : > { %v1112_v14 = vsel %vm1063_vm8, %v3853_v13, 0.0 }
 0x39a   : > { %v4325_v15 = vpop.eup %3854 }
 0x39b   : > { %v1115_v16 = vsel %vm1063_vm8, %v4325_v15, 0.0 }
 0x3a1   : > { %1345 = vrot.lane.b32.xlu1 %v4218_v41, %s3961_s19 }
 0x3aa   : > { %1343 = vrot.lane.b32.xlu0 %v4208_v36, %s3961_s19 }
 0x3c5   : > { %1113 = vadd.xlane.f32.xlu1 %v1112_v14 }
 0x3c9   : > { %1116 = vadd.xlane.f32.xlu0 %v1115_v16 }
 0x3d6   : > { %1448 = vrot.lane.b32.xlu1 %v4222_v42, %s3961_s19 }
 0x3da   : > { %1452 = vrot.lane.b32.xlu1 %v4231_v45, %s3961_s19 }
 0x3df   : > { %1458 = vrot.lane.b32.xlu0 %v4231_v45, %s3960_s20 }
 0x3e3   : > { %1450 = vrot.lane.b32.xlu0 %v4224_v43, %s3961_s19 }
 0x415   : > { %v1102_v18 = vpop.xlane.xlu1 %1101 }
 0x416   : > { %3856 = vrcp.f32 %v1102_v18 }
 0x419   : > { %v1105_v19 = vpop.xlane.xlu0 %1104 }
 0x41a   : > { %3858 = vrcp.f32 %v1105_v19 }
 0x41d   : > { %v1108_v20 = vpop.xlane.xlu1 %1107 }
 0x41e   : > { %3860 = vrcp.f32 %v1108_v20 }
 0x420   : > { %v3857_v23 = vpop.eup %3856 }
 0x421   : > { %v1124_v24 = vmul.f32 %v3857_v23, %v3845_v58  ;;  %v1111_v25 = vpop.xlane.xlu0 %1110  ;;  %v1346_v30 = vpop.permute.xlu1 %1345 }
 0x422   : > { %3862 = vrcp.f32 %v1111_v25 }
 0x423   : > { %3452 = vmatmul.mubr.msk.f32.vlgmr.msra.gmra.mrb[24].mxu1 %vm1063_vm8, %v1124_v24 }
 0x424   : > { %v3859_v27 = vpop.eup %3858  ;;  %3684 = vmatpush3.bf16.msra.mxu1 %v3683_v26  ;;  %3454 = vmatprep.mubr.msk.f32.mxu1 %vm3955_vm2, %v3954_v6 }
 0x425   : > { %v1344_v28 = vpop.permute.xlu0 %1343  ;;  %3464 = vmatprep.subr.mxu1 %v3954_v6  ;;  %v1125_v29 = vmul.f32 %v3859_v27, %v3847_v62 }
 0x426   : > { %3485 = vmatmul.mubr.msk.f32.gmra.mrb[26].mxu0 %vm857_vm6, %v1344_v28 }
 0x427   : > { %3455 = vmatmul.mubr.msk.f32.gmra.mrb[26].mxu1 %vm1063_vm8, %v1125_v29  ;;  %3487 = vmatprep.mubr.msk.f32.mxu0 %vm3955_vm2, %v3954_v6 }
 0x428   : > { %v3861_v1 = vpop.eup %3860  ;;  %3465 = vmatpush3.msra.mxu1 %v4311_v40  ;;  %3457 = vmatprep.mubr.msk.f32.mxu1 %vm3955_vm2, %v3954_v6  ;;  %v3690_v40 = vpack.c.bf16 %v3785_v33, %v3784_v34 }
 0x429   : > { %v1126_v32 = vmul.f32 %v3861_v1, %v3849_v2  ;;  %3689 = vmatprep.subr.bf16.mxu1 %v3958_v31 }
 0x42a   : > { %3488 = vmatmul.mubr.msk.f32.gmra.mrb[28].mxu0 %vm857_vm6, %v1346_v30 }
 0x42b   : > { %3458 = vmatmul.mubr.msk.f32.gmra.mrb[28].mxu1 %vm1063_vm8, %v1126_v32  ;;  %3511 = vmatprep.mubr.msk.f32.mxu0 %vm3955_vm2, %v3954_v6 }
 0x42c   : > { %v3863_v38 = vpop.eup %3862  ;;  %3466 = vmatprep.mubr.msk.f32.mxu1 %vm3955_vm2, %v3954_v6 }
 0x42d   : > { %v1127_v39 = vmul.f32 %v3863_v38, %v3851_v5 }
 0x42f   : > { %3467 = vmatmul.mubr.msk.f32.vlgmr.msra.gmra.mrb[30].mxu1 %vm1063_vm8, %v1127_v39 }
 0x430   : > { %3692 = vmatpush3.bf16.xpose.msk.msra.mxu1 %vm4248_vm7, %v3690_v40  ;;  %3469 = vmatprep.mubr.msk.f32.mxu1 %vm3955_vm2, %v3954_v6 }
 0x431   : > { %3494 = vmatprep.subr.mxu1 %v3954_v6 }
 0x452   : > { %v1114_v46 = vpop.xlane.xlu1 %1113 }
 0x453   : > { %3864 = vrcp.f32 %v1114_v46 }
 0x456   : > { %v1117_v47 = vpop.xlane.xlu0 %1116  ;;  %v1449_v59 = vpop.permute.xlu1 %1448 }
 0x457   : > { %3866 = vrcp.f32 %v1117_v47 }
 0x45a   : > { %v1459_v48 = vpop.permute.xlu0 %1458  ;;  %v1453_v61 = vpop.permute.xlu1 %1452 }
 0x45b   : > { %3495 = vmatpush3.xpose.msk.msra.mxu1 %vm857_vm6, %v1459_v48 }
 0x45c   : > { %3696 = vmatprep.subr.bf16.mxu1 %v3958_v31 }
 0x45d   : > { %v3865_v50 = vpop.eup %3864 }
 0x45e   : > { %v1128_v51 = vmul.f32 %v3865_v50, %v3853_v13  ;;  %v1451_v60 = vpop.permute.xlu0 %1450 }
 0x45f   : > { %v1431_v52 = vpop.f32.mrb[24].mxu0 }
 0x460   : > { %v1552_v53 = vmul.f32 0.35355338, %v1431_v52  ;;  %3470 = vmatmul.mubr.msk.f32.gmra.mrb[32].mxu1 %vm1063_vm8, %v1128_v51  ;;  %v3483_v54 = vpop.f32.mrb[25].mxu0 }
 0x461   : > { %v3867_v55 = vpop.eup %3866  ;;  %3472 = vmatprep.mubr.msk.f32.mxu1 %vm3955_vm2, %v3954_v6 }
 0x462   : > { %v1558_v56 = vadd.f32 %v1552_v53, %v4046_v3  ;;  %v1129_v57 = vmul.f32 %v3867_v55, %v4325_v15 }
 0x464   : > { %3473 = vmatmul.mubr.msk.f32.gmra.mrb[34].mxu1 %vm1063_vm8, %v1129_v57  ;;  %v1564_v58 = vsel %vm1063_vm8, %v1558_v56, -inf }
 0x465   : > { %1565 = vmax.xlane.f32.xlu0 %v1564_v58  ;;  %3496 = vmatprep.mubr.msk.f32.mxu1 %vm3955_vm2, %v3954_v6 }
 0x468   : > { %3497 = vmatmul.mubr.msk.f32.vlgmr.msra.gmra.mrb[36].mxu1 %vm857_vm6, %v1449_v59 }
 0x469   : > { %3499 = vmatprep.mubr.msk.f32.mxu1 %vm3955_vm2, %v3954_v6 }
 0x46c   : > { %3500 = vmatmul.mubr.msk.f32.gmra.mrb[38].mxu1 %vm857_vm6, %v1451_v60 }
 0x46d   : > { %3502 = vmatprep.mubr.msk.f32.mxu1 %vm3955_vm2, %v3954_v6 }
 0x470   : > { %3503 = vmatmul.mubr.msk.f32.gmra.mrb[40].mxu1 %vm857_vm6, %v1453_v61 }
 0x471   : > { %3526 = vmatprep.mubr.msk.f32.mxu1 %vm3955_vm2, %v3954_v6 }
 0x4f2   : > { %v1566_v19 = vpop.xlane.xlu0 %1565 }
 0x4f3   : > { %v1582_v20 = vsub.f32 %v1558_v56, %v1566_v19 }
 0x4f5   : > { %v1588_v23 = vmul.f32 1.442695, %v1582_v20 }
 0x4f6   : > { %v1214_v62 = vpop.f32.mrb[24].mxu1 }
 0x4f7   : > { %1326 = vst.msk [vmem:[#allocation3] sm:$0xff] %vm857_vm6, %v1214_v62  ;;  %v3453_v63 = vpop.f32.mrb[25].mxu1  ;;  %3868 = vpow2.f32 %v1588_v23 }
 0x4f9   : > { %v1436_v0 = vpop.f32.mrb[26].mxu0 }
 0x4fa   : > { %v1553_v2 = vmul.f32 0.35355338, %v1436_v0  ;;  %v1219_v4 = vpop.f32.mrb[26].mxu1  ;;  %v3486_v5 = vpop.f32.mrb[27].mxu0 }
 0x4fb   : > { %1327 = vst.msk [vmem:[#allocation3 + $0x8] sm:$0xff] %vm857_vm6, %v1219_v4  ;;  %v3456_v7 = vpop.f32.mrb[27].mxu1 }
 0x4fc   : > { %v1559_v8 = vadd.f32 %v1553_v2, %v4046_v3 }
 0x4fd   : > { %v1441_v9 = vpop.f32.mrb[28].mxu0 }
 0x4fe   : > { %v1554_v10 = vmul.f32 0.35355338, %v1441_v9  ;;  %v1224_v11 = vpop.f32.mrb[28].mxu1  ;;  %v3489_v12 = vpop.f32.mrb[29].mxu0  ;;  %v1567_v13 = vsel %vm1063_vm8, %v1559_v8, -inf }
 0x4ff   : > { %1328 = vst.msk [vmem:[#allocation3 + $0x10] sm:$0xff] %vm857_vm6, %v1224_v11  ;;  %v3459_v14 = vpop.f32.mrb[29].mxu1  ;;  %1568 = vmax.xlane.f32.xlu1 %v1567_v13 }
 0x500   : > { %v1560_v15 = vadd.f32 %v1554_v10, %v4046_v3 }
 0x501   : > { %v4397_v47 = vpop.eup %3868 }
 0x502   : > { %v1312_v16 = vpop.f32.mrb[30].mxu1  ;;  %v1570_v17 = vsel %vm1063_vm8, %v1560_v15, -inf  ;;  %v1600_v50 = vsel %vm1063_vm8, %v4397_v47, 0.0 }
 0x503   : > { %1329 = vst.msk [vmem:[#allocation3 + $0x18] sm:$0xff] %vm857_vm6, %v1312_v16  ;;  %v3468_v18 = vpop.f32.mrb[31].mxu1  ;;  %1571 = vmax.xlane.f32.xlu0 %v1570_v17 }
 0x533   : > { %v1317_v21 = vpop.f32.mrb[32].mxu1 }
 0x534   : > { %1330 = vst.msk [vmem:[#allocation3 + $0x20] sm:$0xff] %vm857_vm6, %v1317_v21  ;;  %v3471_v22 = vpop.f32.mrb[33].mxu1 }
 0x537   : > { %v1322_v24 = vpop.f32.mrb[34].mxu1 }
 0x538   : > { %1331 = vst.msk [vmem:[#allocation3 + $0x28] sm:$0xff] %vm857_vm6, %v1322_v24  ;;  %v3474_v25 = vpop.f32.mrb[35].mxu1 }
 0x53b   : > { %v1538_v26 = vpop.f32.mrb[36].mxu1 }
 0x53c   : > { %v1555_v27 = vmul.f32 0.35355338, %v1538_v26  ;;  %v3498_v28 = vpop.f32.mrb[37].mxu1 }
 0x53e   : > { %v1561_v29 = vadd.f32 %v1555_v27, %v4046_v3 }
 0x53f   : > { %v1543_v1 = vpop.f32.mrb[38].mxu1 }
 0x540   : > { %v1556_v30 = vmul.f32 0.35355338, %v1543_v1  ;;  %v3501_v32 = vpop.f32.mrb[39].mxu1  ;;  %v1573_v33 = vsel %vm1063_vm8, %v1561_v29, -inf }
 0x541   : > { %1574 = vmax.xlane.f32.xlu0 %v1573_v33 }
 0x542   : > { %v1562_v34 = vadd.f32 %v1556_v30, %v4046_v3 }
 0x543   : > { %v1548_v38 = vpop.f32.mrb[40].mxu1 }
 0x544   : > { %v1557_v39 = vmul.f32 0.35355338, %v1548_v38  ;;  %v3504_v40 = vpop.f32.mrb[41].mxu1  ;;  %v1576_v46 = vsel %vm1063_vm8, %v1562_v34, -inf }
 0x545   : > { %1577 = vmax.xlane.f32.xlu1 %v1576_v46 }
 0x546   : > { %v1563_v48 = vadd.f32 %v1557_v39, %v4046_v3 }
 0x548   : > { %v1579_v51 = vsel %vm1063_vm8, %v1563_v48, -inf }
 0x549   : > { %1601 = vadd.xlane.f32.xlu1 %v1600_v50  ;;  %1580 = vmax.xlane.f32.xlu0 %v1579_v51 }
 0x58c   : > { %v1569_v52 = vpop.xlane.xlu1 %1568 }
 0x58d   : > { %v1583_v53 = vsub.f32 %v1559_v8, %v1569_v52 }
 0x58f   : > { %v1590_v54 = vmul.f32 1.442695, %v1583_v53 }
 0x590   : > { %v1572_v55 = vpop.xlane.xlu0 %1571 }
 0x591   : > { %3870 = vpow2.f32 %v1590_v54  ;;  %v1584_v56 = vsub.f32 %v1560_v15, %v1572_v55 }
 0x593   : > { %v1592_v57 = vmul.f32 1.442695, %v1584_v56 }
 0x595   : > { %3872 = vpow2.f32 %v1592_v57 }
 0x59b   : > { %v4403_v58 = vpop.eup %3870 }
 0x59c   : > { %v1603_v59 = vsel %vm1063_vm8, %v4403_v58, 0.0 }
 0x59d   : > { %1604 = vadd.xlane.f32.xlu0 %v1603_v59 }
 0x59f   : > { %v4407_v60 = vpop.eup %3872 }
 0x5a0   : > { %v1606_v61 = vsel %vm1063_vm8, %v4407_v60, 0.0 }
 0x5a1   : > { %1607 = vadd.xlane.f32.xlu1 %v1606_v61 }
 0x5b2   : > { %3787 = vrot.lane.b32.xlu1 %v4213_v37, %s3962_s29 }
 0x5b3   : > { %1634 = vrot.lane.b32.xlu0 %v4218_v41, %s3962_s29 }
 0x5b6   : > { %3792 = vrot.lane.b32.xlu1 %v4213_v37, %s3963_s22 }
 0x5b7   : > { %3802 = vrot.lane.b32.xlu0 %v4228_v44, %s3963_s22 }
 0x5ba   : > { %3797 = vrot.lane.b32.xlu1 %v4228_v44, %s3962_s29 }
 0x5bb   : > { %1868 = vrot.lane.b32.xlu0 %v4208_v36, %s3964_s21 }
 0x5be   : > { %1732 = vrot.lane.b32.xlu1 %v4231_v45, %s3962_s29 }
 0x5c2   : > { %1876 = vrot.lane.b32.xlu1 %v4218_v41, %s3963_s22 }
 0x5c6   : > { %1866 = vrot.lane.b32.xlu1 %v4206_v35, %s3964_s21 }
 0x5ca   : > { %1870 = vrot.lane.b32.xlu1 %v4218_v41, %s3964_s21 }
 0x5ce   : > { %1973 = vrot.lane.b32.xlu1 %v4222_v42, %s3964_s21  ;;  %v1575_v62 = vpop.xlane.xlu0 %1574 }
 0x5cf   : > { %v1585_v63 = vsub.f32 %v1561_v29, %v1575_v62 }
 0x5d1   : > { %v1594_v0 = vmul.f32 1.442695, %v1585_v63 }
 0x5d2   : > { %v1578_v2 = vpop.xlane.xlu1 %1577  ;;  %1977 = vrot.lane.b32.xlu1 %v4231_v45, %s3964_s21 }
 0x5d3   : > { %3874 = vpow2.f32 %v1594_v0  ;;  %v1586_v36 = vsub.f32 %v1562_v34, %v1578_v2 }
 0x5d5   : > { %v1596_v4 = vmul.f32 1.442695, %v1586_v36 }
 0x5d6   : > { %v1581_v5 = vpop.xlane.xlu0 %1580  ;;  %v1602_v13 = vpop.xlane.xlu1 %1601 }
 0x5d7   : > { %3876 = vpow2.f32 %v1596_v4  ;;  %v1587_v7 = vsub.f32 %v1563_v48, %v1581_v5 }
 0x5d9   : > { %v1598_v35 = vmul.f32 1.442695, %v1587_v7 }
 0x5db   : > { %3878 = vpow2.f32 %v1598_v35 }
 0x5dc   : > { %3880 = vrcp.f32 %v1602_v13 }
 0x5dd   : > { %v4431_v8 = vpop.eup %3874 }
 0x5de   : > { %v1609_v42 = vsel %vm1063_vm8, %v4431_v8, 0.0 }
 0x5df   : > { %1610 = vadd.xlane.f32.xlu0 %v1609_v42 }
 0x5e1   : > { %v4435_v9 = vpop.eup %3876 }
 0x5e2   : > { %v1612_v10 = vsel %vm1063_vm8, %v4435_v9, 0.0 }
 0x5e3   : > { %1613 = vadd.xlane.f32.xlu0 %v1612_v10 }
 0x5e5   : > { %v4439_v11 = vpop.eup %3878 }
 0x5e6   : > { %v1615_v12 = vsel %vm1063_vm8, %v4439_v11, 0.0  ;;  %v3881_v21 = vpop.eup %3880 }
 0x5e7   : > { %1616 = vadd.xlane.f32.xlu0 %v1615_v12  ;;  %v1624_v22 = vmul.f32 %v3881_v21, %v4397_v47 }
 0x5fd   : > { %1983 = vrot.lane.b32.xlu0 %v4231_v45, %s3963_s22 }
 0x601   : > { %1975 = vrot.lane.b32.xlu0 %v4224_v43, %s3964_s21 }
 0x62a   : > { %v1605_v14 = vpop.xlane.xlu0 %1604 }
 0x62b   : > { %3882 = vrcp.f32 %v1605_v14 }
 0x62e   : > { %v1608_v15 = vpop.xlane.xlu1 %1607  ;;  %v1635_v23 = vpop.permute.xlu0 %1634 }
 0x62f   : > { %3884 = vrcp.f32 %v1608_v15 }
 0x632   : > { %v3788_v16 = vpop.permute.xlu1 %3787  ;;  %v3803_v39 = vpop.permute.xlu0 %3802 }
 0x633   : > { %v3790_v17 = vunpack.i.h.bf16 %v3788_v16  ;;  %v3789_v18 = vunpack.i.l.bf16 %v3788_v16  ;;  %v3805_v52 = vunpack.i.h.bf16 %v3803_v39  ;;  %v3804_v53 = vunpack.i.l.bf16 %v3803_v39 }
 0x635   : > { %v3694_v19 = vpack.c.bf16 %v3790_v17, %v3789_v18  ;;  %v3883_v43 = vpop.eup %3882  ;;  %v3704_v56 = vpack.c.bf16 %v3805_v52, %v3804_v53 }
 0x636   : > { %v3793_v20 = vpop.permute.xlu1 %3792  ;;  %v1625_v1 = vmul.f32 %v3883_v43, %v4403_v58  ;;  %v1869_v46 = vpop.permute.xlu0 %1868 }
 0x637   : > { %3695 = vmatpush3.bf16.msra.mxu0 %v3694_v19  ;;  %v3795_v27 = vunpack.i.h.bf16 %v3793_v20  ;;  %v3794_v28 = vunpack.i.l.bf16 %v3793_v20 }
 0x638   : > { %3509 = vmatprep.subr.mxu0 %v3954_v6 }
 0x639   : > { %v3885_v30 = vpop.eup %3884  ;;  %v3700_v32 = vpack.c.bf16 %v3795_v27, %v3794_v28 }
 0x63a   : > { %v3798_v24 = vpop.permute.xlu1 %3797  ;;  %v1626_v34 = vmul.f32 %v3885_v30, %v4407_v60 }
 0x63b   : > { %v3800_v25 = vunpack.i.h.bf16 %v3798_v24  ;;  %v3799_v26 = vunpack.i.l.bf16 %v3798_v24  ;;  %3510 = vmatpush3.msra.mxu0 %v1635_v23 }
 0x63c   : > { %3512 = vmatmul.mubr.msk.f32.vlgmr.msra.gmra.mrb[30].mxu0 %vm1063_vm8, %v1624_v22  ;;  %3699 = vmatprep.subr.bf16.mxu0 %v3958_v31 }
 0x63d   : > { %v3697_v29 = vpack.c.bf16 %v3800_v25, %v3799_v26  ;;  %3514 = vmatprep.mubr.msk.f32.mxu0 %vm3955_vm2, %v3954_v6 }
 0x63e   : > { %v1733_v33 = vpop.permute.xlu1 %1732 }
 0x63f   : > { %3698 = vmatpush3.bf16.msra.mxu1 %v3697_v29 }
 0x640   : > { %3515 = vmatmul.mubr.msk.f32.gmra.mrb[32].mxu0 %vm1063_vm8, %v1625_v1  ;;  %3524 = vmatprep.subr.mxu1 %v3954_v6 }
 0x641   : > { %3517 = vmatprep.mubr.msk.f32.mxu0 %vm3955_vm2, %v3954_v6 }
 0x642   : > { %3702 = vmatpush3.bf16.xpose.msk.msra.mxu0 %vm4248_vm7, %v3700_v32  ;;  %v1877_v38 = vpop.permute.xlu1 %1876 }
 0x643   : > { %3525 = vmatpush3.msra.mxu1 %v1733_v33  ;;  %3539 = vmatprep.subr.mxu0 %v3954_v6 }
 0x644   : > { %3518 = vmatmul.mubr.msk.f32.gmra.mrb[34].mxu0 %vm1063_vm8, %v1626_v34  ;;  %3703 = vmatprep.subr.bf16.mxu1 %v3958_v31 }
 0x645   : > { %3541 = vmatprep.mubr.msk.f32.mxu0 %vm3955_vm2, %v3954_v6 }
 0x646   : > { %v1867_v40 = vpop.permute.xlu1 %1866 }
 0x64a   : > { %3540 = vmatpush3.xpose.msk.msra.mxu0 %vm857_vm6, %v1877_v38  ;;  %v1871_v47 = vpop.permute.xlu1 %1870 }
 0x64b   : > { %3707 = vmatprep.subr.bf16.mxu0 %v3958_v31 }
 0x64d   : > { %3542 = vmatmul.mubr.msk.f32.vlgmr.msra.gmra.mrb[36].mxu0 %vm857_vm6, %v1867_v40 }
 0x64e   : > { %3544 = vmatprep.mubr.msk.f32.mxu0 %vm3955_vm2, %v3954_v6  ;;  %v1974_v62 = vpop.permute.xlu1 %1973 }
 0x651   : > { %3545 = vmatmul.mubr.msk.f32.gmra.mrb[38].mxu0 %vm857_vm6, %v1869_v46 }
 0x652   : > { %3547 = vmatprep.mubr.msk.f32.mxu0 %vm3955_vm2, %v3954_v6  ;;  %v1978_v0 = vpop.permute.xlu1 %1977 }
 0x655   : > { %3548 = vmatmul.mubr.msk.f32.gmra.mrb[40].mxu0 %vm857_vm6, %v1871_v47 }
 0x656   : > { %3571 = vmatprep.mubr.msk.f32.mxu0 %vm3955_vm2, %v3954_v6 }
 0x66c   : > { %v1611_v48 = vpop.xlane.xlu0 %1610 }
 0x66d   : > { %3886 = vrcp.f32 %v1611_v48 }
 0x670   : > { %v1614_v50 = vpop.xlane.xlu0 %1613 }
 0x671   : > { %3888 = vrcp.f32 %v1614_v50 }
 0x674   : > { %v1617_v51 = vpop.xlane.xlu0 %1616 }
 0x675   : > { %3890 = vrcp.f32 %v1617_v51 }
 0x677   : > { %v3887_v54 = vpop.eup %3886 }
 0x678   : > { %v1627_v55 = vmul.f32 %v3887_v54, %v4431_v8  ;;  %v1984_v61 = vpop.permute.xlu0 %1983 }
 0x67a   : > { %3527 = vmatmul.mubr.msk.f32.vlgmr.msra.gmra.mrb[42].mxu1 %vm1063_vm8, %v1627_v55 }
 0x67b   : > { %v3889_v57 = vpop.eup %3888  ;;  %3706 = vmatpush3.bf16.xpose.msk.msra.mxu1 %vm4248_vm7, %v3704_v56  ;;  %3529 = vmatprep.mubr.msk.f32.mxu1 %vm3955_vm2, %v3954_v6 }
 0x67c   : > { %v1628_v58 = vmul.f32 %v3889_v57, %v4435_v9  ;;  %3554 = vmatprep.subr.mxu1 %v3954_v6  ;;  %v1976_v63 = vpop.permute.xlu0 %1975 }
 0x67e   : > { %3530 = vmatmul.mubr.msk.f32.gmra.mrb[44].mxu1 %vm1063_vm8, %v1628_v58 }
 0x67f   : > { %v3891_v59 = vpop.eup %3890  ;;  %3532 = vmatprep.mubr.msk.f32.mxu1 %vm3955_vm2, %v3954_v6 }
 0x680   : > { %v1629_v60 = vmul.f32 %v3891_v59, %v4439_v11 }
 0x682   : > { %3533 = vmatmul.mubr.msk.f32.gmra.mrb[46].mxu1 %vm1063_vm8, %v1629_v60 }
 0x683   : > { %3555 = vmatpush3.xpose.msk.msra.mxu1 %vm857_vm6, %v1984_v61  ;;  %3556 = vmatprep.mubr.msk.f32.mxu1 %vm3955_vm2, %v3954_v6 }
 0x684   : > { %3710 = vmatprep.subr.bf16.mxu1 %v3958_v31 }
 0x686   : > { %3557 = vmatmul.mubr.msk.f32.vlgmr.msra.gmra.mrb[48].mxu1 %vm857_vm6, %v1974_v62 }
 0x687   : > { %3559 = vmatprep.mubr.msk.f32.mxu1 %vm3955_vm2, %v3954_v6 }
 0x68a   : > { %3560 = vmatmul.mubr.msk.f32.gmra.mrb[50].mxu1 %vm857_vm6, %v1976_v63 }
 0x68b   : > { %3562 = vmatprep.mubr.msk.f32.mxu1 %vm3955_vm2, %v3954_v6 }
 0x68e   : > { %3563 = vmatmul.mubr.msk.f32.gmra.mrb[52].mxu1 %vm857_vm6, %v1978_v0 }
 0x68f   : > { %3586 = vmatprep.mubr.msk.f32.mxu1 %vm3955_vm2, %v3954_v6 }
 0x70f   : > { %v4503_v2 = vpop.f32.mrb[30].mxu0 }
 0x710   : > { %v3513_v36 = vpop.f32.mrb[31].mxu0 }
 0x713   : > { %v4505_v4 = vpop.f32.mrb[32].mxu0 }
 0x714   : > { %v3516_v5 = vpop.f32.mrb[33].mxu0 }
 0x715   : > { %v4544_v5 = vld [vmem:[#allocation2 + $0x8] sm:$0xff] }
 0x717   : > { %v4507_v7 = vpop.f32.mrb[34].mxu0 }
 0x718   : > { %v3519_v35 = vpop.f32.mrb[35].mxu0 }
 0x720   : > { %v1956_v8 = vpop.f32.mrb[36].mxu0 }
 0x721   : > { %v2077_v42 = vmul.f32 0.35355338, %v1956_v8  ;;  %v3543_v9 = vpop.f32.mrb[37].mxu0  ;;  %v4549_v8 = vld [vmem:[#allocation2 + $0x10] sm:$0xff] }
 0x723   : > { %v2083_v10 = vadd.f32 %v2077_v42, %v4046_v3 }
 0x724   : > { %v1961_v11 = vpop.f32.mrb[38].mxu0 }
 0x725   : > { %v2078_v12 = vmul.f32 0.35355338, %v1961_v11  ;;  %v3546_v13 = vpop.f32.mrb[39].mxu0  ;;  %v2089_v14 = vsel %vm1063_vm8, %v2083_v10, -inf  ;;  %v4556_v11 = vld [vmem:[#allocation2 + $0x28] sm:$0xff] }
 0x726   : > { %2090 = vmax.xlane.f32.xlu0 %v2089_v14  ;;  %v4559_v13 = vld [vmem:[#allocation2 + $0x18] sm:$0xff] }
 0x727   : > { %v2084_v15 = vadd.f32 %v2078_v12, %v4046_v3 }
 0x728   : > { %v1966_v16 = vpop.f32.mrb[40].mxu0 }
 0x729   : > { %v2079_v17 = vmul.f32 0.35355338, %v1966_v16  ;;  %v3549_v18 = vpop.f32.mrb[41].mxu0  ;;  %v2092_v19 = vsel %vm1063_vm8, %v2084_v15, -inf }
 0x72a   : > { %2093 = vmax.xlane.f32.xlu1 %v2092_v19 }
 0x72b   : > { %v2085_v20 = vadd.f32 %v2079_v17, %v4046_v3 }
 0x72d   : > { %v2095_v21 = vsel %vm1063_vm8, %v2085_v20, -inf }
 0x72e   : > { %2096 = vmax.xlane.f32.xlu0 %v2095_v21  ;;  %v4579_v21 = vld [vmem:[#allocation2 + $0x20] sm:$0xff] }
 0x74d   : > { %v4515_v22 = vpop.f32.mrb[42].mxu1 }
 0x74e   : > { %v3528_v23 = vpop.f32.mrb[43].mxu1 }
 0x751   : > { %v4517_v24 = vpop.f32.mrb[44].mxu1 }
 0x752   : > { %v3531_v43 = vpop.f32.mrb[45].mxu1 }
 0x755   : > { %v4519_v25 = vpop.f32.mrb[46].mxu1 }
 0x756   : > { %v3534_v26 = vpop.f32.mrb[47].mxu1 }
 0x759   : > { %v2063_v27 = vpop.f32.mrb[48].mxu1 }
 0x75a   : > { %v2080_v28 = vmul.f32 0.35355338, %v2063_v27  ;;  %v3558_v29 = vpop.f32.mrb[49].mxu1 }
 0x75c   : > { %v2086_v1 = vadd.f32 %v2080_v28, %v4046_v3 }
 0x75d   : > { %v2068_v30 = vpop.f32.mrb[50].mxu1 }
 0x75e   : > { %v2081_v32 = vmul.f32 0.35355338, %v2068_v30  ;;  %v3561_v33 = vpop.f32.mrb[51].mxu1  ;;  %v2098_v34 = vsel %vm1063_vm8, %v2086_v1, -inf }
 0x75f   : > { %2099 = vmax.xlane.f32.xlu0 %v2098_v34 }
 0x760   : > { %v2087_v38 = vadd.f32 %v2081_v32, %v4046_v3 }
 0x761   : > { %v2073_v39 = vpop.f32.mrb[52].mxu1 }
 0x762   : > { %v2082_v40 = vmul.f32 0.35355338, %v2073_v39  ;;  %v3564_v46 = vpop.f32.mrb[53].mxu1  ;;  %v2101_v47 = vsel %vm1063_vm8, %v2087_v38, -inf }
 0x763   : > { %2102 = vmax.xlane.f32.xlu1 %v2101_v47 }
 0x764   : > { %v2088_v48 = vadd.f32 %v2082_v40, %v4046_v3 }
 0x766   : > { %v2104_v50 = vsel %vm1063_vm8, %v2088_v48, -inf }
 0x767   : > { %2105 = vmax.xlane.f32.xlu0 %v2104_v50 }
 0x7b3   : > { %v2091_v51 = vpop.xlane.xlu0 %2090 }
 0x7b4   : > { %v2107_v52 = vsub.f32 %v2083_v10, %v2091_v51 }
 0x7b6   : > { %v2113_v53 = vmul.f32 1.442695, %v2107_v52 }
 0x7b7   : > { %v2094_v54 = vpop.xlane.xlu1 %2093 }
 0x7b8   : > { %3892 = vpow2.f32 %v2113_v53  ;;  %v2108_v55 = vsub.f32 %v2084_v15, %v2094_v54 }
 0x7ba   : > { %v2115_v56 = vmul.f32 1.442695, %v2108_v55 }
 0x7bb   : > { %v2097_v57 = vpop.xlane.xlu0 %2096 }
 0x7bc   : > { %3894 = vpow2.f32 %v2115_v56  ;;  %v2109_v58 = vsub.f32 %v2085_v20, %v2097_v57 }
 0x7be   : > { %v2117_v59 = vmul.f32 1.442695, %v2109_v58 }
 0x7c0   : > { %3896 = vpow2.f32 %v2117_v59 }
 0x7c2   : > { %v4527_v60 = vpop.eup %3892 }
 0x7c3   : > { %v2125_v61 = vsel %vm1063_vm8, %v4527_v60, 0.0 }
 0x7c4   : > { %2126 = vadd.xlane.f32.xlu1 %v2125_v61 }
 0x7c6   : > { %v4531_v62 = vpop.eup %3894 }
 0x7c7   : > { %v2128_v63 = vsel %vm1063_vm8, %v4531_v62, 0.0 }
 0x7c8   : > { %2129 = vadd.xlane.f32.xlu0 %v2128_v63 }
 0x7ca   : > { %v4535_v0 = vpop.eup %3896 }
 0x7cb   : > { %v2131_v36 = vsel %vm1063_vm8, %v4535_v0, 0.0 }
 0x7cc   : > { %2132 = vadd.xlane.f32.xlu1 %v2131_v36 }
 0x7dd   : > { %3807 = vrot.lane.b32.xlu1 %v4213_v37, %s3965_s17 }
 0x7de   : > { %2159 = vrot.lane.b32.xlu0 %v4218_v41, %s3965_s17 }
 0x7e1   : > { %3812 = vrot.lane.b32.xlu1 %v4213_v37, %s3966_s16  ;;  %v4552_v37 = vld [vmem:[#allocation2] sm:$0xff] }
 0x7e2   : > { %3822 = vrot.lane.b32.xlu0 %v4228_v44, %s3966_s16 }
 0x7e5   : > { %3817 = vrot.lane.b32.xlu1 %v4228_v44, %s3965_s17 }
 0x7e6   : > { %2393 = vrot.lane.b32.xlu0 %v4544_v5, %s3967_s14 }
 0x7e9   : > { %2257 = vrot.lane.b32.xlu1 %v4231_v45, %s3965_s17 }
 0x7ec   : > { %v2100_v35 = vpop.xlane.xlu0 %2099 }
 0x7ed   : > { %2401 = vrot.lane.b32.xlu1 %v4549_v8, %s3966_s16  ;;  %v2110_v41 = vsub.f32 %v2086_v1, %v2100_v35 }
 0x7ef   : > { %v2119_v44 = vmul.f32 1.442695, %v2110_v41 }
 0x7f0   : > { %v2103_v42 = vpop.xlane.xlu1 %2102 }
 0x7f1   : > { %2391 = vrot.lane.b32.xlu1 %v4552_v37, %s3967_s14  ;;  %v2111_v9 = vsub.f32 %v2087_v38, %v2103_v42  ;;  %3898 = vpow2.f32 %v2119_v44 }
 0x7f3   : > { %v2121_v45 = vmul.f32 1.442695, %v2111_v9 }
 0x7f4   : > { %v2106_v10 = vpop.xlane.xlu0 %2105 }
 0x7f5   : > { %2508 = vrot.lane.b32.xlu1 %v4556_v11, %s3966_s16  ;;  %v2112_v12 = vsub.f32 %v2088_v48, %v2106_v10  ;;  %3900 = vpow2.f32 %v2121_v45 }
 0x7f7   : > { %v2123_v14 = vmul.f32 1.442695, %v2112_v12 }
 0x7f9   : > { %2498 = vrot.lane.b32.xlu1 %v4559_v13, %s3967_s14  ;;  %3902 = vpow2.f32 %v2123_v14 }
 0x7fb   : > { %v4565_v15 = vpop.eup %3898 }
 0x7fc   : > { %v2134_v16 = vsel %vm1063_vm8, %v4565_v15, 0.0 }
 0x7fd   : > { %2502 = vrot.lane.b32.xlu1 %v4556_v11, %s3967_s14 }
 0x7ff   : > { %v4569_v17 = vpop.eup %3900 }
 0x800   : > { %v2137_v18 = vsel %vm1063_vm8, %v4569_v17, 0.0 }
 0x803   : > { %v4573_v19 = vpop.eup %3902 }
 0x804   : > { %v2140_v20 = vsel %vm1063_vm8, %v4573_v19, 0.0 }
 0x805   : > { %2135 = vadd.xlane.f32.xlu0 %v2134_v16 }
 0x809   : > { %2138 = vadd.xlane.f32.xlu0 %v2137_v18 }
 0x80d   : > { %2141 = vadd.xlane.f32.xlu0 %v2140_v20 }
 0x823   : > { %2395 = vrot.lane.b32.xlu0 %v4549_v8, %s3967_s14 }
 0x827   : > { %2500 = vrot.lane.b32.xlu0 %v4579_v21, %s3967_s14 }
 0x851   : > { %v2127_v23 = vpop.xlane.xlu1 %2126 }
 0x852   : > { %3904 = vrcp.f32 %v2127_v23 }
 0x855   : > { %v2130_v43 = vpop.xlane.xlu0 %2129 }
 0x856   : > { %3906 = vrcp.f32 %v2130_v43 }
 0x859   : > { %v2133_v26 = vpop.xlane.xlu1 %2132  ;;  %v2160_v34 = vpop.permute.xlu0 %2159 }
 0x85a   : > { %3908 = vrcp.f32 %v2133_v26 }
 0x85c   : > { %v3905_v32 = vpop.eup %3904 }
 0x85d   : > { %v3808_v27 = vpop.permute.xlu1 %3807  ;;  %v2149_v33 = vmul.f32 %v3905_v32, %v4527_v60  ;;  %v3823_v57 = vpop.permute.xlu0 %3822 }
 0x85e   : > { %v3810_v28 = vunpack.i.h.bf16 %v3808_v27  ;;  %v3809_v29 = vunpack.i.l.bf16 %v3808_v27  ;;  %v3825_v63 = vunpack.i.h.bf16 %v3823_v57 }
 0x860   : > { %v3708_v1 = vpack.c.bf16 %v3810_v28, %v3809_v29  ;;  %v3907_v39 = vpop.eup %3906 }
 0x861   : > { %v3813_v30 = vpop.permute.xlu1 %3812  ;;  %v2150_v51 = vmul.f32 %v3907_v39, %v4531_v62  ;;  %v2394_v59 = vpop.permute.xlu0 %2393 }
 0x862   : > { %3709 = vmatpush3.bf16.msra.mxu0 %v3708_v1  ;;  %v3815_v47 = vunpack.i.h.bf16 %v3813_v30  ;;  %v3814_v48 = vunpack.i.l.bf16 %v3813_v30 }
 0x863   : > { %3569 = vmatprep.subr.mxu0 %v3954_v6 }
 0x864   : > { %v3909_v52 = vpop.eup %3908  ;;  %v3714_v53 = vpack.c.bf16 %v3815_v47, %v3814_v48 }
 0x865   : > { %v3818_v38 = vpop.permute.xlu1 %3817  ;;  %v2151_v55 = vmul.f32 %v3909_v52, %v4535_v0  ;;  %v3824_v0 = vunpack.i.l.bf16 %v3823_v57 }
 0x866   : > { %v3820_v40 = vunpack.i.h.bf16 %v3818_v38  ;;  %v3819_v46 = vunpack.i.l.bf16 %v3818_v38  ;;  %3570 = vmatpush3.msra.mxu0 %v2160_v34 }
 0x867   : > { %3572 = vmatmul.mubr.msk.f32.vlgmr.msra.gmra.mrb[42].mxu0 %vm1063_vm8, %v2149_v33  ;;  %3713 = vmatprep.subr.bf16.mxu0 %v3958_v31  ;;  %v3718_v42 = vpack.c.bf16 %v3825_v63, %v3824_v0 }
 0x868   : > { %v3711_v50 = vpack.c.bf16 %v3820_v40, %v3819_v46  ;;  %3574 = vmatprep.mubr.msk.f32.mxu0 %vm3955_vm2, %v3954_v6 }
 0x869   : > { %v2258_v54 = vpop.permute.xlu1 %2257 }
 0x86a   : > { %3712 = vmatpush3.bf16.msra.mxu1 %v3711_v50 }
 0x86b   : > { %3575 = vmatmul.mubr.msk.f32.gmra.mrb[44].mxu0 %vm1063_vm8, %v2150_v51  ;;  %3584 = vmatprep.subr.mxu1 %v3954_v6 }
 0x86c   : > { %3577 = vmatprep.mubr.msk.f32.mxu0 %vm3955_vm2, %v3954_v6 }
 0x86d   : > { %3716 = vmatpush3.bf16.xpose.msk.msra.mxu0 %vm4248_vm7, %v3714_v53  ;;  %v2402_v56 = vpop.permute.xlu1 %2401 }
 0x86e   : > { %3585 = vmatpush3.msra.mxu1 %v2258_v54  ;;  %3599 = vmatprep.subr.mxu0 %v3954_v6 }
 0x86f   : > { %3578 = vmatmul.mubr.msk.f32.gmra.mrb[46].mxu0 %vm1063_vm8, %v2151_v55  ;;  %3717 = vmatprep.subr.bf16.mxu1 %v3958_v31 }
 0x870   : > { %3601 = vmatprep.mubr.msk.f32.mxu0 %vm3955_vm2, %v3954_v6 }
 0x871   : > { %v2392_v58 = vpop.permute.xlu1 %2391 }
 0x875   : > { %3600 = vmatpush3.xpose.msk.msra.mxu0 %vm857_vm6, %v2402_v56  ;;  %v2509_v45 = vpop.permute.xlu1 %2508 }
 0x876   : > { %3721 = vmatprep.subr.bf16.mxu0 %v3958_v31 }
 0x878   : > { %3602 = vmatmul.mubr.msk.f32.vlgmr.msra.gmra.mrb[48].mxu0 %vm857_vm6, %v2392_v58 }
 0x879   : > { %3604 = vmatprep.mubr.msk.f32.mxu0 %vm3955_vm2, %v3954_v6  ;;  %v2499_v49 = vpop.permute.xlu1 %2498 }
 0x87c   : > { %3605 = vmatmul.mubr.msk.f32.gmra.mrb[50].mxu0 %vm857_vm6, %v2394_v59 }
 0x87d   : > { %3607 = vmatprep.mubr.msk.f32.mxu0 %vm3955_vm2, %v3954_v6 }
 0x892   : > { %v2136_v60 = vpop.xlane.xlu0 %2135 }
 0x893   : > { %3910 = vrcp.f32 %v2136_v60 }
 0x896   : > { %v2139_v61 = vpop.xlane.xlu0 %2138 }
 0x897   : > { %3912 = vrcp.f32 %v2139_v61 }
 0x89a   : > { %v2142_v62 = vpop.xlane.xlu0 %2141 }
 0x89b   : > { %3914 = vrcp.f32 %v2142_v62 }
 0x89d   : > { %v3911_v36 = vpop.eup %3910 }
 0x89e   : > { %v2152_v35 = vmul.f32 %v3911_v36, %v4565_v15  ;;  %v2396_v41 = vpop.permute.xlu0 %2395  ;;  %v2503_v15 = vpop.permute.xlu1 %2502 }
 0x89f   : > { %3608 = vmatmul.mubr.msk.f32.gmra.mrb[52].mxu0 %vm857_vm6, %v2396_v41 }
 0x8a0   : > { %3587 = vmatmul.mubr.msk.f32.vlgmr.msra.gmra.mrb[54].mxu1 %vm1063_vm8, %v2152_v35  ;;  %3631 = vmatprep.mubr.msk.f32.mxu0 %vm3955_vm2, %v3954_v6 }
 0x8a1   : > { %v3913_v44 = vpop.eup %3912  ;;  %3720 = vmatpush3.bf16.xpose.msk.msra.mxu1 %vm4248_vm7, %v3718_v42  ;;  %3589 = vmatprep.mubr.msk.f32.mxu1 %vm3955_vm2, %v3954_v6 }
 0x8a2   : > { %v2153_v9 = vmul.f32 %v3913_v44, %v4569_v17  ;;  %3614 = vmatprep.subr.mxu1 %v3954_v6  ;;  %v2501_v14 = vpop.permute.xlu0 %2500 }
 0x8a4   : > { %3590 = vmatmul.mubr.msk.f32.gmra.mrb[56].mxu1 %vm1063_vm8, %v2153_v9 }
 0x8a5   : > { %v3915_v10 = vpop.eup %3914  ;;  %3592 = vmatprep.mubr.msk.f32.mxu1 %vm3955_vm2, %v3954_v6 }
 0x8a6   : > { %v2154_v12 = vmul.f32 %v3915_v10, %v4573_v19 }
 0x8a8   : > { %3593 = vmatmul.mubr.msk.f32.gmra.mrb[58].mxu1 %vm1063_vm8, %v2154_v12 }
 0x8a9   : > { %3615 = vmatpush3.xpose.msk.msra.mxu1 %vm857_vm6, %v2509_v45  ;;  %3616 = vmatprep.mubr.msk.f32.mxu1 %vm3955_vm2, %v3954_v6 }
 0x8aa   : > { %3724 = vmatprep.subr.bf16.mxu1 %v3958_v31 }
 0x8ac   : > { %3617 = vmatmul.mubr.msk.f32.vlgmr.msra.gmra.mrb[60].mxu1 %vm857_vm6, %v2499_v49 }
 0x8ad   : > { %3619 = vmatprep.mubr.msk.f32.mxu1 %vm3955_vm2, %v3954_v6 }
 0x8b0   : > { %3620 = vmatmul.mubr.msk.f32.gmra.mrb[62].mxu1 %vm857_vm6, %v2501_v14 }
 0x8b1   : > { %3622 = vmatprep.mubr.msk.f32.mxu1 %vm3955_vm2, %v3954_v6 }
 0x8b4   : > { %3623 = vmatmul.mubr.msk.f32.gmra.mrb[64].mxu1 %vm857_vm6, %v2503_v15 }
 0x8b5   : > { %3646 = vmatprep.mubr.msk.f32.mxu1 %vm3955_vm2, %v3954_v6 }
 0x93a   : > { %v4639_v16 = vpop.f32.mrb[42].mxu0 }
 0x93b   : > { %v3573_v31 = vpop.f32.mrb[43].mxu0 }
 0x93e   : > { %v4641_v17 = vpop.f32.mrb[44].mxu0 }
 0x93f   : > { %v3576_v18 = vpop.f32.mrb[45].mxu0 }
 0x942   : > { %v4643_v19 = vpop.f32.mrb[46].mxu0 }
 0x943   : > { %v3579_v20 = vpop.f32.mrb[47].mxu0 }
 0x94b   : > { %v2481_v23 = vpop.f32.mrb[48].mxu0 }
 0x94c   : > { %v2602_v43 = vmul.f32 0.35355338, %v2481_v23  ;;  %v3603_v26 = vpop.f32.mrb[49].mxu0 }
 0x94e   : > { %v2608_v27 = vadd.f32 %v2602_v43, %v4046_v3 }
 0x94f   : > { %v2486_v28 = vpop.f32.mrb[50].mxu0 }
 0x950   : > { %v2603_v29 = vmul.f32 0.35355338, %v2486_v28  ;;  %v3606_v1 = vpop.f32.mrb[51].mxu0  ;;  %v2614_v30 = vsel %vm1063_vm8, %v2608_v27, -inf }
 0x951   : > { %2615 = vmax.xlane.f32.xlu0 %v2614_v30 }
 0x952   : > { %v2609_v32 = vadd.f32 %v2603_v29, %v4046_v3 }
 0x954   : > { %v2617_v33 = vsel %vm1063_vm8, %v2609_v32, -inf }
 0x955   : > { %2618 = vmax.xlane.f32.xlu1 %v2617_v33 }
 0x972   : > { %v2491_v34 = vpop.f32.mrb[52].mxu0 }
 0x973   : > { %v2604_v38 = vmul.f32 0.35355338, %v2491_v34  ;;  %v4649_v39 = vpop.f32.mrb[54].mxu1  ;;  %v3609_v40 = vpop.f32.mrb[53].mxu0 }
 0x974   : > { %v3588_v46 = vpop.f32.mrb[55].mxu1 }
 0x975   : > { %v2610_v47 = vadd.f32 %v2604_v38, %v4046_v3  ;;  %v3826_v38 = vpack.i.bf16 %v4544_v5, %v4552_v37  ;;  %v3831_v37 = vpack.i.bf16 %v4579_v21, %v4559_v13 }
 0x977   : > { %v4652_v48 = vpop.f32.mrb[56].mxu1  ;;  %v2620_v50 = vsel %vm1063_vm8, %v2610_v47, -inf }
 0x978   : > { %v3591_v51 = vpop.f32.mrb[57].mxu1  ;;  %2621 = vmax.xlane.f32.xlu0 %v2620_v50 }
 0x97b   : > { %v4655_v52 = vpop.f32.mrb[58].mxu1 }
 0x97c   : > { %v3594_v53 = vpop.f32.mrb[59].mxu1 }
 0x97f   : > { %v2588_v54 = vpop.f32.mrb[60].mxu1 }
 0x980   : > { %v2605_v55 = vmul.f32 0.35355338, %v2588_v54  ;;  %v3618_v56 = vpop.f32.mrb[61].mxu1 }
 0x982   : > { %v2611_v57 = vadd.f32 %v2605_v55, %v4046_v3 }
 0x983   : > { %v2593_v58 = vpop.f32.mrb[62].mxu1 }
 0x984   : > { %v2606_v59 = vmul.f32 0.35355338, %v2593_v58  ;;  %v3621_v60 = vpop.f32.mrb[63].mxu1  ;;  %v2623_v61 = vsel %vm1063_vm8, %v2611_v57, -inf }
 0x985   : > { %2624 = vmax.xlane.f32.xlu0 %v2623_v61 }
 0x986   : > { %v2612_v62 = vadd.f32 %v2606_v59, %v4046_v3 }
 0x987   : > { %v2598_v63 = vpop.f32.mrb[64].mxu1 }
 0x988   : > { %v2607_v0 = vmul.f32 0.35355338, %v2598_v63  ;;  %v3624_v36 = vpop.f32.mrb[65].mxu1  ;;  %v2626_v35 = vsel %vm1063_vm8, %v2612_v62, -inf }
 0x989   : > { %2627 = vmax.xlane.f32.xlu1 %v2626_v35 }
 0x98a   : > { %v2613_v41 = vadd.f32 %v2607_v0, %v4046_v3 }
 0x98c   : > { %v2629_v42 = vsel %vm1063_vm8, %v2613_v41, -inf }
 0x98d   : > { %2630 = vmax.xlane.f32.xlu0 %v2629_v42 }
 0x9de   : > { %v2616_v44 = vpop.xlane.xlu0 %2615 }
 0x9df   : > { %v2632_v9 = vsub.f32 %v2608_v27, %v2616_v44 }
 0x9e1   : > { %v2638_v10 = vmul.f32 1.442695, %v2632_v9 }
 0x9e2   : > { %v2619_v45 = vpop.xlane.xlu1 %2618 }
 0x9e3   : > { %3916 = vpow2.f32 %v2638_v10  ;;  %v2633_v12 = vsub.f32 %v2609_v32, %v2619_v45 }
 0x9e5   : > { %v2640_v49 = vmul.f32 1.442695, %v2633_v12 }
 0x9e7   : > { %3918 = vpow2.f32 %v2640_v49 }
 0x9ed   : > { %v3917_v14 = vpop.eup %3916 }
 0x9ee   : > { %v2650_v15 = vsel %vm1063_vm8, %v3917_v14, 0.0 }
 0x9ef   : > { %2651 = vadd.xlane.f32.xlu1 %v2650_v15 }
 0x9f1   : > { %v4664_v31 = vpop.eup %3918 }
 0x9f2   : > { %v2653_v3 = vsel %vm1063_vm8, %v4664_v31, 0.0 }
 0x9f3   : > { %2654 = vadd.xlane.f32.xlu0 %v2653_v3  ;;  %v3842_v3 = vld [vmem:[%s4074_s1] sm:$0xff]  }
 0xa05   : > { %v2622_v18 = vpop.xlane.xlu0 %2621 }
 0xa06   : > { %v2634_v20 = vsub.f32 %v2610_v47, %v2622_v18  ;;  %v3843_v18 = vld [vmem:[%s4074_s1 + $0x8] sm:$0xff]  }
 0xa08   : > { %v2642_v23 = vmul.f32 1.442695, %v2634_v20 }
 0xa0a   : > { %3920 = vpow2.f32 %v2642_v23 }
 0xa12   : > { %v2625_v43 = vpop.xlane.xlu0 %2624 }
 0xa13   : > { %v2635_v26 = vsub.f32 %v2611_v57, %v2625_v43 }
 0xa14   : > { %v4668_v27 = vpop.eup %3920 }
 0xa15   : > { %v2644_v28 = vmul.f32 1.442695, %v2635_v26  ;;  %v2656_v29 = vsel %vm1063_vm8, %v4668_v27, 0.0 }
 0xa16   : > { %2657 = vadd.xlane.f32.xlu1 %v2656_v29  ;;  %v2628_v47 = vpop.xlane.xlu1 %2627 }
 0xa17   : > { %3922 = vpow2.f32 %v2644_v28  ;;  %v2636_v50 = vsub.f32 %v2612_v62, %v2628_v47 }
 0xa19   : > { %v2646_v51 = vmul.f32 1.442695, %v2636_v50 }
 0xa1a   : > { %v2631_v1 = vpop.xlane.xlu0 %2630 }
 0xa1b   : > { %v2637_v30 = vsub.f32 %v2613_v41, %v2631_v1 }
 0xa1d   : > { %v2648_v32 = vmul.f32 1.442695, %v2637_v30 }
 0xa1f   : > { %3924 = vpow2.f32 %v2648_v32 }
 0xa20   : > { %3926 = vpow2.f32 %v2646_v51 }
 0xa21   : > { %v4672_v33 = vpop.eup %3922 }
 0xa22   : > { %v2659_v34 = vsel %vm1063_vm8, %v4672_v33, 0.0 }
 0xa23   : > { %2660 = vadd.xlane.f32.xlu0 %v2659_v34 }
 0xa27   : > { %3827 = vrot.lane.b32.xlu1 %v3826_v38, %s3968_s26 }
 0xa29   : > { %v4678_v40 = vpop.eup %3924 }
 0xa2a   : > { %v2665_v46 = vsel %vm1063_vm8, %v4678_v40, 0.0  ;;  %v4685_v53 = vpop.eup %3926 }
 0xa2b   : > { %2666 = vadd.xlane.f32.xlu0 %v2665_v46  ;;  %v2662_v5 = vsel %vm1063_vm8, %v4685_v53, 0.0 }
 0xa41   : > { %2684 = vrot.lane.b32.xlu0 %v4549_v8, %s3968_s26 }
 0xa45   : > { %1832 = vrot.lane.b32.xlu0 %v4503_v2, %s3969_s25 }
 0xa49   : > { %2357 = vrot.lane.b32.xlu0 %v4639_v16, %s3970_s27 }
 0xa4b   : > { %2663 = vadd.xlane.f32.xlu1 %v2662_v5 }
 0xa5c   : > { %3832 = vrot.lane.b32.xlu1 %v3831_v37, %s3968_s26 }
 0xa60   : > { %2782 = vrot.lane.b32.xlu1 %v4556_v11, %s3968_s26 }
 0xa64   : > { %1834 = vrot.lane.b32.xlu1 %v4505_v4, %s3969_s25 }
 0xa68   : > { %2359 = vrot.lane.b32.xlu1 %v4641_v17, %s3970_s27 }
 0xa7c   : > { %v2652_v2 = vpop.xlane.xlu1 %2651 }
 0xa7d   : > { %3928 = vrcp.f32 %v2652_v2 }
 0xa80   : > { %v2655_v13 = vpop.xlane.xlu0 %2654 }
 0xa81   : > { %3930 = vrcp.f32 %v2655_v13  ;;  %v3239_v13 = vld [vmem:[%s480_s2] ss:$0 sm:$0xff] }
 0xa87   : > { %v3929_v57 = vpop.eup %3928 }
 0xa88   : > { %v2674_v4 = vmul.f32 %v3929_v57, %v3917_v14 }
 0xa8b   : > { %v3931_v59 = vpop.eup %3930 }
 0xa8c   : > { %v2675_v60 = vmul.f32 %v3931_v59, %v4664_v31 }
 0xaa3   : > { %v2658_v8 = vpop.xlane.xlu1 %2657 }
 0xaa4   : > { %3932 = vrcp.f32 %v2658_v8 }
 0xaa7   : > { %v3828_v54 = vpop.permute.xlu1 %3827 }
 0xaa8   : > { %v3830_v16 = vunpack.i.h.bf16 %v3828_v54  ;;  %v3829_v55 = vunpack.i.l.bf16 %v3828_v54 }
 0xaaa   : > { %v3722_v56 = vpack.c.bf16 %v3830_v16, %v3829_v55 }
 0xaac   : > { %3723 = vmatpush3.bf16.msra.mxu0 %v3722_v56 }
 0xaad   : > { %3629 = vmatprep.subr.mxu0 %v3954_v6 }
 0xaae   : > { %v3933_v61 = vpop.eup %3932 }
 0xaaf   : > { %v2676_v63 = vmul.f32 %v3933_v61, %v4668_v27 }
 0xab0   : > { %v2661_v21 = vpop.xlane.xlu0 %2660 }
 0xab1   : > { %3934 = vrcp.f32 %v2661_v21  ;;  %v2907_v21 = vld [vmem:[%s4826_s10] sm:$0xff] }
 0xab8   : > { %v2667_v11 = vpop.xlane.xlu0 %2666 }
 0xabb   : > { %v3935_v9 = vpop.eup %3934 }
 0xabc   : > { %v2685_v58 = vpop.permute.xlu0 %2684  ;;  %v2677_v10 = vmul.f32 %v3935_v9, %v4672_v33 }
 0xabd   : > { %3630 = vmatpush3.msra.mxu0 %v2685_v58 }
 0xabe   : > { %3632 = vmatmul.mubr.msk.f32.vlgmr.msra.gmra.mrb[54].mxu0 %vm1063_vm8, %v2674_v4  ;;  %3655 = vmatprep.subr.bf16.mxu0 %v3954_v6 }
 0xabf   : > { %3634 = vmatprep.mubr.msk.f32.mxu0 %vm3955_vm2, %v3954_v6  ;;  %3656 = vmatpush3.bf16.msra.mxu0 %v3842_v3 }
 0xac0   : > { %v1833_v17 = vpop.permute.xlu0 %1832  ;;  %3657 = vmatprep.subr.bf16.mxu0 %v3954_v6 }
 0xac1   : > { %1851 = vst.msk [vmem:[#allocation3] sm:$0xff] %vm1850_vm9, %v1833_v17 }
 0xac2   : > { %3635 = vmatmul.mubr.msk.f32.gmra.mrb[56].mxu0 %vm1063_vm8, %v2675_v60 }
 0xac3   : > { %3637 = vmatprep.mubr.msk.f32.mxu0 %vm3955_vm2, %v3954_v6  ;;  %3658 = vmatpush3.bf16.msra.mxu0 %v3843_v18 }
 0xac4   : > { %v2358_v62 = vpop.permute.xlu0 %2357 }
 0xac5   : > { %2376 = vst.msk [vmem:[#allocation3] sm:$0xff] %vm2375_vm10, %v2358_v62  ;;  %v2909_v62 = vld [vmem:[%s4826_s10 + $0x10] sm:$0xff] }
 0xac6   : > { %3638 = vmatmul.mubr.msk.f32.gmra.mrb[58].mxu0 %vm1063_vm8, %v2676_v63 }
 0xac7   : > { %3659 = vmatprep.mubr.msk.bf16.mxu0 %vm3955_vm2, %v3954_v6 }
 0xad8   : > { %v2664_v0 = vpop.xlane.xlu1 %2663 }
 0xad9   : > { %3936 = vrcp.f32 %v2664_v0 }
 0xada   : > { %3938 = vrcp.f32 %v2667_v11 }
 0xadc   : > { %v3833_v36 = vpop.permute.xlu1 %3832 }
 0xadd   : > { %v3835_v35 = vunpack.i.h.bf16 %v3833_v36  ;;  %v3834_v41 = vunpack.i.l.bf16 %v3833_v36 }
 0xadf   : > { %v3725_v42 = vpack.c.bf16 %v3835_v35, %v3834_v41  ;;  %v2910_v35 = vld [vmem:[%s4826_s10 + $0x18] sm:$0xff] }
 0xae0   : > { %v2783_v44 = vpop.permute.xlu1 %2782 }
 0xae1   : > { %3726 = vmatpush3.bf16.msra.mxu1 %v3725_v42 }
 0xae2   : > { %3644 = vmatprep.subr.mxu1 %v3954_v6 }
 0xae3   : > { %v3937_v12 = vpop.eup %3936 }
 0xae4   : > { %v1835_v45 = vpop.permute.xlu1 %1834  ;;  %v2678_v14 = vmul.f32 %v3937_v12, %v4685_v53  ;;  %v3939_v15 = vpop.eup %3938 }
 0xae5   : > { %1852 = vst.msk [vmem:[#allocation3 + $0x8] sm:$0xff] %vm1850_vm9, %v1835_v45  ;;  %3645 = vmatpush3.msra.mxu1 %v2783_v44  ;;  %v2679_v31 = vmul.f32 %v3939_v15, %v4678_v40  ;;  %v2911_v45 = vld [vmem:[%s4826_s10 + $0x20] sm:$0xff]  ;;  %v2912_v15 = vld [vmem:[%s4826_s10 + $0x28] sm:$0xff] }
 0xae6   : > { %3647 = vmatmul.mubr.msk.f32.vlgmr.msra.gmra.mrb[66].mxu1 %vm1063_vm8, %v2677_v10 }
 0xae7   : > { %3649 = vmatprep.mubr.msk.f32.mxu1 %vm3955_vm2, %v3954_v6 }
 0xae8   : > { %v2360_v49 = vpop.permute.xlu1 %2359 }
 0xae9   : > { %2377 = vst.msk [vmem:[#allocation3 + $0x8] sm:$0xff] %vm2375_vm10, %v2360_v49 }
 0xaea   : > { %3650 = vmatmul.mubr.msk.f32.gmra.mrb[68].mxu1 %vm1063_vm8, %v2678_v14 }
 0xaeb   : > { %3652 = vmatprep.mubr.msk.f32.mxu1 %vm3955_vm2, %v3954_v6 }
 0xaee   : > { %3653 = vmatmul.mubr.msk.f32.gmra.mrb[70].mxu1 %vm1063_vm8, %v2679_v31 }
 0xb91   : > { %v2764_v20 = vpop.f32.mrb[54].mxu0 }
 0xb92   : > { %2882 = vrot.lane.b32.xlu0 %v2764_v20, %s3971_s28  ;;  %v3633_v23 = vpop.f32.mrb[55].mxu0 }
 0xb95   : > { %v2769_v43 = vpop.f32.mrb[56].mxu0 }
 0xb96   : > { %1836 = vrot.lane.b32.xlu0 %v4507_v7, %s3969_s25  ;;  %2884 = vrot.lane.b32.xlu1 %v2769_v43, %s3971_s28  ;;  %v3636_v26 = vpop.f32.mrb[57].mxu0 }
 0xb99   : > { %v2774_v27 = vpop.f32.mrb[58].mxu0 }
 0xb9a   : > { %2361 = vrot.lane.b32.xlu0 %v4643_v19, %s3970_s27  ;;  %1838 = vrot.lane.b32.xlu1 %v4515_v22, %s3969_s25  ;;  %v3639_v28 = vpop.f32.mrb[59].mxu0 }
 0xb9e   : > { %2363 = vrot.lane.b32.xlu1 %v4649_v39, %s3970_s27  ;;  %2886 = vrot.lane.b32.xlu0 %v2774_v27, %s3971_s28 }
 0xba2   : > { %1842 = vrot.lane.b32.xlu1 %v4519_v25, %s3969_s25  ;;  %1840 = vrot.lane.b32.xlu0 %v4517_v24, %s3969_s25 }
 0xba6   : > { %2365 = vrot.lane.b32.xlu0 %v4652_v48, %s3970_s27 }
 0xbb9   : > { %v2862_v7 = vpop.f32.mrb[66].mxu1 }
 0xbba   : > { %v3648_v29 = vpop.f32.mrb[67].mxu1  ;;  %2888 = vrot.lane.b32.xlu1 %v2862_v7, %s3971_s28 }
 0xbbd   : > { %v2867_v19 = vpop.f32.mrb[68].mxu1 }
 0xbbe   : > { %v3651_v1 = vpop.f32.mrb[69].mxu1  ;;  %2367 = vrot.lane.b32.xlu1 %v4655_v52, %s3970_s27  ;;  %2890 = vrot.lane.b32.xlu0 %v2867_v19, %s3971_s28 }
 0xbc1   : > { %v2872_v22 = vpop.f32.mrb[70].mxu1 }
 0xbc2   : > { %v3654_v39 = vpop.f32.mrb[71].mxu1  ;;  %2892 = vrot.lane.b32.xlu1 %v2872_v22, %s3971_s28 }
 0xc04   : > { %v2883_v25 = vpop.permute.xlu0 %2882 }
 0xc05   : > { %2901 = vst.msk [vmem:[#allocation3] sm:$0xff] %vm2900_vm11, %v2883_v25 }
 0xc08   : > { %v1837_v24 = vpop.permute.xlu0 %1836  ;;  %v2885_v30 = vpop.permute.xlu1 %2884 }
 0xc09   : > { %1853 = vst.msk [vmem:[#allocation3 + $0x10] sm:$0xff] %vm1850_vm9, %v1837_v24 }
 0xc0a   : > { %2902 = vst.msk [vmem:[#allocation3 + $0x8] sm:$0xff] %vm2900_vm11, %v2885_v30 }
 0xc0c   : > { %v2362_v48 = vpop.permute.xlu0 %2361  ;;  %v1839_v32 = vpop.permute.xlu1 %1838  ;;  %v2913_v34 = vld [vmem:[#allocation3] sm:$0xff] }
 0xc0d   : > { %2378 = vst.msk [vmem:[#allocation3 + $0x10] sm:$0xff] %vm2375_vm10, %v2362_v48 }
 0xc0e   : > { %1854 = vst.msk [vmem:[#allocation3 + $0x18] sm:$0xff] %vm1850_vm9, %v1839_v32 }
 0xc10   : > { %v2364_v52 = vpop.permute.xlu1 %2363  ;;  %v2887_v33 = vpop.permute.xlu0 %2886 }
 0xc11   : > { %v2914_v38 = vld [vmem:[#allocation3 + $0x8] sm:$0xff]  ;;  %2379 = vst.msk [vmem:[#allocation3 + $0x18] sm:$0xff] %vm2375_vm10, %v2364_v52 }
 0xc12   : > { %2903 = vst.msk [vmem:[#allocation3 + $0x10] sm:$0xff] %vm2900_vm11, %v2887_v33  ;;  %v2923_v40 = vpack.c.bf16 %v2914_v38, %v2913_v34 }
 0xc14   : > { %3660 = vmatmul.mubr.msk.bf16.vlgmr.msra.gmra.mrb[60].mxu0 %vm535_vm3, %v2923_v40  ;;  %v1843_v46 = vpop.permute.xlu1 %1842  ;;  %v1841_v47 = vpop.permute.xlu0 %1840 }
 0xc15   : > { %3663 = vmatprep.mubr.msk.bf16.mxu0 %vm3955_vm2, %v3954_v6  ;;  %1856 = vst.msk [vmem:[#allocation3 + $0x28] sm:$0xff] %vm1850_vm9, %v1843_v46  ;;  %1855 = vst.msk [vmem:[#allocation3 + $0x20] sm:$0xff] %vm1850_vm9, %v1841_v47 }
 0xc18   : > { %v2366_v50 = vpop.permute.xlu0 %2365 }
 0xc19   : > { %2380 = vst.msk [vmem:[#allocation3 + $0x20] sm:$0xff] %vm2375_vm10, %v2366_v50  ;;  %v2915_v2 = vld [vmem:[#allocation3 + $0x10] sm:$0xff] }
 0xc2c   : > { %v2889_v51 = vpop.permute.xlu1 %2888 }
 0xc2d   : > { %2904 = vst.msk [vmem:[#allocation3 + $0x18] sm:$0xff] %vm2900_vm11, %v2889_v51 }
 0xc30   : > { %v2368_v53 = vpop.permute.xlu1 %2367  ;;  %v2891_v5 = vpop.permute.xlu0 %2890 }
 0xc31   : > { %2381 = vst.msk [vmem:[#allocation3 + $0x28] sm:$0xff] %vm2375_vm10, %v2368_v53 }
 0xc32   : > { %2905 = vst.msk [vmem:[#allocation3 + $0x20] sm:$0xff] %vm2900_vm11, %v2891_v5 }
 0xc34   : > { %v2893_v37 = vpop.permute.xlu1 %2892  ;;  %v2916_v8 = vld [vmem:[#allocation3 + $0x18] sm:$0xff] }
 0xc35   : > { %2906 = vst.msk [vmem:[#allocation3 + $0x28] sm:$0xff] %vm2900_vm11, %v2893_v37  ;;  %v2924_v54 = vpack.c.bf16 %v2916_v8, %v2915_v2 }
 0xc37   : > { %3664 = vmatmul.mubr.msk.bf16.gmra.mrb[64].mxu0 %vm535_vm3, %v2924_v54 }
 0xc38   : > { %3667 = vmatprep.mubr.msk.bf16.mxu0 %vm3955_vm2, %v3954_v6  ;;  %v2908_v6 = vld [vmem:[%s4826_s10 + $0x8] sm:$0xff] }
 0xc39   : > { %v2917_v16 = vld [vmem:[#allocation3 + $0x20] sm:$0xff] }
 0xc3c   : > { %v2918_v55 = vld [vmem:[#allocation3 + $0x28] sm:$0xff] }
 0xc3d   : > { %v2925_v56 = vpack.c.bf16 %v2918_v55, %v2917_v16 }
 0xc3f   : > { %3668 = vmatmul.mubr.msk.bf16.gmra.mrb[68].mxu0 %vm535_vm3, %v2925_v56 }
 0xce7   : > { %v2988_v11 = vpop.f32.mrb[60].mxu0 }
 0xce8   : > { %v2989_v57 = vadd.f32 %v3239_v13, %v2988_v11  ;;  %v3661_v4 = vpop.f32.mrb[61].mxu0 }
 0xce9   : > { %v2991_v58 = vpop.f32.mrb[62].mxu0 }
 0xcea   : > { %v3011_v59 = vadd.f32 %v2989_v57, %v2907_v21  ;;  %v2992_v17 = vadd.f32 %v3239_v13, %v2991_v58  ;;  %v3662_v60 = vpop.f32.mrb[63].mxu0 }
 0xcec   : > { %3017 = vst.msk [vmem:[%s4826_s10] sm:$0xff] %vm535_vm3, %v3011_v59  ;;  %v3012_v61 = vadd.f32 %v2992_v17, %v2908_v6 }
 0xcee   : > { %3018 = vst.msk [vmem:[%s4826_s10 + $0x8] sm:$0xff] %vm535_vm3, %v3012_v61 }
 0xd0a   : > { %v2996_v63 = vpop.f32.mrb[64].mxu0 }
 0xd0b   : > { %v2997_v0 = vadd.f32 %v3239_v13, %v2996_v63  ;;  %v3665_v36 = vpop.f32.mrb[65].mxu0 }
 0xd0c   : > { %v2999_v41 = vpop.f32.mrb[66].mxu0 }
 0xd0d   : > { %v3013_v42 = vadd.f32 %v2997_v0, %v2909_v62  ;;  %v3000_v44 = vadd.f32 %v3239_v13, %v2999_v41  ;;  %v3666_v9 = vpop.f32.mrb[67].mxu0 }
 0xd0f   : > { %3019 = vst.msk [vmem:[%s4826_s10 + $0x10] sm:$0xff] %vm535_vm3, %v3013_v42  ;;  %v3014_v10 = vadd.f32 %v3000_v44, %v2910_v35 }
 0xd11   : > { %3020 = vst.msk [vmem:[%s4826_s10 + $0x18] sm:$0xff] %vm535_vm3, %v3014_v10 }
 0xd12   : > { %v3004_v12 = vpop.f32.mrb[68].mxu0 }
 0xd13   : > { %v3005_v49 = vadd.f32 %v3239_v13, %v3004_v12  ;;  %v3669_v14 = vpop.f32.mrb[69].mxu0 }
 0xd14   : > { %v3007_v31 = vpop.f32.mrb[70].mxu0 }
 0xd15   : > { %v3015_v3 = vadd.f32 %v3005_v49, %v2911_v45  ;;  %v3008_v18 = vadd.f32 %v3239_v13, %v3007_v31  ;;  %v3670_v20 = vpop.f32.mrb[71].mxu0 }
 0xd17   : > { %3021 = vst.msk [vmem:[%s4826_s10 + $0x20] sm:$0xff] %vm535_vm3, %v3015_v3  ;;  %v3016_v23 = vadd.f32 %v3008_v18, %v2912_v15 }
 0xd19   : > { %3022 = vst.msk [vmem:[%s4826_s10 + $0x28] sm:$0xff] %vm535_vm3, %v3016_v23 }
 0xd1a PF: > { %s20_s13 = sadd.s32 1, %s3950_s13  }
 0xd1b   : > { %p17_p5 = scmp.ge.s32.totalorder %s20_s13, 4  }
 0xd1d   :  { %19 = sbr.rel (!%p17_p5) target bundleno = 3 (0x3), region = 114 }

// kernel: tcait_extractor_forward.4
= control target key start
LH: loop header
LB: loop body
LE: loop exit
PB: predicated region body
PF: predicated region fallthrough
CT: control target
= control target key end

     0   :  { %s11527_s25 = smov 0   ;;  %s11529_s26 = smov 0   ;;  %s15286_s0 = inlined_call_operand.vmem [shape: f32[1,144,32], index: 0, kind: input, shape index: {}, may-alias: {0,13}]   ;;  %s15287_s1 = inlined_call_operand.vmem [shape: f32[2,1,32], index: 1, kind: input, shape index: {}]   ;;  %s15288_s2 = inlined_call_operand.vmem [shape: f32[2,1,32], index: 2, kind: input, shape index: {}]   ;;  %s15289_s3 = inlined_call_operand.vmem [shape: bf16[2,32,96], index: 3, kind: input, shape index: {}]   ;;  %s15290_s4 = inlined_call_operand.vmem [shape: f32[2,1,96], index: 4, kind: input, shape index: {}]   ;;  %s15291_s5 = inlined_call_operand.vmem [shape: bf16[2,32,32], index: 5, kind: input, shape index: {}]   ;;  %s15292_s6 = inlined_call_operand.vmem [shape: f32[2,1,32], index: 6, kind: input, shape index: {}]   ;;  %s15293_s7 = inlined_call_operand.vmem [shape: f32[2,1,32], index: 7, kind: input, shape index: {}]   ;;  %s15294_s8 = inlined_call_operand.vmem [shape: f32[2,1,32], index: 8, kind: input, shape index: {}]   ;;  %s15295_s9 = inlined_call_operand.vmem [shape: bf16[2,32,128], index: 9, kind: input, shape index: {}]   ;;  %s15296_s10 = inlined_call_operand.vmem [shape: f32[2,1,128], index: 10, kind: input, shape index: {}]   ;;  %s15297_s11 = inlined_call_operand.vmem [shape: bf16[2,128,32], index: 11, kind: input, shape index: {}]   ;;  %s15298_s12 = inlined_call_operand.vmem [shape: f32[2,1,32], index: 12, kind: input, shape index: {}]   ;;  %s15299_s13 = inlined_call_operand.vmem [shape: f32[1,144,32], index: 13, kind: output, shape index: {}, may-alias: {0,13}]  }
   0x1   :  { %15310 = sst [smem:[#allocation20_spill]] %s15288_s2  ;;  %s11531_s27 = smov 0  }
   0x2   :  { %15311 = sst [smem:[#allocation21_spill]] %s15289_s3 }
   0x3   :  { %15312 = sst [smem:[#allocation22_spill]] %s15291_s5 }
   0x4 LB: > { %15313 = sst [smem:[#allocation4_spill]] %s11433_s26  ;;  %s32_s28 = sadd.s32 1, %s11433_s26  ;;  %s11437_s27 = sphi %s11531_s27, %s23_s27   ;;  %s11433_s26 = sphi %s11529_s26, %s15366_s26   ;;  %s11429_s25 = sphi %s11527_s25, %s15365_s25  }
   0x5   : > { %15314 = sst [smem:[#allocation5_spill]] %s11437_s27  ;;  %p8942_p0 = scmp.ge.s32.totalorder %s11437_s27, 1 }
   0x6   : > { %p33_p1 = scmp.ge.s32.totalorder %s32_s28, 2  ;;  %p503_p2 = scmp.lt.s32.totalorder %s11437_s27, 3 }
   0x8   : > { %s15368_s28 = smov (%p33_p1, %s32_s28), 0  ;;  %p504_p3 = pnand %p8942_p0, %p503_p2 }
   0x9   : > { %15315 = sst [smem:[#allocation6_spill]] %s15368_s28 }
   0xa   : > { %507 = sbr.rel (%p504_p3) target bundleno = 4785 (0x12b1), region = 72 }
  0x11   : > { %p596_p4 = scmp.lt.s32.totalorder %s11429_s25, 1  ;;  %s15317_s3 = sld [smem:[#allocation21_spill]] }
  0x12   : > { %s15318_s5 = sld [smem:[#allocation22_spill]]  ;;  %p8951_p5 = scmp.ne.s32.totalorder %s11429_s25, 0 }
  0x13   : > { %s11545_s29 = scalar_select %p596_p4, %s11429_s25, 1 }
  0x14   : > { %649 = sbr.rel (%p8951_p5) target bundleno = 68 (0x44), region = 76  ;;  %v650_v0 = vld [vmem:[%s15286_s0] sm:$0xff] (!%p8951_p5)  ;;  %vm668_vm0 = vcmask (!%p8951_p5), 261120   ;;  %v651_v1 = vld [vmem:[%s15286_s0 + $0x8] sm:$0xff] (!%p8951_p5)  ;;  %v652_v2 = vld [vmem:[%s15286_s0 + $0x10] sm:$0xff] (!%p8951_p5) }
  0x15   : > { %s9220_s19 = sshll.u32 %s11545_s29, 4  ;;  %s620_s2 = scalar_lea.vmem %s15293_s7, %s11545_s29  ;;  %669 = vst.msk [vmem:[%s15299_s13] sm:$0xff] (!%p8951_p5), %vm668_vm0, %v650_v0  ;;  %670 = vst.msk [vmem:[%s15299_s13 + $0x8] sm:$0xff] (!%p8951_p5), %vm668_vm0, %v651_v1 }
  0x16   : > { %s623_s22 = scalar_lea.vmem %s15294_s8, %s11545_s29  ;;  %s639_s20 = scalar_lea.vmem %s15298_s12, %s11545_s29  ;;  %671 = vst.msk [vmem:[%s15299_s13 + $0x10] sm:$0xff] (!%p8951_p5), %vm668_vm0, %v652_v2 }
  0x17   : > { %s11563_s30 = scalar_lea.vmem %s15317_s3, %s9220_s19  ;;  %s11585_s3 = scalar_lea.vmem %s15295_s9, %s9220_s19 }
  0x18   : > { %s11568_s26 = scalar_lea.vmem %s15318_s5, %s9220_s19  ;;  %s631_s5 = scalar_lea.vmem %s15296_s10, %s11545_s29 }
  0x19   : > { %15319 = sst [smem:[#allocation7_spill]] %s11568_s26  ;;  %s9223_s26 = sshll.u32 %s11545_s29, 6 }
  0x1a   : > { %s11595_s16 = scalar_lea.vmem %s15297_s11, %s9223_s26 }
  0x1d   : > { %v653_v3 = vld [vmem:[%s15286_s0 + $0x18] sm:$0xff]  ;;  %v654_v4 = vld [vmem:[%s15286_s0 + $0x20] sm:$0xff]  ;;  %v655_v5 = vld [vmem:[%s15286_s0 + $0x28] sm:$0xff] }
  0x1e   : > { %672 = vst.msk [vmem:[%s15299_s13 + $0x18] sm:$0xff] %vm668_vm0, %v653_v3  ;;  %673 = vst.msk [vmem:[%s15299_s13 + $0x20] sm:$0xff] %vm668_vm0, %v654_v4 }
  0x1f   : > { %674 = vst.msk [vmem:[%s15299_s13 + $0x28] sm:$0xff] %vm668_vm0, %v655_v5 }
  0x26   : > { %v656_v6 = vld [vmem:[%s15286_s0 + $0x30] sm:$0xff]  ;;  %v657_v7 = vld [vmem:[%s15286_s0 + $0x38] sm:$0xff]  ;;  %v658_v8 = vld [vmem:[%s15286_s0 + $0x40] sm:$0xff] }
  0x27   : > { %675 = vst.msk [vmem:[%s15299_s13 + $0x30] sm:$0xff] %vm668_vm0, %v656_v6  ;;  %676 = vst.msk [vmem:[%s15299_s13 + $0x38] sm:$0xff] %vm668_vm0, %v657_v7 }
  0x28   : > { %677 = vst.msk [vmem:[%s15299_s13 + $0x40] sm:$0xff] %vm668_vm0, %v658_v8 }
  0x2f   : > { %v659_v9 = vld [vmem:[%s15286_s0 + $0x48] sm:$0xff]  ;;  %v660_v10 = vld [vmem:[%s15286_s0 + $0x50] sm:$0xff]  ;;  %v661_v11 = vld [vmem:[%s15286_s0 + $0x58] sm:$0xff] }
  0x30   : > { %678 = vst.msk [vmem:[%s15299_s13 + $0x48] sm:$0xff] %vm668_vm0, %v659_v9  ;;  %679 = vst.msk [vmem:[%s15299_s13 + $0x50] sm:$0xff] %vm668_vm0, %v660_v10 }
  0x31   : > { %680 = vst.msk [vmem:[%s15299_s13 + $0x58] sm:$0xff] %vm668_vm0, %v661_v11 }
  0x38   : > { %v662_v12 = vld [vmem:[%s15286_s0 + $0x60] sm:$0xff]  ;;  %v663_v13 = vld [vmem:[%s15286_s0 + $0x68] sm:$0xff]  ;;  %v664_v14 = vld [vmem:[%s15286_s0 + $0x70] sm:$0xff] }
  0x39   : > { %681 = vst.msk [vmem:[%s15299_s13 + $0x60] sm:$0xff] %vm668_vm0, %v662_v12  ;;  %682 = vst.msk [vmem:[%s15299_s13 + $0x68] sm:$0xff] %vm668_vm0, %v663_v13 }
  0x3a   : > { %683 = vst.msk [vmem:[%s15299_s13 + $0x70] sm:$0xff] %vm668_vm0, %v664_v14 }
  0x41   : > { %v665_v15 = vld [vmem:[%s15286_s0 + $0x78] sm:$0xff]  ;;  %v666_v16 = vld [vmem:[%s15286_s0 + $0x80] sm:$0xff]  ;;  %v667_v17 = vld [vmem:[%s15286_s0 + $0x88] sm:$0xff] }
  0x42   : > { %684 = vst.msk [vmem:[%s15299_s13 + $0x78] sm:$0xff] %vm668_vm0, %v665_v15  ;;  %685 = vst.msk [vmem:[%s15299_s13 + $0x80] sm:$0xff] %vm668_vm0, %v666_v16 }
  0x43   : > { %686 = vst.msk [vmem:[%s15299_s13 + $0x88] sm:$0xff] %vm668_vm0, %v667_v17 }
  0x44 PF: > { %vm711_vm1 = vcmask 261120   ;;  %v694_v23 = vld [vmem:[%s15299_s13 + $0x18] sm:$0xff]  ;;  %v11746_v24 = vld [vmem:[%s15299_s13 + $0x20] sm:$0xff]  ;;  %v11751_v25 = vld [vmem:[%s15299_s13 + $0x28] sm:$0xff]  ;;  %vm11440_vm2 = vmmov 0   ;;  %s15320_s23 = scalar_lea.vmem %s15287_s1, %s11545_s29  ;;  %s15321_s28 = sld [smem:[#allocation20_spill]] }
  0x45   : > { %v691_v18 = vld [vmem:[%s15299_s13] sm:$0xff]  ;;  %v11736_v20 = vld [vmem:[%s15299_s13 + $0x8] sm:$0xff]  ;;  %v11756_v26 = vld [vmem:[%s15299_s13 + $0x30] sm:$0xff]  ;;  %v721_v28 = vsel %vm711_vm1, %v694_v23, 0.0  ;;  %v724_v32 = vsel %vm711_vm1, %v11746_v24, 0.0  ;;  %v727_v33 = vsel %vm711_vm1, %v11751_v25, 0.0  ;;  %s15323_s25 = scalar_lea.vmem %s15290_s4, %s11545_s29 }
  0x46   : > { %v693_v19 = vld [vmem:[%s15299_s13 + $0x10] sm:$0xff]  ;;  %v712_v21 = vsel %vm711_vm1, %v691_v18, 0.0  ;;  %v715_v27 = vsel %vm711_vm1, %v11736_v20, 0.0  ;;  %v11764_v29 = vld [vmem:[%s15299_s13 + $0x38] sm:$0xff]  ;;  %v11769_v30 = vld [vmem:[%s15299_s13 + $0x40] sm:$0xff]  ;;  %v730_v34 = vsel %vm711_vm1, %v11756_v26, 0.0 }
  0x47   : > { %v718_v22 = vsel %vm711_vm1, %v693_v19, 0.0  ;;  %713 = vadd.xlane.f32.xlu0 %v712_v21  ;;  %v11774_v31 = vld [vmem:[%s15299_s13 + $0x48] sm:$0xff]  ;;  %v733_v35 = vsel %vm711_vm1, %v11764_v29, 0.0  ;;  %v736_v36 = vsel %vm711_vm1, %v11769_v30, 0.0  ;;  %v11791_v38 = vld [vmem:[%s15299_s13 + $0x50] sm:$0xff]  ;;  %v11796_v39 = vld [vmem:[%s15299_s13 + $0x58] sm:$0xff] }
  0x48   : > { %719 = vadd.xlane.f32.xlu1 %v718_v22  ;;  %v739_v37 = vsel %vm711_vm1, %v11774_v31, 0.0  ;;  %v742_v40 = vsel %vm711_vm1, %v11791_v38, 0.0  ;;  %v745_v41 = vsel %vm711_vm1, %v11796_v39, 0.0  ;;  %v11805_v42 = vld [vmem:[%s15299_s13 + $0x60] sm:$0xff]  ;;  %v11810_v43 = vld [vmem:[%s15299_s13 + $0x68] sm:$0xff]  ;;  %v11819_v46 = vld [vmem:[%s15299_s13 + $0x70] sm:$0xff] }
  0x49   : > { %v748_v44 = vsel %vm711_vm1, %v11805_v42, 0.0  ;;  %v751_v45 = vsel %vm711_vm1, %v11810_v43, 0.0  ;;  %v11824_v47 = vld [vmem:[%s15299_s13 + $0x78] sm:$0xff]  ;;  %v754_v48 = vsel %vm711_vm1, %v11819_v46, 0.0  ;;  %v11833_v50 = vld [vmem:[%s15299_s13 + $0x80] sm:$0xff]  ;;  %vm1159_vm3 = vcmask 785408  }
  0x4a   : > { %v757_v49 = vsel %vm711_vm1, %v11824_v47, 0.0  ;;  %v11838_v51 = vld [vmem:[%s15299_s13 + $0x88] sm:$0xff]  ;;  %v760_v52 = vsel %vm711_vm1, %v11833_v50, 0.0  ;;  %s15322_s14 = scalar_lea.vmem %s15321_s28, %s11545_s29  ;;  %s11442_s15 = smov 96   ;;  %vm1205_vm4 = vcmask 64512   ;;  %vm1839_vm7 = vcmask 195584  }
  0x4b   : > { %716 = vadd.xlane.f32.xlu0 %v715_v27  ;;  %v763_v53 = vsel %vm711_vm1, %v11838_v51, 0.0  ;;  %s11443_s18 = smov 64   ;;  %s11444_s17 = smov 88   ;;  %vm12212_vm5 = vmpackc.low %vm1205_vm4, %vm1205_vm4  ;;  %vm4198_vm8 = vcmask 130112   ;;  %vm5771_vm9 = vcmask 195712   ;;  %vm7344_vm10 = vcmask 261312  }
  0x4c   : > { %722 = vadd.xlane.f32.xlu1 %v721_v28  ;;  %s11447_s21 = smov 56   ;;  %s11449_s19 = smov 112  }
  0x4d   : > { %s11450_s24 = smov 48   ;;  %s11451_s28 = smov 72  }
  0x4e   : > { %s11453_s26 = smov 40   ;;  %s11454_s27 = smov 8  }
  0x4f   : > { %725 = vadd.xlane.f32.xlu0 %v724_v32 }
  0x50   : > { %728 = vadd.xlane.f32.xlu1 %v727_v33 }
  0x53   : > { %731 = vadd.xlane.f32.xlu0 %v730_v34 }
  0x54   : > { %734 = vadd.xlane.f32.xlu1 %v733_v35 }
  0x57   : > { %737 = vadd.xlane.f32.xlu0 %v736_v36 }
  0x58   : > { %740 = vadd.xlane.f32.xlu1 %v739_v37 }
  0x5b   : > { %743 = vadd.xlane.f32.xlu0 %v742_v40 }
  0x5c   : > { %746 = vadd.xlane.f32.xlu1 %v745_v41 }
  0x5f   : > { %749 = vadd.xlane.f32.xlu0 %v748_v44 }
  0x60   : > { %752 = vadd.xlane.f32.xlu1 %v751_v45 }
  0x63   : > { %755 = vadd.xlane.f32.xlu0 %v754_v48 }
  0x64   : > { %758 = vadd.xlane.f32.xlu1 %v757_v49 }
  0x67   : > { %761 = vadd.xlane.f32.xlu0 %v760_v52 }
  0x68   : > { %764 = vadd.xlane.f32.xlu1 %v763_v53 }
  0xd4   : > { %v714_v54 = vpop.xlane.xlu0 %713 }
  0xd5   : > { %v720_v55 = vpop.xlane.xlu1 %719  ;;  %v767_v56 = vmul.f32 0.03125, %v714_v54 }
  0xd6   : > { %v769_v57 = vmul.f32 0.03125, %v720_v55 }
  0xd7   : > { %v11844_v58 = vsub.f32 %v691_v18, %v767_v56 }
  0xd8   : > { %v11846_v59 = vsub.f32 %v693_v19, %v769_v57  ;;  %v717_v60 = vpop.xlane.xlu0 %716 }
  0xd9   : > { %v723_v61 = vpop.xlane.xlu1 %722  ;;  %v768_v62 = vmul.f32 0.03125, %v717_v60  ;;  %v803_v0 = vmul.f32 %v11844_v58, %v11844_v58 }
  0xda   : > { %v770_v63 = vmul.f32 0.03125, %v723_v61  ;;  %v805_v1 = vmul.f32 %v11846_v59, %v11846_v59 }
  0xdb   : > { %v11853_v2 = vsub.f32 %v11736_v20, %v768_v62  ;;  %v821_v4 = vsel %vm711_vm1, %v803_v0, 0.0 }
  0xdc   : > { %v11855_v3 = vsub.f32 %v694_v23, %v770_v63  ;;  %822 = vadd.xlane.f32.xlu0 %v821_v4  ;;  %v726_v5 = vpop.xlane.xlu0 %725  ;;  %v827_v7 = vsel %vm711_vm1, %v805_v1, 0.0 }
  0xdd   : > { %v729_v6 = vpop.xlane.xlu1 %728  ;;  %v771_v8 = vmul.f32 0.03125, %v726_v5  ;;  %v804_v10 = vmul.f32 %v11853_v2, %v11853_v2 }
  0xde   : > { %v772_v9 = vmul.f32 0.03125, %v729_v6  ;;  %v806_v11 = vmul.f32 %v11855_v3, %v11855_v3 }
  0xdf   : > { %v11864_v12 = vsub.f32 %v11746_v24, %v771_v8  ;;  %v824_v14 = vsel %vm711_vm1, %v804_v10, 0.0 }
  0xe0   : > { %v11867_v13 = vsub.f32 %v11751_v25, %v772_v9  ;;  %828 = vadd.xlane.f32.xlu0 %v827_v7  ;;  %825 = vadd.xlane.f32.xlu1 %v824_v14  ;;  %v732_v15 = vpop.xlane.xlu0 %731  ;;  %v830_v17 = vsel %vm711_vm1, %v806_v11, 0.0 }
  0xe1   : > { %v735_v16 = vpop.xlane.xlu1 %734  ;;  %v773_v18 = vmul.f32 0.03125, %v732_v15  ;;  %v807_v20 = vmul.f32 %v11864_v12, %v11864_v12 }
  0xe2   : > { %v774_v19 = vmul.f32 0.03125, %v735_v16  ;;  %v808_v21 = vmul.f32 %v11867_v13, %v11867_v13 }
  0xe3   : > { %v11876_v22 = vsub.f32 %v11756_v26, %v773_v18  ;;  %v833_v24 = vsel %vm711_vm1, %v807_v20, 0.0 }
  0xe4   : > { %v11879_v23 = vsub.f32 %v11764_v29, %v774_v19  ;;  %831 = vadd.xlane.f32.xlu1 %v830_v17  ;;  %834 = vadd.xlane.f32.xlu0 %v833_v24  ;;  %v738_v25 = vpop.xlane.xlu0 %737  ;;  %v836_v28 = vsel %vm711_vm1, %v808_v21, 0.0 }
  0xe5   : > { %v741_v27 = vpop.xlane.xlu1 %740  ;;  %v775_v32 = vmul.f32 0.03125, %v738_v25  ;;  %v809_v34 = vmul.f32 %v11876_v22, %v11876_v22  ;;  %v15305_v25 = vmov 0.0  }
  0xe6   : > { %v776_v33 = vmul.f32 0.03125, %v741_v27  ;;  %v810_v26 = vmul.f32 %v11879_v23, %v11879_v23  ;;  %9562 = vmatprep.subr.bf16.mxu0 %v15305_v25  ;;  %10622 = vmatprep.subr.bf16.mxu1 %v15305_v25  ;;  %v10913_v27 = vld [vmem:[%s11563_s30 + $0x8] sm:$0xff]  }
  0xe7   : > { %v11888_v35 = vsub.f32 %v11769_v30, %v775_v32  ;;  %v839_v36 = vsel %vm711_vm1, %v809_v34, 0.0  ;;  %9566 = vmatprep.mubr.msk.bf16.mxu0 %vm11440_vm2, %v15305_v25  ;;  %9586 = vmatprep.mubr.msk.bf16.mxu1 %vm11440_vm2, %v15305_v25 }
  0xe8   : > { %v11891_v29 = vsub.f32 %v11774_v31, %v776_v33  ;;  %837 = vadd.xlane.f32.xlu1 %v836_v28  ;;  %840 = vadd.xlane.f32.xlu0 %v839_v36  ;;  %v744_v37 = vpop.xlane.xlu0 %743  ;;  %v842_v41 = vsel %vm711_vm1, %v810_v26, 0.0 }
  0xe9   : > { %v747_v40 = vpop.xlane.xlu1 %746  ;;  %v777_v44 = vmul.f32 0.03125, %v744_v37  ;;  %v811_v48 = vmul.f32 %v11888_v35, %v11888_v35 }
  0xea   : > { %v778_v45 = vmul.f32 0.03125, %v747_v40  ;;  %v812_v30 = vmul.f32 %v11891_v29, %v11891_v29 }
  0xeb   : > { %v11900_v49 = vsub.f32 %v11791_v38, %v777_v44  ;;  %v845_v52 = vsel %vm711_vm1, %v811_v48, 0.0 }
  0xec   : > { %v11903_v31 = vsub.f32 %v11796_v39, %v778_v45  ;;  %843 = vadd.xlane.f32.xlu1 %v842_v41  ;;  %846 = vadd.xlane.f32.xlu0 %v845_v52  ;;  %v750_v53 = vpop.xlane.xlu0 %749  ;;  %v848_v55 = vsel %vm711_vm1, %v812_v30, 0.0 }
  0xed   : > { %v753_v54 = vpop.xlane.xlu1 %752  ;;  %v779_v56 = vmul.f32 0.03125, %v750_v53  ;;  %v813_v60 = vmul.f32 %v11900_v49, %v11900_v49 }
  0xee   : > { %v780_v57 = vmul.f32 0.03125, %v753_v54  ;;  %v814_v38 = vmul.f32 %v11903_v31, %v11903_v31 }
  0xef   : > { %v11912_v61 = vsub.f32 %v11805_v42, %v779_v56  ;;  %v851_v62 = vsel %vm711_vm1, %v813_v60, 0.0 }
  0xf0   : > { %v11915_v39 = vsub.f32 %v11810_v43, %v780_v57  ;;  %849 = vadd.xlane.f32.xlu1 %v848_v55  ;;  %852 = vadd.xlane.f32.xlu0 %v851_v62  ;;  %v756_v63 = vpop.xlane.xlu0 %755  ;;  %v854_v1 = vsel %vm711_vm1, %v814_v38, 0.0 }
  0xf1   : > { %v759_v0 = vpop.xlane.xlu1 %758  ;;  %v781_v4 = vmul.f32 0.03125, %v756_v63  ;;  %v815_v6 = vmul.f32 %v11912_v61, %v11912_v61 }
  0xf2   : > { %v782_v5 = vmul.f32 0.03125, %v759_v0  ;;  %v816_v42 = vmul.f32 %v11915_v39, %v11915_v39  ;;  %v11964_v0 = vld [vmem:[%s15320_s23] ss:$0 sm:$0xff]  ;;  %s11448_s23 = smov 80  }
  0xf3   : > { %v11924_v7 = vsub.f32 %v11819_v46, %v781_v4  ;;  %v857_v8 = vsel %vm711_vm1, %v815_v6, 0.0 }
  0xf4   : > { %v11927_v43 = vsub.f32 %v11824_v47, %v782_v5  ;;  %855 = vadd.xlane.f32.xlu1 %v854_v1  ;;  %858 = vadd.xlane.f32.xlu0 %v857_v8  ;;  %v762_v9 = vpop.xlane.xlu0 %761  ;;  %v860_v11 = vsel %vm711_vm1, %v816_v42, 0.0 }
  0xf5   : > { %v765_v10 = vpop.xlane.xlu1 %764  ;;  %v783_v14 = vmul.f32 0.03125, %v762_v9  ;;  %v817_v16 = vmul.f32 %v11924_v7, %v11924_v7 }
  0xf6   : > { %v784_v15 = vmul.f32 0.03125, %v765_v10  ;;  %v818_v46 = vmul.f32 %v11927_v43, %v11927_v43  ;;  %v11973_v10 = vld [vmem:[%s15322_s14] ss:$0 sm:$0xff]  ;;  %s11452_s14 = smov 104  }
  0xf7   : > { %v11936_v47 = vsub.f32 %v11833_v50, %v783_v14  ;;  %v863_v18 = vsel %vm711_vm1, %v817_v16, 0.0 }
  0xf8   : > { %v11939_v17 = vsub.f32 %v11838_v51, %v784_v15  ;;  %861 = vadd.xlane.f32.xlu1 %v860_v11  ;;  %864 = vadd.xlane.f32.xlu0 %v863_v18  ;;  %v866_v19 = vsel %vm711_vm1, %v818_v46, 0.0  ;;  %v10912_v51 = vld [vmem:[%s11563_s30] sm:$0xff]   ;;  %s11445_s30 = smov 120  }
  0xf9   : > { %v819_v20 = vmul.f32 %v11936_v47, %v11936_v47  ;;  %9563 = vmatpush3.bf16.msra.mxu0 %v10912_v51  ;;  %10624 = vmatpush3.bf16.msra.mxu1 %v10912_v51 }
  0xfa   : > { %v820_v21 = vmul.f32 %v11939_v17, %v11939_v17  ;;  %9564 = vmatprep.subr.bf16.mxu0 %v15305_v25  ;;  %10623 = vmatprep.subr.bf16.mxu1 %v15305_v25 }
  0xfb   : > { %v869_v24 = vsel %vm711_vm1, %v819_v20, 0.0 }
  0xfc   : > { %867 = vadd.xlane.f32.xlu1 %v866_v19  ;;  %870 = vadd.xlane.f32.xlu0 %v869_v24  ;;  %v872_v50 = vsel %vm711_vm1, %v820_v21, 0.0 }
  0xfd   : > { %9565 = vmatpush3.bf16.msra.mxu0 %v10913_v27  ;;  %10625 = vmatpush3.bf16.msra.mxu1 %v10913_v27 }
 0x100   : > { %873 = vadd.xlane.f32.xlu1 %v872_v50 }
 0x169   : > { %v823_v28 = vpop.xlane.xlu0 %822 }
 0x16a   : > { %v875_v32 = vmul.f32 0.03125, %v823_v28 }
 0x16c   : > { %v893_v33 = vadd.f32 1e-05, %v875_v32 }
 0x16d   : > { %v826_v34 = vpop.xlane.xlu1 %825  ;;  %v829_v26 = vpop.xlane.xlu0 %828 }
 0x16e   : > { %10926 = vrsqrt.f32 %v893_v33  ;;  %v876_v36 = vmul.f32 0.03125, %v826_v34  ;;  %v877_v37 = vmul.f32 0.03125, %v829_v26 }
 0x170   : > { %v894_v40 = vadd.f32 1e-05, %v876_v36  ;;  %v895_v41 = vadd.f32 1e-05, %v877_v37 }
 0x171   : > { %v832_v44 = vpop.xlane.xlu1 %831  ;;  %v835_v45 = vpop.xlane.xlu0 %834 }
 0x172   : > { %10928 = vrsqrt.f32 %v894_v40  ;;  %v878_v48 = vmul.f32 0.03125, %v832_v44  ;;  %v879_v52 = vmul.f32 0.03125, %v835_v45 }
 0x173   : > { %10930 = vrsqrt.f32 %v895_v41 }
 0x174   : > { %v896_v30 = vadd.f32 1e-05, %v878_v48  ;;  %v897_v57 = vadd.f32 1e-05, %v879_v52 }
 0x175   : > { %v838_v53 = vpop.xlane.xlu1 %837  ;;  %v841_v54 = vpop.xlane.xlu0 %840 }
 0x176   : > { %10932 = vrsqrt.f32 %v896_v30  ;;  %v880_v55 = vmul.f32 0.03125, %v838_v53  ;;  %v881_v38 = vmul.f32 0.03125, %v841_v54 }
 0x178   : > { %v10927_v56 = vpop.eup %10926  ;;  %v898_v60 = vadd.f32 1e-05, %v880_v55  ;;  %v899_v6 = vadd.f32 1e-05, %v881_v38 }
 0x179   : > { %v844_v62 = vpop.xlane.xlu1 %843  ;;  %v847_v63 = vpop.xlane.xlu0 %846  ;;  %v929_v1 = vmul.f32 %v10927_v56, %v11844_v58 }
 0x17a   : > { %10934 = vrsqrt.f32 %v898_v60  ;;  %v882_v4 = vmul.f32 0.03125, %v844_v62  ;;  %v883_v26 = vmul.f32 0.03125, %v847_v63 }
 0x17b   : > { %10936 = vrsqrt.f32 %v897_v57  ;;  %v953_v42 = vmul.f32 %v11964_v0, %v929_v1 }
 0x17c   : > { %v10929_v5 = vpop.eup %10928  ;;  %v900_v15 = vadd.f32 1e-05, %v882_v4  ;;  %10938 = vrsqrt.f32 %v899_v6  ;;  %v901_v52 = vadd.f32 1e-05, %v883_v26 }
 0x17d   : > { %v850_v8 = vpop.xlane.xlu1 %849  ;;  %v853_v9 = vpop.xlane.xlu0 %852  ;;  %v930_v11 = vmul.f32 %v10929_v5, %v11853_v2  ;;  %v977_v19 = vadd.f32 %v11973_v10, %v953_v42 }
 0x17e   : > { %v10931_v14 = vpop.eup %10930  ;;  %v885_v58 = vmul.f32 0.03125, %v853_v9  ;;  %v884_v20 = vmul.f32 0.03125, %v850_v8  ;;  %10940 = vrsqrt.f32 %v900_v15 }
 0x17f   : > { %v954_v16 = vmul.f32 %v11964_v0, %v930_v11  ;;  %v931_v51 = vmul.f32 %v10931_v14, %v11846_v59 }
 0x180   : > { %v10933_v46 = vpop.eup %10932  ;;  %v903_v18 = vadd.f32 1e-05, %v885_v58  ;;  %v902_v40 = vadd.f32 1e-05, %v884_v20 }
 0x181   : > { %v856_v21 = vpop.xlane.xlu1 %855  ;;  %v859_v24 = vpop.xlane.xlu0 %858  ;;  %v978_v50 = vadd.f32 %v11973_v10, %v954_v16  ;;  %v932_v27 = vmul.f32 %v10933_v46, %v11855_v3  ;;  %v955_v59 = vmul.f32 %v11964_v0, %v931_v51 }
 0x182   : > { %v886_v2 = vmul.f32 0.03125, %v856_v21  ;;  %v887_v28 = vmul.f32 0.03125, %v859_v24  ;;  %10942 = vrsqrt.f32 %v903_v18 }
 0x183   : > { %v999_v32 = vpack.c.bf16 %v978_v50, %v977_v19  ;;  %v956_v33 = vmul.f32 %v11964_v0, %v932_v27  ;;  %v979_v56 = vadd.f32 %v11973_v10, %v955_v59 }
 0x184   : > { %v10935_v34 = vpop.eup %10934  ;;  %v904_v36 = vadd.f32 1e-05, %v886_v2  ;;  %v905_v37 = vadd.f32 1e-05, %v887_v28 }
 0x185   : > { %v862_v41 = vpop.xlane.xlu1 %861  ;;  %9567 = vmatmul.mubr.msk.bf16.vlgmr.msra.gmra.mrb[0].mxu0 %vm711_vm1, %v999_v32  ;;  %v865_v44 = vpop.xlane.xlu0 %864  ;;  %v980_v48 = vadd.f32 %v11973_v10, %v956_v33  ;;  %v934_v30 = vmul.f32 %v10935_v34, %v11867_v13 }
 0x186   : > { %v10937_v45 = vpop.eup %10936  ;;  %10944 = vrsqrt.f32 %v904_v36  ;;  %v888_v3 = vmul.f32 0.03125, %v862_v41  ;;  %9570 = vmatprep.mubr.msk.bf16.mxu0 %vm11440_vm2, %v15305_v25  ;;  %v889_v54 = vmul.f32 0.03125, %v865_v44 }
 0x187   : > { %10946 = vrsqrt.f32 %v905_v37  ;;  %v933_v57 = vmul.f32 %v10937_v45, %v11864_v12  ;;  %v10939_v60 = vpop.eup %10938  ;;  %v1000_v62 = vpack.c.bf16 %v980_v48, %v979_v56  ;;  %v958_v63 = vmul.f32 %v11964_v0, %v934_v30 }
 0x188   : > { %v906_v53 = vadd.f32 1e-05, %v888_v3  ;;  %10948 = vrsqrt.f32 %v902_v40  ;;  %v10941_v1 = vpop.eup %10940  ;;  %v907_v4 = vadd.f32 1e-05, %v889_v54  ;;  %v935_v16 = vmul.f32 %v10939_v60, %v11876_v22 }
 0x189   : > { %v868_v55 = vpop.xlane.xlu1 %867  ;;  %v871_v6 = vpop.xlane.xlu0 %870  ;;  %v957_v8 = vmul.f32 %v11964_v0, %v933_v57  ;;  %v982_v11 = vadd.f32 %v11973_v10, %v958_v63  ;;  %v936_v14 = vmul.f32 %v10941_v1, %v11879_v23 }
 0x18a   : > { %10950 = vrsqrt.f32 %v906_v53  ;;  %v890_v38 = vmul.f32 0.03125, %v868_v55  ;;  %v891_v58 = vmul.f32 0.03125, %v871_v6  ;;  %v959_v2 = vmul.f32 %v11964_v0, %v935_v16 }
 0x18b   : > { %10952 = vrsqrt.f32 %v901_v52  ;;  %v981_v46 = vadd.f32 %v11973_v10, %v957_v8  ;;  %v960_v51 = vmul.f32 %v11964_v0, %v936_v14 }
 0x18c   : > { %v908_v13 = vadd.f32 1e-05, %v890_v38  ;;  %v10943_v5 = vpop.eup %10942  ;;  %v909_v27 = vadd.f32 1e-05, %v891_v58 }
 0x18d   : > { %v874_v42 = vpop.xlane.xlu1 %873  ;;  %9571 = vmatmul.mubr.msk.bf16.gmra.mrb[4].mxu0 %vm711_vm1, %v1000_v62  ;;  %v939_v12 = vmul.f32 %v10943_v5, %v11900_v49  ;;  %v1001_v50 = vpack.c.bf16 %v982_v11, %v981_v46  ;;  %v984_v26 = vadd.f32 %v11973_v10, %v960_v51  ;;  %v15303_v11 = vmov 0.0|0.0  }
 0x18e   : > { %10954 = vrsqrt.f32 %v908_v13  ;;  %v892_v9 = vmul.f32 0.03125, %v874_v42  ;;  %9574 = vmatprep.mubr.msk.bf16.mxu0 %vm11440_vm2, %v15305_v25  ;;  %10454 = vmatprep.subr.bf16.mxu1 %v15303_v11 }
 0x18f   : > { %10956 = vrsqrt.f32 %v907_v4  ;;  %v963_v19 = vmul.f32 %v11964_v0, %v939_v12  ;;  %10478 = vmatprep.subr.bf16.mxu0 %v15303_v11 }
 0x190   : > { %v10945_v15 = vpop.eup %10944  ;;  %v910_v21 = vadd.f32 1e-05, %v892_v9 }
 0x191   : > { %v940_v18 = vmul.f32 %v10945_v15, %v11903_v31  ;;  %v10947_v20 = vpop.eup %10946  ;;  %v987_v22 = vadd.f32 %v11973_v10, %v963_v19 }
 0x192   : > { %v10949_v24 = vpop.eup %10948  ;;  %v941_v28 = vmul.f32 %v10947_v20, %v11912_v61  ;;  %10958 = vrsqrt.f32 %v910_v21  ;;  %v983_v61 = vadd.f32 %v11973_v10, %v959_v2 }
 0x193   : > { %v964_v49 = vmul.f32 %v11964_v0, %v940_v18  ;;  %v938_v37 = vmul.f32 %v10949_v24, %v11891_v29  ;;  %10960 = vrsqrt.f32 %v909_v27 }
 0x194   : > { %v10951_v23 = vpop.eup %10950  ;;  %v1002_v59 = vpack.c.bf16 %v984_v26, %v983_v61 }
 0x195   : > { %9575 = vmatmul.mubr.msk.bf16.gmra.mrb[8].mxu0 %vm711_vm1, %v1001_v50  ;;  %v988_v31 = vadd.f32 %v11973_v10, %v964_v49  ;;  %v942_v32 = vmul.f32 %v10951_v23, %v11915_v39  ;;  %v10953_v33 = vpop.eup %10952  ;;  %v965_v39 = vmul.f32 %v11964_v0, %v941_v28  ;;  %v962_v3 = vmul.f32 %v11964_v0, %v938_v37 }
 0x196   : > { %9578 = vmatprep.mubr.msk.bf16.mxu0 %vm11440_vm2, %v15305_v25  ;;  %v937_v41 = vmul.f32 %v10953_v33, %v11888_v35 }
 0x197   : > { %v1004_v34 = vpack.c.bf16 %v988_v31, %v987_v22  ;;  %v966_v36 = vmul.f32 %v11964_v0, %v942_v32  ;;  %v989_v48 = vadd.f32 %v11973_v10, %v965_v39  ;;  %v986_v53 = vadd.f32 %v11973_v10, %v962_v3 }
 0x198   : > { %v10955_v40 = vpop.eup %10954  ;;  %v961_v30 = vmul.f32 %v11964_v0, %v937_v41 }
 0x199   : > { %9587 = vmatmul.mubr.msk.bf16.vlgmr.msra.gmra.mrb[0].mxu1 %vm711_vm1, %v1004_v34  ;;  %v10957_v44 = vpop.eup %10956  ;;  %v990_v45 = vadd.f32 %v11973_v10, %v966_v36  ;;  %v944_v29 = vmul.f32 %v10955_v40, %v11927_v43 }
 0x19a   : > { %9590 = vmatprep.mubr.msk.bf16.mxu1 %vm11440_vm2, %v15305_v25  ;;  %v943_v52 = vmul.f32 %v10957_v44, %v11924_v7  ;;  %v985_v43 = vadd.f32 %v11973_v10, %v961_v30 }
 0x19b   : > { %v1005_v35 = vpack.c.bf16 %v990_v45, %v989_v48  ;;  %v968_v54 = vmul.f32 %v11964_v0, %v944_v29 }
 0x19c   : > { %v10959_v55 = vpop.eup %10958  ;;  %v967_v56 = vmul.f32 %v11964_v0, %v943_v52  ;;  %v1003_v7 = vpack.c.bf16 %v986_v53, %v985_v43 }
 0x19d   : > { %9579 = vmatmul.mubr.msk.bf16.gmra.mrb[12].mxu0 %vm711_vm1, %v1002_v59  ;;  %v10961_v57 = vpop.eup %10960  ;;  %v992_v60 = vadd.f32 %v11973_v10, %v968_v54  ;;  %v946_v38 = vmul.f32 %v10959_v55, %v11939_v17 }
 0x19e   : > { %9582 = vmatprep.mubr.msk.bf16.mxu0 %vm11440_vm2, %v15305_v25  ;;  %v991_v62 = vadd.f32 %v11973_v10, %v967_v56  ;;  %v945_v63 = vmul.f32 %v10961_v57, %v11936_v47  ;;  %v12059_v47 = vld [vmem:[%s15323_s25] ss:$0 sm:$0xff]  ;;  %s11455_s25 = smov 16  }
 0x19f   : > { %v970_v4 = vmul.f32 %v11964_v0, %v946_v38 }
 0x1a0   : > { %v1006_v1 = vpack.c.bf16 %v992_v60, %v991_v62  ;;  %v969_v13 = vmul.f32 %v11964_v0, %v945_v63 }
 0x1a1   : > { %9591 = vmatmul.mubr.msk.bf16.gmra.mrb[4].mxu1 %vm711_vm1, %v1005_v35  ;;  %v994_v17 = vadd.f32 %v11973_v10, %v970_v4 }
 0x1a2   : > { %9594 = vmatprep.mubr.msk.bf16.mxu1 %vm11440_vm2, %v15305_v25  ;;  %v993_v5 = vadd.f32 %v11973_v10, %v969_v13 }
 0x1a4   : > { %v1007_v6 = vpack.c.bf16 %v994_v17, %v993_v5 }
 0x1a5   : > { %9583 = vmatmul.mubr.msk.bf16.gmra.mrb[16].mxu0 %vm711_vm1, %v1003_v7 }
 0x1a6   : > { %9698 = vmatprep.mubr.msk.f32.mxu0 %vm11440_vm2, %v15305_v25 }
 0x1a9   : > { %9595 = vmatmul.mubr.msk.bf16.gmra.mrb[8].mxu1 %vm711_vm1, %v1006_v1 }
 0x1aa   : > { %9598 = vmatprep.mubr.msk.bf16.mxu1 %vm11440_vm2, %v15305_v25 }
 0x1b1   : > { %9599 = vmatmul.mubr.msk.bf16.gmra.mrb[12].mxu1 %vm711_vm1, %v1007_v6 }
 0x1b2   : > { %9608 = vmatprep.mubr.msk.f32.mxu1 %vm11440_vm2, %v15305_v25 }
 0x258   : > { %v1088_v0 = vpop.f32.mrb[0].mxu0 }
 0x259   : > { %v1089_v42 = vadd.f32 %v12059_v47, %v1088_v0  ;;  %v9568_v8 = vpop.f32.mrb[1].mxu0 }
 0x25a   : > { %v1091_v9 = vpop.f32.mrb[2].mxu0 }
 0x25b   : > { %1160 = vst.msk [vmem:[#allocation2] sm:$0xff] %vm1159_vm3, %v1089_v42  ;;  %v1092_v10 = vadd.f32 %v12059_v47, %v1091_v9  ;;  %v9569_v12 = vpop.f32.mrb[3].mxu0 }
 0x25d   : > { %1161 = vst.msk [vmem:[#allocation2 + $0x8] sm:$0xff] %vm1159_vm3, %v1092_v10 }
 0x260   : > { %v1096_v14 = vpop.f32.mrb[4].mxu0 }
 0x261   : > { %v1097_v15 = vadd.f32 %v12059_v47, %v1096_v14  ;;  %v9572_v58 = vpop.f32.mrb[5].mxu0 }
 0x262   : > { %v1099_v16 = vpop.f32.mrb[6].mxu0  ;;  %v12070_v19 = vld [vmem:[#allocation2] sm:$0xff] }
 0x263   : > { %1162 = vst.msk [vmem:[#allocation2 + $0x10] sm:$0xff] %vm1159_vm3, %v1097_v15  ;;  %v1100_v46 = vadd.f32 %v12059_v47, %v1099_v16  ;;  %v9573_v18 = vpop.f32.mrb[7].mxu0 }
 0x264   : > { %v12072_v20 = vld [vmem:[#allocation2 + $0x8] sm:$0xff] }
 0x265   : > { %1163 = vst.msk [vmem:[#allocation2 + $0x18] sm:$0xff] %vm1159_vm3, %v1100_v46  ;;  %v12077_v21 = vpack.i.bf16 %v12072_v20, %v12070_v19 }
 0x267   : > { %10673 = vrot.lane.b32.xlu0 %v12077_v21, %s11442_s15 }
 0x268   : > { %v1104_v24 = vpop.f32.mrb[8].mxu0 }
 0x269   : > { %v1105_v50 = vadd.f32 %v12059_v47, %v1104_v24  ;;  %v9576_v49 = vpop.f32.mrb[9].mxu0 }
 0x26a   : > { %v1107_v51 = vpop.f32.mrb[10].mxu0  ;;  %v12082_v23 = vld [vmem:[#allocation2 + $0x10] sm:$0xff] }
 0x26b   : > { %1164 = vst.msk [vmem:[#allocation2 + $0x20] sm:$0xff] %vm1159_vm3, %v1105_v50  ;;  %v1108_v27 = vadd.f32 %v12059_v47, %v1107_v51  ;;  %1203 = vrot.lane.b32.xlu1 %v12082_v23, %s11442_s15  ;;  %v9577_v2 = vpop.f32.mrb[11].mxu0 }
 0x26c   : > { %v1128_v22 = vpop.f32.mrb[0].mxu1  ;;  %v12094_v61 = vld [vmem:[#allocation2 + $0x18] sm:$0xff] }
 0x26d   : > { %1165 = vst.msk [vmem:[#allocation2 + $0x28] sm:$0xff] %vm1159_vm3, %v1108_v27  ;;  %v1129_v31 = vadd.f32 %v12059_v47, %v1128_v22  ;;  %v9588_v28 = vpop.f32.mrb[1].mxu1 }
 0x26e   : > { %v1131_v32 = vpop.f32.mrb[2].mxu1 }
 0x26f   : > { %1170 = vst.msk [vmem:[#allocation2 + $0x50] sm:$0xff] %vm1159_vm3, %v1129_v31  ;;  %v1132_v33 = vadd.f32 %v12059_v47, %v1131_v32  ;;  %v9589_v34 = vpop.f32.mrb[3].mxu1 }
 0x270   : > { %v1112_v26 = vpop.f32.mrb[12].mxu0 }
 0x271   : > { %1171 = vst.msk [vmem:[#allocation2 + $0x58] sm:$0xff] %vm1159_vm3, %v1132_v33  ;;  %v1113_v36 = vadd.f32 %v12059_v47, %v1112_v26  ;;  %v9580_v37 = vpop.f32.mrb[13].mxu0 }
 0x272   : > { %v1115_v40 = vpop.f32.mrb[14].mxu0  ;;  %v12096_v39 = vld [vmem:[#allocation2 + $0x20] sm:$0xff] }
 0x273   : > { %1166 = vst.msk [vmem:[#allocation2 + $0x30] sm:$0xff] %vm1159_vm3, %v1113_v36  ;;  %v1116_v41 = vadd.f32 %v12059_v47, %v1115_v40  ;;  %v9581_v44 = vpop.f32.mrb[15].mxu0  ;;  %v12102_v59 = vpack.i.bf16 %v12096_v39, %v12094_v61 }
 0x274   : > { %v1136_v45 = vpop.f32.mrb[4].mxu1  ;;  %v12110_v53 = vld [vmem:[#allocation2 + $0x28] sm:$0xff] }
 0x275   : > { %1167 = vst.msk [vmem:[#allocation2 + $0x38] sm:$0xff] %vm1159_vm3, %v1116_v41  ;;  %v1137_v3 = vadd.f32 %v12059_v47, %v1136_v45  ;;  %10678 = vrot.lane.b32.xlu1 %v12102_v59, %s11442_s15  ;;  %v9592_v29 = vpop.f32.mrb[5].mxu1 }
 0x276   : > { %v1139_v48 = vpop.f32.mrb[6].mxu1  ;;  %v12139_v42 = vld [vmem:[#allocation2 + $0x50] sm:$0xff] }
 0x277   : > { %1172 = vst.msk [vmem:[#allocation2 + $0x60] sm:$0xff] %vm1159_vm3, %v1137_v3  ;;  %v1140_v30 = vadd.f32 %v12059_v47, %v1139_v48  ;;  %v9593_v52 = vpop.f32.mrb[7].mxu1 }
 0x278   : > { %v1120_v35 = vpop.f32.mrb[16].mxu0  ;;  %v12144_v14 = vld [vmem:[#allocation2 + $0x58] sm:$0xff] }
 0x279   : > { %1173 = vst.msk [vmem:[#allocation2 + $0x68] sm:$0xff] %vm1159_vm3, %v1140_v30  ;;  %v1121_v54 = vadd.f32 %v12059_v47, %v1120_v35  ;;  %1305 = vrot.lane.b32.xlu1 %v12110_v53, %s11442_s15  ;;  %v9584_v55 = vpop.f32.mrb[17].mxu0 }
 0x27a   : > { %v1123_v43 = vpop.f32.mrb[18].mxu0  ;;  %v12118_v60 = vld [vmem:[#allocation2 + $0x30] sm:$0xff] }
 0x27b   : > { %1168 = vst.msk [vmem:[#allocation2 + $0x40] sm:$0xff] %vm1159_vm3, %v1121_v54  ;;  %v1124_v56 = vadd.f32 %v12059_v47, %v1123_v43  ;;  %v9585_v57 = vpop.f32.mrb[19].mxu0 }
 0x27c   : > { %v1144_v7 = vpop.f32.mrb[8].mxu1  ;;  %v12120_v38 = vld [vmem:[#allocation2 + $0x38] sm:$0xff] }
 0x27d   : > { %1169 = vst.msk [vmem:[#allocation2 + $0x48] sm:$0xff] %vm1159_vm3, %v1124_v56  ;;  %v1145_v62 = vadd.f32 %v12059_v47, %v1144_v7  ;;  %v9596_v63 = vpop.f32.mrb[9].mxu1  ;;  %v12126_v1 = vpack.i.bf16 %v12120_v38, %v12118_v60 }
 0x27e   : > { %v1147_v4 = vpop.f32.mrb[10].mxu1  ;;  %v12153_v46 = vld [vmem:[#allocation2 + $0x60] sm:$0xff] }
 0x27f   : > { %1174 = vst.msk [vmem:[#allocation2 + $0x70] sm:$0xff] %vm1159_vm3, %v1145_v62  ;;  %v1148_v13 = vadd.f32 %v12059_v47, %v1147_v4  ;;  %10683 = vrot.lane.b32.xlu0 %v12126_v1, %s11442_s15  ;;  %v9597_v17 = vpop.f32.mrb[11].mxu1 }
 0x280   : > { %v12146_v15 = vld [vmem:[#allocation2 + $0x68] sm:$0xff]  ;;  %v687_v17 = vlaneseq }
 0x281   : > { %1175 = vst.msk [vmem:[#allocation2 + $0x78] sm:$0xff] %vm1159_vm3, %v1148_v13  ;;  %v12158_v18 = vpack.i.bf16 %v12146_v15, %v12153_v46 }
 0x282   : > { %v12133_v5 = vld [vmem:[#allocation2 + $0x40] sm:$0xff] }
 0x283   : > { %1406 = vrot.lane.b32.xlu1 %v12133_v5, %s11442_s15 }
 0x284   : > { %v1152_v6 = vpop.f32.mrb[12].mxu1  ;;  %v12137_v0 = vld [vmem:[#allocation2 + $0x48] sm:$0xff] }
 0x285   : > { %v1153_v8 = vadd.f32 %v12059_v47, %v1152_v6  ;;  %v9600_v9 = vpop.f32.mrb[13].mxu1  ;;  %v10687_v10 = vpack.i.bf16 %v12139_v42, %v12137_v0  ;;  %v688_v6 = vand.u32 127, %v687_v17 }
 0x286   : > { %v1155_v12 = vpop.f32.mrb[14].mxu1  ;;  %v12160_v24 = vld [vmem:[#allocation2 + $0x70] sm:$0xff]  ;;  %v11446_v9 = vmov -1e+30  }
 0x287   : > { %1176 = vst.msk [vmem:[#allocation2 + $0x80] sm:$0xff] %vm1159_vm3, %v1153_v8  ;;  %v1156_v58 = vadd.f32 %v12059_v47, %v1155_v12  ;;  %10688 = vrot.lane.b32.xlu0 %v10687_v10, %s11442_s15  ;;  %1507 = vrot.lane.b32.xlu1 %v12144_v14, %s11442_s15  ;;  %v9601_v16 = vpop.f32.mrb[15].mxu1  ;;  %vm689_vm6 = vcmp.lt.s32.totalorder %v688_v6, 17 }
 0x288   : > { %v12166_v47 = vld [vmem:[#allocation2 + $0x78] sm:$0xff] }
 0x289   : > { %1177 = vst.msk [vmem:[#allocation2 + $0x88] sm:$0xff] %vm1159_vm3, %v1156_v58 }
 0x28b   : > { %10693 = vrot.lane.b32.xlu0 %v12158_v18, %s11442_s15  ;;  %1608 = vrot.lane.b32.xlu1 %v12160_v24, %s11442_s15 }
 0x28e   : > { %v12168_v50 = vld [vmem:[#allocation2 + $0x80] sm:$0xff] }
 0x28f   : > { %v12172_v49 = vpack.i.bf16 %v12168_v50, %v12166_v47 }
 0x290   : > { %v12174_v51 = vld [vmem:[#allocation2 + $0x88] sm:$0xff] }
 0x291   : > { %10698 = vrot.lane.b32.xlu0 %v12172_v49, %s11442_s15  ;;  %1709 = vrot.lane.b32.xlu1 %v12174_v51, %s11442_s15  ;;  %s15350_s15 = sld [smem:[#allocation7_spill]] }
 0x295   : > { %2042 = vrot.lane.b32.xlu0 %v12082_v23, %s11443_s18  ;;  %10703 = vrot.lane.b32.xlu1 %v12077_v21, %s11443_s18 }
 0x299   : > { %10713 = vrot.lane.b32.xlu0 %v12126_v1, %s11443_s18  ;;  %10708 = vrot.lane.b32.xlu1 %v12102_v59, %s11443_s18 }
 0x29d   : > { %2140 = vrot.lane.b32.xlu0 %v12110_v53, %s11443_s18  ;;  %2434 = vrot.lane.b32.xlu1 %v12160_v24, %s11443_s18 }
 0x2a1   : > { %2238 = vrot.lane.b32.xlu0 %v12133_v5, %s11443_s18  ;;  %10723 = vrot.lane.b32.xlu1 %v12077_v21, %s11444_s17 }
 0x2a5   : > { %10718 = vrot.lane.b32.xlu0 %v12158_v18, %s11443_s18  ;;  %10728 = vrot.lane.b32.xlu1 %v12172_v49, %s11443_s18 }
 0x2a9   : > { %2336 = vrot.lane.b32.xlu0 %v12144_v14, %s11443_s18  ;;  %2532 = vrot.lane.b32.xlu1 %v12174_v51, %s11443_s18 }
 0x2ad   : > { %2665 = vrot.lane.b32.xlu0 %v12070_v19, %s11445_s30  ;;  %2675 = vrot.lane.b32.xlu1 %v12082_v23, %s11444_s17 }
 0x2b1   : > { %2669 = vrot.lane.b32.xlu0 %v12082_v23, %s11445_s30  ;;  %10733 = vrot.lane.b32.xlu1 %v12102_v59, %s11444_s17 }
 0x2b5   : > { %2889 = vrot.lane.b32.xlu0 %v12133_v5, %s11444_s17  ;;  %10738 = vrot.lane.b32.xlu1 %v12126_v1, %s11444_s17 }
 0x2b9   : > { %2667 = vrot.lane.b32.xlu1 %v12072_v20, %s11445_s30 }
 0x2bd   : > { %2782 = vrot.lane.b32.xlu1 %v12110_v53, %s11444_s17 }
 0x2c1   : > { %10743 = vrot.lane.b32.xlu1 %v10687_v10, %s11443_s18  ;;  %s11456_s18 = smov 24  }
 0x2c5   : > { %10748 = vrot.lane.b32.xlu1 %v10687_v10, %s11444_s17  ;;  %v12322_v10 = vsel %vm689_vm6, 0.0, %v11446_v9 }
 0x2c6   : > { %15326 = vst [vmem:[#allocation8_spill] sm:$0xff] %v12322_v10 }
 0x2d9   : > { %v10674_v21 = vpop.permute.xlu0 %10673 }
 0x2da   : > { %v10676_v27 = vunpack.i.h.bf16 %v10674_v21  ;;  %v10675_v2 = vunpack.i.l.bf16 %v10674_v21 }
 0x2dc   : > { %v10455_v31 = vpack.c.bf16 %v10676_v27, %v10675_v2 }
 0x2dd   : > { %v1204_v28 = vpop.permute.xlu1 %1203 }
 0x2de   : > { %10457 = vmatpush3.bf16.xpose.msk.msra.mxu1 %vm12212_vm5, %v10455_v31 }
 0x2df   : > { %9606 = vmatprep.subr.mxu1 %v15305_v25 }
 0x2e6   : > { %9607 = vmatpush3.xpose.msk.msra.mxu1 %vm1205_vm4, %v1204_v28 }
 0x2e7   : > { %v10679_v32 = vpop.permute.xlu1 %10678  ;;  %10458 = vmatprep.subr.bf16.mxu1 %v15303_v11 }
 0x2e8   : > { %v10681_v33 = vunpack.i.h.bf16 %v10679_v32  ;;  %v10680_v34 = vunpack.i.l.bf16 %v10679_v32 }
 0x2e9   : > { %9609 = vmatmul.mubr.msk.f32.vlgmr.msra.gmra.mrb[16].mxu1 %vm1205_vm4, %v12070_v19 }
 0x2ea   : > { %v10459_v26 = vpack.c.bf16 %v10681_v33, %v10680_v34  ;;  %9611 = vmatprep.mubr.msk.f32.mxu1 %vm11440_vm2, %v15305_v25 }
 0x2eb   : > { %v1306_v36 = vpop.permute.xlu1 %1305 }
 0x2ec   : > { %10461 = vmatpush3.bf16.xpose.msk.msra.mxu1 %vm12212_vm5, %v10459_v26 }
 0x2ed   : > { %9612 = vmatmul.mubr.msk.f32.gmra.mrb[18].mxu1 %vm1205_vm4, %v12072_v20  ;;  %9621 = vmatprep.subr.mxu1 %v15305_v25 }
 0x2ee   : > { %9614 = vmatprep.mubr.msk.f32.mxu1 %vm11440_vm2, %v15305_v25 }
 0x2f1   : > { %v10684_v37 = vpop.permute.xlu0 %10683  ;;  %9615 = vmatmul.mubr.msk.f32.gmra.mrb[20].mxu1 %vm1205_vm4, %v12082_v23 }
 0x2f2   : > { %v10686_v19 = vunpack.i.h.bf16 %v10684_v37  ;;  %v10685_v40 = vunpack.i.l.bf16 %v10684_v37  ;;  %9623 = vmatprep.mubr.msk.f32.mxu1 %vm11440_vm2, %v15305_v25 }
 0x2f4   : > { %9622 = vmatpush3.xpose.msk.msra.mxu1 %vm1205_vm4, %v1306_v36  ;;  %v10463_v20 = vpack.c.bf16 %v10686_v19, %v10685_v40 }
 0x2f5   : > { %v1407_v41 = vpop.permute.xlu1 %1406  ;;  %10462 = vmatprep.subr.bf16.mxu1 %v15303_v11 }
 0x2f7   : > { %9624 = vmatmul.mubr.msk.f32.vlgmr.msra.gmra.mrb[22].mxu1 %vm1205_vm4, %v12094_v61 }
 0x2f8   : > { %10465 = vmatpush3.bf16.xpose.msk.msra.mxu1 %vm12212_vm5, %v10463_v20  ;;  %9626 = vmatprep.mubr.msk.f32.mxu1 %vm11440_vm2, %v15305_v25 }
 0x2f9   : > { %v1508_v23 = vpop.permute.xlu1 %1507  ;;  %9636 = vmatprep.subr.mxu1 %v15305_v25  ;;  %v10689_v44 = vpop.permute.xlu0 %10688 }
 0x2fa   : > { %v10691_v59 = vunpack.i.h.bf16 %v10689_v44  ;;  %v10690_v45 = vunpack.i.l.bf16 %v10689_v44 }
 0x2fb   : > { %9627 = vmatmul.mubr.msk.f32.gmra.mrb[24].mxu1 %vm1205_vm4, %v12096_v39 }
 0x2fc   : > { %9629 = vmatprep.mubr.msk.f32.mxu1 %vm11440_vm2, %v15305_v25  ;;  %v10467_v29 = vpack.c.bf16 %v10691_v59, %v10690_v45 }
 0x2fd   : > { %v1609_v3 = vpop.permute.xlu1 %1608  ;;  %v10694_v30 = vpop.permute.xlu0 %10693 }
 0x2fe   : > { %v10696_v43 = vunpack.i.h.bf16 %v10694_v30  ;;  %v10695_v56 = vunpack.i.l.bf16 %v10694_v30 }
 0x2ff   : > { %9630 = vmatmul.mubr.msk.f32.gmra.mrb[26].mxu1 %vm1205_vm4, %v12110_v53 }
 0x300   : > { %9637 = vmatpush3.xpose.msk.msra.mxu1 %vm1205_vm4, %v1407_v41  ;;  %9638 = vmatprep.mubr.msk.f32.mxu1 %vm11440_vm2, %v15305_v25  ;;  %v10471_v7 = vpack.c.bf16 %v10696_v43, %v10695_v56 }
 0x301   : > { %10466 = vmatprep.subr.bf16.mxu1 %v15303_v11 }
 0x303   : > { %v1710_v48 = vpop.permute.xlu1 %1709  ;;  %9639 = vmatmul.mubr.msk.f32.vlgmr.msra.gmra.mrb[28].mxu1 %vm1205_vm4, %v12118_v60  ;;  %v10699_v55 = vpop.permute.xlu0 %10698 }
 0x304   : > { %10469 = vmatpush3.bf16.xpose.msk.msra.mxu1 %vm12212_vm5, %v10467_v29  ;;  %9641 = vmatprep.mubr.msk.f32.mxu1 %vm11440_vm2, %v15305_v25  ;;  %v10701_v63 = vunpack.i.h.bf16 %v10699_v55  ;;  %v10700_v4 = vunpack.i.l.bf16 %v10699_v55 }
 0x305   : > { %9651 = vmatprep.subr.mxu1 %v15305_v25 }
 0x306   : > { %v10475_v13 = vpack.c.bf16 %v10701_v63, %v10700_v4 }
 0x307   : > { %v10704_v52 = vpop.permute.xlu1 %10703  ;;  %9642 = vmatmul.mubr.msk.f32.gmra.mrb[30].mxu1 %vm1205_vm4, %v12120_v38  ;;  %v2043_v62 = vpop.permute.xlu0 %2042 }
 0x308   : > { %v10706_v35 = vunpack.i.h.bf16 %v10704_v52  ;;  %v10705_v54 = vunpack.i.l.bf16 %v10704_v52  ;;  %9644 = vmatprep.mubr.msk.f32.mxu1 %vm11440_vm2, %v15305_v25 }
 0x30a   : > { %v10479_v57 = vpack.c.bf16 %v10706_v35, %v10705_v54 }
 0x30b   : > { %9645 = vmatmul.mubr.msk.f32.gmra.mrb[32].mxu1 %vm1205_vm4, %v12133_v5 }
 0x30c   : > { %9652 = vmatpush3.xpose.msk.msra.mxu1 %vm1205_vm4, %v1508_v23  ;;  %10480 = vmatpush3.bf16.msra.mxu0 %v10479_v57 }
 0x30d   : > { %9653 = vmatprep.mubr.msk.f32.mxu1 %vm11440_vm2, %v15305_v25  ;;  %9696 = vmatprep.subr.mxu0 %v15305_v25 }
 0x30e   : > { %10470 = vmatprep.subr.bf16.mxu1 %v15303_v11 }
 0x30f   : > { %9654 = vmatmul.mubr.msk.f32.vlgmr.msra.gmra.mrb[34].mxu1 %vm1205_vm4, %v12137_v0 }
 0x310   : > { %10473 = vmatpush3.bf16.xpose.msk.msra.mxu1 %vm12212_vm5, %v10471_v7  ;;  %9697 = vmatpush3.msra.mxu0 %v2043_v62 }
 0x311   : > { %9656 = vmatprep.mubr.msk.f32.mxu1 %vm11440_vm2, %v15305_v25  ;;  %9666 = vmatprep.subr.mxu1 %v15305_v25 }
 0x312   : > { %10484 = vmatprep.subr.bf16.mxu0 %v15303_v11 }
 0x313   : > { %9657 = vmatmul.mubr.msk.f32.gmra.mrb[36].mxu1 %vm1205_vm4, %v12139_v42 }
 0x314   : > { %9659 = vmatprep.mubr.msk.f32.mxu1 %vm11440_vm2, %v15305_v25 }
 0x317   : > { %9660 = vmatmul.mubr.msk.f32.gmra.mrb[38].mxu1 %vm1205_vm4, %v12144_v14 }
 0x318   : > { %9667 = vmatpush3.xpose.msk.msra.mxu1 %vm1205_vm4, %v1609_v3  ;;  %9668 = vmatprep.mubr.msk.f32.mxu1 %vm11440_vm2, %v15305_v25 }
 0x319   : > { %10474 = vmatprep.subr.bf16.mxu1 %v15303_v11 }
 0x31b   : > { %9669 = vmatmul.mubr.msk.f32.vlgmr.msra.gmra.mrb[40].mxu1 %vm1205_vm4, %v12153_v46 }
 0x31c   : > { %10477 = vmatpush3.bf16.xpose.msk.msra.mxu1 %vm12212_vm5, %v10475_v13  ;;  %9671 = vmatprep.mubr.msk.f32.mxu1 %vm11440_vm2, %v15305_v25 }
 0x31d   : > { %9681 = vmatprep.subr.mxu1 %v15305_v25 }
 0x31f   : > { %9672 = vmatmul.mubr.msk.f32.gmra.mrb[42].mxu1 %vm1205_vm4, %v12146_v15 }
 0x320   : > { %9674 = vmatprep.mubr.msk.f32.mxu1 %vm11440_vm2, %v15305_v25 }
 0x323   : > { %9675 = vmatmul.mubr.msk.f32.gmra.mrb[44].mxu1 %vm1205_vm4, %v12160_v24 }
 0x324   : > { %9682 = vmatpush3.xpose.msk.msra.mxu1 %vm1205_vm4, %v1710_v48  ;;  %9683 = vmatprep.mubr.msk.f32.mxu1 %vm11440_vm2, %v15305_v25 }
 0x325   : > { %10626 = vmatprep.subr.bf16.mxu1 %v15303_v11 }
 0x327   : > { %9684 = vmatmul.mubr.msk.f32.vlgmr.msra.gmra.mrb[46].mxu1 %vm1205_vm4, %v12166_v47 }
 0x328   : > { %10628 = vmatpush3.bf16.msra.mxu1 %v10479_v57  ;;  %9686 = vmatprep.mubr.msk.f32.mxu1 %vm11440_vm2, %v15305_v25 }
 0x329   : > { %10627 = vmatprep.subr.mxu1 %v15305_v25 }
 0x32b   : > { %9687 = vmatmul.mubr.msk.f32.gmra.mrb[48].mxu1 %vm1205_vm4, %v12168_v50 }
 0x32c   : > { %10629 = vmatpush3.msra.mxu1 %v2043_v62  ;;  %9689 = vmatprep.mubr.msk.f32.mxu1 %vm11440_vm2, %v15305_v25 }
 0x32d   : > { %10481 = vmatprep.subr.bf16.mxu1 %v15303_v11 }
 0x32f   : > { %9690 = vmatmul.mubr.msk.f32.gmra.mrb[50].mxu1 %vm1205_vm4, %v12174_v51 }
 0x330   : > { %9704 = vmatprep.mubr.msk.f32.mxu1 %vm11440_vm2, %v15305_v25 }
 0x3bc   : > { %v1284_v8 = vpop.f32.mrb[16].mxu1 }
 0x3bd   : > { %v1803_v12 = vmul.f32 0.35355338, %v1284_v8  ;;  %v9610_v58 = vpop.f32.mrb[17].mxu1 }
 0x3bf   : > { %v12325_v16 = vadd.f32 %v1803_v12, %v12322_v10 }
 0x3c0   : > { %v1289_v47 = vpop.f32.mrb[18].mxu1 }
 0x3c1   : > { %v1804_v21 = vmul.f32 0.35355338, %v1289_v47  ;;  %v9613_v27 = vpop.f32.mrb[19].mxu1  ;;  %v1840_v2 = vsel %vm1839_vm7, %v12325_v16, -inf }
 0x3c2   : > { %1841 = vmax.xlane.f32.xlu0 %v1840_v2 }
 0x3c3   : > { %v12330_v31 = vadd.f32 %v1804_v21, %v12322_v10 }
 0x3c4   : > { %v1294_v28 = vpop.f32.mrb[20].mxu1 }
 0x3c5   : > { %v1805_v32 = vmul.f32 0.35355338, %v1294_v28  ;;  %v9616_v33 = vpop.f32.mrb[21].mxu1  ;;  %v1843_v34 = vsel %vm1839_vm7, %v12330_v31, -inf }
 0x3c6   : > { %1844 = vmax.xlane.f32.xlu0 %v1843_v34 }
 0x3c7   : > { %v12335_v26 = vadd.f32 %v1805_v32, %v12322_v10 }
 0x3c9   : > { %v1846_v36 = vsel %vm1839_vm7, %v12335_v26, -inf }
 0x3ca   : > { %v1385_v37 = vpop.f32.mrb[22].mxu1  ;;  %1847 = vmax.xlane.f32.xlu1 %v1846_v36 }
 0x3cb   : > { %v1806_v19 = vmul.f32 0.35355338, %v1385_v37  ;;  %v9625_v40 = vpop.f32.mrb[23].mxu1 }
 0x3cd   : > { %v12340_v41 = vadd.f32 %v1806_v19, %v12322_v10 }
 0x3ce   : > { %v1390_v20 = vpop.f32.mrb[24].mxu1 }
 0x3cf   : > { %v1807_v23 = vmul.f32 0.35355338, %v1390_v20  ;;  %v9628_v44 = vpop.f32.mrb[25].mxu1  ;;  %v1849_v59 = vsel %vm1839_vm7, %v12340_v41, -inf }
 0x3d0   : > { %1850 = vmax.xlane.f32.xlu0 %v1849_v59 }
 0x3d1   : > { %v12345_v45 = vadd.f32 %v1807_v23, %v12322_v10 }
 0x3d2   : > { %v1395_v3 = vpop.f32.mrb[26].mxu1 }
 0x3d3   : > { %v1808_v29 = vmul.f32 0.35355338, %v1395_v3  ;;  %v9631_v48 = vpop.f32.mrb[27].mxu1  ;;  %v1852_v30 = vsel %vm1839_vm7, %v12345_v45, -inf }
 0x3d4   : > { %1853 = vmax.xlane.f32.xlu1 %v1852_v30 }
 0x3d5   : > { %v12350_v52 = vadd.f32 %v1808_v29, %v12322_v10 }
 0x3d6   : > { %v1486_v35 = vpop.f32.mrb[28].mxu1 }
 0x3d7   : > { %v1809_v54 = vmul.f32 0.35355338, %v1486_v35  ;;  %v9640_v55 = vpop.f32.mrb[29].mxu1  ;;  %v1855_v43 = vsel %vm1839_vm7, %v12350_v52, -inf }
 0x3d8   : > { %1856 = vmax.xlane.f32.xlu1 %v1855_v43 }
 0x3d9   : > { %v12355_v56 = vadd.f32 %v1809_v54, %v12322_v10 }
 0x3da   : > { %v1491_v57 = vpop.f32.mrb[30].mxu1 }
 0x3db   : > { %v1810_v7 = vmul.f32 0.35355338, %v1491_v57  ;;  %v9643_v62 = vpop.f32.mrb[31].mxu1  ;;  %v1858_v63 = vsel %vm1839_vm7, %v12355_v56, -inf }
 0x3dc   : > { %1859 = vmax.xlane.f32.xlu0 %v1858_v63 }
 0x3dd   : > { %v12360_v4 = vadd.f32 %v1810_v7, %v12322_v10 }
 0x3de   : > { %v1496_v13 = vpop.f32.mrb[32].mxu1 }
 0x3df   : > { %v1811_v17 = vmul.f32 0.35355338, %v1496_v13  ;;  %v9646_v6 = vpop.f32.mrb[33].mxu1  ;;  %v1861_v8 = vsel %vm1839_vm7, %v12360_v4, -inf }
 0x3e0   : > { %1862 = vmax.xlane.f32.xlu0 %v1861_v8 }
 0x3e1   : > { %v12365_v9 = vadd.f32 %v1811_v17, %v12322_v10 }
 0x3e2   : > { %v1587_v12 = vpop.f32.mrb[34].mxu1 }
 0x3e3   : > { %v1812_v58 = vmul.f32 0.35355338, %v1587_v12  ;;  %v9655_v47 = vpop.f32.mrb[35].mxu1  ;;  %v1864_v21 = vsel %vm1839_vm7, %v12365_v9, -inf }
 0x3e4   : > { %1865 = vmax.xlane.f32.xlu0 %v1864_v21 }
 0x3e5   : > { %v12370_v27 = vadd.f32 %v1812_v58, %v12322_v10 }
 0x3e6   : > { %v1592_v2 = vpop.f32.mrb[36].mxu1 }
 0x3e7   : > { %v1813_v28 = vmul.f32 0.35355338, %v1592_v2  ;;  %v9658_v32 = vpop.f32.mrb[37].mxu1  ;;  %v1867_v33 = vsel %vm1839_vm7, %v12370_v27, -inf }
 0x3e8   : > { %1868 = vmax.xlane.f32.xlu1 %v1867_v33 }
 0x3e9   : > { %v12375_v34 = vadd.f32 %v1813_v28, %v12322_v10 }
 0x3ea   : > { %v1597_v36 = vpop.f32.mrb[38].mxu1 }
 0x3eb   : > { %v1814_v37 = vmul.f32 0.35355338, %v1597_v36  ;;  %v9661_v19 = vpop.f32.mrb[39].mxu1  ;;  %v1870_v40 = vsel %vm1839_vm7, %v12375_v34, -inf }
 0x3ec   : > { %1871 = vmax.xlane.f32.xlu1 %v1870_v40 }
 0x3ed   : > { %v12380_v20 = vadd.f32 %v1814_v37, %v12322_v10 }
 0x3ee   : > { %v1688_v23 = vpop.f32.mrb[40].mxu1 }
 0x3ef   : > { %v1815_v44 = vmul.f32 0.35355338, %v1688_v23  ;;  %v9670_v59 = vpop.f32.mrb[41].mxu1  ;;  %v1873_v3 = vsel %vm1839_vm7, %v12380_v20, -inf  ;;  %v12414_v23 = vpop.permute.xlu1 %10708 }
 0x3f0   : > { %1874 = vmax.xlane.f32.xlu1 %v1873_v3  ;;  %v12420_v3 = vpop.permute.xlu0 %10713 }
 0x3f1   : > { %v12385_v29 = vadd.f32 %v1815_v44, %v12322_v10 }
 0x3f2   : > { %v1693_v48 = vpop.f32.mrb[42].mxu1 }
 0x3f3   : > { %v1816_v30 = vmul.f32 0.35355338, %v1693_v48  ;;  %v9673_v35 = vpop.f32.mrb[43].mxu1  ;;  %v1876_v54 = vsel %vm1839_vm7, %v12385_v29, -inf  ;;  %v12416_v44 = vpop.permute.xlu1 %2434 }
 0x3f4   : > { %1877 = vmax.xlane.f32.xlu0 %v1876_v54 }
 0x3f5   : > { %v12390_v55 = vadd.f32 %v1816_v30, %v12322_v10  ;;  %v12424_v30 = vpop.permute.xlu0 %2140 }
 0x3f6   : > { %v1698_v43 = vpop.f32.mrb[44].mxu1 }
 0x3f7   : > { %v1817_v57 = vmul.f32 0.35355338, %v1698_v43  ;;  %v9676_v7 = vpop.f32.mrb[45].mxu1  ;;  %v1879_v62 = vsel %vm1839_vm7, %v12390_v55, -inf  ;;  %v12418_v59 = vpop.permute.xlu1 %10723 }
 0x3f8   : > { %1880 = vmax.xlane.f32.xlu0 %v1879_v62 }
 0x3f9   : > { %v12395_v63 = vadd.f32 %v1817_v57, %v12322_v10  ;;  %v12428_v54 = vpop.permute.xlu0 %2238 }
 0x3fa   : > { %v1789_v13 = vpop.f32.mrb[46].mxu1 }
 0x3fb   : > { %v1818_v17 = vmul.f32 0.35355338, %v1789_v13  ;;  %v9685_v6 = vpop.f32.mrb[47].mxu1  ;;  %v1882_v8 = vsel %vm1839_vm7, %v12395_v63, -inf  ;;  %v12422_v48 = vpop.permute.xlu1 %10728 }
 0x3fc   : > { %1883 = vmax.xlane.f32.xlu0 %v1882_v8 }
 0x3fd   : > { %v12400_v12 = vadd.f32 %v1818_v17, %v12322_v10  ;;  %v12432_v57 = vpop.permute.xlu0 %10718 }
 0x3fe   : > { %v1794_v58 = vpop.f32.mrb[48].mxu1 }
 0x3ff   : > { %v1819_v47 = vmul.f32 0.35355338, %v1794_v58  ;;  %v9688_v21 = vpop.f32.mrb[49].mxu1  ;;  %v1885_v2 = vsel %vm1839_vm7, %v12400_v12, -inf  ;;  %v12426_v35 = vpop.permute.xlu1 %2532 }
 0x400   : > { %1886 = vmax.xlane.f32.xlu1 %v1885_v2 }
 0x401   : > { %v12405_v28 = vadd.f32 %v1819_v47, %v12322_v10  ;;  %v12436_v62 = vpop.permute.xlu0 %2336 }
 0x402   : > { %v1799_v32 = vpop.f32.mrb[50].mxu1 }
 0x403   : > { %v1820_v33 = vmul.f32 0.35355338, %v1799_v32  ;;  %v9691_v36 = vpop.f32.mrb[51].mxu1  ;;  %v1888_v37 = vsel %vm1839_vm7, %v12405_v28, -inf  ;;  %v12430_v43 = vpop.permute.xlu1 %2675 }
 0x404   : > { %1889 = vmax.xlane.f32.xlu0 %v1888_v37 }
 0x405   : > { %v12410_v19 = vadd.f32 %v1820_v33, %v12322_v10  ;;  %v12440_v17 = vpop.permute.xlu0 %2665 }
 0x407   : > { %v1891_v40 = vsel %vm1839_vm7, %v12410_v19, -inf  ;;  %v12434_v7 = vpop.permute.xlu1 %10733 }
 0x408   : > { %1892 = vmax.xlane.f32.xlu1 %v1891_v40  ;;  %15327 = vst [vmem:[#allocation9_spill] sm:$0xff] %v12434_v7 }
 0x409   : > { %v12444_v8 = vpop.permute.xlu0 %2669 }
 0x40a   : > { %15328 = vst [vmem:[#allocation10_spill] sm:$0xff] %v12444_v8 }
 0x40b   : > { %v12438_v13 = vpop.permute.xlu1 %10738 }
 0x40d   : > { %v12448_v47 = vpop.permute.xlu0 %2889 }
 0x40e   : > { %15330 = vst [vmem:[#allocation12_spill] sm:$0xff] %v12448_v47 }
 0x40f   : > { %v12442_v6 = vpop.permute.xlu1 %2667 }
 0x413   : > { %v12446_v58 = vpop.permute.xlu1 %2782 }
 0x414   : > { %15329 = vst [vmem:[#allocation11_spill] sm:$0xff] %v12446_v58 }
 0x417   : > { %v12450_v21 = vpop.permute.xlu1 %10743 }
 0x41b   : > { %v12453_v36 = vpop.permute.xlu1 %10748 }
 0x44f   : > { %v1842_v2 = vpop.xlane.xlu0 %1841 }
 0x450   : > { %v1894_v32 = vsub.f32 %v12325_v16, %v1842_v2 }
 0x452   : > { %v1912_v33 = vmul.f32 1.442695, %v1894_v32 }
 0x453   : > { %v1845_v37 = vpop.xlane.xlu0 %1844 }
 0x454   : > { %10962 = vpow2.f32 %v1912_v33  ;;  %v1895_v40 = vsub.f32 %v12330_v31, %v1845_v37 }
 0x456   : > { %v1914_v11 = vmul.f32 1.442695, %v1895_v40 }
 0x457   : > { %v1848_v25 = vpop.xlane.xlu1 %1847 }
 0x458   : > { %10964 = vpow2.f32 %v1914_v11  ;;  %v1896_v10 = vsub.f32 %v12335_v26, %v1848_v25 }
 0x45a   : > { %v1916_v58 = vmul.f32 1.442695, %v1896_v10 }
 0x45c   : > { %10966 = vpow2.f32 %v1916_v58 }
 0x45d   : > { %v1851_v7 = vpop.xlane.xlu0 %1850 }
 0x45e   : > { %v12457_v47 = vpop.eup %10962  ;;  %v1897_v8 = vsub.f32 %v12340_v41, %v1851_v7 }
 0x45f   : > { %v1948_v16 = vsel %vm1839_vm7, %v12457_v47, 0.0 }
 0x460   : > { %v1918_v2 = vmul.f32 1.442695, %v1897_v8  ;;  %1949 = vadd.xlane.f32.xlu0 %v1948_v16 }
 0x461   : > { %v1854_v32 = vpop.xlane.xlu1 %1853 }
 0x462   : > { %v12462_v33 = vpop.eup %10964  ;;  %10968 = vpow2.f32 %v1918_v2  ;;  %v1898_v11 = vsub.f32 %v12345_v45, %v1854_v32 }
 0x463   : > { %v1951_v25 = vsel %vm1839_vm7, %v12462_v33, 0.0 }
 0x464   : > { %v1920_v10 = vmul.f32 1.442695, %v1898_v11  ;;  %1952 = vadd.xlane.f32.xlu0 %v1951_v25 }
 0x465   : > { %v1857_v31 = vpop.xlane.xlu1 %1856 }
 0x466   : > { %v12467_v26 = vpop.eup %10966  ;;  %10970 = vpow2.f32 %v1920_v10  ;;  %v1899_v41 = vsub.f32 %v12350_v52, %v1857_v31 }
 0x467   : > { %v1954_v7 = vsel %vm1839_vm7, %v12467_v26, 0.0 }
 0x468   : > { %v1922_v8 = vmul.f32 1.442695, %v1899_v41  ;;  %1955 = vadd.xlane.f32.xlu1 %v1954_v7 }
 0x469   : > { %v1860_v58 = vpop.xlane.xlu0 %1859 }
 0x46a   : > { %10972 = vpow2.f32 %v1922_v8  ;;  %v1900_v45 = vsub.f32 %v12355_v56, %v1860_v58 }
 0x46c   : > { %v12473_v37 = vpop.eup %10968  ;;  %v1924_v40 = vmul.f32 1.442695, %v1900_v45 }
 0x46d   : > { %v1863_v16 = vpop.xlane.xlu0 %1862  ;;  %v1957_v2 = vsel %vm1839_vm7, %v12473_v37, 0.0 }
 0x46e   : > { %10974 = vpow2.f32 %v1924_v40  ;;  %v1901_v32 = vsub.f32 %v12360_v4, %v1863_v16  ;;  %1958 = vadd.xlane.f32.xlu1 %v1957_v2 }
 0x470   : > { %v12478_v52 = vpop.eup %10970  ;;  %v1926_v11 = vmul.f32 1.442695, %v1901_v32 }
 0x471   : > { %v1866_v25 = vpop.xlane.xlu0 %1865  ;;  %v1960_v10 = vsel %vm1839_vm7, %v12478_v52, 0.0 }
 0x472   : > { %10976 = vpow2.f32 %v1926_v11  ;;  %v1902_v56 = vsub.f32 %v12365_v9, %v1866_v25  ;;  %1961 = vadd.xlane.f32.xlu1 %v1960_v10 }
 0x474   : > { %v12483_v31 = vpop.eup %10972  ;;  %v1928_v41 = vmul.f32 1.442695, %v1902_v56 }
 0x475   : > { %v1869_v7 = vpop.xlane.xlu1 %1868  ;;  %v1963_v8 = vsel %vm1839_vm7, %v12483_v31, 0.0 }
 0x476   : > { %10978 = vpow2.f32 %v1928_v41  ;;  %v1903_v4 = vsub.f32 %v12370_v27, %v1869_v7  ;;  %1964 = vadd.xlane.f32.xlu1 %v1963_v8 }
 0x478   : > { %v12488_v58 = vpop.eup %10974  ;;  %v1930_v45 = vmul.f32 1.442695, %v1903_v4 }
 0x479   : > { %v1872_v40 = vpop.xlane.xlu1 %1871  ;;  %v1966_v16 = vsel %vm1839_vm7, %v12488_v58, 0.0 }
 0x47a   : > { %10980 = vpow2.f32 %v1930_v45  ;;  %v1904_v9 = vsub.f32 %v12375_v34, %v1872_v40  ;;  %1967 = vadd.xlane.f32.xlu0 %v1966_v16 }
 0x47c   : > { %v12493_v2 = vpop.eup %10976  ;;  %v1932_v32 = vmul.f32 1.442695, %v1904_v9 }
 0x47d   : > { %v1875_v11 = vpop.xlane.xlu1 %1874  ;;  %v1969_v25 = vsel %vm1839_vm7, %v12493_v2, 0.0 }
 0x47e   : > { %10982 = vpow2.f32 %v1932_v32  ;;  %v1905_v27 = vsub.f32 %v12380_v20, %v1875_v11  ;;  %1970 = vadd.xlane.f32.xlu0 %v1969_v25 }
 0x480   : > { %v12498_v10 = vpop.eup %10978  ;;  %v1934_v56 = vmul.f32 1.442695, %v1905_v27 }
 0x481   : > { %v1878_v41 = vpop.xlane.xlu0 %1877  ;;  %v1972_v7 = vsel %vm1839_vm7, %v12498_v10, 0.0 }
 0x482   : > { %10984 = vpow2.f32 %v1934_v56  ;;  %v1906_v34 = vsub.f32 %v12385_v29, %v1878_v41  ;;  %1973 = vadd.xlane.f32.xlu0 %v1972_v7 }
 0x484   : > { %v12503_v8 = vpop.eup %10980  ;;  %v1936_v4 = vmul.f32 1.442695, %v1906_v34 }
 0x485   : > { %v1881_v45 = vpop.xlane.xlu0 %1880  ;;  %v1975_v40 = vsel %vm1839_vm7, %v12503_v8, 0.0 }
 0x486   : > { %10986 = vpow2.f32 %v1936_v4  ;;  %v1907_v20 = vsub.f32 %v12390_v55, %v1881_v45  ;;  %1976 = vadd.xlane.f32.xlu1 %v1975_v40 }
 0x488   : > { %v12508_v16 = vpop.eup %10982  ;;  %v1938_v9 = vmul.f32 1.442695, %v1907_v20 }
 0x489   : > { %v1884_v32 = vpop.xlane.xlu0 %1883  ;;  %v1978_v11 = vsel %vm1839_vm7, %v12508_v16, 0.0 }
 0x48a   : > { %10988 = vpow2.f32 %v1938_v9  ;;  %v1908_v29 = vsub.f32 %v12395_v63, %v1884_v32  ;;  %1979 = vadd.xlane.f32.xlu0 %v1978_v11 }
 0x48c   : > { %v12513_v25 = vpop.eup %10984  ;;  %v1940_v27 = vmul.f32 1.442695, %v1908_v29 }
 0x48d   : > { %v1981_v56 = vsel %vm1839_vm7, %v12513_v25, 0.0  ;;  %v1887_v45 = vpop.xlane.xlu1 %1886 }
 0x48e   : > { %10990 = vpow2.f32 %v1940_v27  ;;  %1982 = vadd.xlane.f32.xlu1 %v1981_v56  ;;  %v1909_v40 = vsub.f32 %v12400_v12, %v1887_v45 }
 0x490   : > { %v12517_v55 = vpop.eup %10986  ;;  %v1942_v20 = vmul.f32 1.442695, %v1909_v40 }
 0x491   : > { %v1984_v41 = vsel %vm1839_vm7, %v12517_v55, 0.0  ;;  %v1890_v9 = vpop.xlane.xlu0 %1889 }
 0x492   : > { %1985 = vadd.xlane.f32.xlu0 %v1984_v41  ;;  %10992 = vpow2.f32 %v1942_v20  ;;  %v1910_v32 = vsub.f32 %v12405_v28, %v1890_v9  ;;  %v10710_v9 = vunpack.i.l.bf16 %v12414_v23 }
 0x494   : > { %v12521_v7 = vpop.eup %10988  ;;  %v1944_v11 = vmul.f32 1.442695, %v1910_v32 }
 0x495   : > { %v1987_v63 = vsel %vm1839_vm7, %v12521_v7, 0.0  ;;  %v1893_v28 = vpop.xlane.xlu1 %1892 }
 0x496   : > { %1988 = vadd.xlane.f32.xlu0 %v1987_v63  ;;  %10994 = vpow2.f32 %v1944_v11  ;;  %v1911_v56 = vsub.f32 %v12410_v19, %v1893_v28  ;;  %v10715_v19 = vunpack.i.l.bf16 %v12420_v3  ;;  %v10746_v28 = vunpack.i.h.bf16 %v12450_v21 }
 0x498   : > { %v12525_v34 = vpop.eup %10990  ;;  %v1946_v41 = vmul.f32 1.442695, %v1911_v56  ;;  %v10745_v56 = vunpack.i.l.bf16 %v12450_v21 }
 0x499   : > { %v1990_v4 = vsel %vm1839_vm7, %v12525_v34, 0.0 }
 0x49a   : > { %1991 = vadd.xlane.f32.xlu0 %v1990_v4  ;;  %10996 = vpow2.f32 %v1946_v41  ;;  %v10488_v41 = vpack.c.bf16 %v10746_v28, %v10745_v56 }
 0x49c   : > { %v12535_v29 = vpop.eup %10992 }
 0x49d   : > { %v1993_v27 = vsel %vm1839_vm7, %v12535_v29, 0.0 }
 0x49f   : > { %2772 = vrot.lane.b32.xlu1 %v12094_v61, %s11445_s30 }
 0x4a0   : > { %v12539_v61 = vpop.eup %10994 }
 0x4a1   : > { %v1996_v12 = vsel %vm1839_vm7, %v12539_v61, 0.0 }
 0x4b0   : > { %10753 = vrot.lane.b32.xlu0 %v12158_v18, %s11444_s17 }
 0x4c3   : > { %1994 = vadd.xlane.f32.xlu1 %v1993_v27 }
 0x4cf   : > { %1997 = vadd.xlane.f32.xlu0 %v1996_v12 }
 0x4d4   : > { %2774 = vrot.lane.b32.xlu1 %v12096_v39, %s11445_s30 }
 0x4d8   : > { %2776 = vrot.lane.b32.xlu1 %v12110_v53, %s11445_s30 }
 0x4e5   : > { %2879 = vrot.lane.b32.xlu0 %v12118_v60, %s11445_s30  ;;  %v10716_v60 = vunpack.i.h.bf16 %v12420_v3  ;;  %v15331_v3 = vmov 0.0  }
 0x4e9   : > { %2881 = vrot.lane.b32.xlu0 %v12120_v38, %s11445_s30  ;;  %v12560_v38 = vpop.eup %10996 }
 0x4ed   : > { %2883 = vrot.lane.b32.xlu0 %v12133_v5, %s11445_s30  ;;  %v1950_v63 = vpop.xlane.xlu0 %1949 }
 0x4ee   : > { %10998 = vrcp.f32 %v1950_v63  ;;  %v11358_v63 = vld [vmem:[#allocation2 + $0x10] sm:$0xff] }
 0x4f1   : > { %3103 = vrot.lane.b32.xlu0 %v12160_v24, %s11444_s17  ;;  %v1953_v39 = vpop.xlane.xlu0 %1952  ;;  %v10485_v24 = vpack.c.bf16 %v10716_v60, %v10715_v19 }
 0x4f2   : > { %11000 = vrcp.f32 %v1953_v39 }
 0x4f5   : > { %v1956_v53 = vpop.xlane.xlu1 %1955  ;;  %2986 = vrot.lane.b32.xlu0 %v12137_v0, %s11445_s30  ;;  %v1999_v0 = vsel %vm1839_vm7, %v12560_v38, 0.0 }
 0x4f6   : > { %11002 = vrcp.f32 %v1956_v53 }
 0x4f8   : > { %v10999_v4 = vpop.eup %10998 }
 0x4f9   : > { %v2020_v45 = vmul.f32 %v10999_v4, %v12457_v47  ;;  %2988 = vrot.lane.b32.xlu0 %v12139_v42, %s11445_s30  ;;  %v10711_v42 = vunpack.i.h.bf16 %v12414_v23 }
 0x4fb   : > { %v1959_v40 = vpop.xlane.xlu1 %1958  ;;  %9699 = vmatmul.mubr.msk.f32.vlgmr.msra.gmra.mrb[20].mxu0 %vm1839_vm7, %v2020_v45  ;;  %v10482_v23 = vpack.c.bf16 %v10711_v42, %v10710_v9 }
 0x4fc   : > { %v11001_v20 = vpop.eup %11000  ;;  %11004 = vrcp.f32 %v1959_v40  ;;  %10486 = vmatpush3.bf16.msra.mxu0 %v10485_v24  ;;  %2000 = vadd.xlane.f32.xlu1 %v1999_v0  ;;  %v11360_v24 = vld [vmem:[#allocation2 + $0x70] sm:$0xff]  ;;  %v12647_v0 = vld [vmem:[#allocation2 + $0x18] sm:$0xff] }
 0x4fd   : > { %2990 = vrot.lane.b32.xlu0 %v12144_v14, %s11445_s30  ;;  %9701 = vmatprep.mubr.msk.f32.mxu0 %vm11440_vm2, %v15331_v3  ;;  %v2021_v47 = vmul.f32 %v11001_v20, %v12462_v33  ;;  %v15332_v33 = vmov 0.0|0.0  }
 0x4fe   : > { %9726 = vmatprep.subr.mxu0 %v15331_v3 }
 0x4ff   : > { %v1962_v32 = vpop.xlane.xlu1 %1961  ;;  %9702 = vmatmul.mubr.msk.f32.gmra.mrb[22].mxu0 %vm1839_vm7, %v2021_v47  ;;  %v11361_v47 = vld [vmem:[#allocation2 + $0x78] sm:$0xff] }
 0x500   : > { %v11003_v11 = vpop.eup %11002  ;;  %11006 = vrcp.f32 %v1962_v32  ;;  %9727 = vmatpush3.msra.mxu0 %v12428_v54  ;;  %9728 = vmatprep.mubr.msk.f32.mxu0 %vm11440_vm2, %v15331_v3  ;;  %v12657_v32 = vld [vmem:[#allocation2 + $0x88] sm:$0xff] }
 0x501   : > { %v2022_v27 = vmul.f32 %v11003_v11, %v12467_v26  ;;  %3210 = vrot.lane.b32.xlu0 %v12174_v51, %s11444_s17  ;;  %10490 = vmatprep.subr.bf16.mxu0 %v15332_v33  ;;  %v4217_v11 = vld [vmem:[#allocation2] sm:$0xff] }
 0x503   : > { %9705 = vmatmul.mubr.msk.f32.vlgmr.msra.gmra.mrb[52].mxu1 %vm1839_vm7, %v2022_v27  ;;  %v1965_v12 = vpop.xlane.xlu1 %1964 }
 0x504   : > { %10483 = vmatpush3.bf16.msra.mxu1 %v10482_v23  ;;  %11008 = vrcp.f32 %v1965_v12  ;;  %9713 = vmatprep.mubr.msk.f32.mxu1 %vm11440_vm2, %v15331_v3  ;;  %v11364_v12 = vld [vmem:[#allocation2 + $0x8] sm:$0xff] }
 0x505   : > { %3202 = vrot.lane.b32.xlu0 %v12168_v50, %s11445_s30  ;;  %9711 = vmatprep.subr.mxu1 %v15331_v3 }
 0x506   : > { %v11005_v51 = vpop.eup %11004 }
 0x507   : > { %v1968_v54 = vpop.xlane.xlu0 %1967  ;;  %v2023_v26 = vmul.f32 %v11005_v51, %v12473_v37  ;;  %v10726_v51 = vunpack.i.h.bf16 %v12418_v59 }
 0x508   : > { %9712 = vmatpush3.msra.mxu1 %v12424_v30  ;;  %11010 = vrcp.f32 %v1968_v54  ;;  %v10725_v54 = vunpack.i.l.bf16 %v12418_v59 }
 0x509   : > { %10487 = vmatprep.subr.bf16.mxu1 %v15332_v33  ;;  %9714 = vmatmul.mubr.msk.f32.vlgmr.msra.gmra.mrb[54].mxu1 %vm1839_vm7, %v2023_v26 }
 0x50a   : > { %v11007_v21 = vpop.eup %11006  ;;  %10489 = vmatpush3.bf16.msra.mxu1 %v10488_v41  ;;  %3542 = vrot.lane.b32.xlu0 %v11358_v63, %s11447_s21  ;;  %v11365_v41 = vld [vmem:[#allocation2 + $0x18] sm:$0xff] }
 0x50b   : > { %v1971_v50 = vpop.xlane.xlu0 %1970  ;;  %9716 = vmatprep.mubr.msk.f32.mxu1 %vm11440_vm2, %v15331_v3  ;;  %9741 = vmatprep.subr.mxu1 %v15331_v3  ;;  %v2024_v37 = vmul.f32 %v11007_v21, %v12478_v52  ;;  %v10721_v52 = vunpack.i.h.bf16 %v12432_v57  ;;  %v11366_v21 = vld [vmem:[#allocation2 + $0x20] sm:$0xff] }
 0x50c   : > { %11012 = vrcp.f32 %v1971_v50  ;;  %v10767_v63 = vpack.i.bf16 %v11366_v21, %v11365_v41  ;;  %v10497_v50 = vpack.c.bf16 %v10726_v51, %v10725_v54  ;;  %v10751_v51 = vunpack.i.h.bf16 %v12453_v36 }
 0x50d   : > { %2996 = vrot.lane.b32.xlu1 %v12144_v14, %s11444_s17  ;;  %9717 = vmatmul.mubr.msk.f32.gmra.mrb[56].mxu1 %vm1839_vm7, %v2024_v37  ;;  %v10720_v14 = vunpack.i.l.bf16 %v12432_v57  ;;  %v11367_v37 = vld [vmem:[#allocation2 + $0x48] sm:$0xff]  ;;  %v10750_v54 = vunpack.i.l.bf16 %v12453_v36 }
 0x50e   : > { %v11009_v30 = vpop.eup %11008  ;;  %9742 = vmatpush3.msra.mxu1 %v12436_v62  ;;  %10773 = vrot.lane.b32.xlu0 %v12126_v1, %s11447_s21  ;;  %v11359_v1 = vld [vmem:[#allocation2 + $0x28] sm:$0xff] }
 0x50f   : > { %v1974_v39 = vpop.xlane.xlu0 %1973  ;;  %9719 = vmatprep.mubr.msk.f32.mxu1 %vm11440_vm2, %v15331_v3  ;;  %v2025_v53 = vmul.f32 %v11009_v30, %v12483_v31  ;;  %10493 = vmatprep.subr.bf16.mxu1 %v15332_v33  ;;  %v10491_v19 = vpack.c.bf16 %v10721_v52, %v10720_v14  ;;  %v11368_v30 = vld [vmem:[#allocation2 + $0x50] sm:$0xff]  ;;  %v10741_v14 = vunpack.i.h.bf16 %v12438_v13 }
 0x510   : > { %11014 = vrcp.f32 %v1974_v39  ;;  %v10782_v39 = vpack.i.bf16 %v11368_v30, %v11367_v37 }
 0x511   : > { %10758 = vrot.lane.b32.xlu1 %v12172_v49, %s11444_s17  ;;  %9720 = vmatmul.mubr.msk.f32.gmra.mrb[58].mxu1 %vm1839_vm7, %v2025_v53 }
 0x512   : > { %v11011_v62 = vpop.eup %11010  ;;  %3640 = vrot.lane.b32.xlu0 %v11359_v1, %s11447_s21  ;;  %9743 = vmatprep.mubr.msk.f32.mxu1 %vm11440_vm2, %v15331_v3  ;;  %v4218_v1 = vld [vmem:[#allocation2 + $0x8] sm:$0xff] }
 0x513   : > { %v2026_v31 = vmul.f32 %v11011_v62, %v12488_v58  ;;  %v1977_v60 = vpop.xlane.xlu1 %1976  ;;  %v10740_v62 = vunpack.i.l.bf16 %v12438_v13  ;;  %v15334_v13 = vld [vmem:[#allocation12_spill] sm:$0xff] }
 0x514   : > { %11016 = vrcp.f32 %v1977_v60 }
 0x515   : > { %3093 = vrot.lane.b32.xlu1 %v12153_v46, %s11445_s30  ;;  %9729 = vmatmul.mubr.msk.f32.vlgmr.msra.gmra.mrb[24].mxu0 %vm1839_vm7, %v2026_v31  ;;  %v11369_v31 = vld [vmem:[#allocation2 + $0x58] sm:$0xff] }
 0x516   : > { %v11013_v57 = vpop.eup %11012  ;;  %3738 = vrot.lane.b32.xlu0 %v12133_v5, %s11447_s21  ;;  %10492 = vmatpush3.bf16.msra.mxu0 %v10491_v19 }
 0x517   : > { %v1980_v4 = vpop.xlane.xlu0 %1979  ;;  %9731 = vmatprep.mubr.msk.f32.mxu0 %vm11440_vm2, %v15331_v3  ;;  %9756 = vmatprep.subr.mxu0 %v15331_v3  ;;  %v2027_v58 = vmul.f32 %v11013_v57, %v12493_v2  ;;  %v10731_v2 = vunpack.i.h.bf16 %v12422_v48  ;;  %v12733_v57 = vld [vmem:[#allocation2 + $0x28] sm:$0xff] }
 0x518   : > { %11018 = vrcp.f32 %v1980_v4 }
 0x519   : > { %3095 = vrot.lane.b32.xlu1 %v12146_v15, %s11445_s30  ;;  %9732 = vmatmul.mubr.msk.f32.gmra.mrb[26].mxu0 %vm1839_vm7, %v2027_v58  ;;  %v10730_v15 = vunpack.i.l.bf16 %v12422_v48  ;;  %v15335_v58 = vld [vmem:[#allocation9_spill] sm:$0xff] }
 0x51a   : > { %v11015_v46 = vpop.eup %11014  ;;  %10778 = vrot.lane.b32.xlu0 %v12158_v18, %s11447_s21  ;;  %9757 = vmatpush3.msra.mxu0 %v12416_v44  ;;  %v4221_v18 = vld [vmem:[#allocation2 + $0x20] sm:$0xff] }
 0x51b   : > { %v1983_v5 = vpop.xlane.xlu1 %1982  ;;  %9734 = vmatprep.mubr.msk.f32.mxu0 %vm11440_vm2, %v15331_v3  ;;  %v2028_v45 = vmul.f32 %v11015_v46, %v12498_v10  ;;  %10496 = vmatprep.subr.bf16.mxu0 %v15332_v33  ;;  %v10494_v20 = vpack.c.bf16 %v10731_v2, %v10730_v15  ;;  %v10797_v48 = vpack.i.bf16 %v4221_v18, %v12647_v0  ;;  %v10736_v46 = vunpack.i.h.bf16 %v15335_v58 }
 0x51c   : > { %11020 = vrcp.f32 %v1983_v5  ;;  %v10735_v5 = vunpack.i.l.bf16 %v15335_v58 }
 0x51d   : > { %3097 = vrot.lane.b32.xlu1 %v11360_v24, %s11445_s30  ;;  %9735 = vmatmul.mubr.msk.f32.gmra.mrb[28].mxu0 %vm1839_vm7, %v2028_v45 }
 0x51e   : > { %v11017_v44 = vpop.eup %11016  ;;  %3934 = vrot.lane.b32.xlu0 %v11360_v24, %s11447_s21  ;;  %9758 = vmatprep.mubr.msk.f32.mxu0 %vm11440_vm2, %v15331_v3 }
 0x51f   : > { %v2029_v10 = vmul.f32 %v11017_v44, %v12503_v8  ;;  %v1986_v40 = vpop.xlane.xlu0 %1985  ;;  %v2773_v60 = vpop.permute.xlu1 %2772  ;;  %v10501_v44 = vpack.c.bf16 %v10736_v46, %v10735_v5 }
 0x520   : > { %11022 = vrcp.f32 %v1986_v40 }
 0x521   : > { %3200 = vrot.lane.b32.xlu1 %v11361_v47, %s11445_s30  ;;  %9744 = vmatmul.mubr.msk.f32.vlgmr.msra.gmra.mrb[60].mxu1 %vm1839_vm7, %v2029_v10 }
 0x522   : > { %v11019_v42 = vpop.eup %11018  ;;  %10495 = vmatpush3.bf16.msra.mxu1 %v10494_v20  ;;  %10798 = vrot.lane.b32.xlu0 %v10797_v48, %s11448_s23  ;;  %v15336_v48 = vld [vmem:[#allocation11_spill] sm:$0xff] }
 0x523   : > { %v1989_v9 = vpop.xlane.xlu0 %1988  ;;  %9746 = vmatprep.mubr.msk.f32.mxu1 %vm11440_vm2, %v15331_v3  ;;  %9771 = vmatprep.subr.mxu1 %v15331_v3  ;;  %v2030_v8 = vmul.f32 %v11019_v42, %v12508_v16  ;;  %v11363_v16 = vld [vmem:[#allocation2] sm:$0xff] }
 0x524   : > { %11024 = vrcp.f32 %v1989_v9  ;;  %v10762_v28 = vpack.i.bf16 %v11364_v12, %v11363_v16 }
 0x525   : > { %3204 = vrot.lane.b32.xlu1 %v12657_v32, %s11445_s30  ;;  %9747 = vmatmul.mubr.msk.f32.gmra.mrb[62].mxu1 %vm1839_vm7, %v2030_v8 }
 0x526   : > { %v11021_v27 = vpop.eup %11020  ;;  %9772 = vmatpush3.msra.mxu1 %v12426_v35  ;;  %4238 = vrot.lane.b32.xlu0 %v4217_v11, %s11449_s19  ;;  %v4219_v35 = vld [vmem:[#allocation2 + $0x10] sm:$0xff] }
 0x527   : > { %v1992_v23 = vpop.xlane.xlu0 %1991  ;;  %9749 = vmatprep.mubr.msk.f32.mxu1 %vm11440_vm2, %v15331_v3  ;;  %v2031_v56 = vmul.f32 %v11021_v27, %v12513_v25  ;;  %10500 = vmatprep.subr.bf16.mxu1 %v15332_v33 }
 0x528   : > { %11026 = vrcp.f32 %v1992_v23 }
 0x529   : > { %10763 = vrot.lane.b32.xlu1 %v10762_v28, %s11447_s21  ;;  %9750 = vmatmul.mubr.msk.f32.gmra.mrb[64].mxu1 %vm1839_vm7, %v2031_v56 }
 0x52a   : > { %v11023_v26 = vpop.eup %11022  ;;  %4242 = vrot.lane.b32.xlu0 %v4219_v35, %s11449_s19  ;;  %9773 = vmatprep.mubr.msk.f32.mxu1 %vm11440_vm2, %v15331_v3 }
 0x52b   : > { %v2032_v25 = vmul.f32 %v11023_v26, %v12517_v55  ;;  %v10754_v4 = vpop.permute.xlu0 %10753 }
 0x52c   : > { %v10756_v2 = vunpack.i.h.bf16 %v10754_v4  ;;  %v10755_v15 = vunpack.i.l.bf16 %v10754_v4 }
 0x52d   : > { %10768 = vrot.lane.b32.xlu1 %v10767_v63, %s11447_s21  ;;  %9759 = vmatmul.mubr.msk.f32.vlgmr.msra.gmra.mrb[30].mxu0 %vm1839_vm7, %v2032_v25  ;;  %v10509_v25 = vpack.c.bf16 %v10751_v51, %v10750_v54  ;;  %v15337_v54 = vld [vmem:[#allocation8_spill] sm:$0xff] }
 0x52e   : > { %v11025_v59 = vpop.eup %11024  ;;  %10499 = vmatpush3.bf16.xpose.msk.msra.mxu0 %vm12212_vm5, %v10497_v50  ;;  %9761 = vmatprep.mubr.msk.f32.mxu0 %vm11440_vm2, %v15331_v3  ;;  %v10513_v10 = vpack.c.bf16 %v10756_v2, %v10755_v15 }
 0x52f   : > { %v2033_v55 = vmul.f32 %v11025_v59, %v12521_v7  ;;  %9786 = vmatprep.subr.mxu0 %v15331_v3  ;;  %v10787_v7 = vpack.i.bf16 %v4218_v1, %v4217_v11 }
 0x531   : > { %10783 = vrot.lane.b32.xlu1 %v10782_v39, %s11447_s21  ;;  %9762 = vmatmul.mubr.msk.f32.gmra.mrb[32].mxu0 %vm1839_vm7, %v2033_v55 }
 0x532   : > { %v11027_v53 = vpop.eup %11026  ;;  %9764 = vmatprep.mubr.msk.f32.mxu0 %vm11440_vm2, %v15331_v3 }
 0x533   : > { %v2034_v52 = vmul.f32 %v11027_v53, %v12525_v34  ;;  %v10505_v34 = vpack.c.bf16 %v10741_v14, %v10740_v62 }
 0x535   : > { %3836 = vrot.lane.b32.xlu1 %v11369_v31, %s11447_s21  ;;  %9765 = vmatmul.mubr.msk.f32.gmra.mrb[34].mxu0 %vm1839_vm7, %v2034_v52 }
 0x536   : > { %9787 = vmatpush3.xpose.msk.msra.mxu0 %vm1205_vm4, %v12430_v43  ;;  %9788 = vmatprep.mubr.msk.f32.mxu0 %vm11440_vm2, %v15331_v3  ;;  %v15333_v43 = vld [vmem:[#allocation10_spill] sm:$0xff] }
 0x537   : > { %10504 = vmatprep.subr.bf16.mxu0 %v15332_v33 }
 0x539   : > { %10788 = vrot.lane.b32.xlu1 %v10787_v7, %s11448_s23  ;;  %9789 = vmatmul.mubr.msk.f32.vlgmr.msra.gmra.mrb[36].mxu0 %vm1205_vm4, %v12440_v17  ;;  %v12724_v17 = vld [vmem:[#allocation2 + $0x30] sm:$0xff] }
 0x53a   : > { %10507 = vmatpush3.bf16.xpose.msk.msra.mxu0 %vm12212_vm5, %v10505_v34  ;;  %9791 = vmatprep.mubr.msk.f32.mxu0 %vm11440_vm2, %v15331_v3 }
 0x53b   : > { %9816 = vmatprep.subr.mxu0 %v15331_v3 }
 0x53d   : > { %10793 = vrot.lane.b32.xlu1 %v12172_v49, %s11447_s21  ;;  %9792 = vmatmul.mubr.msk.f32.gmra.mrb[38].mxu0 %vm1205_vm4, %v12442_v6  ;;  %v12721_v49 = vld [vmem:[#allocation2 + $0x38] sm:$0xff] }
 0x53e   : > { %9794 = vmatprep.mubr.msk.f32.mxu0 %vm11440_vm2, %v15331_v3  ;;  %v12728_v6 = vpack.i.bf16 %v12721_v49, %v12724_v17 }
 0x541   : > { %4032 = vrot.lane.b32.xlu1 %v12657_v32, %s11447_s21  ;;  %9795 = vmatmul.mubr.msk.f32.gmra.mrb[40].mxu0 %vm1205_vm4, %v15333_v43  ;;  %s15363_s21 = scalar_lea.vmem %s15292_s6, %s11545_s29 }
 0x542   : > { %9817 = vmatpush3.xpose.msk.msra.mxu0 %vm1205_vm4, %v15334_v13  ;;  %9818 = vmatprep.mubr.msk.f32.mxu0 %vm11440_vm2, %v15331_v3 }
 0x543   : > { %10512 = vmatprep.subr.bf16.mxu0 %v15332_v33 }
 0x545   : > { %4248 = vrot.lane.b32.xlu1 %v4219_v35, %s11448_s23 }
 0x549   : > { %10803 = vrot.lane.b32.xlu1 %v12728_v6, %s11448_s23 }
 0x54d   : > { %4240 = vrot.lane.b32.xlu1 %v4218_v1, %s11449_s19 }
 0x550   : > { %v1995_v19 = vpop.xlane.xlu1 %1994 }
 0x551   : > { %11028 = vrcp.f32 %v1995_v19  ;;  %4355 = vrot.lane.b32.xlu1 %v12733_v57, %s11448_s23 }
 0x554   : > { %v2775_v8 = vpop.permute.xlu1 %2774 }
 0x558   : > { %v2777_v32 = vpop.permute.xlu1 %2776 }
 0x55b   : > { %v11029_v45 = vpop.eup %11028 }
 0x55c   : > { %v2035_v24 = vmul.f32 %v11029_v45, %v12535_v29  ;;  %v1998_v18 = vpop.xlane.xlu0 %1997 }
 0x55d   : > { %11030 = vrcp.f32 %v1998_v18 }
 0x55e   : > { %9774 = vmatmul.mubr.msk.f32.vlgmr.msra.gmra.mrb[66].mxu1 %vm1839_vm7, %v2035_v24 }
 0x55f   : > { %10503 = vmatpush3.bf16.xpose.msk.msra.mxu1 %vm12212_vm5, %v10501_v44  ;;  %9776 = vmatprep.mubr.msk.f32.mxu1 %vm11440_vm2, %v15331_v3 }
 0x560   : > { %v2880_v40 = vpop.permute.xlu0 %2879  ;;  %9801 = vmatprep.subr.mxu1 %v15331_v3 }
 0x561   : > { %9819 = vmatmul.mubr.msk.f32.vlgmr.msra.gmra.mrb[42].mxu0 %vm1205_vm4, %v2880_v40 }
 0x562   : > { %10515 = vmatpush3.bf16.xpose.msk.msra.mxu0 %vm12212_vm5, %v10513_v10  ;;  %9821 = vmatprep.mubr.msk.f32.mxu0 %vm11440_vm2, %v15331_v3 }
 0x563   : > { %9846 = vmatprep.subr.mxu0 %v15331_v3 }
 0x564   : > { %v2882_v29 = vpop.permute.xlu0 %2881 }
 0x565   : > { %9822 = vmatmul.mubr.msk.f32.gmra.mrb[44].mxu0 %vm1205_vm4, %v2882_v29 }
 0x566   : > { %9824 = vmatprep.mubr.msk.f32.mxu0 %vm11440_vm2, %v15331_v3 }
 0x567   : > { %v11031_v20 = vpop.eup %11030  ;;  %9802 = vmatpush3.xpose.msk.msra.mxu1 %vm1205_vm4, %v15336_v48 }
 0x568   : > { %v2884_v47 = vpop.permute.xlu0 %2883  ;;  %v2036_v42 = vmul.f32 %v11031_v20, %v12539_v61  ;;  %10508 = vmatprep.subr.bf16.mxu1 %v15332_v33 }
 0x569   : > { %9825 = vmatmul.mubr.msk.f32.gmra.mrb[46].mxu0 %vm1205_vm4, %v2884_v47 }
 0x56a   : > { %9777 = vmatmul.mubr.msk.f32.gmra.mrb[68].mxu1 %vm1839_vm7, %v2036_v42  ;;  %9848 = vmatprep.mubr.msk.f32.mxu0 %vm11440_vm2, %v15331_v3 }
 0x56b   : > { %9779 = vmatprep.mubr.msk.f32.mxu1 %vm11440_vm2, %v15331_v3 }
 0x56c   : > { %v3104_v9 = vpop.permute.xlu0 %3103 }
 0x56d   : > { %9847 = vmatpush3.xpose.msk.msra.mxu0 %vm1205_vm4, %v3104_v9 }
 0x56e   : > { %10520 = vmatprep.subr.bf16.mxu0 %v15332_v33 }
 0x570   : > { %v2987_v11 = vpop.permute.xlu0 %2986 }
 0x574   : > { %v2989_v16 = vpop.permute.xlu0 %2988 }
 0x578   : > { %v2991_v35 = vpop.permute.xlu0 %2990 }
 0x589   : > { %v2001_v61 = vpop.xlane.xlu1 %2000 }
 0x58a   : > { %11032 = vrcp.f32 %v2001_v61 }
 0x58d   : > { %v2997_v27 = vpop.permute.xlu1 %2996 }
 0x591   : > { %v10759_v23 = vpop.permute.xlu1 %10758 }
 0x592   : > { %v10761_v21 = vunpack.i.h.bf16 %v10759_v23  ;;  %v10760_v63 = vunpack.i.l.bf16 %v10759_v23 }
 0x594   : > { %v11033_v12 = vpop.eup %11032  ;;  %v10517_v37 = vpack.c.bf16 %v10761_v21, %v10760_v63 }
 0x595   : > { %v3094_v28 = vpop.permute.xlu1 %3093  ;;  %v2037_v56 = vmul.f32 %v11033_v12, %v12560_v38  ;;  %v3211_v38 = vpop.permute.xlu0 %3210 }
 0x596   : > { %9849 = vmatmul.mubr.msk.f32.vlgmr.msra.gmra.mrb[48].mxu0 %vm1205_vm4, %v3094_v28 }
 0x597   : > { %9780 = vmatmul.mubr.msk.f32.gmra.mrb[70].mxu1 %vm1839_vm7, %v2037_v56  ;;  %9851 = vmatprep.mubr.msk.f32.mxu0 %vm11440_vm2, %v15331_v3 }
 0x598   : > { %9803 = vmatprep.mubr.msk.f32.mxu1 %vm11440_vm2, %v15331_v3 }
 0x599   : > { %v3096_v26 = vpop.permute.xlu1 %3095  ;;  %v3203_v50 = vpop.permute.xlu0 %3202 }
 0x59a   : > { %9852 = vmatmul.mubr.msk.f32.gmra.mrb[50].mxu0 %vm1205_vm4, %v3096_v26 }
 0x59b   : > { %9804 = vmatmul.mubr.msk.f32.vlgmr.msra.gmra.mrb[72].mxu1 %vm1205_vm4, %v2773_v60  ;;  %9854 = vmatprep.mubr.msk.f32.mxu0 %vm11440_vm2, %v15331_v3 }
 0x59c   : > { %10511 = vmatpush3.bf16.xpose.msk.msra.mxu1 %vm12212_vm5, %v10509_v25  ;;  %9806 = vmatprep.mubr.msk.f32.mxu1 %vm11440_vm2, %v15331_v3 }
 0x59d   : > { %v3098_v36 = vpop.permute.xlu1 %3097  ;;  %9831 = vmatprep.subr.mxu1 %v15331_v3  ;;  %v3543_v53 = vpop.permute.xlu0 %3542 }
 0x59e   : > { %9855 = vmatmul.mubr.msk.f32.gmra.mrb[52].mxu0 %vm1205_vm4, %v3098_v36 }
 0x59f   : > { %9807 = vmatmul.mubr.msk.f32.gmra.mrb[74].mxu1 %vm1205_vm4, %v2775_v8  ;;  %9878 = vmatprep.mubr.msk.f32.mxu0 %vm11440_vm2, %v15331_v3 }
 0x5a0   : > { %9809 = vmatprep.mubr.msk.f32.mxu1 %vm11440_vm2, %v15331_v3 }
 0x5a1   : > { %v3201_v41 = vpop.permute.xlu1 %3200  ;;  %v12810_v7 = vpop.permute.xlu0 %10773 }
 0x5a3   : > { %9810 = vmatmul.mubr.msk.f32.gmra.mrb[76].mxu1 %vm1205_vm4, %v2777_v32 }
 0x5a4   : > { %9832 = vmatpush3.xpose.msk.msra.mxu1 %vm1205_vm4, %v2997_v27  ;;  %9833 = vmatprep.mubr.msk.f32.mxu1 %vm11440_vm2, %v15331_v3 }
 0x5a5   : > { %v3205_v59 = vpop.permute.xlu1 %3204  ;;  %10516 = vmatprep.subr.bf16.mxu1 %v15332_v33  ;;  %v3641_v34 = vpop.permute.xlu0 %3640 }
 0x5a7   : > { %9834 = vmatmul.mubr.msk.f32.vlgmr.msra.gmra.mrb[78].mxu1 %vm1205_vm4, %v2987_v11 }
 0x5a8   : > { %10519 = vmatpush3.bf16.xpose.msk.msra.mxu1 %vm12212_vm5, %v10517_v37  ;;  %9836 = vmatprep.mubr.msk.f32.mxu1 %vm11440_vm2, %v15331_v3 }
 0x5a9   : > { %v10764_v30 = vpop.permute.xlu1 %10763  ;;  %9861 = vmatprep.subr.mxu1 %v15331_v3 }
 0x5aa   : > { %v10766_v39 = vunpack.i.h.bf16 %v10764_v30  ;;  %v10765_v55 = vunpack.i.l.bf16 %v10764_v30 }
 0x5ab   : > { %9837 = vmatmul.mubr.msk.f32.gmra.mrb[80].mxu1 %vm1205_vm4, %v2989_v16 }
 0x5ac   : > { %v10521_v52 = vpack.c.bf16 %v10766_v39, %v10765_v55  ;;  %9839 = vmatprep.mubr.msk.f32.mxu1 %vm11440_vm2, %v15331_v3 }
 0x5ad   : > { %v10769_v14 = vpop.permute.xlu1 %10768 }
 0x5ae   : > { %v10771_v62 = vunpack.i.h.bf16 %v10769_v14  ;;  %v10770_v1 = vunpack.i.l.bf16 %v10769_v14  ;;  %10522 = vmatpush3.bf16.msra.mxu0 %v10521_v52 }
 0x5af   : > { %9840 = vmatmul.mubr.msk.f32.gmra.mrb[82].mxu1 %vm1205_vm4, %v2991_v35  ;;  %9876 = vmatprep.subr.mxu0 %v15331_v3 }
 0x5b0   : > { %v10524_v31 = vpack.c.bf16 %v10771_v62, %v10770_v1  ;;  %9862 = vmatpush3.xpose.msk.msra.mxu1 %vm1205_vm4, %v3211_v38  ;;  %9863 = vmatprep.mubr.msk.f32.mxu1 %vm11440_vm2, %v15331_v3 }
 0x5b1   : > { %10523 = vmatprep.subr.bf16.mxu1 %v15332_v33 }
 0x5b2   : > { %9877 = vmatpush3.msra.mxu0 %v3543_v53 }
 0x5b3   : > { %9864 = vmatmul.mubr.msk.f32.vlgmr.msra.gmra.mrb[84].mxu1 %vm1205_vm4, %v3201_v41  ;;  %10526 = vmatprep.subr.bf16.mxu0 %v15332_v33 }
 0x5b4   : > { %10525 = vmatpush3.bf16.msra.mxu1 %v10524_v31  ;;  %9866 = vmatprep.mubr.msk.f32.mxu1 %vm11440_vm2, %v15331_v3 }
 0x5b5   : > { %9891 = vmatprep.subr.mxu1 %v15331_v3 }
 0x5b7   : > { %9867 = vmatmul.mubr.msk.f32.gmra.mrb[86].mxu1 %vm1205_vm4, %v3203_v50 }
 0x5b8   : > { %9892 = vmatpush3.msra.mxu1 %v3641_v34  ;;  %9869 = vmatprep.mubr.msk.f32.mxu1 %vm11440_vm2, %v15331_v3 }
 0x5b9   : > { %10529 = vmatprep.subr.bf16.mxu1 %v15332_v33 }
 0x5bb   : > { %9870 = vmatmul.mubr.msk.f32.gmra.mrb[88].mxu1 %vm1205_vm4, %v3205_v59 }
 0x5bc   : > { %9893 = vmatprep.mubr.msk.f32.mxu1 %vm11440_vm2, %v15331_v3 }
 0x5ce   : > { %v2122_v43 = vpop.f32.mrb[20].mxu0 }
 0x5cf   : > { %2626 = vst.msk [vmem:[#allocation3] sm:$0xff] %vm1205_vm4, %v2122_v43  ;;  %v9700_v13 = vpop.f32.mrb[21].mxu0 }
 0x5d2   : > { %v2127_v60 = vpop.f32.mrb[22].mxu0 }
 0x5d3   : > { %2627 = vst.msk [vmem:[#allocation3 + $0x8] sm:$0xff] %vm1205_vm4, %v2127_v60  ;;  %v9703_v19 = vpop.f32.mrb[23].mxu0 }
 0x5d6   : > { %v2132_v4 = vpop.f32.mrb[52].mxu1 }
 0x5d7   : > { %2628 = vst.msk [vmem:[#allocation3 + $0x10] sm:$0xff] %vm1205_vm4, %v2132_v4  ;;  %v9706_v58 = vpop.f32.mrb[53].mxu1 }
 0x5dc   : > { %v2220_v46 = vpop.f32.mrb[54].mxu1 }
 0x5dd   : > { %2629 = vst.msk [vmem:[#allocation3 + $0x18] sm:$0xff] %vm1205_vm4, %v2220_v46  ;;  %v9715_v5 = vpop.f32.mrb[55].mxu1 }
 0x5e0   : > { %v2225_v45 = vpop.f32.mrb[56].mxu1 }
 0x5e1   : > { %2630 = vst.msk [vmem:[#allocation3 + $0x20] sm:$0xff] %vm1205_vm4, %v2225_v45  ;;  %v9718_v2 = vpop.f32.mrb[57].mxu1 }
 0x5e4   : > { %v2230_v15 = vpop.f32.mrb[58].mxu1 }
 0x5e5   : > { %2631 = vst.msk [vmem:[#allocation3 + $0x28] sm:$0xff] %vm1205_vm4, %v2230_v15  ;;  %v9721_v24 = vpop.f32.mrb[59].mxu1 }
 0x5e8   : > { %v2318_v18 = vpop.f32.mrb[24].mxu0 }
 0x5e9   : > { %2632 = vst.msk [vmem:[#allocation3 + $0x30] sm:$0xff] %vm1205_vm4, %v2318_v18  ;;  %v9730_v44 = vpop.f32.mrb[25].mxu0 }
 0x5ec   : > { %v2323_v10 = vpop.f32.mrb[26].mxu0 }
 0x5ed   : > { %2633 = vst.msk [vmem:[#allocation3 + $0x38] sm:$0xff] %vm1205_vm4, %v2323_v10  ;;  %v9733_v40 = vpop.f32.mrb[27].mxu0 }
 0x5f0   : > { %v2328_v29 = vpop.f32.mrb[28].mxu0 }
 0x5f1   : > { %2634 = vst.msk [vmem:[#allocation3 + $0x40] sm:$0xff] %vm1205_vm4, %v2328_v29  ;;  %v9736_v20 = vpop.f32.mrb[29].mxu0 }
 0x5f4   : > { %v2416_v48 = vpop.f32.mrb[60].mxu1 }
 0x5f5   : > { %2635 = vst.msk [vmem:[#allocation3 + $0x48] sm:$0xff] %vm1205_vm4, %v2416_v48  ;;  %v9745_v47 = vpop.f32.mrb[61].mxu1 }
 0x5f8   : > { %v2421_v42 = vpop.f32.mrb[62].mxu1 }
 0x5f9   : > { %2636 = vst.msk [vmem:[#allocation3 + $0x50] sm:$0xff] %vm1205_vm4, %v2421_v42  ;;  %v9748_v9 = vpop.f32.mrb[63].mxu1 }
 0x5fc   : > { %v2426_v8 = vpop.f32.mrb[64].mxu1 }
 0x5fd   : > { %2637 = vst.msk [vmem:[#allocation3 + $0x58] sm:$0xff] %vm1205_vm4, %v2426_v8  ;;  %v9751_v32 = vpop.f32.mrb[65].mxu1 }
 0x600   : > { %v2514_v61 = vpop.f32.mrb[30].mxu0 }
 0x601   : > { %2638 = vst.msk [vmem:[#allocation3 + $0x60] sm:$0xff] %vm1205_vm4, %v2514_v61  ;;  %v9760_v11 = vpop.f32.mrb[31].mxu0 }
 0x604   : > { %v2519_v27 = vpop.f32.mrb[32].mxu0 }
 0x605   : > { %2639 = vst.msk [vmem:[#allocation3 + $0x68] sm:$0xff] %vm1205_vm4, %v2519_v27  ;;  %v9763_v23 = vpop.f32.mrb[33].mxu0 }
 0x608   : > { %v2524_v16 = vpop.f32.mrb[34].mxu0 }
 0x609   : > { %2640 = vst.msk [vmem:[#allocation3 + $0x70] sm:$0xff] %vm1205_vm4, %v2524_v16  ;;  %v9766_v12 = vpop.f32.mrb[35].mxu0  ;;  %v12876_v16 = vpop.permute.xlu1 %10783 }
 0x60c   : > { %v2755_v28 = vpop.f32.mrb[36].mxu0 }
 0x60d   : > { %v3304_v56 = vmul.f32 0.35355338, %v2755_v28  ;;  %v9790_v51 = vpop.f32.mrb[37].mxu0 }
 0x60f   : > { %v12841_v35 = vadd.f32 %v3304_v56, %v15337_v54 }
 0x610   : > { %v2760_v26 = vpop.f32.mrb[38].mxu0 }
 0x611   : > { %v3305_v25 = vmul.f32 0.35355338, %v2760_v26  ;;  %v9793_v36 = vpop.f32.mrb[39].mxu0  ;;  %v3340_v38 = vsel %vm1839_vm7, %v12841_v35, -inf }
 0x612   : > { %3341 = vmax.xlane.f32.xlu0 %v3340_v38 }
 0x613   : > { %v12846_v41 = vadd.f32 %v3305_v25, %v15337_v54 }
 0x614   : > { %v2765_v21 = vpop.f32.mrb[40].mxu0 }
 0x615   : > { %v3306_v63 = vmul.f32 0.35355338, %v2765_v21  ;;  %v9796_v50 = vpop.f32.mrb[41].mxu0  ;;  %v3343_v59 = vsel %vm1839_vm7, %v12846_v41, -inf }
 0x616   : > { %3344 = vmax.xlane.f32.xlu1 %v3343_v59 }
 0x617   : > { %v12851_v37 = vadd.f32 %v3306_v63, %v15337_v54  ;;  %v12891_v63 = vpop.permute.xlu1 %3836 }
 0x619   : > { %v3346_v30 = vsel %vm1839_vm7, %v12851_v37, -inf }
 0x61a   : > { %3347 = vmax.xlane.f32.xlu0 %v3346_v30 }
 0x631   : > { %v2612_v39 = vpop.f32.mrb[66].mxu1 }
 0x632   : > { %2641 = vst.msk [vmem:[#allocation3 + $0x78] sm:$0xff] %vm1205_vm4, %v2612_v39  ;;  %v9775_v55 = vpop.f32.mrb[67].mxu1 }
 0x634   : > { %v2969_v53 = vpop.f32.mrb[42].mxu0 }
 0x635   : > { %v9820_v52 = vpop.f32.mrb[43].mxu0  ;;  %v3310_v45 = vmul.f32 0.35355338, %v2969_v53 }
 0x637   : > { %v12862_v40 = vadd.f32 %v3310_v45, %v15337_v54 }
 0x638   : > { %v2974_v14 = vpop.f32.mrb[44].mxu0 }
 0x639   : > { %v9823_v62 = vpop.f32.mrb[45].mxu0  ;;  %v3311_v29 = vmul.f32 0.35355338, %v2974_v14  ;;  %v3358_v23 = vsel %vm1839_vm7, %v12862_v40, -inf }
 0x63b   : > { %v12870_v32 = vadd.f32 %v3311_v29, %v15337_v54 }
 0x63c   : > { %v2979_v1 = vpop.f32.mrb[46].mxu0 }
 0x63d   : > { %v2617_v31 = vpop.f32.mrb[68].mxu1  ;;  %v9826_v34 = vpop.f32.mrb[47].mxu0  ;;  %v3312_v9 = vmul.f32 0.35355338, %v2979_v1  ;;  %v3361_v38 = vsel %vm1839_vm7, %v12870_v32, -inf }
 0x63e   : > { %2642 = vst.msk [vmem:[#allocation3 + $0x80] sm:$0xff] %vm1205_vm4, %v2617_v31  ;;  %v9778_v43 = vpop.f32.mrb[69].mxu1 }
 0x63f   : > { %v12882_v28 = vadd.f32 %v3312_v9, %v15337_v54 }
 0x641   : > { %v3364_v30 = vsel %vm1839_vm7, %v12882_v28, -inf }
 0x669   : > { %v3183_v13 = vpop.f32.mrb[48].mxu0 }
 0x66a   : > { %v2622_v60 = vpop.f32.mrb[70].mxu1  ;;  %v9850_v19 = vpop.f32.mrb[49].mxu0  ;;  %v3316_v56 = vmul.f32 0.35355338, %v3183_v13 }
 0x66b   : > { %2643 = vst.msk [vmem:[#allocation3 + $0x88] sm:$0xff] %vm1205_vm4, %v2622_v60  ;;  %v9781_v4 = vpop.f32.mrb[71].mxu1  ;;  %v12910_v19 = vpop.permute.xlu1 %10788 }
 0x66c   : > { %v12894_v50 = vadd.f32 %v3316_v56, %v15337_v54 }
 0x66d   : > { %v3188_v58 = vpop.f32.mrb[50].mxu0 }
 0x66e   : > { %v2862_v46 = vpop.f32.mrb[72].mxu1  ;;  %v9853_v5 = vpop.f32.mrb[51].mxu0  ;;  %v3317_v39 = vmul.f32 0.35355338, %v3188_v58  ;;  %v3376_v1 = vsel %vm1839_vm7, %v12894_v50, -inf }
 0x66f   : > { %v3307_v2 = vmul.f32 0.35355338, %v2862_v46  ;;  %v9805_v15 = vpop.f32.mrb[73].mxu1 }
 0x670   : > { %v12906_v31 = vadd.f32 %v3317_v39, %v15337_v54  ;;  %v12922_v15 = vpop.permute.xlu0 %3738 }
 0x671   : > { %v12859_v24 = vadd.f32 %v3307_v2, %v15337_v54  ;;  %v3193_v18 = vpop.f32.mrb[52].mxu0 }
 0x672   : > { %v2867_v44 = vpop.f32.mrb[74].mxu1  ;;  %v9856_v10 = vpop.f32.mrb[53].mxu0  ;;  %v3318_v34 = vmul.f32 0.35355338, %v3193_v18  ;;  %v3379_v2 = vsel %vm1839_vm7, %v12906_v31, -inf }
 0x673   : > { %v3308_v20 = vmul.f32 0.35355338, %v2867_v44  ;;  %v9808_v48 = vpop.f32.mrb[75].mxu1  ;;  %v3349_v47 = vsel %vm1839_vm7, %v12859_v24, -inf  ;;  %v12924_v18 = vpop.permute.xlu1 %10793 }
 0x674   : > { %3350 = vmax.xlane.f32.xlu0 %v3349_v47  ;;  %v12916_v46 = vadd.f32 %v3318_v34, %v15337_v54  ;;  %v12928_v48 = vpop.permute.xlu0 %10778 }
 0x675   : > { %v12867_v42 = vadd.f32 %v3308_v20, %v15337_v54 }
 0x676   : > { %v2872_v8 = vpop.f32.mrb[76].mxu1  ;;  %v3382_v29 = vsel %vm1839_vm7, %v12916_v46, -inf }
 0x677   : > { %v3309_v61 = vmul.f32 0.35355338, %v2872_v8  ;;  %v9811_v11 = vpop.f32.mrb[77].mxu1  ;;  %v3352_v27 = vsel %vm1839_vm7, %v12867_v42, -inf  ;;  %v12930_v9 = vpop.permute.xlu1 %4032  ;;  %v12932_v8 = vld [vmem:[#allocation2 + $0x48] sm:$0xff] }
 0x678   : > { %3353 = vmax.xlane.f32.xlu1 %v3352_v27  ;;  %3359 = vmax.xlane.f32.xlu0 %v3358_v23  ;;  %v12938_v27 = vld [vmem:[#allocation2 + $0x50] sm:$0xff] }
 0x679   : > { %v12879_v12 = vadd.f32 %v3309_v61, %v15337_v54  ;;  %v12934_v61 = vpop.permute.xlu0 %3934  ;;  %v12942_v23 = vpack.i.bf16 %v12938_v27, %v12932_v8 }
 0x67a   : > { %v3076_v51 = vpop.f32.mrb[78].mxu1 }
 0x67b   : > { %v3313_v26 = vmul.f32 0.35355338, %v3076_v51  ;;  %v9835_v25 = vpop.f32.mrb[79].mxu1  ;;  %v3355_v36 = vsel %vm1839_vm7, %v12879_v12, -inf  ;;  %v12936_v11 = vpop.permute.xlu1 %4248 }
 0x67c   : > { %3356 = vmax.xlane.f32.xlu1 %v3355_v36  ;;  %3362 = vmax.xlane.f32.xlu0 %v3361_v38  ;;  %v12952_v25 = vld [vmem:[#allocation2 + $0x40] sm:$0xff] }
 0x67d   : > { %v12889_v21 = vadd.f32 %v3313_v26, %v15337_v54  ;;  %v12946_v56 = vpop.permute.xlu0 %10798 }
 0x67e   : > { %v3081_v59 = vpop.f32.mrb[80].mxu1 }
 0x67f   : > { %v3314_v55 = vmul.f32 0.35355338, %v3081_v59  ;;  %v9838_v53 = vpop.f32.mrb[81].mxu1  ;;  %v3367_v52 = vsel %vm1839_vm7, %v12889_v21, -inf  ;;  %v12948_v51 = vpop.permute.xlu1 %10803 }
 0x680   : > { %3365 = vmax.xlane.f32.xlu0 %v3364_v30  ;;  %3368 = vmax.xlane.f32.xlu1 %v3367_v52 }
 0x681   : > { %v12901_v14 = vadd.f32 %v3314_v55, %v15337_v54  ;;  %v12950_v26 = vpop.permute.xlu0 %4238 }
 0x682   : > { %v3086_v62 = vpop.f32.mrb[82].mxu1 }
 0x683   : > { %v3315_v43 = vmul.f32 0.35355338, %v3086_v62  ;;  %v9841_v13 = vpop.f32.mrb[83].mxu1  ;;  %v3370_v60 = vsel %vm1839_vm7, %v12901_v14, -inf  ;;  %v12954_v36 = vpop.permute.xlu1 %4240 }
 0x684   : > { %3371 = vmax.xlane.f32.xlu1 %v3370_v60  ;;  %3377 = vmax.xlane.f32.xlu0 %v3376_v1 }
 0x685   : > { %v12913_v4 = vadd.f32 %v3315_v43, %v15337_v54  ;;  %v12958_v38 = vpop.permute.xlu0 %4242 }
 0x686   : > { %v3290_v58 = vpop.f32.mrb[84].mxu1 }
 0x687   : > { %v9865_v5 = vpop.f32.mrb[85].mxu1  ;;  %v3373_v45 = vsel %vm1839_vm7, %v12913_v4, -inf  ;;  %v12960_v59 = vpop.permute.xlu1 %4355  ;;  %v3319_v43 = vmul.f32 0.35355338, %v3290_v58 }
 0x688   : > { %3374 = vmax.xlane.f32.xlu1 %v3373_v45  ;;  %3380 = vmax.xlane.f32.xlu0 %v3379_v2 }
 0x689   : > { %v12966_v60 = vadd.f32 %v3319_v43, %v15337_v54 }
 0x68a   : > { %v3295_v44 = vpop.f32.mrb[86].mxu1 }
 0x68b   : > { %v9868_v10 = vpop.f32.mrb[87].mxu1  ;;  %v3320_v5 = vmul.f32 0.35355338, %v3295_v44 }
 0x68c   : > { %3383 = vmax.xlane.f32.xlu0 %v3382_v29 }
 0x68d   : > { %v12969_v2 = vadd.f32 %v3320_v5, %v15337_v54 }
 0x68e   : > { %v3300_v20 = vpop.f32.mrb[88].mxu1 }
 0x68f   : > { %v9871_v47 = vpop.f32.mrb[89].mxu1  ;;  %v3321_v45 = vmul.f32 0.35355338, %v3300_v20  ;;  %v3388_v44 = vsel %vm1839_vm7, %v12969_v2, -inf }
 0x699   : > { %10808 = vrot.lane.b32.xlu1 %v12942_v23, %s11448_s23 }
 0x69f   : > { %v3342_v30 = vpop.xlane.xlu0 %3341 }
 0x6a0   : > { %v3394_v55 = vsub.f32 %v12841_v35, %v3342_v30  ;;  %v12972_v35 = vadd.f32 %v3321_v45, %v15337_v54 }
 0x6a2   : > { %4462 = vrot.lane.b32.xlu0 %v12952_v25, %s11448_s23  ;;  %v3412_v62 = vmul.f32 1.442695, %v3394_v55  ;;  %v3391_v58 = vsel %vm1839_vm7, %v12972_v35, -inf }
 0x6a3   : > { %v3345_v39 = vpop.xlane.xlu1 %3344 }
 0x6a4   : > { %v3395_v53 = vsub.f32 %v12846_v41, %v3345_v39  ;;  %11034 = vpow2.f32 %v3412_v62  ;;  %v3385_v41 = vsel %vm1839_vm7, %v12966_v60, -inf }
 0x6a6   : > { %v3414_v1 = vmul.f32 1.442695, %v3395_v53 }
 0x6a7   : > { %v3348_v52 = vpop.xlane.xlu0 %3347 }
 0x6a8   : > { %v3396_v34 = vsub.f32 %v12851_v37, %v3348_v52  ;;  %11036 = vpow2.f32 %v3414_v1 }
 0x6aa   : > { %v3416_v13 = vmul.f32 1.442695, %v3396_v34 }
 0x6ac   : > { %11038 = vpow2.f32 %v3416_v13 }
 0x6ae   : > { %v12976_v37 = vpop.eup %11034 }
 0x6af   : > { %v3448_v20 = vsel %vm1839_vm7, %v12976_v37, 0.0 }
 0x6b2   : > { %v12982_v10 = vpop.eup %11036 }
 0x6b3   : > { %v3451_v29 = vsel %vm1839_vm7, %v12982_v10, 0.0 }
 0x6b6   : > { %v12988_v47 = vpop.eup %11038 }
 0x6b7   : > { %v3454_v30 = vsel %vm1839_vm7, %v12988_v47, 0.0 }
 0x6bd   : > { %3386 = vmax.xlane.f32.xlu1 %v3385_v41 }
 0x6c1   : > { %3392 = vmax.xlane.f32.xlu1 %v3391_v58  ;;  %3389 = vmax.xlane.f32.xlu0 %v3388_v44 }
 0x6c5   : > { %3452 = vadd.xlane.f32.xlu1 %v3451_v29  ;;  %3449 = vadd.xlane.f32.xlu0 %v3448_v20 }
 0x6c9   : > { %3455 = vadd.xlane.f32.xlu0 %v3454_v30 }
 0x701   : > { %v3351_v39 = vpop.xlane.xlu0 %3350 }
 0x702   : > { %v3397_v55 = vsub.f32 %v12859_v24, %v3351_v39 }
 0x704   : > { %v3418_v53 = vmul.f32 1.442695, %v3397_v55 }
 0x705   : > { %v3354_v52 = vpop.xlane.xlu1 %3353  ;;  %v3360_v62 = vpop.xlane.xlu0 %3359 }
 0x706   : > { %11040 = vpow2.f32 %v3418_v53  ;;  %v3398_v1 = vsub.f32 %v12867_v42, %v3354_v52  ;;  %v3400_v34 = vsub.f32 %v12862_v40, %v3360_v62 }
 0x708   : > { %v3420_v43 = vmul.f32 1.442695, %v3398_v1  ;;  %v3424_v13 = vmul.f32 1.442695, %v3400_v34 }
 0x709   : > { %v3357_v5 = vpop.xlane.xlu1 %3356  ;;  %v3363_v45 = vpop.xlane.xlu0 %3362 }
 0x70a   : > { %11042 = vpow2.f32 %v3420_v43  ;;  %v3399_v41 = vsub.f32 %v12879_v12, %v3357_v5  ;;  %v3401_v58 = vsub.f32 %v12870_v32, %v3363_v45 }
 0x70b   : > { %11044 = vpow2.f32 %v3424_v13 }
 0x70c   : > { %v3422_v44 = vmul.f32 1.442695, %v3399_v41  ;;  %v3426_v24 = vmul.f32 1.442695, %v3401_v58 }
 0x70d   : > { %v3369_v29 = vpop.xlane.xlu1 %3368  ;;  %v3366_v20 = vpop.xlane.xlu0 %3365 }
 0x70e   : > { %11046 = vpow2.f32 %v3422_v44  ;;  %v3403_v30 = vsub.f32 %v12889_v21, %v3369_v29  ;;  %v3402_v42 = vsub.f32 %v12882_v28, %v3366_v20 }
 0x70f   : > { %11048 = vpow2.f32 %v3426_v24 }
 0x710   : > { %v12999_v40 = vpop.eup %11040  ;;  %v3428_v39 = vmul.f32 1.442695, %v3402_v42  ;;  %v3430_v55 = vmul.f32 1.442695, %v3403_v30 }
 0x711   : > { %v3372_v53 = vpop.xlane.xlu1 %3371  ;;  %v3378_v52 = vpop.xlane.xlu0 %3377  ;;  %v3457_v32 = vsel %vm1839_vm7, %v12999_v40, 0.0 }
 0x712   : > { %v3404_v12 = vsub.f32 %v12901_v14, %v3372_v53  ;;  %v3406_v62 = vsub.f32 %v12894_v50, %v3378_v52  ;;  %3458 = vadd.xlane.f32.xlu1 %v3457_v32  ;;  %11050 = vpow2.f32 %v3428_v39  ;;  %v13044_v32 = vld [vmem:[#allocation2 + $0x68] sm:$0xff] }
 0x713   : > { %11052 = vpow2.f32 %v3430_v55 }
 0x714   : > { %v13005_v1 = vpop.eup %11042  ;;  %v3432_v21 = vmul.f32 1.442695, %v3404_v12  ;;  %v3436_v13 = vmul.f32 1.442695, %v3406_v62  ;;  %v13046_v62 = vld [vmem:[#allocation2 + $0x60] sm:$0xff] }
 0x715   : > { %v13007_v28 = vpop.eup %11044  ;;  %v3381_v34 = vpop.xlane.xlu0 %3380  ;;  %v3460_v43 = vsel %vm1839_vm7, %v13005_v1, 0.0 }
 0x716   : > { %11054 = vpow2.f32 %v3432_v21  ;;  %v3407_v5 = vsub.f32 %v12906_v31, %v3381_v34  ;;  %3461 = vadd.xlane.f32.xlu1 %v3460_v43  ;;  %v3466_v50 = vsel %vm1839_vm7, %v13007_v28, 0.0  ;;  %v3375_v12 = vpop.xlane.xlu1 %3374  ;;  %v13050_v21 = vpack.i.bf16 %v13044_v32, %v13046_v62 }
 0x717   : > { %3467 = vadd.xlane.f32.xlu0 %v3466_v50  ;;  %11056 = vpow2.f32 %v3436_v13  ;;  %v3405_v34 = vsub.f32 %v12913_v4, %v3375_v12 }
 0x718   : > { %v13014_v14 = vpop.eup %11046  ;;  %v3438_v58 = vmul.f32 1.442695, %v3407_v5 }
 0x719   : > { %v13016_v45 = vpop.eup %11048  ;;  %v3463_v41 = vsel %vm1839_vm7, %v13014_v14, 0.0  ;;  %v3384_v43 = vpop.xlane.xlu0 %3383  ;;  %v3434_v13 = vmul.f32 1.442695, %v3405_v34 }
 0x71a   : > { %3464 = vadd.xlane.f32.xlu1 %v3463_v41  ;;  %v3469_v44 = vsel %vm1839_vm7, %v13016_v45, 0.0  ;;  %11058 = vpow2.f32 %v3438_v58  ;;  %v3408_v5 = vsub.f32 %v12916_v46, %v3384_v43  ;;  %v13056_v50 = vpop.permute.xlu1 %10808 }
 0x71b   : > { %3470 = vadd.xlane.f32.xlu0 %v3469_v44  ;;  %11060 = vpow2.f32 %v3434_v13 }
 0x71c   : > { %v13022_v31 = vpop.eup %11050 }
 0x71d   : > { %v3472_v24 = vsel %vm1839_vm7, %v13022_v31, 0.0  ;;  %v13026_v29 = vpop.eup %11052  ;;  %v13058_v41 = vpop.permute.xlu0 %4462 }
 0x71e   : > { %v3475_v42 = vsel %vm1839_vm7, %v13026_v29, 0.0 }
 0x71f   : > { %3473 = vadd.xlane.f32.xlu0 %v3472_v24 }
 0x720   : > { %v13028_v20 = vpop.eup %11054 }
 0x721   : > { %v3478_v30 = vsel %vm1839_vm7, %v13028_v20, 0.0  ;;  %v13034_v39 = vpop.eup %11056 }
 0x722   : > { %3479 = vadd.xlane.f32.xlu1 %v3478_v30  ;;  %v3484_v55 = vsel %vm1839_vm7, %v13034_v39, 0.0 }
 0x723   : > { %3476 = vadd.xlane.f32.xlu0 %v3475_v42 }
 0x724   : > { %v13038_v53 = vpop.eup %11058 }
 0x725   : > { %v3487_v52 = vsel %vm1839_vm7, %v13038_v53, 0.0 }
 0x727   : > { %3485 = vadd.xlane.f32.xlu0 %v3484_v55 }
 0x72b   : > { %3488 = vadd.xlane.f32.xlu0 %v3487_v52  ;;  %v13062_v52 = vpop.eup %11060 }
 0x72c   : > { %v3481_v34 = vsel %vm1839_vm7, %v13062_v52, 0.0 }
 0x733   : > { %4345 = vrot.lane.b32.xlu1 %v12647_v0, %s11449_s19  ;;  %v3440_v0 = vmul.f32 1.442695, %v3408_v5 }
 0x735   : > { %11062 = vpow2.f32 %v3440_v0  ;;  %v10776_v0 = vunpack.i.h.bf16 %v12810_v7 }
 0x73f   : > { %v13066_v43 = vpop.eup %11062 }
 0x740   : > { %v3490_v13 = vsel %vm1839_vm7, %v13066_v43, 0.0 }
 0x741   : > { %10813 = vrot.lane.b32.xlu0 %v13050_v21, %s11448_s23 }
 0x74a   : > { %v3387_v58 = vpop.xlane.xlu1 %3386 }
 0x74b   : > { %v3409_v44 = vsub.f32 %v12966_v60, %v3387_v58  ;;  %v10775_v58 = vunpack.i.l.bf16 %v12810_v7 }
 0x74d   : > { %v3442_v24 = vmul.f32 1.442695, %v3409_v44 }
 0x74e   : > { %v3390_v30 = vpop.xlane.xlu0 %3389  ;;  %v3393_v4 = vpop.xlane.xlu1 %3392 }
 0x74f   : > { %v3410_v42 = vsub.f32 %v12969_v2, %v3390_v30  ;;  %11064 = vpow2.f32 %v3442_v24 }
 0x751   : > { %v3444_v55 = vmul.f32 1.442695, %v3410_v42 }
 0x752   : > { %v3450_v46 = vpop.xlane.xlu0 %3449  ;;  %v3453_v12 = vpop.xlane.xlu1 %3452 }
 0x753   : > { %11066 = vpow2.f32 %v3444_v55 }
 0x754   : > { %11068 = vrcp.f32 %v3450_v46  ;;  %v10527_v46 = vpack.c.bf16 %v10776_v0, %v10775_v58 }
 0x755   : > { %11070 = vrcp.f32 %v3453_v12 }
 0x756   : > { %v3456_v60 = vpop.xlane.xlu0 %3455 }
 0x757   : > { %3482 = vadd.xlane.f32.xlu1 %v3481_v34  ;;  %11072 = vrcp.f32 %v3456_v60  ;;  %v13095_v34 = vld [vmem:[#allocation2 + $0x20] sm:$0xff] }
 0x759   : > { %v13070_v2 = vpop.eup %11064 }
 0x75a   : > { %v3493_v44 = vsel %vm1839_vm7, %v13070_v2, 0.0 }
 0x75b   : > { %3491 = vadd.xlane.f32.xlu1 %v3490_v13 }
 0x75d   : > { %v13072_v5 = vpop.eup %11066 }
 0x75e   : > { %v3496_v24 = vsel %vm1839_vm7, %v13072_v5, 0.0  ;;  %v11069_v30 = vpop.eup %11068 }
 0x75f   : > { %3494 = vadd.xlane.f32.xlu1 %v3493_v44  ;;  %v3520_v42 = vmul.f32 %v11069_v30, %v12976_v37  ;;  %v11071_v55 = vpop.eup %11070  ;;  %v10786_v44 = vunpack.i.h.bf16 %v12876_v16 }
 0x760   : > { %3497 = vadd.xlane.f32.xlu0 %v3496_v24  ;;  %v3521_v7 = vmul.f32 %v11071_v55, %v12982_v10  ;;  %v13108_v10 = vld [vmem:[#allocation2 + $0x70] sm:$0xff]  ;;  %v10785_v24 = vunpack.i.l.bf16 %v12876_v16  ;;  %v10780_v16 = vunpack.i.l.bf16 %v12928_v48 }
 0x761   : > { %9879 = vmatmul.mubr.msk.f32.vlgmr.msra.gmra.mrb[54].mxu0 %vm1839_vm7, %v3520_v42  ;;  %v11073_v12 = vpop.eup %11072  ;;  %v4232_v42 = vld [vmem:[#allocation2 + $0x78] sm:$0xff] }
 0x762   : > { %10528 = vmatpush3.bf16.msra.mxu0 %v10527_v46  ;;  %9881 = vmatprep.mubr.msk.f32.mxu0 %vm11440_vm2, %v15331_v3  ;;  %v3522_v37 = vmul.f32 %v11073_v12, %v12988_v47  ;;  %v10781_v46 = vunpack.i.h.bf16 %v12928_v48 }
 0x763   : > { %9906 = vmatprep.subr.mxu0 %v15331_v3 }
 0x765   : > { %9882 = vmatmul.mubr.msk.f32.gmra.mrb[56].mxu0 %vm1839_vm7, %v3521_v7 }
 0x766   : > { %9907 = vmatpush3.msra.mxu0 %v12922_v15  ;;  %9884 = vmatprep.mubr.msk.f32.mxu0 %vm11440_vm2, %v15331_v3  ;;  %v3411_v15 = vsub.f32 %v12972_v35, %v3393_v4  ;;  %v4233_v4 = vld [vmem:[#allocation2 + $0x80] sm:$0xff] }
 0x767   : > { %10532 = vmatprep.subr.bf16.mxu0 %v15332_v33 }
 0x768   : > { %v3446_v47 = vmul.f32 1.442695, %v3411_v15 }
 0x769   : > { %9885 = vmatmul.mubr.msk.f32.gmra.mrb[58].mxu0 %vm1839_vm7, %v3522_v37  ;;  %v10533_v37 = vpack.c.bf16 %v10781_v46, %v10780_v16 }
 0x76a   : > { %9908 = vmatprep.mubr.msk.f32.mxu0 %vm11440_vm2, %v15331_v3  ;;  %11074 = vpow2.f32 %v3446_v47 }
 0x770   : > { %4347 = vrot.lane.b32.xlu1 %v13095_v34, %s11449_s19 }
 0x774   : > { %4349 = vrot.lane.b32.xlu1 %v12733_v57, %s11449_s19  ;;  %v13124_v35 = vpop.eup %11074 }
 0x776   : > { %4452 = vrot.lane.b32.xlu0 %v12724_v17, %s11449_s19  ;;  %v13116_v17 = vld [vmem:[#allocation2 + $0x58] sm:$0xff] }
 0x77a   : > { %4454 = vrot.lane.b32.xlu0 %v12721_v49, %s11449_s19  ;;  %v13120_v49 = vld [vmem:[#allocation2 + $0x88] sm:$0xff] }
 0x77e   : > { %4456 = vrot.lane.b32.xlu0 %v12952_v25, %s11449_s19 }
 0x782   : > { %4676 = vrot.lane.b32.xlu0 %v13108_v10, %s11448_s23 }
 0x786   : > { %4559 = vrot.lane.b32.xlu0 %v12932_v8, %s11449_s19  ;;  %v3499_v8 = vsel %vm1839_vm7, %v13124_v35, 0.0 }
 0x78a   : > { %4561 = vrot.lane.b32.xlu0 %v12938_v27, %s11449_s19  ;;  %v11371_v27 = vld [vmem:[#allocation2 + $0x10] sm:$0xff] }
 0x78e   : > { %4563 = vrot.lane.b32.xlu0 %v13116_v17, %s11449_s19 }
 0x792   : > { %4783 = vrot.lane.b32.xlu0 %v13120_v49, %s11448_s23 }
 0x796   : > { %4775 = vrot.lane.b32.xlu0 %v4233_v4, %s11449_s19 }
 0x798   : > { %3500 = vadd.xlane.f32.xlu1 %v3499_v8 }
 0x79a   : > { %5115 = vrot.lane.b32.xlu0 %v11371_v27, %s11450_s24  ;;  %v10795_v27 = vunpack.i.l.bf16 %v12924_v18 }
 0x79e   : > { %10833 = vrot.lane.b32.xlu0 %v12728_v6, %s11450_s24 }
 0x79f   : > { %v3459_v60 = vpop.xlane.xlu1 %3458 }
 0x7a0   : > { %11076 = vrcp.f32 %v3459_v60 }
 0x7a2   : > { %5213 = vrot.lane.b32.xlu0 %v12733_v57, %s11450_s24  ;;  %v13140_v57 = vpack.i.bf16 %v4233_v4, %v4232_v42 }
 0x7a3   : > { %v3462_v13 = vpop.xlane.xlu1 %3461 }
 0x7a4   : > { %11078 = vrcp.f32 %v3462_v13  ;;  %v3468_v0 = vpop.xlane.xlu0 %3467  ;;  %v10790_v13 = vunpack.i.l.bf16 %v12910_v19 }
 0x7a5   : > { %11080 = vrcp.f32 %v3468_v0 }
 0x7a6   : > { %5311 = vrot.lane.b32.xlu0 %v12952_v25, %s11450_s24  ;;  %v10530_v25 = vpack.c.bf16 %v10786_v44, %v10785_v24  ;;  %v11372_v24 = vld [vmem:[#allocation2] sm:$0xff] }
 0x7a7   : > { %v3465_v58 = vpop.xlane.xlu1 %3464 }
 0x7a8   : > { %11082 = vrcp.f32 %v3465_v58  ;;  %v3471_v30 = vpop.xlane.xlu0 %3470 }
 0x7a9   : > { %4569 = vrot.lane.b32.xlu1 %v13116_v17, %s11448_s23  ;;  %11084 = vrcp.f32 %v3471_v30 }
 0x7aa   : > { %v11077_v6 = vpop.eup %11076  ;;  %10838 = vrot.lane.b32.xlu0 %v13050_v21, %s11450_s24 }
 0x7ab   : > { %v3523_v55 = vmul.f32 %v11077_v6, %v12999_v40 }
 0x7ac   : > { %v3474_v7 = vpop.xlane.xlu0 %3473 }
 0x7ad   : > { %9894 = vmatmul.mubr.msk.f32.vlgmr.msra.gmra.mrb[90].mxu1 %vm1839_vm7, %v3523_v55  ;;  %10818 = vrot.lane.b32.xlu1 %v13140_v57, %s11448_s23  ;;  %11086 = vrcp.f32 %v3474_v7 }
 0x7ae   : > { %v11079_v12 = vpop.eup %11078  ;;  %10531 = vmatpush3.bf16.msra.mxu1 %v10530_v25  ;;  %9896 = vmatprep.mubr.msk.f32.mxu1 %vm11440_vm2, %v15331_v3 }
 0x7af   : > { %v11081_v40 = vpop.eup %11080  ;;  %5507 = vrot.lane.b32.xlu0 %v13108_v10, %s11450_s24  ;;  %9921 = vmatprep.subr.mxu1 %v15331_v3  ;;  %v3524_v48 = vmul.f32 %v11079_v12, %v13005_v1  ;;  %v3480_v15 = vpop.xlane.xlu1 %3479 }
 0x7b0   : > { %v3526_v21 = vmul.f32 %v11081_v40, %v13007_v28  ;;  %v3477_v47 = vpop.xlane.xlu0 %3476  ;;  %v10801_v40 = vunpack.i.h.bf16 %v12946_v56 }
 0x7b1   : > { %9897 = vmatmul.mubr.msk.f32.gmra.mrb[92].mxu1 %vm1839_vm7, %v3524_v48  ;;  %4666 = vrot.lane.b32.xlu1 %v13046_v62, %s11449_s19  ;;  %11088 = vrcp.f32 %v3477_v47  ;;  %v10800_v48 = vunpack.i.l.bf16 %v12946_v56 }
 0x7b2   : > { %v11083_v4 = vpop.eup %11082  ;;  %9922 = vmatpush3.msra.mxu1 %v12891_v63  ;;  %9909 = vmatmul.mubr.msk.f32.vlgmr.msra.gmra.mrb[60].mxu0 %vm1839_vm7, %v3526_v21  ;;  %11090 = vrcp.f32 %v3480_v15  ;;  %v10806_v21 = vunpack.i.h.bf16 %v12948_v51 }
 0x7b3   : > { %10534 = vmatpush3.bf16.msra.mxu0 %v10533_v37  ;;  %9899 = vmatprep.mubr.msk.f32.mxu1 %vm11440_vm2, %v15331_v3  ;;  %v3525_v1 = vmul.f32 %v11083_v4, %v13014_v14  ;;  %v11085_v28 = vpop.eup %11084  ;;  %v10805_v37 = vunpack.i.l.bf16 %v12948_v51  ;;  %v10543_v4 = vpack.c.bf16 %v10801_v40, %v10800_v48 }
 0x7b4   : > { %9911 = vmatprep.mubr.msk.f32.mxu0 %vm11440_vm2, %v15331_v3  ;;  %9936 = vmatprep.subr.mxu0 %v15331_v3  ;;  %v3486_v62 = vpop.xlane.xlu0 %3485  ;;  %v3527_v63 = vmul.f32 %v11085_v28, %v13016_v45 }
 0x7b5   : > { %9900 = vmatmul.mubr.msk.f32.gmra.mrb[94].mxu1 %vm1839_vm7, %v3525_v1  ;;  %4668 = vrot.lane.b32.xlu1 %v13044_v32, %s11449_s19  ;;  %11092 = vrcp.f32 %v3486_v62  ;;  %v10796_v32 = vunpack.i.h.bf16 %v12924_v18  ;;  %v10547_v1 = vpack.c.bf16 %v10806_v21, %v10805_v37 }
 0x7b6   : > { %9923 = vmatprep.mubr.msk.f32.mxu1 %vm11440_vm2, %v15331_v3  ;;  %10535 = vmatprep.subr.bf16.mxu1 %v15332_v33 }
 0x7b7   : > { %9912 = vmatmul.mubr.msk.f32.gmra.mrb[62].mxu0 %vm1839_vm7, %v3527_v63  ;;  %v11087_v14 = vpop.eup %11086  ;;  %v10536_v0 = vpack.c.bf16 %v10796_v32, %v10795_v27 }
 0x7b8   : > { %9937 = vmatpush3.msra.mxu0 %v12934_v61  ;;  %9914 = vmatprep.mubr.msk.f32.mxu0 %vm11440_vm2, %v15331_v3  ;;  %v3489_v8 = vpop.xlane.xlu0 %3488  ;;  %v3528_v45 = vmul.f32 %v11087_v14, %v13022_v31  ;;  %v10791_v31 = vunpack.i.h.bf16 %v12910_v19  ;;  %v11373_v19 = vld [vmem:[#allocation2 + $0x8] sm:$0xff] }
 0x7b9   : > { %4670 = vrot.lane.b32.xlu1 %v13108_v10, %s11449_s19  ;;  %10538 = vmatprep.subr.bf16.mxu0 %v15332_v33  ;;  %11094 = vrcp.f32 %v3489_v8  ;;  %v10822_v30 = vpack.i.bf16 %v11373_v19, %v11372_v24 }
 0x7ba   : > { %v10539_v44 = vpack.c.bf16 %v10791_v31, %v10790_v13 }
 0x7bb   : > { %9915 = vmatmul.mubr.msk.f32.gmra.mrb[64].mxu0 %vm1839_vm7, %v3528_v45  ;;  %v11089_v60 = vpop.eup %11088 }
 0x7bc   : > { %9938 = vmatprep.mubr.msk.f32.mxu0 %vm11440_vm2, %v15331_v3  ;;  %v3529_v61 = vmul.f32 %v11089_v60, %v13026_v29  ;;  %v11091_v10 = vpop.eup %11090  ;;  %v10814_v25 = vpop.permute.xlu0 %10813  ;;  %v10811_v60 = vunpack.i.h.bf16 %v13056_v50 }
 0x7bd   : > { %4773 = vrot.lane.b32.xlu1 %v4232_v42, %s11449_s19  ;;  %v3530_v29 = vmul.f32 %v11091_v10, %v13028_v20 }
 0x7be   : > { %9924 = vmatmul.mubr.msk.f32.vlgmr.msra.gmra.mrb[96].mxu1 %vm1839_vm7, %v3529_v61  ;;  %v10810_v61 = vunpack.i.l.bf16 %v13056_v50 }
 0x7bf   : > { %v11093_v18 = vpop.eup %11092  ;;  %10537 = vmatpush3.bf16.msra.mxu1 %v10536_v0  ;;  %9926 = vmatprep.mubr.msk.f32.mxu1 %vm11440_vm2, %v15331_v3 }
 0x7c0   : > { %v3532_v58 = vmul.f32 %v11093_v18, %v13034_v39  ;;  %9951 = vmatprep.subr.mxu1 %v15331_v3  ;;  %v11374_v39 = vld [vmem:[#allocation2 + $0x18] sm:$0xff]  ;;  %v10551_v13 = vpack.c.bf16 %v10811_v60, %v10810_v61 }
 0x7c1   : > { %4777 = vrot.lane.b32.xlu1 %v13120_v49, %s11449_s19 }
 0x7c2   : > { %9927 = vmatmul.mubr.msk.f32.gmra.mrb[98].mxu1 %vm1839_vm7, %v3530_v29  ;;  %9939 = vmatmul.mubr.msk.f32.vlgmr.msra.gmra.mrb[66].mxu0 %vm1839_vm7, %v3532_v58 }
 0x7c3   : > { %v11095_v6 = vpop.eup %11094  ;;  %9952 = vmatpush3.msra.mxu1 %v12930_v9  ;;  %10541 = vmatpush3.bf16.xpose.msk.msra.mxu0 %vm12212_vm5, %v10539_v44  ;;  %v10827_v9 = vpack.i.bf16 %v13095_v34, %v11374_v39  ;;  %v13227_v34 = vld [vmem:[#allocation2] sm:$0xff] }
 0x7c4   : > { %9941 = vmatprep.mubr.msk.f32.mxu0 %vm11440_vm2, %v15331_v3  ;;  %v3533_v20 = vmul.f32 %v11095_v6, %v13038_v53  ;;  %9966 = vmatprep.subr.mxu0 %v15331_v3  ;;  %v13223_v53 = vld [vmem:[#allocation2 + $0x8] sm:$0xff] }
 0x7c5   : > { %10823 = vrot.lane.b32.xlu1 %v10822_v30, %s11450_s24  ;;  %9929 = vmatprep.mubr.msk.f32.mxu1 %vm11440_vm2, %v15331_v3  ;;  %v13231_v42 = vpack.i.bf16 %v13223_v53, %v13227_v34 }
 0x7c6   : > { %9942 = vmatmul.mubr.msk.f32.gmra.mrb[68].mxu0 %vm1839_vm7, %v3533_v20  ;;  %10542 = vmatprep.subr.bf16.mxu1 %v15332_v33 }
 0x7c7   : > { %9944 = vmatprep.mubr.msk.f32.mxu0 %vm11440_vm2, %v15331_v3 }
 0x7c9   : > { %10828 = vrot.lane.b32.xlu1 %v10827_v9, %s11450_s24 }
 0x7cb   : > { %9967 = vmatpush3.xpose.msk.msra.mxu0 %vm1205_vm4, %v12936_v11  ;;  %v13239_v11 = vpop.permute.xlu1 %4345 }
 0x7cc   : > { %10546 = vmatprep.subr.bf16.mxu0 %v15332_v33 }
 0x7cd   : > { %10843 = vrot.lane.b32.xlu1 %v12942_v23, %s11450_s24  ;;  %v13241_v23 = vld [vmem:[#allocation2 + $0x10] sm:$0xff] }
 0x7d1   : > { %5409 = vrot.lane.b32.xlu1 %v13116_v17, %s11450_s24 }
 0x7d5   : > { %10848 = vrot.lane.b32.xlu1 %v13231_v42, %s11451_s28 }
 0x7d9   : > { %10853 = vrot.lane.b32.xlu1 %v13140_v57, %s11450_s24 }
 0x7dd   : > { %5605 = vrot.lane.b32.xlu1 %v13120_v49, %s11450_s24 }
 0x7e1   : > { %5821 = vrot.lane.b32.xlu1 %v13241_v23, %s11451_s28 }
 0x7e4   : > { %v3483_v17 = vpop.xlane.xlu1 %3482 }
 0x7e5   : > { %11096 = vrcp.f32 %v3483_v17 }
 0x7e8   : > { %v3492_v55 = vpop.xlane.xlu1 %3491 }
 0x7e9   : > { %11098 = vrcp.f32 %v3492_v55 }
 0x7ec   : > { %v3495_v46 = vpop.xlane.xlu1 %3494 }
 0x7ed   : > { %11100 = vrcp.f32 %v3495_v46  ;;  %v3498_v16 = vpop.xlane.xlu0 %3497 }
 0x7ee   : > { %11102 = vrcp.f32 %v3498_v16 }
 0x7ef   : > { %v11097_v7 = vpop.eup %11096 }
 0x7f0   : > { %v3531_v57 = vmul.f32 %v11097_v7, %v13062_v52 }
 0x7f1   : > { %v4453_v56 = vpop.permute.xlu0 %4452 }
 0x7f2   : > { %9930 = vmatmul.mubr.msk.f32.gmra.mrb[100].mxu1 %vm1839_vm7, %v3531_v57 }
 0x7f3   : > { %v11099_v49 = vpop.eup %11098  ;;  %9953 = vmatprep.mubr.msk.f32.mxu1 %vm11440_vm2, %v15331_v3 }
 0x7f4   : > { %v3534_v12 = vmul.f32 %v11099_v49, %v13066_v43  ;;  %v10815_v43 = vunpack.i.l.bf16 %v10814_v25 }
 0x7f6   : > { %9945 = vmatmul.mubr.msk.f32.gmra.mrb[70].mxu0 %vm1839_vm7, %v3534_v12 }
 0x7f7   : > { %v11101_v15 = vpop.eup %11100  ;;  %9968 = vmatprep.mubr.msk.f32.mxu0 %vm11440_vm2, %v15331_v3 }
 0x7f8   : > { %v3535_v52 = vmul.f32 %v11101_v15, %v13070_v2  ;;  %v11103_v47 = vpop.eup %11102  ;;  %v4455_v2 = vpop.permute.xlu0 %4454 }
 0x7f9   : > { %v3536_v51 = vmul.f32 %v11103_v47, %v13072_v5 }
 0x7fa   : > { %9954 = vmatmul.mubr.msk.f32.vlgmr.msra.gmra.mrb[102].mxu1 %vm1839_vm7, %v3535_v52  ;;  %9969 = vmatmul.mubr.msk.f32.vlgmr.msra.gmra.mrb[72].mxu0 %vm1205_vm4, %v12950_v26  ;;  %v10816_v26 = vunpack.i.h.bf16 %v10814_v25 }
 0x7fb   : > { %10545 = vmatpush3.bf16.xpose.msk.msra.mxu1 %vm12212_vm5, %v10543_v4  ;;  %10549 = vmatpush3.bf16.xpose.msk.msra.mxu0 %vm12212_vm5, %v10547_v1 }
 0x7fc   : > { %9956 = vmatprep.mubr.msk.f32.mxu1 %vm11440_vm2, %v15331_v3  ;;  %9971 = vmatprep.mubr.msk.f32.mxu0 %vm11440_vm2, %v15331_v3 }
 0x7fd   : > { %9981 = vmatprep.subr.mxu1 %v15331_v3  ;;  %9996 = vmatprep.subr.mxu0 %v15331_v3 }
 0x7fe   : > { %9957 = vmatmul.mubr.msk.f32.gmra.mrb[104].mxu1 %vm1839_vm7, %v3536_v51  ;;  %9972 = vmatmul.mubr.msk.f32.gmra.mrb[74].mxu0 %vm1205_vm4, %v12954_v36  ;;  %v10555_v36 = vpack.c.bf16 %v10816_v26, %v10815_v43 }
 0x7ff   : > { %9974 = vmatprep.mubr.msk.f32.mxu0 %vm11440_vm2, %v15331_v3  ;;  %9959 = vmatprep.mubr.msk.f32.mxu1 %vm11440_vm2, %v15331_v3 }
 0x802   : > { %9975 = vmatmul.mubr.msk.f32.gmra.mrb[76].mxu0 %vm1205_vm4, %v12958_v38  ;;  %v4457_v38 = vpop.permute.xlu0 %4456 }
 0x803   : > { %9982 = vmatpush3.xpose.msk.msra.mxu1 %vm1205_vm4, %v12960_v59  ;;  %9997 = vmatpush3.xpose.msk.msra.mxu0 %vm1205_vm4, %v13058_v41  ;;  %v4348_v41 = vpop.permute.xlu1 %4347 }
 0x804   : > { %9998 = vmatprep.mubr.msk.f32.mxu0 %vm11440_vm2, %v15331_v3  ;;  %10554 = vmatprep.subr.bf16.mxu0 %v15332_v33 }
 0x805   : > { %10550 = vmatprep.subr.bf16.mxu1 %v15332_v33 }
 0x806   : > { %9999 = vmatmul.mubr.msk.f32.vlgmr.msra.gmra.mrb[78].mxu0 %vm1205_vm4, %v4453_v56  ;;  %v4677_v59 = vpop.permute.xlu0 %4676 }
 0x807   : > { %10557 = vmatpush3.bf16.xpose.msk.msra.mxu0 %vm12212_vm5, %v10555_v36  ;;  %10001 = vmatprep.mubr.msk.f32.mxu0 %vm11440_vm2, %v15331_v3  ;;  %v4350_v5 = vpop.permute.xlu1 %4349 }
 0x808   : > { %10026 = vmatprep.subr.mxu0 %v15331_v3 }
 0x80a   : > { %10002 = vmatmul.mubr.msk.f32.gmra.mrb[80].mxu0 %vm1205_vm4, %v4455_v2  ;;  %v4560_v62 = vpop.permute.xlu0 %4559 }
 0x80b   : > { %10004 = vmatprep.mubr.msk.f32.mxu0 %vm11440_vm2, %v15331_v3 }
 0x80e   : > { %10005 = vmatmul.mubr.msk.f32.gmra.mrb[82].mxu0 %vm1205_vm4, %v4457_v38  ;;  %v4562_v8 = vpop.permute.xlu0 %4561 }
 0x80f   : > { %10027 = vmatpush3.xpose.msk.msra.mxu0 %vm1205_vm4, %v4677_v59  ;;  %10028 = vmatprep.mubr.msk.f32.mxu0 %vm11440_vm2, %v15331_v3 }
 0x810   : > { %10562 = vmatprep.subr.bf16.mxu0 %v15332_v33 }
 0x812   : > { %v4564_v10 = vpop.permute.xlu0 %4563 }
 0x816   : > { %v4784_v58 = vpop.permute.xlu0 %4783 }
 0x81a   : > { %v4776_v20 = vpop.permute.xlu0 %4775 }
 0x81e   : > { %v5116_v25 = vpop.permute.xlu0 %5115 }
 0x822   : > { %v13353_v12 = vpop.permute.xlu0 %10833 }
 0x825   : > { %v3501_v28 = vpop.xlane.xlu1 %3500 }
 0x826   : > { %11104 = vrcp.f32 %v3501_v28  ;;  %v5214_v40 = vpop.permute.xlu0 %5213 }
 0x829   : > { %v4570_v63 = vpop.permute.xlu1 %4569 }
 0x82d   : > { %v10819_v14 = vpop.permute.xlu1 %10818 }
 0x82e   : > { %v10821_v24 = vunpack.i.h.bf16 %v10819_v14  ;;  %v10820_v19 = vunpack.i.l.bf16 %v10819_v14 }
 0x830   : > { %v11105_v45 = vpop.eup %11104  ;;  %v10559_v9 = vpack.c.bf16 %v10821_v24, %v10820_v19 }
 0x831   : > { %v4667_v32 = vpop.permute.xlu1 %4666  ;;  %v3537_v27 = vmul.f32 %v11105_v45, %v13124_v35 }
 0x832   : > { %10029 = vmatmul.mubr.msk.f32.vlgmr.msra.gmra.mrb[84].mxu0 %vm1205_vm4, %v4667_v32 }
 0x833   : > { %9960 = vmatmul.mubr.msk.f32.gmra.mrb[106].mxu1 %vm1839_vm7, %v3537_v27  ;;  %10031 = vmatprep.mubr.msk.f32.mxu0 %vm11440_vm2, %v15331_v3 }
 0x834   : > { %9983 = vmatprep.mubr.msk.f32.mxu1 %vm11440_vm2, %v15331_v3  ;;  %v13312_v0 = vpop.f32.mrb[54].mxu0 }
 0x835   : > { %v4669_v31 = vpop.permute.xlu1 %4668  ;;  %v9880_v35 = vpop.f32.mrb[55].mxu0 }
 0x836   : > { %10032 = vmatmul.mubr.msk.f32.gmra.mrb[86].mxu0 %vm1205_vm4, %v4669_v31 }
 0x837   : > { %9984 = vmatmul.mubr.msk.f32.vlgmr.msra.gmra.mrb[108].mxu1 %vm1205_vm4, %v13239_v11  ;;  %10034 = vmatprep.mubr.msk.f32.mxu0 %vm11440_vm2, %v15331_v3 }
 0x838   : > { %10553 = vmatpush3.bf16.xpose.msk.msra.mxu1 %vm12212_vm5, %v10551_v13  ;;  %9986 = vmatprep.mubr.msk.f32.mxu1 %vm11440_vm2, %v15331_v3  ;;  %v13324_v18 = vpop.f32.mrb[56].mxu0 }
 0x839   : > { %v4671_v50 = vpop.permute.xlu1 %4670  ;;  %10011 = vmatprep.subr.mxu1 %v15331_v3  ;;  %v9883_v29 = vpop.f32.mrb[57].mxu0 }
 0x83a   : > { %10035 = vmatmul.mubr.msk.f32.gmra.mrb[88].mxu0 %vm1205_vm4, %v4671_v50 }
 0x83b   : > { %9987 = vmatmul.mubr.msk.f32.gmra.mrb[110].mxu1 %vm1205_vm4, %v4348_v41  ;;  %10058 = vmatprep.mubr.msk.f32.mxu0 %vm11440_vm2, %v15331_v3 }
 0x83c   : > { %9989 = vmatprep.mubr.msk.f32.mxu1 %vm11440_vm2, %v15331_v3  ;;  %v13332_v30 = vpop.f32.mrb[58].mxu0 }
 0x83d   : > { %v4774_v44 = vpop.permute.xlu1 %4773  ;;  %v9886_v6 = vpop.f32.mrb[59].mxu0 }
 0x83f   : > { %9990 = vmatmul.mubr.msk.f32.gmra.mrb[112].mxu1 %vm1205_vm4, %v4350_v5 }
 0x840   : > { %10012 = vmatpush3.xpose.msk.msra.mxu1 %vm1205_vm4, %v4570_v63  ;;  %10013 = vmatprep.mubr.msk.f32.mxu1 %vm11440_vm2, %v15331_v3 }
 0x841   : > { %v4778_v39 = vpop.permute.xlu1 %4777  ;;  %10558 = vmatprep.subr.bf16.mxu1 %v15332_v33 }
 0x843   : > { %10014 = vmatmul.mubr.msk.f32.vlgmr.msra.gmra.mrb[114].mxu1 %vm1205_vm4, %v4560_v62 }
 0x844   : > { %10561 = vmatpush3.bf16.xpose.msk.msra.mxu1 %vm12212_vm5, %v10559_v9  ;;  %10016 = vmatprep.mubr.msk.f32.mxu1 %vm11440_vm2, %v15331_v3 }
 0x845   : > { %v10824_v11 = vpop.permute.xlu1 %10823  ;;  %10041 = vmatprep.subr.mxu1 %v15331_v3 }
 0x846   : > { %v10826_v17 = vunpack.i.h.bf16 %v10824_v11  ;;  %v10825_v55 = vunpack.i.l.bf16 %v10824_v11 }
 0x847   : > { %10017 = vmatmul.mubr.msk.f32.gmra.mrb[116].mxu1 %vm1205_vm4, %v4562_v8 }
 0x848   : > { %v10563_v46 = vpack.c.bf16 %v10826_v17, %v10825_v55  ;;  %10019 = vmatprep.mubr.msk.f32.mxu1 %vm11440_vm2, %v15331_v3 }
 0x849   : > { %v10829_v16 = vpop.permute.xlu1 %10828 }
 0x84a   : > { %v10831_v7 = vunpack.i.h.bf16 %v10829_v16  ;;  %v10830_v57 = vunpack.i.l.bf16 %v10829_v16  ;;  %10564 = vmatpush3.bf16.msra.mxu0 %v10563_v46 }
 0x84b   : > { %10020 = vmatmul.mubr.msk.f32.gmra.mrb[118].mxu1 %vm1205_vm4, %v4564_v10  ;;  %10056 = vmatprep.subr.mxu0 %v15331_v3 }
 0x84c   : > { %v10566_v49 = vpack.c.bf16 %v10831_v7, %v10830_v57  ;;  %10042 = vmatpush3.xpose.msk.msra.mxu1 %vm1205_vm4, %v4784_v58  ;;  %10043 = vmatprep.mubr.msk.f32.mxu1 %vm11440_vm2, %v15331_v3 }
 0x84d   : > { %10565 = vmatprep.subr.bf16.mxu1 %v15332_v33 }
 0x84e   : > { %10057 = vmatpush3.msra.mxu0 %v5116_v25 }
 0x84f   : > { %10044 = vmatmul.mubr.msk.f32.vlgmr.msra.gmra.mrb[120].mxu1 %vm1205_vm4, %v4774_v44  ;;  %10568 = vmatprep.subr.bf16.mxu0 %v15332_v33 }
 0x850   : > { %10567 = vmatpush3.bf16.msra.mxu1 %v10566_v49  ;;  %10046 = vmatprep.mubr.msk.f32.mxu1 %vm11440_vm2, %v15331_v3 }
 0x851   : > { %10071 = vmatprep.subr.mxu1 %v15331_v3 }
 0x853   : > { %10047 = vmatmul.mubr.msk.f32.gmra.mrb[122].mxu1 %vm1205_vm4, %v4776_v20 }
 0x854   : > { %10072 = vmatpush3.msra.mxu1 %v5214_v40  ;;  %10049 = vmatprep.mubr.msk.f32.mxu1 %vm11440_vm2, %v15331_v3 }
 0x855   : > { %10571 = vmatprep.subr.bf16.mxu1 %v15332_v33 }
 0x857   : > { %10050 = vmatmul.mubr.msk.f32.gmra.mrb[124].mxu1 %vm1205_vm4, %v4778_v39 }
 0x858   : > { %10073 = vmatprep.mubr.msk.f32.mxu1 %vm11440_vm2, %v15331_v3 }
 0x880   : > { %v13368_v48 = vpop.f32.mrb[90].mxu1 }
 0x881   : > { %v9895_v21 = vpop.f32.mrb[91].mxu1 }
 0x884   : > { %v13370_v37 = vpop.f32.mrb[92].mxu1 }
 0x885   : > { %v13372_v15 = vpop.f32.mrb[60].mxu0  ;;  %v9898_v52 = vpop.f32.mrb[93].mxu1 }
 0x886   : > { %v9910_v47 = vpop.f32.mrb[61].mxu0 }
 0x888   : > { %v13374_v4 = vpop.f32.mrb[94].mxu1 }
 0x889   : > { %v9901_v1 = vpop.f32.mrb[95].mxu1 }
 0x88a   : > { %v13376_v56 = vpop.f32.mrb[62].mxu0 }
 0x88b   : > { %v9913_v51 = vpop.f32.mrb[63].mxu0 }
 0x88e   : > { %v13378_v26 = vpop.f32.mrb[64].mxu0 }
 0x88f   : > { %v9916_v43 = vpop.f32.mrb[65].mxu0 }
 0x891   : > { %v13380_v2 = vpop.f32.mrb[96].mxu1 }
 0x892   : > { %v9925_v36 = vpop.f32.mrb[97].mxu1 }
 0x895   : > { %v13382_v38 = vpop.f32.mrb[98].mxu1  ;;  %v13384_v59 = vpop.f32.mrb[66].mxu0 }
 0x896   : > { %15338 = vst [vmem:[#allocation10_spill] sm:$0xff] %v13384_v59  ;;  %v9928_v41 = vpop.f32.mrb[99].mxu1  ;;  %v9940_v5 = vpop.f32.mrb[67].mxu0 }
 0x899   : > { %v13386_v28 = vpop.f32.mrb[68].mxu0 }
 0x89a   : > { %15339 = vst [vmem:[#allocation12_spill] sm:$0xff] %v13386_v28  ;;  %v9943_v62 = vpop.f32.mrb[69].mxu0 }
 0x8c5   : > { %v13388_v63 = vpop.f32.mrb[100].mxu1 }
 0x8c6   : > { %v9931_v14 = vpop.f32.mrb[101].mxu1 }
 0x8c9   : > { %v13390_v8 = vpop.f32.mrb[70].mxu0 }
 0x8ca   : > { %15340 = vst [vmem:[#allocation9_spill] sm:$0xff] %v13390_v8  ;;  %v9946_v45 = vpop.f32.mrb[71].mxu0 }
 0x8cd   : > { %v13392_v32 = vpop.f32.mrb[102].mxu1  ;;  %v4328_v27 = vpop.f32.mrb[72].mxu0 }
 0x8ce   : > { %15341 = vst [vmem:[#allocation11_spill] sm:$0xff] %v13392_v32  ;;  %v4877_v60 = vmul.f32 0.35355338, %v4328_v27  ;;  %v9955_v61 = vpop.f32.mrb[103].mxu1  ;;  %v9970_v10 = vpop.f32.mrb[73].mxu0 }
 0x8d0   : > { %v13395_v31 = vadd.f32 %v4877_v60, %v15337_v54 }
 0x8d1   : > { %v13397_v13 = vpop.f32.mrb[104].mxu1  ;;  %v4333_v35 = vpop.f32.mrb[74].mxu0 }
 0x8d2   : > { %15342 = vst [vmem:[#allocation8_spill] sm:$0xff] %v13397_v13  ;;  %v4878_v50 = vmul.f32 0.35355338, %v4333_v35  ;;  %v9958_v58 = vpop.f32.mrb[105].mxu1  ;;  %v9973_v29 = vpop.f32.mrb[75].mxu0  ;;  %v4913_v44 = vsel %vm1839_vm7, %v13395_v31, -inf }
 0x8d3   : > { %4914 = vmax.xlane.f32.xlu0 %v4913_v44 }
 0x8d4   : > { %v13402_v24 = vadd.f32 %v4878_v50, %v15337_v54 }
 0x8d5   : > { %v4338_v19 = vpop.f32.mrb[76].mxu0 }
 0x8d6   : > { %v4879_v6 = vmul.f32 0.35355338, %v4338_v19  ;;  %v9976_v20 = vpop.f32.mrb[77].mxu0  ;;  %v4916_v39 = vsel %vm1839_vm7, %v13402_v24, -inf }
 0x8d7   : > { %4917 = vmax.xlane.f32.xlu1 %v4916_v39 }
 0x8d8   : > { %v13407_v9 = vadd.f32 %v4879_v6, %v15337_v54 }
 0x8d9   : > { %v4542_v11 = vpop.f32.mrb[78].mxu0 }
 0x8da   : > { %v10000_v17 = vpop.f32.mrb[79].mxu0  ;;  %v4919_v55 = vsel %vm1839_vm7, %v13407_v9, -inf  ;;  %v4883_v51 = vmul.f32 0.35355338, %v4542_v11 }
 0x8db   : > { %4920 = vmax.xlane.f32.xlu0 %v4919_v55 }
 0x8dc   : > { %v13417_v45 = vadd.f32 %v4883_v51, %v15337_v54 }
 0x8dd   : > { %v4547_v25 = vpop.f32.mrb[80].mxu0 }
 0x8de   : > { %v10003_v46 = vpop.f32.mrb[81].mxu0  ;;  %v4884_v27 = vmul.f32 0.35355338, %v4547_v25  ;;  %v4931_v20 = vsel %vm1839_vm7, %v13417_v45, -inf }
 0x8e0   : > { %v13425_v29 = vadd.f32 %v4884_v27, %v15337_v54 }
 0x8e1   : > { %v4552_v16 = vpop.f32.mrb[82].mxu0 }
 0x8e2   : > { %v10006_v7 = vpop.f32.mrb[83].mxu0  ;;  %v4885_v50 = vmul.f32 0.35355338, %v4552_v16 }
 0x8e3   : > { %v4934_v7 = vsel %vm1839_vm7, %v13425_v29, -inf }
 0x8e4   : > { %v13435_v11 = vadd.f32 %v4885_v50, %v15337_v54 }
 0x905   : > { %v4756_v57 = vpop.f32.mrb[84].mxu0 }
 0x906   : > { %v13411_v49 = vpop.f32.mrb[106].mxu1  ;;  %v10030_v40 = vpop.f32.mrb[85].mxu0  ;;  %v4889_v17 = vmul.f32 0.35355338, %v4756_v57  ;;  %v4937_v57 = vsel %vm1839_vm7, %v13435_v11, -inf }
 0x907   : > { %15343 = vst [vmem:[#allocation13_spill] sm:$0xff] %v13411_v49  ;;  %v9961_v21 = vpop.f32.mrb[107].mxu1 }
 0x908   : > { %v13445_v21 = vadd.f32 %v4889_v17, %v15337_v54 }
 0x909   : > { %v4761_v52 = vpop.f32.mrb[86].mxu0 }
 0x90a   : > { %v4435_v47 = vpop.f32.mrb[108].mxu1  ;;  %v10033_v1 = vpop.f32.mrb[87].mxu0  ;;  %v4949_v27 = vsel %vm1839_vm7, %v13445_v21, -inf }
 0x90b   : > { %v4880_v43 = vmul.f32 0.35355338, %v4435_v47  ;;  %v9985_v36 = vpop.f32.mrb[109].mxu1  ;;  %v4890_v1 = vmul.f32 0.35355338, %v4761_v52 }
 0x90d   : > { %v13414_v41 = vadd.f32 %v4880_v43, %v15337_v54  ;;  %v4766_v5 = vpop.f32.mrb[88].mxu0 }
 0x90e   : > { %v4440_v62 = vpop.f32.mrb[110].mxu1  ;;  %v10036_v14 = vpop.f32.mrb[89].mxu0 }
 0x90f   : > { %v4881_v60 = vmul.f32 0.35355338, %v4440_v62  ;;  %v9988_v61 = vpop.f32.mrb[111].mxu1  ;;  %v4922_v10 = vsel %vm1839_vm7, %v13414_v41, -inf }
 0x910   : > { %4923 = vmax.xlane.f32.xlu0 %v4922_v10  ;;  %v4891_v61 = vmul.f32 0.35355338, %v4766_v5 }
 0x911   : > { %v13422_v35 = vadd.f32 %v4881_v60, %v15337_v54  ;;  %v13457_v60 = vadd.f32 %v4890_v1, %v15337_v54 }
 0x912   : > { %v4445_v58 = vpop.f32.mrb[112].mxu1 }
 0x913   : > { %v4882_v44 = vmul.f32 0.35355338, %v4445_v58  ;;  %v9991_v19 = vpop.f32.mrb[113].mxu1  ;;  %v4925_v6 = vsel %vm1839_vm7, %v13422_v35, -inf  ;;  %v4952_v5 = vsel %vm1839_vm7, %v13457_v60, -inf }
 0x914   : > { %4926 = vmax.xlane.f32.xlu1 %v4925_v6  ;;  %4932 = vmax.xlane.f32.xlu0 %v4931_v20  ;;  %v13465_v19 = vadd.f32 %v4891_v61, %v15337_v54  ;;  %v13493_v61 = vpop.permute.xlu1 %10843 }
 0x915   : > { %v13432_v39 = vadd.f32 %v4882_v44, %v15337_v54 }
 0x916   : > { %v4649_v55 = vpop.f32.mrb[114].mxu1 }
 0x917   : > { %v4886_v25 = vmul.f32 0.35355338, %v4649_v55  ;;  %v10015_v46 = vpop.f32.mrb[115].mxu1  ;;  %v4928_v16 = vsel %vm1839_vm7, %v13432_v39, -inf }
 0x918   : > { %4929 = vmax.xlane.f32.xlu1 %v4928_v16  ;;  %4935 = vmax.xlane.f32.xlu0 %v4934_v7 }
 0x919   : > { %v13442_v40 = vadd.f32 %v4886_v25, %v15337_v54 }
 0x91a   : > { %v4654_v47 = vpop.f32.mrb[116].mxu1 }
 0x91b   : > { %v4887_v51 = vmul.f32 0.35355338, %v4654_v47  ;;  %v10018_v43 = vpop.f32.mrb[117].mxu1  ;;  %v4940_v36 = vsel %vm1839_vm7, %v13442_v40, -inf  ;;  %v4955_v47 = vsel %vm1839_vm7, %v13465_v19, -inf }
 0x91c   : > { %4941 = vmax.xlane.f32.xlu1 %v4940_v36  ;;  %4938 = vmax.xlane.f32.xlu0 %v4937_v57  ;;  %v13485_v36 = vld [vmem:[#allocation2 + $0x20] sm:$0xff] }
 0x91d   : > { %v13452_v62 = vadd.f32 %v4887_v51, %v15337_v54 }
 0x91e   : > { %v4659_v14 = vpop.f32.mrb[118].mxu1 }
 0x91f   : > { %v4888_v10 = vmul.f32 0.35355338, %v4659_v14  ;;  %v10021_v52 = vpop.f32.mrb[119].mxu1  ;;  %v4943_v50 = vsel %vm1839_vm7, %v13452_v62, -inf  ;;  %v13487_v14 = vld [vmem:[#allocation2 + $0x18] sm:$0xff] }
 0x920   : > { %4944 = vmax.xlane.f32.xlu1 %v4943_v50  ;;  %4950 = vmax.xlane.f32.xlu0 %v4949_v27  ;;  %v13491_v27 = vpack.i.bf16 %v13485_v36, %v13487_v14  ;;  %v13501_v50 = vpop.permute.xlu0 %5311 }
 0x921   : > { %v13462_v58 = vadd.f32 %v4888_v10, %v15337_v54  ;;  %v13497_v10 = vpop.permute.xlu1 %5409 }
 0x922   : > { %v4863_v44 = vpop.f32.mrb[120].mxu1 }
 0x923   : > { %v4892_v6 = vmul.f32 0.35355338, %v4863_v44  ;;  %v10045_v20 = vpop.f32.mrb[121].mxu1  ;;  %v4946_v17 = vsel %vm1839_vm7, %v13462_v58, -inf }
 0x924   : > { %4947 = vmax.xlane.f32.xlu1 %v4946_v17  ;;  %4953 = vmax.xlane.f32.xlu0 %v4952_v5 }
 0x925   : > { %v13472_v55 = vadd.f32 %v4892_v6, %v15337_v54  ;;  %v13499_v52 = vpop.permute.xlu1 %10848  ;;  %v13505_v6 = vpop.permute.xlu0 %10838 }
 0x926   : > { %v4868_v25 = vpop.f32.mrb[122].mxu1 }
 0x927   : > { %v4893_v46 = vmul.f32 0.35355338, %v4868_v25  ;;  %v10048_v16 = vpop.f32.mrb[123].mxu1  ;;  %v4958_v7 = vsel %vm1839_vm7, %v13472_v55, -inf }
 0x928   : > { %4959 = vmax.xlane.f32.xlu1 %v4958_v7  ;;  %4956 = vmax.xlane.f32.xlu0 %v4955_v47 }
 0x929   : > { %v13479_v57 = vadd.f32 %v4893_v46, %v15337_v54  ;;  %v13512_v5 = vpop.permute.xlu0 %5507 }
 0x92a   : > { %v4873_v1 = vpop.f32.mrb[124].mxu1 }
 0x92b   : > { %v10051_v51 = vpop.f32.mrb[125].mxu1  ;;  %v4961_v43 = vsel %vm1839_vm7, %v13479_v57, -inf  ;;  %v4894_v44 = vmul.f32 0.35355338, %v4873_v1 }
 0x92c   : > { %4962 = vmax.xlane.f32.xlu0 %v4961_v43 }
 0x92d   : > { %v13508_v20 = vadd.f32 %v4894_v44, %v15337_v54 }
 0x92f   : > { %v4964_v25 = vsel %vm1839_vm7, %v13508_v20, -inf }
 0x939   : > { %5811 = vrot.lane.b32.xlu1 %v13227_v34, %s11452_s14  ;;  %v13503_v34 = vpop.permute.xlu1 %10853 }
 0x93d   : > { %v13510_v17 = vpop.permute.xlu1 %5605 }
 0x941   : > { %v13516_v46 = vpop.permute.xlu1 %5821 }
 0x942   : > { %10858 = vrot.lane.b32.xlu0 %v13491_v27, %s11451_s28 }
 0x95d   : > { %4965 = vmax.xlane.f32.xlu1 %v4964_v25 }
 0x960   : > { %v4915_v16 = vpop.xlane.xlu0 %4914 }
 0x961   : > { %v4967_v7 = vsub.f32 %v13395_v31, %v4915_v16 }
 0x963   : > { %v4985_v47 = vmul.f32 1.442695, %v4967_v7 }
 0x964   : > { %v4918_v1 = vpop.xlane.xlu1 %4917 }
 0x965   : > { %11106 = vpow2.f32 %v4985_v47  ;;  %v4968_v51 = vsub.f32 %v13402_v24, %v4918_v1 }
 0x967   : > { %v4987_v43 = vmul.f32 1.442695, %v4968_v51 }
 0x968   : > { %v4921_v44 = vpop.xlane.xlu0 %4920 }
 0x969   : > { %11108 = vpow2.f32 %v4987_v43  ;;  %v4969_v49 = vsub.f32 %v13407_v9, %v4921_v44 }
 0x96b   : > { %v4989_v13 = vmul.f32 1.442695, %v4969_v49 }
 0x96d   : > { %11110 = vpow2.f32 %v4989_v13 }
 0x96f   : > { %v13521_v32 = vpop.eup %11106 }
 0x970   : > { %v5021_v25 = vsel %vm1839_vm7, %v13521_v32, 0.0 }
 0x971   : > { %5022 = vadd.xlane.f32.xlu0 %v5021_v25 }
 0x973   : > { %v13525_v8 = vpop.eup %11108 }
 0x974   : > { %v5024_v31 = vsel %vm1839_vm7, %v13525_v8, 0.0 }
 0x975   : > { %5025 = vadd.xlane.f32.xlu1 %v5024_v31 }
 0x977   : > { %v13529_v24 = vpop.eup %11110 }
 0x978   : > { %v5027_v16 = vsel %vm1839_vm7, %v13529_v24, 0.0 }
 0x979   : > { %5028 = vadd.xlane.f32.xlu0 %v5027_v16 }
 0x99d   : > { %v4924_v9 = vpop.xlane.xlu0 %4923 }
 0x99e   : > { %v4970_v13 = vsub.f32 %v13414_v41, %v4924_v9 }
 0x9a0   : > { %v4991_v49 = vmul.f32 1.442695, %v4970_v13 }
 0x9a1   : > { %v4927_v7 = vpop.xlane.xlu1 %4926  ;;  %v4933_v47 = vpop.xlane.xlu0 %4932 }
 0x9a2   : > { %11112 = vpow2.f32 %v4991_v49  ;;  %v4971_v1 = vsub.f32 %v13422_v35, %v4927_v7  ;;  %v4973_v51 = vsub.f32 %v13417_v45, %v4933_v47 }
 0x9a4   : > { %v4993_v43 = vmul.f32 1.442695, %v4971_v1  ;;  %v4997_v44 = vmul.f32 1.442695, %v4973_v51 }
 0x9a5   : > { %v4930_v25 = vpop.xlane.xlu1 %4929  ;;  %v4936_v31 = vpop.xlane.xlu0 %4935 }
 0x9a6   : > { %11114 = vpow2.f32 %v4993_v43  ;;  %v4972_v28 = vsub.f32 %v13432_v39, %v4930_v25  ;;  %v4974_v16 = vsub.f32 %v13425_v29, %v4936_v31 }
 0x9a7   : > { %11116 = vpow2.f32 %v4997_v44 }
 0x9a8   : > { %v4995_v59 = vmul.f32 1.442695, %v4972_v28  ;;  %v4999_v41 = vmul.f32 1.442695, %v4974_v16 }
 0x9a9   : > { %v4942_v9 = vpop.xlane.xlu1 %4941  ;;  %v4939_v13 = vpop.xlane.xlu0 %4938 }
 0x9aa   : > { %11118 = vpow2.f32 %v4995_v59  ;;  %v4976_v49 = vsub.f32 %v13442_v40, %v4942_v9  ;;  %v4975_v35 = vsub.f32 %v13435_v11, %v4939_v13 }
 0x9ab   : > { %11120 = vpow2.f32 %v4999_v41 }
 0x9ac   : > { %v13540_v45 = vpop.eup %11112  ;;  %v5001_v7 = vmul.f32 1.442695, %v4975_v35  ;;  %v5003_v47 = vmul.f32 1.442695, %v4976_v49 }
 0x9ad   : > { %v4945_v1 = vpop.xlane.xlu1 %4944  ;;  %v4951_v51 = vpop.xlane.xlu0 %4950  ;;  %v5030_v29 = vsel %vm1839_vm7, %v13540_v45, 0.0 }
 0x9ae   : > { %v4977_v28 = vsub.f32 %v13452_v62, %v4945_v1  ;;  %v4979_v39 = vsub.f32 %v13445_v21, %v4951_v51  ;;  %5031 = vadd.xlane.f32.xlu1 %v5030_v29  ;;  %11122 = vpow2.f32 %v5001_v7 }
 0x9af   : > { %11124 = vpow2.f32 %v5003_v47 }
 0x9b0   : > { %v13546_v59 = vpop.eup %11114  ;;  %v5005_v40 = vmul.f32 1.442695, %v4977_v28  ;;  %v5009_v43 = vmul.f32 1.442695, %v4979_v39 }
 0x9b1   : > { %v13548_v11 = vpop.eup %11116  ;;  %v4954_v44 = vpop.xlane.xlu0 %4953  ;;  %v5033_v25 = vsel %vm1839_vm7, %v13546_v59, 0.0 }
 0x9b2   : > { %11126 = vpow2.f32 %v5005_v40  ;;  %v4980_v31 = vsub.f32 %v13457_v60, %v4954_v44  ;;  %5034 = vadd.xlane.f32.xlu1 %v5033_v25  ;;  %v5039_v21 = vsel %vm1839_vm7, %v13548_v11, 0.0  ;;  %v13583_v40 = vld [vmem:[#allocation2 + $0x28] sm:$0xff] }
 0x9b3   : > { %5040 = vadd.xlane.f32.xlu0 %v5039_v21  ;;  %11128 = vpow2.f32 %v5009_v43  ;;  %v4948_v43 = vpop.xlane.xlu1 %4947 }
 0x9b4   : > { %v13555_v62 = vpop.eup %11118  ;;  %v5011_v41 = vmul.f32 1.442695, %v4980_v31  ;;  %v4978_v44 = vsub.f32 %v13462_v58, %v4948_v43 }
 0x9b5   : > { %v13557_v16 = vpop.eup %11120  ;;  %v5036_v9 = vsel %vm1839_vm7, %v13555_v62, 0.0  ;;  %v4957_v25 = vpop.xlane.xlu0 %4956 }
 0x9b6   : > { %5037 = vadd.xlane.f32.xlu1 %v5036_v9  ;;  %v5042_v13 = vsel %vm1839_vm7, %v13557_v16, 0.0  ;;  %11130 = vpow2.f32 %v5011_v41  ;;  %v5007_v31 = vmul.f32 1.442695, %v4978_v44  ;;  %v4981_v21 = vsub.f32 %v13465_v19, %v4957_v25 }
 0x9b7   : > { %5043 = vadd.xlane.f32.xlu0 %v5042_v13  ;;  %v4960_v41 = vpop.xlane.xlu1 %4959 }
 0x9b8   : > { %v13563_v60 = vpop.eup %11122  ;;  %11132 = vpow2.f32 %v5007_v31  ;;  %v4982_v13 = vsub.f32 %v13472_v55, %v4960_v41 }
 0x9b9   : > { %v5045_v49 = vsel %vm1839_vm7, %v13563_v60, 0.0  ;;  %v13567_v35 = vpop.eup %11124  ;;  %v4963_v9 = vpop.xlane.xlu0 %4962 }
 0x9ba   : > { %v5048_v1 = vsel %vm1839_vm7, %v13567_v35, 0.0 }
 0x9bb   : > { %5046 = vadd.xlane.f32.xlu0 %v5045_v49  ;;  %v5013_v49 = vmul.f32 1.442695, %v4981_v21  ;;  %v13605_v43 = vpop.permute.xlu1 %5811 }
 0x9bc   : > { %v13569_v7 = vpop.eup %11126 }
 0x9bd   : > { %v5051_v47 = vsel %vm1839_vm7, %v13569_v7, 0.0  ;;  %v13575_v51 = vpop.eup %11128  ;;  %11134 = vpow2.f32 %v5013_v49  ;;  %v13607_v44 = vpop.permute.xlu0 %10858  ;;  %v10836_v49 = vunpack.i.h.bf16 %v13353_v12 }
 0x9be   : > { %5052 = vadd.xlane.f32.xlu1 %v5051_v47  ;;  %v5057_v29 = vsel %vm1839_vm7, %v13575_v51, 0.0  ;;  %v4983_v47 = vsub.f32 %v13479_v57, %v4963_v9 }
 0x9bf   : > { %5049 = vadd.xlane.f32.xlu0 %v5048_v1  ;;  %v5015_v1 = vmul.f32 1.442695, %v4982_v13 }
 0x9c0   : > { %v13579_v28 = vpop.eup %11130 }
 0x9c1   : > { %v5060_v39 = vsel %vm1839_vm7, %v13579_v28, 0.0  ;;  %11136 = vpow2.f32 %v5015_v1 }
 0x9c2   : > { %v13593_v58 = vpop.eup %11132 }
 0x9c3   : > { %5058 = vadd.xlane.f32.xlu0 %v5057_v29  ;;  %v5017_v29 = vmul.f32 1.442695, %v4983_v47  ;;  %v10835_v47 = vunpack.i.l.bf16 %v13353_v12 }
 0x9c5   : > { %11138 = vpow2.f32 %v5017_v29 }
 0x9c7   : > { %5061 = vadd.xlane.f32.xlu0 %v5060_v39  ;;  %v13597_v39 = vpop.eup %11134 }
 0x9c8   : > { %v5063_v19 = vsel %vm1839_vm7, %v13597_v39, 0.0 }
 0x9cb   : > { %v13601_v55 = vpop.eup %11136 }
 0x9cc   : > { %v5066_v25 = vsel %vm1839_vm7, %v13601_v55, 0.0 }
 0x9cf   : > { %5928 = vrot.lane.b32.xlu1 %v13583_v40, %s11451_s28  ;;  %v13603_v57 = vpop.eup %11138 }
 0x9d0   : > { %v5069_v31 = vsel %vm1839_vm7, %v13603_v57, 0.0 }
 0x9dd   : > { %5813 = vrot.lane.b32.xlu0 %v13223_v53, %s11452_s14  ;;  %v5054_v53 = vsel %vm1839_vm7, %v13593_v58, 0.0 }
 0x9ea   : > { %v4966_v21 = vpop.xlane.xlu1 %4965 }
 0x9f3   : > { %5055 = vadd.xlane.f32.xlu1 %v5054_v53  ;;  %v10569_v53 = vpack.c.bf16 %v10836_v49, %v10835_v47  ;;  %v5803_v49 = vld [vmem:[#allocation2 + $0x68] sm:$0xff]  ;;  %v13662_v47 = vld [vmem:[#allocation2 + $0x58] sm:$0xff] }
 0x9f7   : > { %5064 = vadd.xlane.f32.xlu1 %v5063_v19 }
 0x9fb   : > { %5067 = vadd.xlane.f32.xlu1 %v5066_v25  ;;  %v5797_v25 = vld [vmem:[#allocation2 + $0x38] sm:$0xff] }
 0x9fc   : > { %5070 = vadd.xlane.f32.xlu0 %v5069_v31  ;;  %v13623_v31 = vld [vmem:[#allocation2 + $0x30] sm:$0xff] }
 0x9fe   : > { %v5023_v41 = vpop.xlane.xlu0 %5022 }
 0x9ff   : > { %11140 = vrcp.f32 %v5023_v41 }
 0xa02   : > { %v5026_v9 = vpop.xlane.xlu1 %5025 }
 0xa03   : > { %11142 = vrcp.f32 %v5026_v9  ;;  %v13644_v9 = vld [vmem:[#allocation2 + $0x50] sm:$0xff] }
 0xa06   : > { %v5029_v13 = vpop.xlane.xlu0 %5028 }
 0xa07   : > { %11144 = vrcp.f32 %v5029_v13 }
 0xa09   : > { %v11141_v1 = vpop.eup %11140 }
 0xa0a   : > { %v5093_v29 = vmul.f32 %v11141_v1, %v13521_v32  ;;  %v13627_v32 = vpack.i.bf16 %v5797_v25, %v13623_v31  ;;  %v5806_v1 = vld [vmem:[#allocation2 + $0x80] sm:$0xff] }
 0xa0c   : > { %5815 = vrot.lane.b32.xlu1 %v13241_v23, %s11452_s14  ;;  %10059 = vmatmul.mubr.msk.f32.vlgmr.msra.gmra.mrb[90].mxu0 %vm1839_vm7, %v5093_v29 }
 0xa0d   : > { %v11143_v19 = vpop.eup %11142  ;;  %10570 = vmatpush3.bf16.msra.mxu0 %v10569_v53  ;;  %10061 = vmatprep.mubr.msk.f32.mxu0 %vm11440_vm2, %v15331_v3  ;;  %v13668_v53 = vld [vmem:[#allocation2 + $0x78] sm:$0xff] }
 0xa0e   : > { %10086 = vmatprep.subr.mxu0 %v15331_v3  ;;  %v5094_v12 = vmul.f32 %v11143_v19, %v13525_v8  ;;  %v5799_v8 = vld [vmem:[#allocation2 + $0x48] sm:$0xff]  ;;  %v10877_v19 = vpack.i.bf16 %v5806_v1, %v13668_v53 }
 0xa10   : > { %10062 = vmatmul.mubr.msk.f32.gmra.mrb[92].mxu0 %vm1839_vm7, %v5094_v12 }
 0xa11   : > { %v11145_v23 = vpop.eup %11144  ;;  %10087 = vmatpush3.msra.mxu0 %v13501_v50  ;;  %10064 = vmatprep.mubr.msk.f32.mxu0 %vm11440_vm2, %v15331_v3  ;;  %v4984_v50 = vsub.f32 %v13508_v20, %v4966_v21 }
 0xa12   : > { %10863 = vrot.lane.b32.xlu0 %v13627_v32, %s11451_s28  ;;  %v5095_v41 = vmul.f32 %v11145_v23, %v13529_v24  ;;  %10574 = vmatprep.subr.bf16.mxu0 %v15332_v33  ;;  %v13647_v24 = vpack.i.bf16 %v13644_v9, %v5799_v8 }
 0xa13   : > { %v5019_v13 = vmul.f32 1.442695, %v4984_v50  ;;  %v10846_v50 = vunpack.i.h.bf16 %v13493_v61 }
 0xa14   : > { %10065 = vmatmul.mubr.msk.f32.gmra.mrb[94].mxu0 %vm1839_vm7, %v5095_v41 }
 0xa15   : > { %10088 = vmatprep.mubr.msk.f32.mxu0 %vm11440_vm2, %v15331_v3  ;;  %11146 = vpow2.f32 %v5019_v13  ;;  %v10845_v13 = vunpack.i.l.bf16 %v13493_v61  ;;  %v10840_v61 = vunpack.i.l.bf16 %v13505_v6 }
 0xa16   : > { %5918 = vrot.lane.b32.xlu0 %v13487_v14, %s11452_s14  ;;  %v13652_v14 = vld [vmem:[#allocation2 + $0x60] sm:$0xff] }
 0xa17   : > { %v13655_v20 = vpack.i.bf16 %v5803_v49, %v13652_v14 }
 0xa1a   : > { %5922 = vrot.lane.b32.xlu0 %v13583_v40, %s11452_s14 }
 0xa1e   : > { %10868 = vrot.lane.b32.xlu0 %v13647_v24, %s11451_s28 }
 0xa1f   : > { %v13660_v21 = vpop.eup %11146 }
 0xa20   : > { %v5072_v29 = vsel %vm1839_vm7, %v13660_v21, 0.0 }
 0xa22   : > { %6027 = vrot.lane.b32.xlu0 %v5797_v25, %s11452_s14  ;;  %v13673_v25 = vld [vmem:[#allocation2 + $0x70] sm:$0xff] }
 0xa26   : > { %10873 = vrot.lane.b32.xlu0 %v13655_v20, %s11451_s28 }
 0xa2a   : > { %6132 = vrot.lane.b32.xlu0 %v5799_v8, %s11452_s14 }
 0xa2e   : > { %6136 = vrot.lane.b32.xlu0 %v13662_v47, %s11452_s14 }
 0xa30   : > { %5073 = vadd.xlane.f32.xlu1 %v5072_v29  ;;  %v13684_v29 = vld [vmem:[#allocation2 + $0x40] sm:$0xff] }
 0xa32   : > { %10878 = vrot.lane.b32.xlu0 %v10877_v19, %s11451_s28 }
 0xa36   : > { %6241 = vrot.lane.b32.xlu0 %v5803_v49, %s11452_s14 }
 0xa3a   : > { %6243 = vrot.lane.b32.xlu0 %v13673_v25, %s11452_s14 }
 0xa3b   : > { %v5032_v12 = vpop.xlane.xlu1 %5031 }
 0xa3c   : > { %11148 = vrcp.f32 %v5032_v12  ;;  %v10841_v12 = vunpack.i.h.bf16 %v13505_v6 }
 0xa3e   : > { %6348 = vrot.lane.b32.xlu0 %v5806_v1, %s11452_s14 }
 0xa3f   : > { %v5035_v23 = vpop.xlane.xlu1 %5034 }
 0xa40   : > { %11150 = vrcp.f32 %v5035_v23  ;;  %v5041_v41 = vpop.xlane.xlu0 %5040 }
 0xa41   : > { %11152 = vrcp.f32 %v5041_v41  ;;  %5920 = vrot.lane.b32.xlu1 %v13485_v36, %s11452_s14 }
 0xa42   : > { %10883 = vrot.lane.b32.xlu0 %v13231_v42, %s11453_s26  ;;  %v10572_v42 = vpack.c.bf16 %v10846_v50, %v10845_v13  ;;  %v10575_v50 = vpack.c.bf16 %v10841_v12, %v10840_v61 }
 0xa43   : > { %v5038_v8 = vpop.xlane.xlu1 %5037 }
 0xa44   : > { %11154 = vrcp.f32 %v5038_v8  ;;  %v5044_v49 = vpop.xlane.xlu0 %5043 }
 0xa45   : > { %11156 = vrcp.f32 %v5044_v49  ;;  %6035 = vrot.lane.b32.xlu1 %v13684_v29, %s11451_s28  ;;  %v10856_v49 = vunpack.i.h.bf16 %v13503_v34 }
 0xa46   : > { %v11149_v1 = vpop.eup %11148  ;;  %10888 = vrot.lane.b32.xlu0 %v13491_v27, %s11453_s26 }
 0xa47   : > { %v5096_v36 = vmul.f32 %v11149_v1, %v13540_v45  ;;  %v10855_v1 = vunpack.i.l.bf16 %v13503_v34 }
 0xa48   : > { %v5047_v19 = vpop.xlane.xlu0 %5046 }
 0xa49   : > { %11158 = vrcp.f32 %v5047_v19  ;;  %10074 = vmatmul.mubr.msk.f32.vlgmr.msra.gmra.mrb[126].mxu1 %vm1839_vm7, %v5096_v36  ;;  %6025 = vrot.lane.b32.xlu1 %v13623_v31, %s11452_s14  ;;  %v10850_v19 = vunpack.i.l.bf16 %v13499_v52  ;;  %v10578_v12 = vpack.c.bf16 %v10856_v49, %v10855_v1 }
 0xa4a   : > { %v11151_v23 = vpop.eup %11150  ;;  %10573 = vmatpush3.bf16.msra.mxu1 %v10572_v42  ;;  %10893 = vrot.lane.b32.xlu0 %v13627_v32, %s11453_s26  ;;  %v10851_v42 = vunpack.i.h.bf16 %v13499_v52 }
 0xa4b   : > { %v11153_v27 = vpop.eup %11152  ;;  %10076 = vmatprep.mubr.msk.f32.mxu1 %vm11440_vm2, %v15331_v3  ;;  %10101 = vmatprep.subr.mxu1 %v15331_v3  ;;  %v5097_v45 = vmul.f32 %v11151_v23, %v13546_v59  ;;  %v5053_v41 = vpop.xlane.xlu1 %5052 }
 0xa4c   : > { %v5099_v6 = vmul.f32 %v11153_v27, %v13548_v11  ;;  %v5050_v8 = vpop.xlane.xlu0 %5049  ;;  %v10581_v61 = vpack.c.bf16 %v10851_v42, %v10850_v19 }
 0xa4d   : > { %11160 = vrcp.f32 %v5050_v8  ;;  %10077 = vmatmul.mubr.msk.f32.gmra.mrb[128].mxu1 %vm1839_vm7, %v5097_v45  ;;  %6142 = vrot.lane.b32.xlu1 %v13662_v47, %s11451_s28  ;;  %v10861_v8 = vunpack.i.h.bf16 %v13607_v44 }
 0xa4e   : > { %v11155_v31 = vpop.eup %11154  ;;  %10102 = vmatpush3.msra.mxu1 %v13497_v10  ;;  %10089 = vmatmul.mubr.msk.f32.vlgmr.msra.gmra.mrb[96].mxu0 %vm1839_vm7, %v5099_v6  ;;  %11162 = vrcp.f32 %v5053_v41 }
 0xa4f   : > { %v11157_v32 = vpop.eup %11156  ;;  %10576 = vmatpush3.bf16.msra.mxu0 %v10575_v50  ;;  %10079 = vmatprep.mubr.msk.f32.mxu1 %vm11440_vm2, %v15331_v3  ;;  %v5098_v59 = vmul.f32 %v11155_v31, %v13555_v62  ;;  %v10860_v50 = vunpack.i.l.bf16 %v13607_v44 }
 0xa50   : > { %v5059_v11 = vpop.xlane.xlu0 %5058  ;;  %10091 = vmatprep.mubr.msk.f32.mxu0 %vm11440_vm2, %v15331_v3  ;;  %10116 = vmatprep.subr.mxu0 %v15331_v3  ;;  %v5100_v13 = vmul.f32 %v11157_v32, %v13557_v16 }
 0xa51   : > { %11164 = vrcp.f32 %v5059_v11  ;;  %10080 = vmatmul.mubr.msk.f32.gmra.mrb[130].mxu1 %vm1839_vm7, %v5098_v59  ;;  %6029 = vrot.lane.b32.xlu1 %v13684_v29, %s11452_s14 }
 0xa52   : > { %10092 = vmatmul.mubr.msk.f32.gmra.mrb[98].mxu0 %vm1839_vm7, %v5100_v13  ;;  %10103 = vmatprep.mubr.msk.f32.mxu1 %vm11440_vm2, %v15331_v3 }
 0xa53   : > { %v11159_v10 = vpop.eup %11158  ;;  %10117 = vmatpush3.msra.mxu0 %v13512_v5  ;;  %10094 = vmatprep.mubr.msk.f32.mxu0 %vm11440_vm2, %v15331_v3 }
 0xa54   : > { %v5062_v62 = vpop.xlane.xlu0 %5061  ;;  %v5101_v16 = vmul.f32 %v11159_v10, %v13563_v60  ;;  %10577 = vmatprep.subr.bf16.mxu1 %v15332_v33  ;;  %10580 = vmatprep.subr.bf16.mxu0 %v15332_v33  ;;  %v10585_v10 = vpack.c.bf16 %v10861_v8, %v10860_v50 }
 0xa55   : > { %11166 = vrcp.f32 %v5062_v62  ;;  %6134 = vrot.lane.b32.xlu1 %v13644_v9, %s11452_s14 }
 0xa56   : > { %10095 = vmatmul.mubr.msk.f32.gmra.mrb[100].mxu0 %vm1839_vm7, %v5101_v16 }
 0xa57   : > { %v11161_v5 = vpop.eup %11160  ;;  %10118 = vmatprep.mubr.msk.f32.mxu0 %vm11440_vm2, %v15331_v3 }
 0xa58   : > { %v5102_v60 = vmul.f32 %v11161_v5, %v13567_v35  ;;  %v11163_v36 = vpop.eup %11162  ;;  %v5814_v23 = vpop.permute.xlu0 %5813 }
 0xa59   : > { %6249 = vrot.lane.b32.xlu1 %v13673_v25, %s11451_s28  ;;  %v5103_v35 = vmul.f32 %v11163_v36, %v13569_v7 }
 0xa5a   : > { %10104 = vmatmul.mubr.msk.f32.vlgmr.msra.gmra.mrb[132].mxu1 %vm1839_vm7, %v5102_v60 }
 0xa5b   : > { %v11165_v34 = vpop.eup %11164  ;;  %10579 = vmatpush3.bf16.msra.mxu1 %v10578_v12  ;;  %10106 = vmatprep.mubr.msk.f32.mxu1 %vm11440_vm2, %v15331_v3 }
 0xa5c   : > { %v5105_v9 = vmul.f32 %v11165_v34, %v13575_v51  ;;  %10131 = vmatprep.subr.mxu1 %v15331_v3  ;;  %v13754_v51 = vld [vmem:[#allocation2 + $0x88] sm:$0xff] }
 0xa5d   : > { %6239 = vrot.lane.b32.xlu1 %v13652_v14, %s11452_s14 }
 0xa5e   : > { %10107 = vmatmul.mubr.msk.f32.gmra.mrb[134].mxu1 %vm1839_vm7, %v5103_v35  ;;  %10119 = vmatmul.mubr.msk.f32.vlgmr.msra.gmra.mrb[102].mxu0 %vm1839_vm7, %v5105_v9 }
 0xa5f   : > { %v11167_v52 = vpop.eup %11166  ;;  %10132 = vmatpush3.msra.mxu1 %v13510_v17  ;;  %10583 = vmatpush3.bf16.xpose.msk.msra.mxu0 %vm12212_vm5, %v10581_v61  ;;  %v11375_v17 = vld [vmem:[#allocation2 + $0x10] sm:$0xff] }
 0xa60   : > { %10121 = vmatprep.mubr.msk.f32.mxu0 %vm11440_vm2, %v15331_v3  ;;  %v5106_v7 = vmul.f32 %v11167_v52, %v13579_v28  ;;  %10146 = vmatprep.subr.mxu0 %v15331_v3  ;;  %v5929_v28 = vpop.permute.xlu1 %5928 }
 0xa61   : > { %6356 = vrot.lane.b32.xlu1 %v13754_v51, %s11451_s28  ;;  %10109 = vmatprep.mubr.msk.f32.mxu1 %vm11440_vm2, %v15331_v3 }
 0xa62   : > { %10122 = vmatmul.mubr.msk.f32.gmra.mrb[104].mxu0 %vm1839_vm7, %v5106_v7  ;;  %10584 = vmatprep.subr.bf16.mxu1 %v15332_v33 }
 0xa63   : > { %10124 = vmatprep.mubr.msk.f32.mxu0 %vm11440_vm2, %v15331_v3 }
 0xa65   : > { %6346 = vrot.lane.b32.xlu1 %v13668_v53, %s11452_s14 }
 0xa67   : > { %10147 = vmatpush3.xpose.msk.msra.mxu0 %vm1205_vm4, %v13516_v46 }
 0xa68   : > { %10588 = vmatprep.subr.bf16.mxu0 %v15332_v33 }
 0xa69   : > { %6350 = vrot.lane.b32.xlu1 %v13754_v51, %s11452_s14 }
 0xa6d   : > { %6688 = vrot.lane.b32.xlu1 %v11375_v17, %s11453_s26 }
 0xa71   : > { %6786 = vrot.lane.b32.xlu1 %v13583_v40, %s11453_s26 }
 0xa80   : > { %v5056_v14 = vpop.xlane.xlu1 %5055 }
 0xa81   : > { %11168 = vrcp.f32 %v5056_v14 }
 0xa84   : > { %v5065_v25 = vpop.xlane.xlu1 %5064 }
 0xa85   : > { %11170 = vrcp.f32 %v5065_v25 }
 0xa88   : > { %v5068_v53 = vpop.xlane.xlu1 %5067 }
 0xa89   : > { %11172 = vrcp.f32 %v5068_v53  ;;  %v5071_v46 = vpop.xlane.xlu0 %5070 }
 0xa8a   : > { %11174 = vrcp.f32 %v5071_v46 }
 0xa8b   : > { %v11169_v27 = vpop.eup %11168 }
 0xa8c   : > { %v5104_v45 = vmul.f32 %v11169_v27, %v13593_v58 }
 0xa8d   : > { %v10864_v6 = vpop.permute.xlu0 %10863 }
 0xa8e   : > { %10110 = vmatmul.mubr.msk.f32.gmra.mrb[136].mxu1 %vm1839_vm7, %v5104_v45  ;;  %v10866_v31 = vunpack.i.h.bf16 %v10864_v6  ;;  %v10865_v32 = vunpack.i.l.bf16 %v10864_v6 }
 0xa8f   : > { %v11171_v41 = vpop.eup %11170  ;;  %10133 = vmatprep.mubr.msk.f32.mxu1 %vm11440_vm2, %v15331_v3 }
 0xa90   : > { %v5107_v40 = vmul.f32 %v11171_v41, %v13597_v39  ;;  %v10589_v62 = vpack.c.bf16 %v10866_v31, %v10865_v32 }
 0xa91   : > { %v5919_v11 = vpop.permute.xlu0 %5918 }
 0xa92   : > { %10125 = vmatmul.mubr.msk.f32.gmra.mrb[106].mxu0 %vm1839_vm7, %v5107_v40 }
 0xa93   : > { %v11173_v59 = vpop.eup %11172  ;;  %10148 = vmatprep.mubr.msk.f32.mxu0 %vm11440_vm2, %v15331_v3 }
 0xa94   : > { %v5108_v58 = vmul.f32 %v11173_v59, %v13601_v55  ;;  %v11175_v13 = vpop.eup %11174 }
 0xa95   : > { %v5109_v39 = vmul.f32 %v11175_v13, %v13603_v57  ;;  %v5923_v55 = vpop.permute.xlu0 %5922 }
 0xa96   : > { %10134 = vmatmul.mubr.msk.f32.vlgmr.msra.gmra.mrb[138].mxu1 %vm1839_vm7, %v5108_v58  ;;  %10149 = vmatmul.mubr.msk.f32.vlgmr.msra.gmra.mrb[108].mxu0 %vm1205_vm4, %v13605_v43  ;;  %v5816_v43 = vpop.permute.xlu1 %5815 }
 0xa97   : > { %10587 = vmatpush3.bf16.xpose.msk.msra.mxu1 %vm12212_vm5, %v10585_v10  ;;  %10591 = vmatpush3.bf16.xpose.msk.msra.mxu0 %vm12212_vm5, %v10589_v62 }
 0xa98   : > { %10136 = vmatprep.mubr.msk.f32.mxu1 %vm11440_vm2, %v15331_v3  ;;  %10151 = vmatprep.mubr.msk.f32.mxu0 %vm11440_vm2, %v15331_v3 }
 0xa99   : > { %10161 = vmatprep.subr.mxu1 %v15331_v3  ;;  %10176 = vmatprep.subr.mxu0 %v15331_v3  ;;  %v10869_v57 = vpop.permute.xlu0 %10868 }
 0xa9a   : > { %10137 = vmatmul.mubr.msk.f32.gmra.mrb[140].mxu1 %vm1839_vm7, %v5109_v39  ;;  %10152 = vmatmul.mubr.msk.f32.gmra.mrb[110].mxu0 %vm1205_vm4, %v5814_v23  ;;  %v10871_v7 = vunpack.i.h.bf16 %v10869_v57  ;;  %v10870_v17 = vunpack.i.l.bf16 %v10869_v57 }
 0xa9b   : > { %10154 = vmatprep.mubr.msk.f32.mxu0 %vm11440_vm2, %v15331_v3  ;;  %10139 = vmatprep.mubr.msk.f32.mxu1 %vm11440_vm2, %v15331_v3 }
 0xa9d   : > { %v6028_v44 = vpop.permute.xlu0 %6027 }
 0xa9e   : > { %10155 = vmatmul.mubr.msk.f32.gmra.mrb[112].mxu0 %vm1205_vm4, %v5816_v43 }
 0xa9f   : > { %10162 = vmatpush3.xpose.msk.msra.mxu1 %vm1205_vm4, %v5929_v28  ;;  %10178 = vmatprep.mubr.msk.f32.mxu0 %vm11440_vm2, %v15331_v3 }
 0xaa0   : > { %10592 = vmatprep.subr.bf16.mxu1 %v15332_v33 }
 0xaa1   : > { %v10874_v16 = vpop.permute.xlu0 %10873 }
 0xaa2   : > { %v10876_v19 = vunpack.i.h.bf16 %v10874_v16  ;;  %v10875_v12 = vunpack.i.l.bf16 %v10874_v16 }
 0xaa4   : > { %v10597_v35 = vpack.c.bf16 %v10876_v19, %v10875_v12 }
 0xaa5   : > { %v6133_v49 = vpop.permute.xlu0 %6132 }
 0xaa9   : > { %v13812_v1 = vpop.permute.xlu0 %6136 }
 0xaad   : > { %v10879_v60 = vpop.permute.xlu0 %10878 }
 0xaae   : > { %v10881_v46 = vunpack.i.h.bf16 %v10879_v60  ;;  %v10880_v27 = vunpack.i.l.bf16 %v10879_v60 }
 0xab0   : > { %v10601_v8 = vpack.c.bf16 %v10881_v46, %v10880_v27 }
 0xab1   : > { %v13814_v42 = vpop.permute.xlu0 %6241 }
 0xab5   : > { %v13819_v28 = vpop.permute.xlu0 %6243 }
 0xab9   : > { %v6349_v25 = vpop.permute.xlu0 %6348 }
 0xabd   : > { %v5074_v5 = vpop.xlane.xlu1 %5073  ;;  %v10884_v45 = vpop.permute.xlu0 %10883 }
 0xabe   : > { %11176 = vrcp.f32 %v5074_v5  ;;  %v10886_v6 = vunpack.i.h.bf16 %v10884_v45  ;;  %v10885_v41 = vunpack.i.l.bf16 %v10884_v45 }
 0xac0   : > { %v10605_v50 = vpack.c.bf16 %v10886_v6, %v10885_v41 }
 0xac1   : > { %v5921_v36 = vpop.permute.xlu1 %5920  ;;  %v10889_v32 = vpop.permute.xlu0 %10888 }
 0xac2   : > { %v10890_v13 = vunpack.i.l.bf16 %v10889_v32 }
 0xac5   : > { %v6036_v34 = vpop.permute.xlu1 %6035 }
 0xac6   : > { %10177 = vmatpush3.xpose.msk.msra.mxu0 %vm1205_vm4, %v6036_v34 }
 0xac7   : > { %10596 = vmatprep.subr.bf16.mxu0 %v15332_v33 }
 0xac8   : > { %v11177_v9 = vpop.eup %11176 }
 0xac9   : > { %v6026_v61 = vpop.permute.xlu1 %6025  ;;  %v5110_v52 = vmul.f32 %v11177_v9, %v13660_v21  ;;  %v10593_v21 = vpack.c.bf16 %v10871_v7, %v10870_v17 }
 0xaca   : > { %10179 = vmatmul.mubr.msk.f32.vlgmr.msra.gmra.mrb[114].mxu0 %vm1205_vm4, %v6026_v61 }
 0xacb   : > { %10599 = vmatpush3.bf16.xpose.msk.msra.mxu0 %vm12212_vm5, %v10597_v35  ;;  %10140 = vmatmul.mubr.msk.f32.gmra.mrb[142].mxu1 %vm1839_vm7, %v5110_v52 }
 0xacc   : > { %10181 = vmatprep.mubr.msk.f32.mxu0 %vm11440_vm2, %v15331_v3  ;;  %10163 = vmatprep.mubr.msk.f32.mxu1 %vm11440_vm2, %v15331_v3 }
 0xacd   : > { %v6143_v14 = vpop.permute.xlu1 %6142  ;;  %10206 = vmatprep.subr.mxu0 %v15331_v3 }
 0xace   : > { %10182 = vmatmul.mubr.msk.f32.gmra.mrb[116].mxu0 %vm1205_vm4, %v6028_v44 }
 0xacf   : > { %10164 = vmatmul.mubr.msk.f32.vlgmr.msra.gmra.mrb[144].mxu1 %vm1205_vm4, %v5919_v11  ;;  %10184 = vmatprep.mubr.msk.f32.mxu0 %vm11440_vm2, %v15331_v3  ;;  %v10891_v11 = vunpack.i.h.bf16 %v10889_v32 }
 0xad0   : > { %10595 = vmatpush3.bf16.xpose.msk.msra.mxu1 %vm12212_vm5, %v10593_v21  ;;  %10166 = vmatprep.mubr.msk.f32.mxu1 %vm11440_vm2, %v15331_v3 }
 0xad1   : > { %v6030_v23 = vpop.permute.xlu1 %6029  ;;  %10191 = vmatprep.subr.mxu1 %v15331_v3 }
 0xad2   : > { %10185 = vmatmul.mubr.msk.f32.gmra.mrb[118].mxu0 %vm1205_vm4, %v6030_v23 }
 0xad3   : > { %10167 = vmatmul.mubr.msk.f32.gmra.mrb[146].mxu1 %vm1205_vm4, %v5921_v36  ;;  %10208 = vmatprep.mubr.msk.f32.mxu0 %vm11440_vm2, %v15331_v3 }
 0xad4   : > { %10169 = vmatprep.mubr.msk.f32.mxu1 %vm11440_vm2, %v15331_v3 }
 0xad5   : > { %v6135_v53 = vpop.permute.xlu1 %6134 }
 0xad7   : > { %10170 = vmatmul.mubr.msk.f32.gmra.mrb[148].mxu1 %vm1205_vm4, %v5923_v55  ;;  %v10608_v55 = vpack.c.bf16 %v10891_v11, %v10890_v13 }
 0xad8   : > { %10192 = vmatpush3.xpose.msk.msra.mxu1 %vm1205_vm4, %v6143_v14  ;;  %10193 = vmatprep.mubr.msk.f32.mxu1 %vm11440_vm2, %v15331_v3 }
 0xad9   : > { %v6250_v40 = vpop.permute.xlu1 %6249  ;;  %10600 = vmatprep.subr.bf16.mxu1 %v15332_v33 }
 0xada   : > { %10207 = vmatpush3.xpose.msk.msra.mxu0 %vm1205_vm4, %v6250_v40 }
 0xadb   : > { %10194 = vmatmul.mubr.msk.f32.vlgmr.msra.gmra.mrb[150].mxu1 %vm1205_vm4, %v6133_v49  ;;  %10604 = vmatprep.subr.bf16.mxu0 %v15332_v33 }
 0xadc   : > { %10603 = vmatpush3.bf16.xpose.msk.msra.mxu1 %vm12212_vm5, %v10601_v8  ;;  %10196 = vmatprep.mubr.msk.f32.mxu1 %vm11440_vm2, %v15331_v3 }
 0xadd   : > { %v6240_v31 = vpop.permute.xlu1 %6239  ;;  %10221 = vmatprep.subr.mxu1 %v15331_v3 }
 0xade   : > { %10209 = vmatmul.mubr.msk.f32.vlgmr.msra.gmra.mrb[120].mxu0 %vm1205_vm4, %v6240_v31 }
 0xadf   : > { %10606 = vmatpush3.bf16.msra.mxu0 %v10605_v50  ;;  %v13859_v59 = vpop.f32.mrb[90].mxu0  ;;  %10197 = vmatmul.mubr.msk.f32.gmra.mrb[152].mxu1 %vm1205_vm4, %v6135_v53 }
 0xae0   : > { %v10060_v58 = vpop.f32.mrb[91].mxu0  ;;  %10211 = vmatprep.mubr.msk.f32.mxu0 %vm11440_vm2, %v15331_v3  ;;  %10199 = vmatprep.mubr.msk.f32.mxu1 %vm11440_vm2, %v15331_v3 }
 0xae1   : > { %v6357_v22 = vpop.permute.xlu1 %6356  ;;  %10236 = vmatprep.subr.mxu0 %v15331_v3 }
 0xae2   : > { %10212 = vmatmul.mubr.msk.f32.gmra.mrb[122].mxu0 %vm1205_vm4, %v13814_v42 }
 0xae3   : > { %v13869_v10 = vpop.f32.mrb[92].mxu0  ;;  %10200 = vmatmul.mubr.msk.f32.gmra.mrb[154].mxu1 %vm1205_vm4, %v13812_v1  ;;  %10214 = vmatprep.mubr.msk.f32.mxu0 %vm11440_vm2, %v15331_v3 }
 0xae4   : > { %10222 = vmatpush3.xpose.msk.msra.mxu1 %vm1205_vm4, %v6357_v22  ;;  %v10063_v62 = vpop.f32.mrb[93].mxu0  ;;  %10223 = vmatprep.mubr.msk.f32.mxu1 %vm11440_vm2, %v15331_v3 }
 0xae5   : > { %v6347_v39 = vpop.permute.xlu1 %6346  ;;  %10607 = vmatprep.subr.bf16.mxu1 %v15332_v33 }
 0xae6   : > { %10215 = vmatmul.mubr.msk.f32.gmra.mrb[124].mxu0 %vm1205_vm4, %v13819_v28 }
 0xae7   : > { %v13881_v43 = vpop.f32.mrb[94].mxu0  ;;  %10224 = vmatmul.mubr.msk.f32.vlgmr.msra.gmra.mrb[156].mxu1 %vm1205_vm4, %v6347_v39  ;;  %10238 = vmatprep.mubr.msk.f32.mxu0 %vm11440_vm2, %v15331_v3 }
 0xae8   : > { %10609 = vmatpush3.bf16.msra.mxu1 %v10608_v55  ;;  %v10066_v57 = vpop.f32.mrb[95].mxu0  ;;  %10226 = vmatprep.mubr.msk.f32.mxu1 %vm11440_vm2, %v15331_v3 }
 0xae9   : > { %v6351_v44 = vpop.permute.xlu1 %6350  ;;  %10251 = vmatprep.subr.mxu1 %v15331_v3 }
 0xaeb   : > { %10227 = vmatmul.mubr.msk.f32.gmra.mrb[158].mxu1 %vm1205_vm4, %v6349_v25 }
 0xaec   : > { %10229 = vmatprep.mubr.msk.f32.mxu1 %vm11440_vm2, %v15331_v3 }
 0xaed   : > { %v6689_v16 = vpop.permute.xlu1 %6688 }
 0xaee   : > { %10237 = vmatpush3.msra.mxu0 %v6689_v16 }
 0xaef   : > { %10230 = vmatmul.mubr.msk.f32.gmra.mrb[160].mxu1 %vm1205_vm4, %v6351_v44  ;;  %10610 = vmatprep.subr.bf16.mxu0 %v15332_v33 }
 0xaf0   : > { %10253 = vmatprep.mubr.msk.f32.mxu1 %vm11440_vm2, %v15331_v3 }
 0xaf1   : > { %v6787_v49 = vpop.permute.xlu1 %6786 }
 0xaf2   : > { %10252 = vmatpush3.msra.mxu1 %v6787_v49 }
 0xaf3   : > { %10613 = vmatprep.subr.bf16.mxu1 %v15332_v33 }
 0xb1c   : > { %v13897_v1 = vpop.f32.mrb[126].mxu1 }
 0xb1d   : > { %v10075_v5 = vpop.f32.mrb[127].mxu1 }
 0xb20   : > { %v13899_v60 = vpop.f32.mrb[128].mxu1 }
 0xb21   : > { %v13901_v36 = vpop.f32.mrb[96].mxu0  ;;  %v10078_v42 = vpop.f32.mrb[129].mxu1 }
 0xb22   : > { %v10090_v19 = vpop.f32.mrb[97].mxu0 }
 0xb24   : > { %v13903_v12 = vpop.f32.mrb[130].mxu1 }
 0xb25   : > { %v13905_v34 = vpop.f32.mrb[98].mxu0  ;;  %v10081_v9 = vpop.f32.mrb[131].mxu1 }
 0xb26   : > { %v10093_v35 = vpop.f32.mrb[99].mxu0 }
 0xb29   : > { %v13907_v61 = vpop.f32.mrb[100].mxu0 }
 0xb2a   : > { %v10096_v52 = vpop.f32.mrb[101].mxu0 }
 0xb2d   : > { %v13909_v7 = vpop.f32.mrb[132].mxu1 }
 0xb2e   : > { %v10105_v17 = vpop.f32.mrb[133].mxu1 }
 0xb31   : > { %v13911_v28 = vpop.f32.mrb[134].mxu1  ;;  %v13913_v14 = vpop.f32.mrb[102].mxu0 }
 0xb32   : > { %15344 = vst [vmem:[#allocation14_spill] sm:$0xff] %v13913_v14  ;;  %v10108_v21 = vpop.f32.mrb[135].mxu1  ;;  %v10120_v25 = vpop.f32.mrb[103].mxu0 }
 0xb35   : > { %v13915_v23 = vpop.f32.mrb[104].mxu0 }
 0xb36   : > { %15345 = vst [vmem:[#allocation15_spill] sm:$0xff] %v13915_v23  ;;  %v10123_v53 = vpop.f32.mrb[105].mxu0 }
 0xb61   : > { %v13917_v46 = vpop.f32.mrb[136].mxu1 }
 0xb62   : > { %v10111_v27 = vpop.f32.mrb[137].mxu1 }
 0xb65   : > { %v13919_v45 = vpop.f32.mrb[106].mxu0 }
 0xb66   : > { %15346 = vst [vmem:[#allocation16_spill] sm:$0xff] %v13919_v45  ;;  %v10126_v6 = vpop.f32.mrb[107].mxu0 }
 0xb69   : > { %v13921_v41 = vpop.f32.mrb[138].mxu1  ;;  %v5901_v40 = vpop.f32.mrb[108].mxu0 }
 0xb6a   : > { %15347 = vst [vmem:[#allocation17_spill] sm:$0xff] %v13921_v41  ;;  %v6450_v8 = vmul.f32 0.35355338, %v5901_v40  ;;  %v10135_v50 = vpop.f32.mrb[139].mxu1  ;;  %v10150_v31 = vpop.f32.mrb[109].mxu0 }
 0xb6c   : > { %v13924_v32 = vadd.f32 %v6450_v8, %v15337_v54 }
 0xb6d   : > { %v13926_v58 = vpop.f32.mrb[140].mxu1  ;;  %v5906_v22 = vpop.f32.mrb[110].mxu0 }
 0xb6e   : > { %15348 = vst [vmem:[#allocation18_spill] sm:$0xff] %v13926_v58  ;;  %v6451_v11 = vmul.f32 0.35355338, %v5906_v22  ;;  %v10138_v13 = vpop.f32.mrb[141].mxu1  ;;  %v10153_v62 = vpop.f32.mrb[111].mxu0  ;;  %v6486_v39 = vsel %vm1839_vm7, %v13924_v32, -inf }
 0xb6f   : > { %6487 = vmax.xlane.f32.xlu0 %v6486_v39 }
 0xb70   : > { %v13931_v55 = vadd.f32 %v6451_v11, %v15337_v54 }
 0xb71   : > { %v5911_v57 = vpop.f32.mrb[112].mxu0 }
 0xb72   : > { %v6452_v44 = vmul.f32 0.35355338, %v5911_v57  ;;  %v10156_v16 = vpop.f32.mrb[113].mxu0  ;;  %v6489_v49 = vsel %vm1839_vm7, %v13931_v55, -inf }
 0xb73   : > { %6490 = vmax.xlane.f32.xlu1 %v6489_v49 }
 0xb74   : > { %v13936_v5 = vadd.f32 %v6452_v44, %v15337_v54 }
 0xb76   : > { %v6492_v42 = vsel %vm1839_vm7, %v13936_v5, -inf }
 0xb77   : > { %6493 = vmax.xlane.f32.xlu0 %v6492_v42 }
 0xb84   : > { %10898 = vrot.lane.b32.xlu1 %v13647_v24, %s11453_s26 }
 0xb9d   : > { %v6115_v19 = vpop.f32.mrb[114].mxu0 }
 0xb9e   : > { %v13942_v9 = vpop.f32.mrb[142].mxu1  ;;  %v10180_v35 = vpop.f32.mrb[115].mxu0  ;;  %v6456_v27 = vmul.f32 0.35355338, %v6115_v19 }
 0xb9f   : > { %15349 = vst [vmem:[#allocation19_spill] sm:$0xff] %v13942_v9  ;;  %v10141_v52 = vpop.f32.mrb[143].mxu1 }
 0xba0   : > { %v13953_v13 = vadd.f32 %v6456_v27, %v15337_v54 }
 0xba1   : > { %v6120_v17 = vpop.f32.mrb[116].mxu0 }
 0xba2   : > { %v6457_v21 = vmul.f32 0.35355338, %v6120_v17  ;;  %v6008_v25 = vpop.f32.mrb[144].mxu1  ;;  %v10183_v53 = vpop.f32.mrb[117].mxu0  ;;  %v6504_v19 = vsel %vm1839_vm7, %v13953_v13, -inf }
 0xba3   : > { %v6453_v6 = vmul.f32 0.35355338, %v6008_v25  ;;  %v10165_v40 = vpop.f32.mrb[145].mxu1 }
 0xba4   : > { %v13945_v8 = vadd.f32 %v6457_v21, %v15337_v54 }
 0xba5   : > { %v13948_v50 = vadd.f32 %v6453_v6, %v15337_v54  ;;  %v6125_v31 = vpop.f32.mrb[118].mxu0 }
 0xba6   : > { %v6013_v24 = vpop.f32.mrb[146].mxu1  ;;  %v10186_v22 = vpop.f32.mrb[119].mxu0  ;;  %v6507_v11 = vsel %vm1839_vm7, %v13945_v8, -inf }
 0xba7   : > { %v6454_v62 = vmul.f32 0.35355338, %v6013_v24  ;;  %v10168_v39 = vpop.f32.mrb[147].mxu1  ;;  %v6495_v57 = vsel %vm1839_vm7, %v13948_v50, -inf }
 0xba8   : > { %6496 = vmax.xlane.f32.xlu0 %v6495_v57  ;;  %6508 = vmax.xlane.f32.xlu1 %v6507_v11 }
 0xba9   : > { %v13958_v16 = vadd.f32 %v6454_v62, %v15337_v54 }
 0xbaa   : > { %v6018_v44 = vpop.f32.mrb[148].mxu1 }
 0xbab   : > { %v6455_v49 = vmul.f32 0.35355338, %v6018_v44  ;;  %v10171_v42 = vpop.f32.mrb[149].mxu1  ;;  %v6498_v25 = vsel %vm1839_vm7, %v13958_v16, -inf }
 0xbac   : > { %6505 = vmax.xlane.f32.xlu0 %v6504_v19 }
 0xbad   : > { %v13963_v35 = vadd.f32 %v6455_v49, %v15337_v54 }
 0xbae   : > { %v6222_v52 = vpop.f32.mrb[150].mxu1 }
 0xbaf   : > { %v6459_v17 = vmul.f32 0.35355338, %v6222_v52  ;;  %v10195_v21 = vpop.f32.mrb[151].mxu1  ;;  %v6501_v53 = vsel %vm1839_vm7, %v13963_v35, -inf }
 0xbb0   : > { %6499 = vmax.xlane.f32.xlu0 %v6498_v25  ;;  %6502 = vmax.xlane.f32.xlu1 %v6501_v53 }
 0xbb1   : > { %v13970_v27 = vadd.f32 %v6459_v17, %v15337_v54  ;;  %v6329_v6 = vpop.f32.mrb[120].mxu0 }
 0xbb2   : > { %v6227_v40 = vpop.f32.mrb[152].mxu1  ;;  %v10210_v24 = vpop.f32.mrb[121].mxu0 }
 0xbb3   : > { %v10198_v22 = vpop.f32.mrb[153].mxu1  ;;  %v6513_v11 = vsel %vm1839_vm7, %v13970_v27, -inf }
 0xbb4   : > { %6514 = vmax.xlane.f32.xlu1 %v6513_v11 }
 0xbb5   : > { %v6334_v62 = vpop.f32.mrb[122].mxu0 }
 0xbb6   : > { %v6463_v39 = vmul.f32 0.35355338, %v6334_v62  ;;  %v6232_v57 = vpop.f32.mrb[154].mxu1  ;;  %v10213_v44 = vpop.f32.mrb[123].mxu0 }
 0xbb7   : > { %v6461_v49 = vmul.f32 0.35355338, %v6232_v57  ;;  %v10201_v42 = vpop.f32.mrb[155].mxu1 }
 0xbb8   : > { %v13975_v19 = vadd.f32 %v6463_v39, %v15337_v54 }
 0xbb9   : > { %v6339_v52 = vpop.f32.mrb[124].mxu0  ;;  %v13978_v17 = vadd.f32 %v6461_v49, %v15337_v54 }
 0xbba   : > { %v10216_v21 = vpop.f32.mrb[125].mxu0  ;;  %v6436_v25 = vpop.f32.mrb[156].mxu1  ;;  %v6525_v53 = vsel %vm1839_vm7, %v13975_v19, -inf }
 0xbbb   : > { %v6465_v24 = vmul.f32 0.35355338, %v6436_v25  ;;  %v10225_v22 = vpop.f32.mrb[157].mxu1  ;;  %6526 = vmax.xlane.f32.xlu1 %v6525_v53  ;;  %v6519_v39 = vsel %vm1839_vm7, %v13978_v17, -inf }
 0xbbd   : > { %v13983_v11 = vadd.f32 %v6465_v24, %v15337_v54  ;;  %v6458_v24 = vmul.f32 0.35355338, %v6125_v31 }
 0xbbe   : > { %v6441_v62 = vpop.f32.mrb[158].mxu1 }
 0xbbf   : > { %v10228_v57 = vpop.f32.mrb[159].mxu1  ;;  %6520 = vmax.xlane.f32.xlu1 %v6519_v39  ;;  %v6531_v49 = vsel %vm1839_vm7, %v13983_v11, -inf  ;;  %v13999_v22 = vadd.f32 %v6458_v24, %v15337_v54  ;;  %v6462_v39 = vmul.f32 0.35355338, %v6329_v6  ;;  %v6466_v6 = vmul.f32 0.35355338, %v6441_v62  ;;  %v14023_v24 = vpop.permute.xlu0 %10893 }
 0xbc1   : > { %v14002_v57 = vadd.f32 %v6462_v39, %v15337_v54 }
 0xbc2   : > { %v6446_v44 = vpop.f32.mrb[160].mxu1 }
 0xbc3   : > { %v6467_v42 = vmul.f32 0.35355338, %v6446_v44  ;;  %v10231_v21 = vpop.f32.mrb[161].mxu1  ;;  %6532 = vmax.xlane.f32.xlu1 %v6531_v49  ;;  %v6460_v44 = vmul.f32 0.35355338, %v6227_v40  ;;  %v6510_v49 = vsel %vm1839_vm7, %v13999_v22, -inf  ;;  %v14017_v40 = vadd.f32 %v6466_v6, %v15337_v54 }
 0xbc5   : > { %v13990_v25 = vadd.f32 %v6467_v42, %v15337_v54  ;;  %v6464_v42 = vmul.f32 0.35355338, %v6339_v52  ;;  %v6534_v52 = vsel %vm1839_vm7, %v14017_v40, -inf }
 0xbc6   : > { %6884 = vrot.lane.b32.xlu0 %v13684_v29, %s11453_s26  ;;  %v14007_v29 = vadd.f32 %v6460_v44, %v15337_v54 }
 0xbc7   : > { %v6537_v53 = vsel %vm1839_vm7, %v13990_v25, -inf  ;;  %v14012_v31 = vadd.f32 %v6464_v42, %v15337_v54 }
 0xbc8   : > { %6538 = vmax.xlane.f32.xlu1 %v6537_v53  ;;  %v6516_v21 = vsel %vm1839_vm7, %v14007_v29, -inf }
 0xbc9   : > { %v6528_v53 = vsel %vm1839_vm7, %v14012_v31, -inf }
 0xbd9   : > { %10903 = vrot.lane.b32.xlu1 %v13655_v20, %s11453_s26  ;;  %v6522_v20 = vsel %vm1839_vm7, %v14002_v57, -inf }
 0xbe5   : > { %6511 = vmax.xlane.f32.xlu0 %v6510_v49 }
 0xbe9   : > { %6523 = vmax.xlane.f32.xlu0 %v6522_v20 }
 0xbed   : > { %6517 = vmax.xlane.f32.xlu0 %v6516_v21 }
 0xbf1   : > { %6529 = vmax.xlane.f32.xlu0 %v6528_v53 }
 0xbf5   : > { %6535 = vmax.xlane.f32.xlu0 %v6534_v52 }
 0xbfc   : > { %v6488_v39 = vpop.xlane.xlu0 %6487 }
 0xbfd   : > { %v6540_v62 = vsub.f32 %v13924_v32, %v6488_v39 }
 0xbff   : > { %v6558_v44 = vmul.f32 1.442695, %v6540_v62 }
 0xc00   : > { %v6491_v49 = vpop.xlane.xlu1 %6490 }
 0xc01   : > { %11178 = vpow2.f32 %v6558_v44  ;;  %v6541_v42 = vsub.f32 %v13931_v55, %v6491_v49 }
 0xc03   : > { %v6560_v54 = vmul.f32 1.442695, %v6541_v42 }
 0xc04   : > { %v6494_v32 = vpop.xlane.xlu0 %6493  ;;  %v14038_v39 = vpop.permute.xlu1 %10898 }
 0xc05   : > { %11180 = vpow2.f32 %v6560_v54  ;;  %v6542_v55 = vsub.f32 %v13936_v5, %v6494_v32 }
 0xc07   : > { %v6562_v52 = vmul.f32 1.442695, %v6542_v55 }
 0xc09   : > { %11182 = vpow2.f32 %v6562_v52 }
 0xc0b   : > { %v14027_v20 = vpop.eup %11178 }
 0xc0c   : > { %v6594_v6 = vsel %vm1839_vm7, %v14027_v20, 0.0 }
 0xc0d   : > { %6595 = vadd.xlane.f32.xlu0 %v6594_v6 }
 0xc0f   : > { %v14031_v21 = vpop.eup %11180 }
 0xc10   : > { %v6597_v53 = vsel %vm1839_vm7, %v14031_v21, 0.0 }
 0xc11   : > { %6598 = vadd.xlane.f32.xlu1 %v6597_v53 }
 0xc13   : > { %v14043_v5 = vpop.eup %11182 }
 0xc23   : > { %6982 = vrot.lane.b32.xlu0 %v13662_v47, %s11453_s26 }
 0xc35   : > { %v6497_v62 = vpop.xlane.xlu0 %6496  ;;  %v6509_v44 = vpop.xlane.xlu1 %6508 }
 0xc36   : > { %v6543_v49 = vsub.f32 %v13948_v50, %v6497_v62  ;;  %v6547_v54 = vsub.f32 %v13945_v8, %v6509_v44  ;;  %v6600_v8 = vsel %vm1839_vm7, %v14043_v5, 0.0 }
 0xc38   : > { %v6564_v42 = vmul.f32 1.442695, %v6543_v49  ;;  %v6572_v9 = vmul.f32 1.442695, %v6547_v54 }
 0xc39   : > { %v6506_v6 = vpop.xlane.xlu0 %6505 }
 0xc3a   : > { %11184 = vpow2.f32 %v6564_v42  ;;  %v6546_v53 = vsub.f32 %v13953_v13, %v6506_v6 }
 0xc3c   : > { %v6570_v47 = vmul.f32 1.442695, %v6546_v53 }
 0xc3d   : > { %v6500_v58 = vpop.xlane.xlu0 %6499  ;;  %v6503_v41 = vpop.xlane.xlu1 %6502 }
 0xc3e   : > { %11186 = vpow2.f32 %v6570_v47  ;;  %v6544_v32 = vsub.f32 %v13958_v16, %v6500_v58  ;;  %v6545_v55 = vsub.f32 %v13963_v35, %v6503_v41 }
 0xc3f   : > { %11188 = vpow2.f32 %v6572_v9 }
 0xc40   : > { %v6566_v50 = vmul.f32 1.442695, %v6544_v32  ;;  %v6568_v52 = vmul.f32 1.442695, %v6545_v55 }
 0xc41   : > { %v6515_v54 = vpop.xlane.xlu1 %6514  ;;  %v14069_v47 = vpop.permute.xlu0 %6884 }
 0xc42   : > { %11190 = vpow2.f32 %v6566_v50  ;;  %6601 = vadd.xlane.f32.xlu0 %v6600_v8  ;;  %v6549_v32 = vsub.f32 %v13970_v27, %v6515_v54 }
 0xc43   : > { %11192 = vpow2.f32 %v6568_v52 }
 0xc44   : > { %v14049_v13 = vpop.eup %11184  ;;  %v6576_v8 = vmul.f32 1.442695, %v6549_v32 }
 0xc45   : > { %v6603_v62 = vsel %vm1839_vm7, %v14049_v13, 0.0 }
 0xc46   : > { %6604 = vadd.xlane.f32.xlu1 %v6603_v62 }
 0xc48   : > { %v14053_v44 = vpop.eup %11186  ;;  %v6527_v6 = vpop.xlane.xlu1 %6526 }
 0xc49   : > { %v6612_v41 = vsel %vm1839_vm7, %v14053_v44, 0.0  ;;  %v14057_v58 = vpop.eup %11188 }
 0xc4a   : > { %6613 = vadd.xlane.f32.xlu1 %v6612_v41  ;;  %v6615_v16 = vsel %vm1839_vm7, %v14057_v58, 0.0 }
 0xc4c   : > { %v14059_v9 = vpop.eup %11190  ;;  %v6521_v53 = vpop.xlane.xlu1 %6520 }
 0xc4d   : > { %v6606_v35 = vsel %vm1839_vm7, %v14059_v9, 0.0  ;;  %v14065_v49 = vpop.eup %11192 }
 0xc4e   : > { %6616 = vadd.xlane.f32.xlu1 %v6615_v16  ;;  %6607 = vadd.xlane.f32.xlu0 %v6606_v35  ;;  %v6609_v42 = vsel %vm1839_vm7, %v14065_v49, 0.0 }
 0xc50   : > { %v6533_v55 = vpop.xlane.xlu1 %6532 }
 0xc51   : > { %v6555_v62 = vsub.f32 %v13983_v11, %v6533_v55 }
 0xc52   : > { %6610 = vadd.xlane.f32.xlu1 %v6609_v42  ;;  %v6553_v42 = vsub.f32 %v13975_v19, %v6527_v6 }
 0xc53   : > { %v6588_v45 = vmul.f32 1.442695, %v6555_v62 }
 0xc54   : > { %v6584_v54 = vmul.f32 1.442695, %v6553_v42 }
 0xc72   : > { %v6512_v50 = vpop.xlane.xlu0 %6511 }
 0xc73   : > { %v6548_v52 = vsub.f32 %v13999_v22, %v6512_v50  ;;  %v6551_v22 = vsub.f32 %v13978_v17, %v6521_v53 }
 0xc75   : > { %v6574_v41 = vmul.f32 1.442695, %v6548_v52 }
 0xc76   : > { %v6524_v16 = vpop.xlane.xlu0 %6523 }
 0xc77   : > { %11194 = vpow2.f32 %v6574_v41  ;;  %v6552_v35 = vsub.f32 %v14002_v57, %v6524_v16  ;;  %v6580_v57 = vmul.f32 1.442695, %v6551_v22 }
 0xc78   : > { %11196 = vpow2.f32 %v6576_v8 }
 0xc79   : > { %v6582_v23 = vmul.f32 1.442695, %v6552_v35 }
 0xc7a   : > { %v6518_v14 = vpop.xlane.xlu0 %6517 }
 0xc7b   : > { %11198 = vpow2.f32 %v6582_v23  ;;  %v6550_v27 = vsub.f32 %v14007_v29, %v6518_v14 }
 0xc7c   : > { %11200 = vpow2.f32 %v6588_v45 }
 0xc7d   : > { %v6578_v32 = vmul.f32 1.442695, %v6550_v27 }
 0xc7e   : > { %v6530_v11 = vpop.xlane.xlu0 %6529 }
 0xc7f   : > { %11202 = vpow2.f32 %v6578_v32  ;;  %v6554_v50 = vsub.f32 %v14012_v31, %v6530_v11 }
 0xc80   : > { %11204 = vpow2.f32 %v6584_v54  ;;  %v6539_v54 = vpop.xlane.xlu1 %6538 }
 0xc81   : > { %v14078_v55 = vpop.eup %11194  ;;  %11206 = vpow2.f32 %v6580_v57  ;;  %v6586_v45 = vmul.f32 1.442695, %v6554_v50 }
 0xc82   : > { %v6536_v19 = vpop.xlane.xlu0 %6535  ;;  %v6618_v6 = vsel %vm1839_vm7, %v14078_v55, 0.0  ;;  %v14083_v23 = vpop.eup %11196 }
 0xc83   : > { %6619 = vadd.xlane.f32.xlu0 %v6618_v6  ;;  %v6556_v17 = vsub.f32 %v14017_v40, %v6536_v19  ;;  %v6621_v53 = vsel %vm1839_vm7, %v14083_v23, 0.0  ;;  %11208 = vpow2.f32 %v6586_v45  ;;  %v11376_v19 = vld [vmem:[#allocation2 + $0x80] sm:$0xff]  ;;  %v11377_v6 = vld [vmem:[#allocation2 + $0x78] sm:$0xff] }
 0xc84   : > { %v14114_v11 = vpop.permute.xlu1 %10903  ;;  %v10907_v45 = vpack.i.bf16 %v11376_v19, %v11377_v6 }
 0xc85   : > { %v14085_v14 = vpop.eup %11198  ;;  %v6590_v8 = vmul.f32 1.442695, %v6556_v17 }
 0xc86   : > { %v6630_v29 = vsel %vm1839_vm7, %v14085_v14, 0.0  ;;  %v14092_v31 = vpop.eup %11200 }
 0xc87   : > { %6631 = vadd.xlane.f32.xlu1 %v6630_v29  ;;  %6622 = vadd.xlane.f32.xlu0 %v6621_v53  ;;  %v6639_v62 = vsel %vm1839_vm7, %v14092_v31, 0.0  ;;  %11210 = vpow2.f32 %v6590_v8  ;;  %v10896_v29 = vunpack.i.h.bf16 %v14023_v24  ;;  %v10895_v53 = vunpack.i.l.bf16 %v14023_v24 }
 0xc89   : > { %v14094_v52 = vpop.eup %11202 }
 0xc8a   : > { %v6624_v40 = vsel %vm1839_vm7, %v14094_v52, 0.0  ;;  %v14100_v41 = vpop.eup %11204 }
 0xc8b   : > { %6640 = vadd.xlane.f32.xlu1 %v6639_v62  ;;  %6625 = vadd.xlane.f32.xlu0 %v6624_v40  ;;  %v6633_v16 = vsel %vm1839_vm7, %v14100_v41, 0.0  ;;  %v14104_v35 = vpop.eup %11206  ;;  %v10611_v40 = vpack.c.bf16 %v10896_v29, %v10895_v53 }
 0xc8c   : > { %v6627_v42 = vsel %vm1839_vm7, %v14104_v35, 0.0 }
 0xc8d   : > { %v14108_v27 = vpop.eup %11208 }
 0xc8e   : > { %v6636_v22 = vsel %vm1839_vm7, %v14108_v27, 0.0 }
 0xc8f   : > { %6634 = vadd.xlane.f32.xlu0 %v6633_v16 }
 0xc91   : > { %v14112_v32 = vpop.eup %11210 }
 0xc92   : > { %v6642_v50 = vsel %vm1839_vm7, %v14112_v32, 0.0 }
 0xc93   : > { %6628 = vadd.xlane.f32.xlu0 %v6627_v42  ;;  %v6557_v42 = vsub.f32 %v13990_v25, %v6539_v54  ;;  %v10900_v54 = vunpack.i.l.bf16 %v14038_v39 }
 0xc95   : > { %v6592_v24 = vmul.f32 1.442695, %v6557_v42 }
 0xc97   : > { %6637 = vadd.xlane.f32.xlu0 %v6636_v22 }
 0xc9a   : > { %v6596_v57 = vpop.xlane.xlu0 %6595 }
 0xc9b   : > { %11212 = vrcp.f32 %v6596_v57  ;;  %6643 = vadd.xlane.f32.xlu0 %v6642_v50  ;;  %v10905_v50 = vunpack.i.l.bf16 %v14114_v11 }
 0xc9c   : > { %10908 = vrot.lane.b32.xlu1 %v10907_v45, %s11453_s26 }
 0xc9e   : > { %v6599_v17 = vpop.xlane.xlu1 %6598 }
 0xc9f   : > { %11214 = vrcp.f32 %v6599_v17 }
 0xca0   : > { %11216 = vpow2.f32 %v6592_v24 }
 0xca5   : > { %v11213_v8 = vpop.eup %11212 }
 0xca6   : > { %v6666_v62 = vmul.f32 %v11213_v8, %v14027_v20  ;;  %v11378_v20 = vld [vmem:[#allocation2 + $0x70] sm:$0xff] }
 0xca8   : > { %10239 = vmatmul.mubr.msk.f32.vlgmr.msra.gmra.mrb[126].mxu0 %vm1839_vm7, %v6666_v62 }
 0xca9   : > { %v11215_v16 = vpop.eup %11214  ;;  %10612 = vmatpush3.bf16.msra.mxu0 %v10611_v40  ;;  %10241 = vmatprep.mubr.msk.f32.mxu0 %vm11440_vm2, %v15331_v3 }
 0xcaa   : > { %10266 = vmatprep.subr.mxu0 %v15331_v3  ;;  %v6667_v22 = vmul.f32 %v11215_v16, %v14031_v21  ;;  %v14138_v25 = vpop.eup %11216 }
 0xcab   : > { %v6645_v21 = vsel %vm1839_vm7, %v14138_v25, 0.0 }
 0xcac   : > { %10242 = vmatmul.mubr.msk.f32.gmra.mrb[128].mxu0 %vm1839_vm7, %v6667_v22 }
 0xcad   : > { %10267 = vmatpush3.msra.mxu0 %v14069_v47  ;;  %10244 = vmatprep.mubr.msk.f32.mxu0 %vm11440_vm2, %v15331_v3 }
 0xcae   : > { %10616 = vmatprep.subr.bf16.mxu0 %v15332_v33 }
 0xcb1   : > { %7080 = vrot.lane.b32.xlu0 %v11378_v20, %s11453_s26 }
 0xcb5   : > { %4148 = vrot.lane.b32.xlu0 %v13332_v30, %s11454_s27  ;;  %v6983_v30 = vpop.permute.xlu0 %6982 }
 0xcb9   : > { %5721 = vrot.lane.b32.xlu0 %v13881_v43, %s11455_s25 }
 0xcbd   : > { %4152 = vrot.lane.b32.xlu0 %v13370_v37, %s11454_s27 }
 0xcc0   : > { %6646 = vadd.xlane.f32.xlu1 %v6645_v21 }
 0xcc1   : > { %5725 = vrot.lane.b32.xlu0 %v13899_v60, %s11455_s25 }
 0xcc5   : > { %4156 = vrot.lane.b32.xlu0 %v13372_v15, %s11454_s27 }
 0xcc9   : > { %5729 = vrot.lane.b32.xlu0 %v13901_v36, %s11455_s25 }
 0xccd   : > { %4160 = vrot.lane.b32.xlu0 %v13378_v26, %s11454_s27 }
 0xccf   : > { %v6602_v43 = vpop.xlane.xlu0 %6601 }
 0xcd0   : > { %11218 = vrcp.f32 %v6602_v43 }
 0xcd1   : > { %7178 = vrot.lane.b32.xlu1 %v13754_v51, %s11453_s26  ;;  %5733 = vrot.lane.b32.xlu0 %v13907_v61, %s11455_s25  ;;  %v10901_v51 = vunpack.i.h.bf16 %v14038_v39 }
 0xcd3   : > { %v6605_v37 = vpop.xlane.xlu1 %6604  ;;  %v10614_v57 = vpack.c.bf16 %v10901_v51, %v10900_v54 }
 0xcd4   : > { %11220 = vrcp.f32 %v6605_v37 }
 0xcd5   : > { %4144 = vrot.lane.b32.xlu1 %v13312_v0, %s11454_s27 }
 0xcd7   : > { %v6614_v15 = vpop.xlane.xlu1 %6613 }
 0xcd8   : > { %11222 = vrcp.f32 %v6614_v15 }
 0xcd9   : > { %4146 = vrot.lane.b32.xlu1 %v13324_v18, %s11454_s27 }
 0xcda   : > { %v11219_v60 = vpop.eup %11218 }
 0xcdb   : > { %v6617_v26 = vpop.xlane.xlu1 %6616  ;;  %v6608_v36 = vpop.xlane.xlu0 %6607  ;;  %v6668_v47 = vmul.f32 %v11219_v60, %v14043_v5  ;;  %v10906_v5 = vunpack.i.h.bf16 %v14114_v11 }
 0xcdc   : > { %11224 = vrcp.f32 %v6617_v26 }
 0xcdd   : > { %11226 = vrcp.f32 %v6608_v36  ;;  %5717 = vrot.lane.b32.xlu1 %v13859_v59, %s11455_s25  ;;  %10245 = vmatmul.mubr.msk.f32.gmra.mrb[130].mxu0 %vm1839_vm7, %v6668_v47 }
 0xcde   : > { %v11221_v0 = vpop.eup %11220  ;;  %10268 = vmatprep.mubr.msk.f32.mxu0 %vm11440_vm2, %v15331_v3 }
 0xcdf   : > { %v6669_v18 = vmul.f32 %v11221_v0, %v14049_v13  ;;  %v6611_v61 = vpop.xlane.xlu1 %6610  ;;  %v10617_v13 = vpack.c.bf16 %v10906_v5, %v10905_v50 }
 0xce0   : > { %11228 = vrcp.f32 %v6611_v61 }
 0xce1   : > { %5719 = vrot.lane.b32.xlu1 %v13869_v10, %s11455_s25  ;;  %10254 = vmatmul.mubr.msk.f32.vlgmr.msra.gmra.mrb[162].mxu1 %vm1839_vm7, %v6669_v18 }
 0xce2   : > { %v11223_v59 = vpop.eup %11222  ;;  %10615 = vmatpush3.bf16.msra.mxu1 %v10614_v57  ;;  %10256 = vmatprep.mubr.msk.f32.mxu1 %vm11440_vm2, %v15331_v3 }
 0xce3   : > { %v6672_v39 = vmul.f32 %v11223_v59, %v14053_v44  ;;  %10281 = vmatprep.subr.mxu1 %v15331_v3 }
 0xce5   : > { %4150 = vrot.lane.b32.xlu1 %v13368_v48, %s11454_s27  ;;  %10269 = vmatmul.mubr.msk.f32.vlgmr.msra.gmra.mrb[132].mxu0 %vm1839_vm7, %v6672_v39 }
 0xce6   : > { %v11225_v11 = vpop.eup %11224  ;;  %10282 = vmatpush3.msra.mxu1 %v6983_v30  ;;  %10618 = vmatpush3.bf16.msra.mxu0 %v10617_v13 }
 0xce7   : > { %v11227_v10 = vpop.eup %11226  ;;  %10271 = vmatprep.mubr.msk.f32.mxu0 %vm11440_vm2, %v15331_v3  ;;  %v6673_v19 = vmul.f32 %v11225_v11, %v14057_v58  ;;  %10619 = vmatprep.subr.bf16.mxu1 %v15332_v33  ;;  %v10914_v11 = vld [vmem:[%s15350_s15] sm:$0xff]  }
 0xce8   : > { %v6670_v44 = vmul.f32 %v11227_v10, %v14059_v9  ;;  %10296 = vmatprep.subr.mxu0 %v15331_v3 }
 0xce9   : > { %5723 = vrot.lane.b32.xlu1 %v13897_v1, %s11455_s25  ;;  %10272 = vmatmul.mubr.msk.f32.gmra.mrb[134].mxu0 %vm1839_vm7, %v6673_v19 }
 0xcea   : > { %v11229_v48 = vpop.eup %11228  ;;  %10257 = vmatmul.mubr.msk.f32.gmra.mrb[164].mxu1 %vm1839_vm7, %v6670_v44  ;;  %10274 = vmatprep.mubr.msk.f32.mxu0 %vm11440_vm2, %v15331_v3  ;;  %v10915_v44 = vld [vmem:[%s15350_s15 + $0x8] sm:$0xff]  }
 0xceb   : > { %10259 = vmatprep.mubr.msk.f32.mxu1 %vm11440_vm2, %v15331_v3  ;;  %v6671_v33 = vmul.f32 %v11229_v48, %v14065_v49 }
 0xced   : > { %4154 = vrot.lane.b32.xlu1 %v13374_v4, %s11454_s27 }
 0xcee   : > { %10260 = vmatmul.mubr.msk.f32.gmra.mrb[166].mxu1 %vm1839_vm7, %v6671_v33 }
 0xcef   : > { %10283 = vmatprep.mubr.msk.f32.mxu1 %vm11440_vm2, %v15331_v3 }
 0xcf1   : > { %5727 = vrot.lane.b32.xlu1 %v13903_v12, %s11455_s25 }
 0xcf5   : > { %4158 = vrot.lane.b32.xlu1 %v13376_v56, %s11454_s27 }
 0xcf9   : > { %5731 = vrot.lane.b32.xlu1 %v13905_v34, %s11455_s25 }
 0xcfd   : > { %4162 = vrot.lane.b32.xlu1 %v13380_v2, %s11454_s27 }
 0xd01   : > { %5735 = vrot.lane.b32.xlu1 %v13909_v7, %s11455_s25 }
 0xd10   : > { %v6620_v4 = vpop.xlane.xlu0 %6619 }
 0xd11   : > { %11230 = vrcp.f32 %v6620_v4 }
 0xd14   : > { %v6632_v1 = vpop.xlane.xlu1 %6631  ;;  %v6623_v58 = vpop.xlane.xlu0 %6622 }
 0xd15   : > { %11232 = vrcp.f32 %v6623_v58 }
 0xd18   : > { %v6641_v9 = vpop.xlane.xlu1 %6640  ;;  %v6626_v49 = vpop.xlane.xlu0 %6625 }
 0xd19   : > { %11234 = vrcp.f32 %v6626_v49 }
 0xd1a   : > { %11236 = vrcp.f32 %v6632_v1 }
 0xd1b   : > { %v11231_v12 = vpop.eup %11230 }
 0xd1c   : > { %v10909_v6 = vpop.permute.xlu1 %10908  ;;  %v6635_v56 = vpop.xlane.xlu0 %6634  ;;  %v6674_v45 = vmul.f32 %v11231_v12, %v14078_v55 }
 0xd1d   : > { %v10911_v34 = vunpack.i.h.bf16 %v10909_v6  ;;  %v10910_v17 = vunpack.i.l.bf16 %v10909_v6 }
 0xd1e   : > { %10275 = vmatmul.mubr.msk.f32.gmra.mrb[136].mxu0 %vm1839_vm7, %v6674_v45 }
 0xd1f   : > { %10298 = vmatprep.mubr.msk.f32.mxu0 %vm11440_vm2, %v15331_v3  ;;  %v11233_v2 = vpop.eup %11232  ;;  %v10620_v7 = vpack.c.bf16 %v10911_v34, %v10910_v17 }
 0xd20   : > { %v6629_v29 = vpop.xlane.xlu0 %6628  ;;  %v6675_v53 = vmul.f32 %v11233_v2, %v14083_v23 }
 0xd21   : > { %11238 = vrcp.f32 %v6629_v29  ;;  %v15351_v29 = vld [vmem:[#allocation10_spill] sm:$0xff] }
 0xd22   : > { %11240 = vrcp.f32 %v6635_v56  ;;  %10284 = vmatmul.mubr.msk.f32.vlgmr.msra.gmra.mrb[168].mxu1 %vm1839_vm7, %v6675_v53  ;;  %v15352_v53 = vld [vmem:[#allocation14_spill] sm:$0xff] }
 0xd23   : > { %v11235_v8 = vpop.eup %11234  ;;  %10621 = vmatpush3.bf16.msra.mxu1 %v10620_v7  ;;  %10286 = vmatprep.mubr.msk.f32.mxu1 %vm11440_vm2, %v15331_v3 }
 0xd24   : > { %v6638_v55 = vpop.xlane.xlu0 %6637  ;;  %v6676_v62 = vmul.f32 %v11235_v8, %v14094_v52  ;;  %10311 = vmatprep.subr.mxu1 %v15331_v3  ;;  %v11237_v23 = vpop.eup %11236  ;;  %v15353_v8 = vld [vmem:[#allocation12_spill] sm:$0xff] }
 0xd25   : > { %11242 = vrcp.f32 %v6638_v55  ;;  %v6678_v42 = vmul.f32 %v11237_v23, %v14085_v14  ;;  %v15354_v55 = vld [vmem:[#allocation15_spill] sm:$0xff] }
 0xd26   : > { %10287 = vmatmul.mubr.msk.f32.gmra.mrb[170].mxu1 %vm1839_vm7, %v6676_v62  ;;  %11244 = vrcp.f32 %v6641_v9 }
 0xd27   : > { %10289 = vmatprep.mubr.msk.f32.mxu1 %vm11440_vm2, %v15331_v3 }
 0xd28   : > { %v6644_v40 = vpop.xlane.xlu0 %6643 }
 0xd29   : > { %11246 = vrcp.f32 %v6644_v40 }
 0xd2b   : > { %v11239_v16 = vpop.eup %11238 }
 0xd2c   : > { %v7081_v22 = vpop.permute.xlu0 %7080  ;;  %v6677_v24 = vmul.f32 %v11239_v16, %v14104_v35  ;;  %v11241_v20 = vpop.eup %11240 }
 0xd2d   : > { %10297 = vmatpush3.msra.mxu0 %v7081_v22  ;;  %v6679_v21 = vmul.f32 %v11241_v20, %v14100_v41 }
 0xd2e   : > { %10290 = vmatmul.mubr.msk.f32.gmra.mrb[172].mxu1 %vm1839_vm7, %v6677_v24  ;;  %10299 = vmatmul.mubr.msk.f32.vlgmr.msra.gmra.mrb[138].mxu0 %vm1839_vm7, %v6678_v42 }
 0xd2f   : > { %10301 = vmatprep.mubr.msk.f32.mxu0 %vm11440_vm2, %v15331_v3  ;;  %10313 = vmatprep.mubr.msk.f32.mxu1 %vm11440_vm2, %v15331_v3  ;;  %v11243_v14 = vpop.eup %11242 }
 0xd30   : > { %v4149_v52 = vpop.permute.xlu0 %4148  ;;  %10322 = vmatprep.subr.bf16.mxu0 %v15331_v3  ;;  %v6680_v30 = vmul.f32 %v11243_v14, %v14108_v27  ;;  %v11245_v36 = vpop.eup %11244 }
 0xd31   : > { %4201 = vst.msk [vmem:[#allocation3 + $0x10] sm:$0xff] %vm4198_vm8, %v4149_v52  ;;  %v6681_v47 = vmul.f32 %v11245_v36, %v14092_v31  ;;  %10323 = vmatpush3.bf16.msra.mxu0 %v10914_v11  ;;  %v15356_v36 = vld [vmem:[#allocation16_spill] sm:$0xff] }
 0xd32   : > { %10302 = vmatmul.mubr.msk.f32.gmra.mrb[140].mxu0 %vm1839_vm7, %v6679_v21  ;;  %10324 = vmatprep.subr.bf16.mxu0 %v15331_v3 }
 0xd33   : > { %10304 = vmatprep.mubr.msk.f32.mxu0 %vm11440_vm2, %v15331_v3  ;;  %v11247_v54 = vpop.eup %11246 }
 0xd34   : > { %v5722_v35 = vpop.permute.xlu0 %5721  ;;  %v6682_v18 = vmul.f32 %v11247_v54, %v14112_v32  ;;  %v15359_v54 = vld [vmem:[#allocation17_spill] sm:$0xff] }
 0xd35   : > { %5774 = vst.msk [vmem:[#allocation3 + $0x10] sm:$0xff] %vm5771_vm9, %v5722_v35  ;;  %10325 = vmatpush3.bf16.msra.mxu0 %v10915_v44 }
 0xd36   : > { %10305 = vmatmul.mubr.msk.f32.gmra.mrb[142].mxu0 %vm1839_vm7, %v6680_v30  ;;  %10402 = vmatprep.subr.bf16.mxu0 %v15331_v3 }
 0xd37   : > { %10326 = vmatprep.mubr.msk.bf16.mxu0 %vm11440_vm2, %v15331_v3 }
 0xd38   : > { %v4153_v41 = vpop.permute.xlu0 %4152 }
 0xd39   : > { %4203 = vst.msk [vmem:[#allocation3 + $0x20] sm:$0xff] %vm4198_vm8, %v4153_v41 }
 0xd3c   : > { %v5726_v43 = vpop.permute.xlu0 %5725 }
 0xd3d   : > { %5776 = vst.msk [vmem:[#allocation3 + $0x20] sm:$0xff] %vm5771_vm9, %v5726_v43 }
 0xd40   : > { %v4157_v37 = vpop.permute.xlu0 %4156 }
 0xd41   : > { %4205 = vst.msk [vmem:[#allocation3 + $0x30] sm:$0xff] %vm4198_vm8, %v4157_v37 }
 0xd44   : > { %v5730_v15 = vpop.permute.xlu0 %5729 }
 0xd45   : > { %5778 = vst.msk [vmem:[#allocation3 + $0x30] sm:$0xff] %vm5771_vm9, %v5730_v15 }
 0xd48   : > { %v4161_v27 = vpop.permute.xlu0 %4160 }
 0xd49   : > { %4207 = vst.msk [vmem:[#allocation3 + $0x40] sm:$0xff] %vm4198_vm8, %v4161_v27 }
 0xd4c   : > { %v5734_v60 = vpop.permute.xlu0 %5733 }
 0xd4d   : > { %5780 = vst.msk [vmem:[#allocation3 + $0x40] sm:$0xff] %vm5771_vm9, %v5734_v60  ;;  %v6647_v26 = vpop.xlane.xlu1 %6646  ;;  %v15355_v60 = vld [vmem:[#allocation9_spill] sm:$0xff] }
 0xd4e   : > { %11248 = vrcp.f32 %v6647_v26 }
 0xd51   : > { %v7179_v51 = vpop.permute.xlu1 %7178 }
 0xd52   : > { %10312 = vmatpush3.msra.mxu1 %v7179_v51  ;;  %v15358_v51 = vld [vmem:[#allocation8_spill] sm:$0xff] }
 0xd53   : > { %10314 = vmatmul.mubr.msk.f32.vlgmr.msra.gmra.mrb[174].mxu1 %vm1839_vm7, %v6681_v47  ;;  %10362 = vmatprep.subr.bf16.mxu1 %v15331_v3  ;;  %v15357_v47 = vld [vmem:[#allocation11_spill] sm:$0xff] }
 0xd54   : > { %10316 = vmatprep.mubr.msk.f32.mxu1 %vm11440_vm2, %v15331_v3 }
 0xd55   : > { %v4145_v0 = vpop.permute.xlu1 %4144 }
 0xd56   : > { %4199 = vst.msk [vmem:[#allocation3] sm:$0xff] %vm4198_vm8, %v4145_v0  ;;  %v15360_v0 = vld [vmem:[#allocation13_spill] sm:$0xff] }
 0xd57   : > { %10317 = vmatmul.mubr.msk.f32.gmra.mrb[176].mxu1 %vm1839_vm7, %v6682_v18  ;;  %v15361_v18 = vld [vmem:[#allocation18_spill] sm:$0xff] }
 0xd58   : > { %v11249_v61 = vpop.eup %11248  ;;  %10319 = vmatprep.mubr.msk.f32.mxu1 %vm11440_vm2, %v15331_v3 }
 0xd59   : > { %v4147_v31 = vpop.permute.xlu1 %4146  ;;  %v6683_v57 = vmul.f32 %v11249_v61, %v14138_v25 }
 0xd5a   : > { %4200 = vst.msk [vmem:[#allocation3 + $0x8] sm:$0xff] %vm4198_vm8, %v4147_v31 }
 0xd5b   : > { %10320 = vmatmul.mubr.msk.f32.gmra.mrb[178].mxu1 %vm1839_vm7, %v6683_v57 }
 0xd5c   : > { %10366 = vmatprep.mubr.msk.bf16.mxu1 %vm11440_vm2, %v15331_v3 }
 0xd5d   : > { %v5718_v32 = vpop.permute.xlu1 %5717 }
 0xd5e   : > { %5772 = vst.msk [vmem:[#allocation3] sm:$0xff] %vm5771_vm9, %v5718_v32 }
 0xd61   : > { %v5720_v5 = vpop.permute.xlu1 %5719 }
 0xd62   : > { %5773 = vst.msk [vmem:[#allocation3 + $0x8] sm:$0xff] %vm5771_vm9, %v5720_v5 }
 0xd65   : > { %v4151_v50 = vpop.permute.xlu1 %4150 }
 0xd66   : > { %4202 = vst.msk [vmem:[#allocation3 + $0x18] sm:$0xff] %vm4198_vm8, %v4151_v50 }
 0xd69   : > { %v5724_v59 = vpop.permute.xlu1 %5723 }
 0xd6a   : > { %5775 = vst.msk [vmem:[#allocation3 + $0x18] sm:$0xff] %vm5771_vm9, %v5724_v59 }
 0xd6d   : > { %v4155_v25 = vpop.permute.xlu1 %4154 }
 0xd6e   : > { %4204 = vst.msk [vmem:[#allocation3 + $0x28] sm:$0xff] %vm4198_vm8, %v4155_v25  ;;  %v15362_v25 = vld [vmem:[#allocation19_spill] sm:$0xff] }
 0xd71   : > { %v5728_v39 = vpop.permute.xlu1 %5727 }
 0xd72   : > { %5777 = vst.msk [vmem:[#allocation3 + $0x28] sm:$0xff] %vm5771_vm9, %v5728_v39 }
 0xd75   : > { %v4159_v13 = vpop.permute.xlu1 %4158 }
 0xd76   : > { %4206 = vst.msk [vmem:[#allocation3 + $0x38] sm:$0xff] %vm4198_vm8, %v4159_v13 }
 0xd79   : > { %v5732_v10 = vpop.permute.xlu1 %5731 }
 0xd7a   : > { %5779 = vst.msk [vmem:[#allocation3 + $0x38] sm:$0xff] %vm5771_vm9, %v5732_v10 }
 0xd7b   : > { %v6768_v19 = vpop.f32.mrb[126].mxu0 }
 0xd7c   : > { %7290 = vrot.lane.b32.xlu0 %v6768_v19, %s11456_s18  ;;  %v10240_v48 = vpop.f32.mrb[127].mxu0 }
 0xd7d   : > { %v4163_v33 = vpop.permute.xlu1 %4162 }
 0xd7e   : > { %4208 = vst.msk [vmem:[#allocation3 + $0x48] sm:$0xff] %vm4198_vm8, %v4163_v33 }
 0xd7f   : > { %v6773_v4 = vpop.f32.mrb[128].mxu0 }
 0xd80   : > { %4164 = vrot.lane.b32.xlu0 %v13382_v38, %s11454_s27  ;;  %7292 = vrot.lane.b32.xlu1 %v6773_v4, %s11456_s18  ;;  %v10243_v1 = vpop.f32.mrb[129].mxu0 }
 0xd81   : > { %v5736_v58 = vpop.permute.xlu1 %5735 }
 0xd82   : > { %5781 = vst.msk [vmem:[#allocation3 + $0x48] sm:$0xff] %vm5771_vm9, %v5736_v58 }
 0xd84   : > { %4166 = vrot.lane.b32.xlu1 %v13388_v63, %s11454_s27 }
 0xdb0   : > { %v6778_v9 = vpop.f32.mrb[130].mxu0 }
 0xdb1   : > { %7294 = vrot.lane.b32.xlu0 %v6778_v9, %s11456_s18  ;;  %v10246_v49 = vpop.f32.mrb[131].mxu0 }
 0xdb4   : > { %v6866_v12 = vpop.f32.mrb[162].mxu1 }
 0xdb5   : > { %v10255_v6 = vpop.f32.mrb[163].mxu1  ;;  %7296 = vrot.lane.b32.xlu1 %v6866_v12, %s11456_s18 }
 0xdb8   : > { %v6964_v56 = vpop.f32.mrb[132].mxu0 }
 0xdb9   : > { %7302 = vrot.lane.b32.xlu0 %v6964_v56, %s11456_s18  ;;  %v10270_v38 = vpop.f32.mrb[133].mxu0 }
 0xdbc   : > { %v6969_v45 = vpop.f32.mrb[134].mxu0 }
 0xdbd   : > { %v6871_v34 = vpop.f32.mrb[164].mxu1  ;;  %7304 = vrot.lane.b32.xlu1 %v6969_v45, %s11456_s18  ;;  %v10273_v17 = vpop.f32.mrb[135].mxu0 }
 0xdbe   : > { %v10258_v2 = vpop.f32.mrb[165].mxu1  ;;  %7298 = vrot.lane.b32.xlu0 %v6871_v34, %s11456_s18 }
 0xdc1   : > { %v6876_v63 = vpop.f32.mrb[166].mxu1 }
 0xdc2   : > { %v10261_v7 = vpop.f32.mrb[167].mxu1  ;;  %5737 = vrot.lane.b32.xlu0 %v13911_v28, %s11455_s25  ;;  %7300 = vrot.lane.b32.xlu1 %v6876_v63, %s11456_s18 }
 0xdc6   : > { %4168 = vrot.lane.b32.xlu0 %v15351_v29, %s11454_s27  ;;  %5739 = vrot.lane.b32.xlu1 %v13917_v46, %s11455_s25 }
 0xdca   : > { %5741 = vrot.lane.b32.xlu0 %v15352_v53, %s11455_s25  ;;  %4170 = vrot.lane.b32.xlu1 %v15353_v8, %s11454_s27 }
 0xdce   : > { %5743 = vrot.lane.b32.xlu1 %v15354_v55, %s11455_s25 }
 0xdee   : > { %v7291_v62 = vpop.permute.xlu0 %7290 }
 0xdef   : > { %7345 = vst.msk [vmem:[#allocation3] sm:$0xff] %vm7344_vm10, %v7291_v62 }
 0xdf1   : > { %v6974_v28 = vpop.f32.mrb[136].mxu0 }
 0xdf2   : > { %v4165_v40 = vpop.permute.xlu0 %4164  ;;  %v7293_v23 = vpop.permute.xlu1 %7292  ;;  %7306 = vrot.lane.b32.xlu0 %v6974_v28, %s11456_s18 }
 0xdf3   : > { %4209 = vst.msk [vmem:[#allocation3 + $0x50] sm:$0xff] %vm4198_vm8, %v4165_v40  ;;  %v10276_v46 = vpop.f32.mrb[137].mxu0 }
 0xdf4   : > { %7346 = vst.msk [vmem:[#allocation3 + $0x8] sm:$0xff] %vm7344_vm10, %v7293_v23 }
 0xdf5   : > { %v7062_v16 = vpop.f32.mrb[168].mxu1 }
 0xdf6   : > { %v4167_v42 = vpop.permute.xlu1 %4166  ;;  %v10285_v22 = vpop.f32.mrb[169].mxu1  ;;  %7308 = vrot.lane.b32.xlu1 %v7062_v16, %s11456_s18  ;;  %v7363_v20 = vld [vmem:[#allocation3] sm:$0xff] }
 0xdf7   : > { %4210 = vst.msk [vmem:[#allocation3 + $0x58] sm:$0xff] %vm4198_vm8, %v4167_v42 }
 0xdf9   : > { %v7067_v24 = vpop.f32.mrb[170].mxu1 }
 0xdfa   : > { %v10288_v21 = vpop.f32.mrb[171].mxu1 }
 0xdfb   : > { %v7364_v52 = vld [vmem:[#allocation3 + $0x8] sm:$0xff] }
 0xdfc   : > { %v7385_v14 = vpack.c.bf16 %v7364_v52, %v7363_v20 }
 0xdfe   : > { %10327 = vmatmul.mubr.msk.bf16.vlgmr.msra.gmra.mrb[144].mxu0 %vm711_vm1, %v7385_v14 }
 0xdff   : > { %10330 = vmatprep.mubr.msk.bf16.mxu0 %vm11440_vm2, %v15331_v3 }
 0xe01   : > { %v7072_v35 = vpop.f32.mrb[172].mxu1  ;;  %v7160_v30 = vpop.f32.mrb[138].mxu0 }
 0xe02   : > { %v10291_v41 = vpop.f32.mrb[173].mxu1  ;;  %7314 = vrot.lane.b32.xlu0 %v7160_v30, %s11456_s18  ;;  %v10300_v43 = vpop.f32.mrb[139].mxu0 }
 0xe05   : > { %v7165_v37 = vpop.f32.mrb[140].mxu0 }
 0xe06   : > { %7310 = vrot.lane.b32.xlu0 %v7067_v24, %s11456_s18  ;;  %7316 = vrot.lane.b32.xlu1 %v7165_v37, %s11456_s18  ;;  %v10303_v15 = vpop.f32.mrb[141].mxu0 }
 0xe09   : > { %v7170_v27 = vpop.f32.mrb[142].mxu0 }
 0xe0a   : > { %4172 = vrot.lane.b32.xlu0 %v15355_v60, %s11454_s27  ;;  %7312 = vrot.lane.b32.xlu1 %v7072_v35, %s11456_s18  ;;  %v10306_v26 = vpop.f32.mrb[143].mxu0 }
 0xe0e   : > { %5745 = vrot.lane.b32.xlu0 %v15356_v36, %s11455_s25  ;;  %4174 = vrot.lane.b32.xlu1 %v15357_v47, %s11454_s27 }
 0xe12   : > { %4176 = vrot.lane.b32.xlu0 %v15358_v51, %s11454_s27  ;;  %5747 = vrot.lane.b32.xlu1 %v15359_v54, %s11455_s25 }
 0xe16   : > { %4178 = vrot.lane.b32.xlu1 %v15360_v0, %s11454_s27  ;;  %7318 = vrot.lane.b32.xlu0 %v7170_v27, %s11456_s18  ;;  %v14394_v0 = vld [vmem:[%s15363_s21] ss:$0 sm:$0xff] }
 0xe1a   : > { %5749 = vrot.lane.b32.xlu0 %v15361_v18, %s11455_s25 }
 0xe23   : > { %v7295_v61 = vpop.permute.xlu0 %7294 }
 0xe24   : > { %7347 = vst.msk [vmem:[#allocation3 + $0x10] sm:$0xff] %vm7344_vm10, %v7295_v61 }
 0xe26   : > { %v7258_v31 = vpop.f32.mrb[174].mxu1 }
 0xe27   : > { %v10315_v57 = vpop.f32.mrb[175].mxu1  ;;  %v7297_v32 = vpop.permute.xlu1 %7296  ;;  %7320 = vrot.lane.b32.xlu1 %v7258_v31, %s11456_s18 }
 0xe28   : > { %7348 = vst.msk [vmem:[#allocation3 + $0x18] sm:$0xff] %vm7344_vm10, %v7297_v32  ;;  %v11379_v32 = vld [vmem:[%s15299_s13] sm:$0xff] }
 0xe2a   : > { %v7263_v5 = vpop.f32.mrb[176].mxu1 }
 0xe2b   : > { %v10318_v50 = vpop.f32.mrb[177].mxu1  ;;  %v7303_v59 = vpop.permute.xlu0 %7302  ;;  %5751 = vrot.lane.b32.xlu1 %v15362_v25, %s11455_s25  ;;  %7322 = vrot.lane.b32.xlu0 %v7263_v5, %s11456_s18  ;;  %v7365_v10 = vld [vmem:[#allocation3 + $0x10] sm:$0xff]  ;;  %v11380_v25 = vld [vmem:[%s15299_s13 + $0x8] sm:$0xff] }
 0xe2c   : > { %7351 = vst.msk [vmem:[#allocation3 + $0x30] sm:$0xff] %vm7344_vm10, %v7303_v59 }
 0xe2e   : > { %v7268_v39 = vpop.f32.mrb[178].mxu1 }
 0xe2f   : > { %v10321_v13 = vpop.f32.mrb[179].mxu1  ;;  %v7305_v11 = vpop.permute.xlu1 %7304  ;;  %7324 = vrot.lane.b32.xlu1 %v7268_v39, %s11456_s18  ;;  %v7366_v19 = vld [vmem:[#allocation3 + $0x18] sm:$0xff] }
 0xe30   : > { %v7299_v44 = vpop.permute.xlu0 %7298  ;;  %7352 = vst.msk [vmem:[#allocation3 + $0x38] sm:$0xff] %vm7344_vm10, %v7305_v11  ;;  %v7386_v48 = vpack.c.bf16 %v7366_v19, %v7365_v10 }
 0xe31   : > { %7349 = vst.msk [vmem:[#allocation3 + $0x20] sm:$0xff] %vm7344_vm10, %v7299_v44 }
 0xe32   : > { %10331 = vmatmul.mubr.msk.bf16.gmra.mrb[148].mxu0 %vm711_vm1, %v7386_v48 }
 0xe33   : > { %10334 = vmatprep.mubr.msk.bf16.mxu0 %vm11440_vm2, %v15331_v3  ;;  %v7369_v34 = vld [vmem:[#allocation3 + $0x30] sm:$0xff] }
 0xe34   : > { %v5738_v33 = vpop.permute.xlu0 %5737  ;;  %v7301_v4 = vpop.permute.xlu1 %7300 }
 0xe35   : > { %5782 = vst.msk [vmem:[#allocation3 + $0x50] sm:$0xff] %vm5771_vm9, %v5738_v33 }
 0xe36   : > { %7350 = vst.msk [vmem:[#allocation3 + $0x28] sm:$0xff] %vm7344_vm10, %v7301_v4 }
 0xe37   : > { %v7370_v45 = vld [vmem:[#allocation3 + $0x38] sm:$0xff] }
 0xe38   : > { %v4169_v1 = vpop.permute.xlu0 %4168  ;;  %v5740_v58 = vpop.permute.xlu1 %5739  ;;  %v7367_v12 = vld [vmem:[#allocation3 + $0x20] sm:$0xff]  ;;  %v7388_v17 = vpack.c.bf16 %v7370_v45, %v7369_v34 }
 0xe39   : > { %4211 = vst.msk [vmem:[#allocation3 + $0x60] sm:$0xff] %vm4198_vm8, %v4169_v1  ;;  %v11381_v1 = vld [vmem:[%s15299_s13 + $0x10] sm:$0xff] }
 0xe3a   : > { %5783 = vst.msk [vmem:[#allocation3 + $0x58] sm:$0xff] %vm5771_vm9, %v5740_v58 }
 0xe3c   : > { %v5742_v9 = vpop.permute.xlu0 %5741  ;;  %v4171_v49 = vpop.permute.xlu1 %4170 }
 0xe3d   : > { %v7368_v6 = vld [vmem:[#allocation3 + $0x28] sm:$0xff]  ;;  %5784 = vst.msk [vmem:[#allocation3 + $0x60] sm:$0xff] %vm5771_vm9, %v5742_v9 }
 0xe3e   : > { %4212 = vst.msk [vmem:[#allocation3 + $0x68] sm:$0xff] %vm4198_vm8, %v4171_v49  ;;  %v7387_v56 = vpack.c.bf16 %v7368_v6, %v7367_v12  ;;  %v11382_v12 = vld [vmem:[%s15299_s13 + $0x18] sm:$0xff] }
 0xe40   : > { %10335 = vmatmul.mubr.msk.bf16.gmra.mrb[152].mxu0 %vm711_vm1, %v7387_v56  ;;  %v5744_v38 = vpop.permute.xlu1 %5743 }
 0xe41   : > { %10338 = vmatprep.mubr.msk.bf16.mxu0 %vm11440_vm2, %v15331_v3  ;;  %5785 = vst.msk [vmem:[#allocation3 + $0x68] sm:$0xff] %vm5771_vm9, %v5744_v38 }
 0xe48   : > { %10339 = vmatmul.mubr.msk.bf16.gmra.mrb[156].mxu0 %vm711_vm1, %v7388_v17 }
 0xe49   : > { %10342 = vmatprep.mubr.msk.bf16.mxu0 %vm11440_vm2, %v15331_v3 }
 0xe64   : > { %v7307_v2 = vpop.permute.xlu0 %7306 }
 0xe65   : > { %7353 = vst.msk [vmem:[#allocation3 + $0x40] sm:$0xff] %vm7344_vm10, %v7307_v2 }
 0xe68   : > { %v7309_v63 = vpop.permute.xlu1 %7308 }
 0xe69   : > { %7354 = vst.msk [vmem:[#allocation3 + $0x48] sm:$0xff] %vm7344_vm10, %v7309_v63 }
 0xe6c   : > { %v7371_v7 = vld [vmem:[#allocation3 + $0x40] sm:$0xff] }
 0xe70   : > { %v7372_v29 = vld [vmem:[#allocation3 + $0x48] sm:$0xff] }
 0xe71   : > { %v7389_v53 = vpack.c.bf16 %v7372_v29, %v7371_v7  ;;  %v11383_v7 = vld [vmem:[%s15299_s13 + $0x20] sm:$0xff] }
 0xe73   : > { %10343 = vmatmul.mubr.msk.bf16.gmra.mrb[160].mxu0 %vm711_vm1, %v7389_v53 }
 0xe74   : > { %v7315_v8 = vpop.permute.xlu0 %7314  ;;  %10346 = vmatprep.mubr.msk.bf16.mxu0 %vm11440_vm2, %v15331_v3 }
 0xe75   : > { %7357 = vst.msk [vmem:[#allocation3 + $0x60] sm:$0xff] %vm7344_vm10, %v7315_v8 }
 0xe78   : > { %v7311_v55 = vpop.permute.xlu0 %7310  ;;  %v7317_v62 = vpop.permute.xlu1 %7316 }
 0xe79   : > { %7355 = vst.msk [vmem:[#allocation3 + $0x50] sm:$0xff] %vm7344_vm10, %v7311_v55  ;;  %7358 = vst.msk [vmem:[#allocation3 + $0x68] sm:$0xff] %vm7344_vm10, %v7317_v62  ;;  %v11384_v62 = vld [vmem:[%s15299_s13 + $0x28] sm:$0xff] }
 0xe7c   : > { %v4173_v28 = vpop.permute.xlu0 %4172  ;;  %v7313_v40 = vpop.permute.xlu1 %7312  ;;  %v7375_v30 = vld [vmem:[#allocation3 + $0x60] sm:$0xff] }
 0xe7d   : > { %4213 = vst.msk [vmem:[#allocation3 + $0x70] sm:$0xff] %vm4198_vm8, %v4173_v28 }
 0xe7e   : > { %7356 = vst.msk [vmem:[#allocation3 + $0x58] sm:$0xff] %vm7344_vm10, %v7313_v40 }
 0xe80   : > { %v5746_v23 = vpop.permute.xlu0 %5745  ;;  %v4175_v46 = vpop.permute.xlu1 %4174  ;;  %v7373_v22 = vld [vmem:[#allocation3 + $0x50] sm:$0xff]  ;;  %v7376_v14 = vld [vmem:[#allocation3 + $0x68] sm:$0xff] }
 0xe81   : > { %5786 = vst.msk [vmem:[#allocation3 + $0x70] sm:$0xff] %vm5771_vm9, %v5746_v23  ;;  %v7391_v41 = vpack.c.bf16 %v7376_v14, %v7375_v30 }
 0xe82   : > { %4214 = vst.msk [vmem:[#allocation3 + $0x78] sm:$0xff] %vm4198_vm8, %v4175_v46 }
 0xe84   : > { %v4177_v16 = vpop.permute.xlu0 %4176  ;;  %v5748_v42 = vpop.permute.xlu1 %5747 }
 0xe85   : > { %v7374_v24 = vld [vmem:[#allocation3 + $0x58] sm:$0xff]  ;;  %4215 = vst.msk [vmem:[#allocation3 + $0x80] sm:$0xff] %vm4198_vm8, %v4177_v16 }
 0xe86   : > { %5787 = vst.msk [vmem:[#allocation3 + $0x78] sm:$0xff] %vm5771_vm9, %v5748_v42  ;;  %v7390_v20 = vpack.c.bf16 %v7374_v24, %v7373_v22  ;;  %v11385_v42 = vld [vmem:[%s15299_s13 + $0x30] sm:$0xff] }
 0xe88   : > { %10347 = vmatmul.mubr.msk.bf16.gmra.mrb[164].mxu0 %vm711_vm1, %v7390_v20  ;;  %v4179_v52 = vpop.permute.xlu1 %4178  ;;  %v7319_v21 = vpop.permute.xlu0 %7318 }
 0xe89   : > { %10350 = vmatprep.mubr.msk.bf16.mxu0 %vm11440_vm2, %v15331_v3  ;;  %4216 = vst.msk [vmem:[#allocation3 + $0x88] sm:$0xff] %vm4198_vm8, %v4179_v52 }
 0xe8a   : > { %7359 = vst.msk [vmem:[#allocation3 + $0x70] sm:$0xff] %vm7344_vm10, %v7319_v21  ;;  %v11386_v21 = vld [vmem:[%s15299_s13 + $0x38] sm:$0xff] }
 0xe8c   : > { %v5750_v35 = vpop.permute.xlu0 %5749 }
 0xe8d   : > { %5788 = vst.msk [vmem:[#allocation3 + $0x80] sm:$0xff] %vm5771_vm9, %v5750_v35 }
 0xe90   : > { %10351 = vmatmul.mubr.msk.bf16.gmra.mrb[168].mxu0 %vm711_vm1, %v7391_v41 }
 0xe91   : > { %10354 = vmatprep.mubr.msk.bf16.mxu0 %vm11440_vm2, %v15331_v3  ;;  %v7377_v60 = vld [vmem:[#allocation3 + $0x70] sm:$0xff] }
 0xe99   : > { %v7321_v43 = vpop.permute.xlu1 %7320 }
 0xe9a   : > { %7360 = vst.msk [vmem:[#allocation3 + $0x78] sm:$0xff] %vm7344_vm10, %v7321_v43 }
 0xe9d   : > { %v5752_v37 = vpop.permute.xlu1 %5751  ;;  %v7323_v15 = vpop.permute.xlu0 %7322 }
 0xe9e   : > { %5789 = vst.msk [vmem:[#allocation3 + $0x88] sm:$0xff] %vm5771_vm9, %v5752_v37 }
 0xe9f   : > { %7361 = vst.msk [vmem:[#allocation3 + $0x80] sm:$0xff] %vm7344_vm10, %v7323_v15 }
 0xea1   : > { %v7325_v27 = vpop.permute.xlu1 %7324  ;;  %v7378_v26 = vld [vmem:[#allocation3 + $0x78] sm:$0xff] }
 0xea2   : > { %7362 = vst.msk [vmem:[#allocation3 + $0x88] sm:$0xff] %vm7344_vm10, %v7325_v27  ;;  %v7392_v36 = vpack.c.bf16 %v7378_v26, %v7377_v60 }
 0xea4   : > { %10355 = vmatmul.mubr.msk.bf16.gmra.mrb[172].mxu0 %vm711_vm1, %v7392_v36 }
 0xea5   : > { %10358 = vmatprep.mubr.msk.bf16.mxu0 %vm11440_vm2, %v15331_v3 }
 0xea6   : > { %v7379_v47 = vld [vmem:[#allocation3 + $0x80] sm:$0xff] }
 0xea9   : > { %v7380_v51 = vld [vmem:[#allocation3 + $0x88] sm:$0xff] }
 0xeaa   : > { %v7393_v54 = vpack.c.bf16 %v7380_v51, %v7379_v47  ;;  %v11387_v51 = vld [vmem:[%s15299_s13 + $0x40] sm:$0xff] }
 0xeac   : > { %10359 = vmatmul.mubr.msk.bf16.gmra.mrb[176].mxu0 %vm711_vm1, %v7393_v54 }
 0xead   : > { %10418 = vmatprep.mubr.msk.bf16.mxu0 %vm11440_vm2, %v15331_v3 }
 0xed1   : > { %v7474_v18 = vpop.f32.mrb[144].mxu0 }
 0xed2   : > { %v7475_v61 = vadd.f32 %v14394_v0, %v7474_v18  ;;  %v10328_v31 = vpop.f32.mrb[145].mxu0 }
 0xed3   : > { %v7477_v57 = vpop.f32.mrb[146].mxu0  ;;  %v11388_v31 = vld [vmem:[%s15299_s13 + $0x48] sm:$0xff] }
 0xed4   : > { %v7545_v5 = vadd.f32 %v11379_v32, %v7475_v61  ;;  %v7478_v50 = vadd.f32 %v14394_v0, %v7477_v57  ;;  %v10329_v59 = vpop.f32.mrb[147].mxu0 }
 0xed6   : > { %7563 = vst.msk [vmem:[%s15299_s13] sm:$0xff] %vm711_vm1, %v7545_v5  ;;  %v7546_v39 = vadd.f32 %v11380_v25, %v7478_v50 }
 0xed8   : > { %7564 = vst.msk [vmem:[%s15299_s13 + $0x8] sm:$0xff] %vm711_vm1, %v7546_v39 }
 0xedd   : > { %v14415_v13 = vld [vmem:[%s15299_s13] sm:$0xff] }
 0xede   : > { %v7601_v11 = vsel %vm711_vm1, %v14415_v13, 0.0 }
 0xedf   : > { %7602 = vadd.xlane.f32.xlu0 %v7601_v11  ;;  %v14422_v10 = vld [vmem:[%s15299_s13 + $0x8] sm:$0xff] }
 0xee0   : > { %v7604_v19 = vsel %vm711_vm1, %v14422_v10, 0.0 }
 0xee1   : > { %7605 = vadd.xlane.f32.xlu1 %v7604_v19 }
 0xf05   : > { %v7482_v44 = vpop.f32.mrb[148].mxu0 }
 0xf06   : > { %v7483_v48 = vadd.f32 %v14394_v0, %v7482_v44  ;;  %v10332_v33 = vpop.f32.mrb[149].mxu0  ;;  %v11389_v44 = vld [vmem:[%s15299_s13 + $0x50] sm:$0xff] }
 0xf07   : > { %v7485_v4 = vpop.f32.mrb[150].mxu0 }
 0xf08   : > { %v7547_v58 = vadd.f32 %v11381_v1, %v7483_v48  ;;  %v7486_v9 = vadd.f32 %v14394_v0, %v7485_v4  ;;  %v10333_v49 = vpop.f32.mrb[151].mxu0  ;;  %v11390_v1 = vld [vmem:[%s15299_s13 + $0x58] sm:$0xff] }
 0xf0a   : > { %7565 = vst.msk [vmem:[%s15299_s13 + $0x10] sm:$0xff] %vm711_vm1, %v7547_v58  ;;  %v7548_v6 = vadd.f32 %v11382_v12, %v7486_v9 }
 0xf0c   : > { %7566 = vst.msk [vmem:[%s15299_s13 + $0x18] sm:$0xff] %vm711_vm1, %v7548_v6 }
 0xf11   : > { %v14445_v56 = vld [vmem:[%s15299_s13 + $0x10] sm:$0xff] }
 0xf12   : > { %v7607_v45 = vsel %vm711_vm1, %v14445_v56, 0.0 }
 0xf13   : > { %v7490_v38 = vpop.f32.mrb[152].mxu0  ;;  %7608 = vadd.xlane.f32.xlu0 %v7607_v45  ;;  %v14453_v2 = vld [vmem:[%s15299_s13 + $0x18] sm:$0xff] }
 0xf14   : > { %v7491_v34 = vadd.f32 %v14394_v0, %v7490_v38  ;;  %v10336_v17 = vpop.f32.mrb[153].mxu0  ;;  %v7610_v55 = vsel %vm711_vm1, %v14453_v2, 0.0  ;;  %v11391_v38 = vld [vmem:[%s15299_s13 + $0x60] sm:$0xff] }
 0xf15   : > { %v7493_v63 = vpop.f32.mrb[154].mxu0 }
 0xf16   : > { %v7549_v29 = vadd.f32 %v11383_v7, %v7491_v34  ;;  %v7494_v53 = vadd.f32 %v14394_v0, %v7493_v63  ;;  %v10337_v8 = vpop.f32.mrb[155].mxu0  ;;  %v11392_v7 = vld [vmem:[%s15299_s13 + $0x68] sm:$0xff] }
 0xf17   : > { %7611 = vadd.xlane.f32.xlu0 %v7610_v55 }
 0xf18   : > { %7567 = vst.msk [vmem:[%s15299_s13 + $0x20] sm:$0xff] %vm711_vm1, %v7549_v29  ;;  %v7550_v28 = vadd.f32 %v11384_v62, %v7494_v53 }
 0xf1a   : > { %7568 = vst.msk [vmem:[%s15299_s13 + $0x28] sm:$0xff] %vm711_vm1, %v7550_v28 }
 0xf1b   : > { %v7498_v40 = vpop.f32.mrb[156].mxu0 }
 0xf1c   : > { %v7499_v23 = vadd.f32 %v14394_v0, %v7498_v40  ;;  %v10340_v46 = vpop.f32.mrb[157].mxu0 }
 0xf1d   : > { %v7501_v16 = vpop.f32.mrb[158].mxu0 }
 0xf1e   : > { %v7551_v22 = vadd.f32 %v11385_v42, %v7499_v23  ;;  %v7502_v24 = vadd.f32 %v14394_v0, %v7501_v16  ;;  %v10341_v20 = vpop.f32.mrb[159].mxu0 }
 0xf1f   : > { %v14480_v52 = vld [vmem:[%s15299_s13 + $0x20] sm:$0xff] }
 0xf20   : > { %7569 = vst.msk [vmem:[%s15299_s13 + $0x30] sm:$0xff] %vm711_vm1, %v7551_v22  ;;  %v7552_v14 = vadd.f32 %v11386_v21, %v7502_v24  ;;  %v7613_v35 = vsel %vm711_vm1, %v14480_v52, 0.0  ;;  %v11393_v24 = vld [vmem:[%s15299_s13 + $0x70] sm:$0xff] }
 0xf21   : > { %7614 = vadd.xlane.f32.xlu0 %v7613_v35  ;;  %v14494_v30 = vld [vmem:[%s15299_s13 + $0x28] sm:$0xff]  ;;  %v11394_v35 = vld [vmem:[%s15299_s13 + $0x78] sm:$0xff] }
 0xf22   : > { %7570 = vst.msk [vmem:[%s15299_s13 + $0x38] sm:$0xff] %vm711_vm1, %v7552_v14  ;;  %v7616_v41 = vsel %vm711_vm1, %v14494_v30, 0.0 }
 0xf23   : > { %7617 = vadd.xlane.f32.xlu1 %v7616_v41 }
 0xf27   : > { %v14505_v43 = vld [vmem:[%s15299_s13 + $0x30] sm:$0xff] }
 0xf28   : > { %v7619_v37 = vsel %vm711_vm1, %v14505_v43, 0.0 }
 0xf29   : > { %7620 = vadd.xlane.f32.xlu0 %v7619_v37  ;;  %v14512_v15 = vld [vmem:[%s15299_s13 + $0x38] sm:$0xff] }
 0xf2a   : > { %v7622_v27 = vsel %vm711_vm1, %v14512_v15, 0.0 }
 0xf2b   : > { %7623 = vadd.xlane.f32.xlu1 %v7622_v27 }
 0xf46   : > { %v7506_v60 = vpop.f32.mrb[160].mxu0 }
 0xf47   : > { %v7507_v26 = vadd.f32 %v14394_v0, %v7506_v60  ;;  %v10344_v36 = vpop.f32.mrb[161].mxu0 }
 0xf48   : > { %v7509_v47 = vpop.f32.mrb[162].mxu0 }
 0xf49   : > { %v7553_v54 = vadd.f32 %v11387_v51, %v7507_v26  ;;  %v7510_v18 = vadd.f32 %v14394_v0, %v7509_v47  ;;  %v10345_v61 = vpop.f32.mrb[163].mxu0  ;;  %v11395_v47 = vld [vmem:[%s15299_s13 + $0x80] sm:$0xff] }
 0xf4b   : > { %7571 = vst.msk [vmem:[%s15299_s13 + $0x40] sm:$0xff] %vm711_vm1, %v7553_v54  ;;  %v7554_v57 = vadd.f32 %v11388_v31, %v7510_v18 }
 0xf4d   : > { %7572 = vst.msk [vmem:[%s15299_s13 + $0x48] sm:$0xff] %vm711_vm1, %v7554_v57 }
 0xf52   : > { %v14535_v32 = vld [vmem:[%s15299_s13 + $0x40] sm:$0xff] }
 0xf53   : > { %v7625_v5 = vsel %vm711_vm1, %v14535_v32, 0.0 }
 0xf54   : > { %7626 = vadd.xlane.f32.xlu0 %v7625_v5  ;;  %v14542_v50 = vld [vmem:[%s15299_s13 + $0x48] sm:$0xff] }
 0xf55   : > { %v7628_v59 = vsel %vm711_vm1, %v14542_v50, 0.0  ;;  %v11396_v5 = vld [vmem:[%s15299_s13 + $0x88] sm:$0xff] }
 0xf56   : > { %7629 = vadd.xlane.f32.xlu1 %v7628_v59 }
 0xf5b   : > { %v7514_v25 = vpop.f32.mrb[164].mxu0 }
 0xf5c   : > { %v7515_v39 = vadd.f32 %v14394_v0, %v7514_v25  ;;  %v10348_v11 = vpop.f32.mrb[165].mxu0 }
 0xf5d   : > { %v7517_v19 = vpop.f32.mrb[166].mxu0 }
 0xf5e   : > { %v7555_v48 = vadd.f32 %v11389_v44, %v7515_v39  ;;  %v7518_v33 = vadd.f32 %v14394_v0, %v7517_v19  ;;  %v10349_v4 = vpop.f32.mrb[167].mxu0 }
 0xf60   : > { %7573 = vst.msk [vmem:[%s15299_s13 + $0x50] sm:$0xff] %vm711_vm1, %v7555_v48  ;;  %v7556_v58 = vadd.f32 %v11390_v1, %v7518_v33 }
 0xf62   : > { %7574 = vst.msk [vmem:[%s15299_s13 + $0x58] sm:$0xff] %vm711_vm1, %v7556_v58 }
 0xf63   : > { %v7522_v9 = vpop.f32.mrb[168].mxu0 }
 0xf64   : > { %v7523_v49 = vadd.f32 %v14394_v0, %v7522_v9  ;;  %v10352_v12 = vpop.f32.mrb[169].mxu0 }
 0xf65   : > { %v7525_v6 = vpop.f32.mrb[170].mxu0 }
 0xf66   : > { %v7557_v45 = vadd.f32 %v11391_v38, %v7523_v49  ;;  %v7526_v34 = vadd.f32 %v14394_v0, %v7525_v6  ;;  %v10353_v17 = vpop.f32.mrb[171].mxu0 }
 0xf67   : > { %v14570_v63 = vld [vmem:[%s15299_s13 + $0x50] sm:$0xff] }
 0xf68   : > { %7575 = vst.msk [vmem:[%s15299_s13 + $0x60] sm:$0xff] %vm711_vm1, %v7557_v45  ;;  %v7558_v29 = vadd.f32 %v11392_v7, %v7526_v34  ;;  %v7631_v53 = vsel %vm711_vm1, %v14570_v63, 0.0 }
 0xf69   : > { %7632 = vadd.xlane.f32.xlu0 %v7631_v53  ;;  %v14584_v8 = vld [vmem:[%s15299_s13 + $0x58] sm:$0xff] }
 0xf6a   : > { %7576 = vst.msk [vmem:[%s15299_s13 + $0x68] sm:$0xff] %vm711_vm1, %v7558_v29  ;;  %v7634_v55 = vsel %vm711_vm1, %v14584_v8, 0.0 }
 0xf6b   : > { %7635 = vadd.xlane.f32.xlu1 %v7634_v55 }
 0xf6c   : > { %v7603_v26 = vpop.xlane.xlu0 %7602 }
 0xf6d   : > { %v7655_v57 = vmul.f32 0.03125, %v7603_v26 }
 0xf6e   : > { %v7606_v61 = vpop.xlane.xlu1 %7605 }
 0xf6f   : > { %v14595_v62 = vld [vmem:[%s15299_s13 + $0x60] sm:$0xff]  ;;  %v7656_v39 = vmul.f32 0.03125, %v7606_v61  ;;  %v14653_v19 = vsub.f32 %v14415_v13, %v7655_v57 }
 0xf70   : > { %v7637_v28 = vsel %vm711_vm1, %v14595_v62, 0.0 }
 0xf71   : > { %7638 = vadd.xlane.f32.xlu0 %v7637_v28  ;;  %v14602_v40 = vld [vmem:[%s15299_s13 + $0x68] sm:$0xff]  ;;  %v14656_v44 = vsub.f32 %v14422_v10, %v7656_v39  ;;  %v7691_v4 = vmul.f32 %v14653_v19, %v14653_v19 }
 0xf72   : > { %v7640_v23 = vsel %vm711_vm1, %v14602_v40, 0.0 }
 0xf73   : > { %7641 = vadd.xlane.f32.xlu1 %v7640_v23  ;;  %v7692_v1 = vmul.f32 %v14656_v44, %v14656_v44  ;;  %v7709_v58 = vsel %vm711_vm1, %v7691_v4, 0.0 }
 0xf75   : > { %v7712_v9 = vsel %vm711_vm1, %v7692_v1, 0.0 }
 0xf77   : > { %v7530_v46 = vpop.f32.mrb[172].mxu0 }
 0xf78   : > { %v7531_v16 = vadd.f32 %v14394_v0, %v7530_v46  ;;  %v10356_v42 = vpop.f32.mrb[173].mxu0 }
 0xf79   : > { %v7533_v22 = vpop.f32.mrb[174].mxu0  ;;  %v10916_v42 = vld [vmem:[%s11585_s3] sm:$0xff]  }
 0xf7a   : > { %v7559_v20 = vadd.f32 %v11393_v24, %v7531_v16  ;;  %v7534_v21 = vadd.f32 %v14394_v0, %v7533_v22  ;;  %v10357_v14 = vpop.f32.mrb[175].mxu0  ;;  %10363 = vmatpush3.bf16.msra.mxu1 %v10916_v42 }
 0xf7b   : > { %10364 = vmatprep.subr.bf16.mxu1 %v15331_v3 }
 0xf7c   : > { %7577 = vst.msk [vmem:[%s15299_s13 + $0x70] sm:$0xff] %vm711_vm1, %v7559_v20  ;;  %v7560_v41 = vadd.f32 %v11394_v35, %v7534_v21  ;;  %v10917_v21 = vld [vmem:[%s11585_s3 + $0x8] sm:$0xff]  }
 0xf7e   : > { %7578 = vst.msk [vmem:[%s15299_s13 + $0x78] sm:$0xff] %vm711_vm1, %v7560_v41  ;;  %10365 = vmatpush3.bf16.msra.mxu1 %v10917_v21 }
 0xf7f   : > { %v7538_v37 = vpop.f32.mrb[176].mxu0 }
 0xf80   : > { %v7539_v27 = vadd.f32 %v14394_v0, %v7538_v37  ;;  %v10360_v60 = vpop.f32.mrb[177].mxu0 }
 0xf81   : > { %v7541_v36 = vpop.f32.mrb[178].mxu0 }
 0xf82   : > { %v7561_v51 = vadd.f32 %v11395_v47, %v7539_v27  ;;  %v7542_v54 = vadd.f32 %v14394_v0, %v7541_v36  ;;  %v10361_v18 = vpop.f32.mrb[179].mxu0 }
 0xf83   : > { %v14630_v31 = vld [vmem:[%s15299_s13 + $0x70] sm:$0xff] }
 0xf84   : > { %7579 = vst.msk [vmem:[%s15299_s13 + $0x80] sm:$0xff] %vm711_vm1, %v7561_v51  ;;  %v7562_v59 = vadd.f32 %v11396_v5, %v7542_v54  ;;  %v7643_v0 = vsel %vm711_vm1, %v14630_v31, 0.0 }
 0xf85   : > { %7644 = vadd.xlane.f32.xlu0 %v7643_v0  ;;  %v14644_v25 = vld [vmem:[%s15299_s13 + $0x78] sm:$0xff] }
 0xf86   : > { %7580 = vst.msk [vmem:[%s15299_s13 + $0x88] sm:$0xff] %vm711_vm1, %v7562_v59  ;;  %v7646_v11 = vsel %vm711_vm1, %v14644_v25, 0.0 }
 0xf87   : > { %7647 = vadd.xlane.f32.xlu1 %v7646_v11 }
 0xf8b   : > { %v14661_v48 = vld [vmem:[%s15299_s13 + $0x80] sm:$0xff] }
 0xf8c   : > { %v7649_v33 = vsel %vm711_vm1, %v14661_v48, 0.0 }
 0xf8d   : > { %7650 = vadd.xlane.f32.xlu0 %v7649_v33  ;;  %v14670_v13 = vld [vmem:[%s15299_s13 + $0x88] sm:$0xff] }
 0xf8e   : > { %v7652_v10 = vsel %vm711_vm1, %v14670_v13, 0.0 }
 0xf8f   : > { %7653 = vadd.xlane.f32.xlu1 %v7652_v10 }
 0xf91   : > { %7710 = vadd.xlane.f32.xlu0 %v7709_v58 }
 0xf93   : > { %7713 = vadd.xlane.f32.xlu1 %v7712_v9 }
 0xfa0   : > { %v7609_v49 = vpop.xlane.xlu0 %7608 }
 0xfa1   : > { %v7657_v12 = vmul.f32 0.03125, %v7609_v49 }
 0xfa3   : > { %v14679_v6 = vsub.f32 %v14445_v56, %v7657_v12 }
 0xfa4   : > { %v7612_v38 = vpop.xlane.xlu0 %7611 }
 0xfa5   : > { %v7658_v45 = vmul.f32 0.03125, %v7612_v38  ;;  %v7693_v34 = vmul.f32 %v14679_v6, %v14679_v6 }
 0xfa7   : > { %v14684_v17 = vsub.f32 %v14453_v2, %v7658_v45  ;;  %v7715_v7 = vsel %vm711_vm1, %v7693_v34, 0.0 }
 0xfa8   : > { %7716 = vadd.xlane.f32.xlu0 %v7715_v7 }
 0xfa9   : > { %v7694_v29 = vmul.f32 %v14684_v17, %v14684_v17 }
 0xfab   : > { %v7718_v53 = vsel %vm711_vm1, %v7694_v29, 0.0 }
 0xfac   : > { %7719 = vadd.xlane.f32.xlu1 %v7718_v53 }
 0xfae   : > { %v7615_v56 = vpop.xlane.xlu0 %7614 }
 0xfaf   : > { %v7659_v55 = vmul.f32 0.03125, %v7615_v56 }
 0xfb0   : > { %v7618_v28 = vpop.xlane.xlu1 %7617 }
 0xfb1   : > { %v14691_v23 = vsub.f32 %v14480_v52, %v7659_v55  ;;  %v7660_v46 = vmul.f32 0.03125, %v7618_v28 }
 0xfb3   : > { %v14694_v2 = vsub.f32 %v14494_v30, %v7660_v46  ;;  %v7695_v16 = vmul.f32 %v14691_v23, %v14691_v23 }
 0xfb5   : > { %v7721_v22 = vsel %vm711_vm1, %v7695_v16, 0.0  ;;  %v7696_v24 = vmul.f32 %v14694_v2, %v14694_v2 }
 0xfb6   : > { %v7621_v20 = vpop.xlane.xlu0 %7620  ;;  %7722 = vadd.xlane.f32.xlu0 %v7721_v22 }
 0xfb7   : > { %v7661_v14 = vmul.f32 0.03125, %v7621_v20  ;;  %v7724_v52 = vsel %vm711_vm1, %v7696_v24, 0.0 }
 0xfb8   : > { %v7624_v30 = vpop.xlane.xlu1 %7623  ;;  %7725 = vadd.xlane.f32.xlu1 %v7724_v52 }
 0xfb9   : > { %v14706_v35 = vsub.f32 %v14505_v43, %v7661_v14  ;;  %v7662_v41 = vmul.f32 0.03125, %v7624_v30 }
 0xfbb   : > { %v14709_v37 = vsub.f32 %v14512_v15, %v7662_v41  ;;  %v7697_v27 = vmul.f32 %v14706_v35, %v14706_v35 }
 0xfbd   : > { %v7727_v60 = vsel %vm711_vm1, %v7697_v27, 0.0  ;;  %v7698_v26 = vmul.f32 %v14709_v37, %v14709_v37 }
 0xfbe   : > { %7728 = vadd.xlane.f32.xlu0 %v7727_v60 }
 0xfbf   : > { %v7730_v36 = vsel %vm711_vm1, %v7698_v26, 0.0 }
 0xfc0   : > { %7731 = vadd.xlane.f32.xlu1 %v7730_v36 }
 0xfe1   : > { %v7627_v47 = vpop.xlane.xlu0 %7626 }
 0xfe2   : > { %v7663_v43 = vmul.f32 0.03125, %v7627_v47 }
 0xfe3   : > { %v7630_v51 = vpop.xlane.xlu1 %7629 }
 0xfe4   : > { %v14718_v54 = vsub.f32 %v14535_v32, %v7663_v43  ;;  %v7664_v15 = vmul.f32 0.03125, %v7630_v51  ;;  %v14782_v51 = vld [vmem:[%s620_s2] ss:$0 sm:$0xff] }
 0xfe6   : > { %v14721_v18 = vsub.f32 %v14542_v50, %v7664_v15  ;;  %v7699_v61 = vmul.f32 %v14718_v54, %v14718_v54 }
 0xfe8   : > { %v7733_v57 = vsel %vm711_vm1, %v7699_v61, 0.0  ;;  %v7700_v5 = vmul.f32 %v14721_v18, %v14721_v18 }
 0xfe9   : > { %7734 = vadd.xlane.f32.xlu0 %v7733_v57 }
 0xfea   : > { %v7736_v59 = vsel %vm711_vm1, %v7700_v5, 0.0 }
 0xfeb   : > { %7737 = vadd.xlane.f32.xlu1 %v7736_v59  ;;  %v14792_v59 = vld [vmem:[%s623_s22] ss:$0 sm:$0xff] }
 0xff6   : > { %v7633_v0 = vpop.xlane.xlu0 %7632 }
 0xff7   : > { %v7665_v39 = vmul.f32 0.03125, %v7633_v0 }
 0xff8   : > { %v7636_v32 = vpop.xlane.xlu1 %7635 }
 0xff9   : > { %v14730_v11 = vsub.f32 %v14570_v63, %v7665_v39  ;;  %v7666_v50 = vmul.f32 0.03125, %v7636_v32 }
 0xffb   : > { %v14733_v33 = vsub.f32 %v14584_v8, %v7666_v50  ;;  %v7701_v4 = vmul.f32 %v14730_v11, %v14730_v11 }
 0xffd   : > { %v7739_v10 = vsel %vm711_vm1, %v7701_v4, 0.0  ;;  %v7702_v1 = vmul.f32 %v14733_v33, %v14733_v33 }
 0xffe   : > { %v7639_v58 = vpop.xlane.xlu0 %7638  ;;  %7740 = vadd.xlane.f32.xlu0 %v7739_v10 }
 0xfff   : > { %v7667_v9 = vmul.f32 0.03125, %v7639_v58  ;;  %v7742_v49 = vsel %vm711_vm1, %v7702_v1, 0.0 }
0x1000   : > { %v7642_v12 = vpop.xlane.xlu1 %7641  ;;  %7743 = vadd.xlane.f32.xlu1 %v7742_v49 }
0x1001   : > { %v14742_v63 = vsub.f32 %v14595_v62, %v7667_v9  ;;  %v7668_v8 = vmul.f32 0.03125, %v7642_v12 }
0x1003   : > { %v14745_v38 = vsub.f32 %v14602_v40, %v7668_v8  ;;  %v7703_v45 = vmul.f32 %v14742_v63, %v14742_v63 }
0x1005   : > { %v7745_v34 = vsel %vm711_vm1, %v7703_v45, 0.0  ;;  %v7704_v7 = vmul.f32 %v14745_v38, %v14745_v38 }
0x1006   : > { %7746 = vadd.xlane.f32.xlu0 %v7745_v34 }
0x1007   : > { %v7748_v29 = vsel %vm711_vm1, %v7704_v7, 0.0 }
0x1008   : > { %7749 = vadd.xlane.f32.xlu1 %v7748_v29 }
0x1012   : > { %v7645_v53 = vpop.xlane.xlu0 %7644 }
0x1013   : > { %v7669_v56 = vmul.f32 0.03125, %v7645_v53 }
0x1014   : > { %v7648_v62 = vpop.xlane.xlu1 %7647 }
0x1015   : > { %v14754_v55 = vsub.f32 %v14630_v31, %v7669_v56  ;;  %v7670_v40 = vmul.f32 0.03125, %v7648_v62 }
0x1017   : > { %v14757_v28 = vsub.f32 %v14644_v25, %v7670_v40  ;;  %v7705_v46 = vmul.f32 %v14754_v55, %v14754_v55 }
0x1019   : > { %v7751_v16 = vsel %vm711_vm1, %v7705_v46, 0.0  ;;  %v7706_v42 = vmul.f32 %v14757_v28, %v14757_v28 }
0x101a   : > { %7752 = vadd.xlane.f32.xlu0 %v7751_v16  ;;  %v7651_v22 = vpop.xlane.xlu0 %7650 }
0x101b   : > { %v7671_v24 = vmul.f32 0.03125, %v7651_v22  ;;  %v7754_v20 = vsel %vm711_vm1, %v7706_v42, 0.0 }
0x101c   : > { %7755 = vadd.xlane.f32.xlu1 %v7754_v20  ;;  %v7654_v31 = vpop.xlane.xlu1 %7653 }
0x101d   : > { %v14766_v21 = vsub.f32 %v14661_v48, %v7671_v24  ;;  %v7672_v25 = vmul.f32 0.03125, %v7654_v31 }
0x101e   : > { %v7711_v14 = vpop.xlane.xlu0 %7710 }
0x101f   : > { %v14769_v52 = vsub.f32 %v14670_v13, %v7672_v25  ;;  %v7763_v30 = vmul.f32 0.03125, %v7711_v14  ;;  %v7707_v41 = vmul.f32 %v14766_v21, %v14766_v21 }
0x1020   : > { %v7714_v27 = vpop.xlane.xlu1 %7713 }
0x1021   : > { %v7781_v60 = vadd.f32 1e-05, %v7763_v30  ;;  %v7764_v26 = vmul.f32 0.03125, %v7714_v27  ;;  %v7757_v36 = vsel %vm711_vm1, %v7707_v41, 0.0  ;;  %v7708_v48 = vmul.f32 %v14769_v52, %v14769_v52 }
0x1022   : > { %7758 = vadd.xlane.f32.xlu0 %v7757_v36 }
0x1023   : > { %11250 = vrsqrt.f32 %v7781_v60  ;;  %v7782_v47 = vadd.f32 1e-05, %v7764_v26  ;;  %v7760_v43 = vsel %vm711_vm1, %v7708_v48, 0.0 }
0x1024   : > { %7761 = vadd.xlane.f32.xlu1 %v7760_v43 }
0x1025   : > { %11252 = vrsqrt.f32 %v7782_v47 }
0x102d   : > { %v11251_v13 = vpop.eup %11250 }
0x102e   : > { %v7817_v15 = vmul.f32 %v11251_v13, %v14653_v19 }
0x102f   : > { %v11253_v61 = vpop.eup %11252 }
0x1030   : > { %v7841_v57 = vmul.f32 %v14782_v51, %v7817_v15  ;;  %v7818_v5 = vmul.f32 %v11253_v61, %v14656_v44 }
0x1032   : > { %v7842_v0 = vmul.f32 %v14782_v51, %v7818_v5  ;;  %v7865_v39 = vadd.f32 %v14792_v59, %v7841_v57 }
0x1034   : > { %v7866_v32 = vadd.f32 %v14792_v59, %v7842_v0 }
0x1035   : > { %v7717_v50 = vpop.xlane.xlu0 %7716 }
0x1036   : > { %v7765_v4 = vmul.f32 0.03125, %v7717_v50  ;;  %v7887_v19 = vpack.c.bf16 %v7866_v32, %v7865_v39 }
0x1038   : > { %v7783_v10 = vadd.f32 1e-05, %v7765_v4  ;;  %10367 = vmatmul.mubr.msk.bf16.vlgmr.msra.gmra.mrb[180].mxu1 %vm711_vm1, %v7887_v19 }
0x1039   : > { %v7720_v1 = vpop.xlane.xlu1 %7719  ;;  %10370 = vmatprep.mubr.msk.bf16.mxu1 %vm11440_vm2, %v15331_v3 }
0x103a   : > { %11254 = vrsqrt.f32 %v7783_v10  ;;  %v7766_v44 = vmul.f32 0.03125, %v7720_v1 }
0x103c   : > { %v7784_v58 = vadd.f32 1e-05, %v7766_v44 }
0x103e   : > { %11256 = vrsqrt.f32 %v7784_v58 }
0x1043   : > { %v7723_v9 = vpop.xlane.xlu0 %7722 }
0x1044   : > { %v7767_v49 = vmul.f32 0.03125, %v7723_v9  ;;  %v11255_v12 = vpop.eup %11254 }
0x1045   : > { %v7726_v8 = vpop.xlane.xlu1 %7725  ;;  %v7819_v45 = vmul.f32 %v11255_v12, %v14679_v6 }
0x1046   : > { %v7785_v34 = vadd.f32 1e-05, %v7767_v49  ;;  %v7768_v7 = vmul.f32 0.03125, %v7726_v8 }
0x1047   : > { %v7843_v62 = vmul.f32 %v14782_v51, %v7819_v45 }
0x1048   : > { %11258 = vrsqrt.f32 %v7785_v34  ;;  %v7786_v29 = vadd.f32 1e-05, %v7768_v7  ;;  %v11257_v53 = vpop.eup %11256 }
0x1049   : > { %v7820_v56 = vmul.f32 %v11257_v53, %v14684_v17  ;;  %v7867_v20 = vadd.f32 %v14792_v59, %v7843_v62 }
0x104a   : > { %11260 = vrsqrt.f32 %v7786_v29 }
0x104b   : > { %v7729_v40 = vpop.xlane.xlu0 %7728  ;;  %v7844_v16 = vmul.f32 %v14782_v51, %v7820_v56 }
0x104c   : > { %v7769_v46 = vmul.f32 0.03125, %v7729_v40 }
0x104d   : > { %v7732_v42 = vpop.xlane.xlu1 %7731  ;;  %v7868_v6 = vadd.f32 %v14792_v59, %v7844_v16 }
0x104e   : > { %v7787_v22 = vadd.f32 1e-05, %v7769_v46  ;;  %v7770_v24 = vmul.f32 0.03125, %v7732_v42 }
0x104f   : > { %v7888_v25 = vpack.c.bf16 %v7868_v6, %v7867_v20 }
0x1050   : > { %11262 = vrsqrt.f32 %v7787_v22  ;;  %v7788_v31 = vadd.f32 1e-05, %v7770_v24 }
0x1051   : > { %10371 = vmatmul.mubr.msk.bf16.gmra.mrb[184].mxu1 %vm711_vm1, %v7888_v25 }
0x1052   : > { %v11259_v14 = vpop.eup %11258  ;;  %11264 = vrsqrt.f32 %v7788_v31  ;;  %10374 = vmatprep.mubr.msk.bf16.mxu1 %vm11440_vm2, %v15331_v3 }
0x1053   : > { %v7821_v17 = vmul.f32 %v11259_v14, %v14691_v23 }
0x1054   : > { %v11261_v30 = vpop.eup %11260 }
0x1055   : > { %v7822_v41 = vmul.f32 %v11261_v30, %v14694_v2  ;;  %v7845_v27 = vmul.f32 %v14782_v51, %v7821_v17 }
0x1057   : > { %v7846_v60 = vmul.f32 %v14782_v51, %v7822_v41  ;;  %v7869_v26 = vadd.f32 %v14792_v59, %v7845_v27 }
0x1059   : > { %v7870_v36 = vadd.f32 %v14792_v59, %v7846_v60 }
0x105a   : > { %v11263_v48 = vpop.eup %11262 }
0x105b   : > { %v7823_v47 = vmul.f32 %v11263_v48, %v14706_v35  ;;  %v7889_v43 = vpack.c.bf16 %v7870_v36, %v7869_v26 }
0x105c   : > { %v11265_v13 = vpop.eup %11264 }
0x105d   : > { %v7824_v23 = vmul.f32 %v11265_v13, %v14709_v37  ;;  %10375 = vmatmul.mubr.msk.bf16.gmra.mrb[188].mxu1 %vm711_vm1, %v7889_v43  ;;  %v7847_v15 = vmul.f32 %v14782_v51, %v7823_v47  ;;  %v10919_v47 = vld [vmem:[%s11595_s16 + $0x8] sm:$0xff]  }
0x105e   : > { %10378 = vmatprep.mubr.msk.bf16.mxu1 %vm11440_vm2, %v15331_v3 }
0x105f   : > { %v7848_v2 = vmul.f32 %v14782_v51, %v7824_v23  ;;  %v7871_v61 = vadd.f32 %v14792_v59, %v7847_v15 }
0x1061   : > { %v7872_v57 = vadd.f32 %v14792_v59, %v7848_v2  ;;  %v10920_v2 = vld [vmem:[%s11595_s16 + $0x10] sm:$0xff]  }
0x1063   : > { %v7890_v5 = vpack.c.bf16 %v7872_v57, %v7871_v61 }
0x1065   : > { %10379 = vmatmul.mubr.msk.bf16.gmra.mrb[192].mxu1 %vm711_vm1, %v7890_v5 }
0x1066   : > { %10382 = vmatprep.mubr.msk.bf16.mxu1 %vm11440_vm2, %v15331_v3 }
0x1076   : > { %v7735_v35 = vpop.xlane.xlu0 %7734 }
0x1077   : > { %v7771_v37 = vmul.f32 0.03125, %v7735_v35  ;;  %v10921_v35 = vld [vmem:[%s11595_s16 + $0x18] sm:$0xff]  }
0x1078   : > { %v7738_v0 = vpop.xlane.xlu1 %7737 }
0x1079   : > { %v7789_v39 = vadd.f32 1e-05, %v7771_v37  ;;  %v7772_v32 = vmul.f32 0.03125, %v7738_v0 }
0x107b   : > { %11266 = vrsqrt.f32 %v7789_v39  ;;  %v7790_v50 = vadd.f32 1e-05, %v7772_v32  ;;  %v10922_v32 = vld [vmem:[%s11595_s16 + $0x20] sm:$0xff]  }
0x107d   : > { %11268 = vrsqrt.f32 %v7790_v50 }
0x1085   : > { %v11267_v4 = vpop.eup %11266 }
0x1086   : > { %v7825_v19 = vmul.f32 %v11267_v4, %v14718_v54 }
0x1087   : > { %v11269_v10 = vpop.eup %11268 }
0x1088   : > { %v7826_v1 = vmul.f32 %v11269_v10, %v14721_v18  ;;  %v7849_v44 = vmul.f32 %v14782_v51, %v7825_v19 }
0x108a   : > { %v7850_v49 = vmul.f32 %v14782_v51, %v7826_v1  ;;  %v7873_v34 = vadd.f32 %v14792_v59, %v7849_v44  ;;  %v10923_v44 = vld [vmem:[%s11595_s16 + $0x28] sm:$0xff]  }
0x108b   : > { %v7741_v58 = vpop.xlane.xlu0 %7740 }
0x108c   : > { %v7773_v9 = vmul.f32 0.03125, %v7741_v58  ;;  %v7874_v7 = vadd.f32 %v14792_v59, %v7850_v49 }
0x108d   : > { %v7744_v12 = vpop.xlane.xlu1 %7743 }
0x108e   : > { %v7791_v8 = vadd.f32 1e-05, %v7773_v9  ;;  %v7774_v45 = vmul.f32 0.03125, %v7744_v12  ;;  %v7891_v53 = vpack.c.bf16 %v7874_v7, %v7873_v34 }
0x1090   : > { %11270 = vrsqrt.f32 %v7791_v8  ;;  %v7792_v29 = vadd.f32 1e-05, %v7774_v45  ;;  %10383 = vmatmul.mubr.msk.bf16.gmra.mrb[196].mxu1 %vm711_vm1, %v7891_v53  ;;  %v10924_v45 = vld [vmem:[%s11595_s16 + $0x30] sm:$0xff]   ;;  %v10925_v53 = vld [vmem:[%s11595_s16 + $0x38] sm:$0xff]  }
0x1091   : > { %10386 = vmatprep.mubr.msk.bf16.mxu1 %vm11440_vm2, %v15331_v3 }
0x1092   : > { %11272 = vrsqrt.f32 %v7792_v29 }
0x1093   : > { %v7747_v54 = vpop.xlane.xlu0 %7746 }
0x1094   : > { %v7775_v18 = vmul.f32 0.03125, %v7747_v54 }
0x1095   : > { %v7750_v56 = vpop.xlane.xlu1 %7749 }
0x1096   : > { %v7793_v62 = vadd.f32 1e-05, %v7775_v18  ;;  %v7776_v40 = vmul.f32 0.03125, %v7750_v56 }
0x1098   : > { %11274 = vrsqrt.f32 %v7793_v62  ;;  %v7794_v46 = vadd.f32 1e-05, %v7776_v40 }
0x109a   : > { %v11271_v16 = vpop.eup %11270  ;;  %11276 = vrsqrt.f32 %v7794_v46 }
0x109b   : > { %v7827_v42 = vmul.f32 %v11271_v16, %v14730_v11 }
0x109c   : > { %v11273_v22 = vpop.eup %11272 }
0x109d   : > { %v7828_v24 = vmul.f32 %v11273_v22, %v14733_v33  ;;  %v7851_v20 = vmul.f32 %v14782_v51, %v7827_v42  ;;  %v10918_v33 = vld [vmem:[%s11595_s16] sm:$0xff]  }
0x109e   : > { %10403 = vmatpush3.bf16.msra.mxu0 %v10918_v33 }
0x109f   : > { %v7852_v6 = vmul.f32 %v14782_v51, %v7828_v24  ;;  %v7875_v31 = vadd.f32 %v14792_v59, %v7851_v20  ;;  %10404 = vmatprep.subr.bf16.mxu0 %v15331_v3 }
0x10a1   : > { %v7876_v25 = vadd.f32 %v14792_v59, %v7852_v6 }
0x10a2   : > { %v11275_v14 = vpop.eup %11274  ;;  %10405 = vmatpush3.bf16.msra.mxu0 %v10919_v47 }
0x10a3   : > { %v7829_v17 = vmul.f32 %v11275_v14, %v14742_v63  ;;  %v7892_v30 = vpack.c.bf16 %v7876_v25, %v7875_v31  ;;  %10406 = vmatprep.subr.bf16.mxu0 %v15331_v3 }
0x10a4   : > { %v11277_v41 = vpop.eup %11276 }
0x10a5   : > { %v7830_v27 = vmul.f32 %v11277_v41, %v14745_v38  ;;  %10387 = vmatmul.mubr.msk.bf16.gmra.mrb[200].mxu1 %vm711_vm1, %v7892_v30  ;;  %v7853_v11 = vmul.f32 %v14782_v51, %v7829_v17 }
0x10a6   : > { %10390 = vmatprep.mubr.msk.bf16.mxu1 %vm11440_vm2, %v15331_v3  ;;  %10407 = vmatpush3.bf16.msra.mxu0 %v10920_v2 }
0x10a7   : > { %v7854_v60 = vmul.f32 %v14782_v51, %v7830_v27  ;;  %v7753_v26 = vpop.xlane.xlu0 %7752  ;;  %v7877_v63 = vadd.f32 %v14792_v59, %v7853_v11  ;;  %10408 = vmatprep.subr.bf16.mxu0 %v15331_v3 }
0x10a8   : > { %v7777_v36 = vmul.f32 0.03125, %v7753_v26 }
0x10a9   : > { %v7878_v48 = vadd.f32 %v14792_v59, %v7854_v60  ;;  %v7756_v38 = vpop.xlane.xlu1 %7755 }
0x10aa   : > { %v7795_v43 = vadd.f32 1e-05, %v7777_v36  ;;  %v7778_v13 = vmul.f32 0.03125, %v7756_v38  ;;  %10409 = vmatpush3.bf16.msra.mxu0 %v10921_v35 }
0x10ab   : > { %v7893_v23 = vpack.c.bf16 %v7878_v48, %v7877_v63  ;;  %10410 = vmatprep.subr.bf16.mxu0 %v15331_v3 }
0x10ac   : > { %11278 = vrsqrt.f32 %v7795_v43  ;;  %v7796_v15 = vadd.f32 1e-05, %v7778_v13 }
0x10ad   : > { %10391 = vmatmul.mubr.msk.bf16.gmra.mrb[204].mxu1 %vm711_vm1, %v7893_v23 }
0x10ae   : > { %10394 = vmatprep.mubr.msk.bf16.mxu1 %vm11440_vm2, %v15331_v3  ;;  %11280 = vrsqrt.f32 %v7796_v15  ;;  %10411 = vmatpush3.bf16.msra.mxu0 %v10922_v32 }
0x10af   : > { %v7759_v61 = vpop.xlane.xlu0 %7758  ;;  %10412 = vmatprep.subr.bf16.mxu0 %v15331_v3 }
0x10b0   : > { %v7779_v57 = vmul.f32 0.03125, %v7759_v61 }
0x10b1   : > { %v7762_v5 = vpop.xlane.xlu1 %7761 }
0x10b2   : > { %v7797_v37 = vadd.f32 1e-05, %v7779_v57  ;;  %v7780_v0 = vmul.f32 0.03125, %v7762_v5  ;;  %10413 = vmatpush3.bf16.msra.mxu0 %v10923_v44 }
0x10b3   : > { %10414 = vmatprep.subr.bf16.mxu0 %v15331_v3 }
0x10b4   : > { %11282 = vrsqrt.f32 %v7797_v37  ;;  %v7798_v39 = vadd.f32 1e-05, %v7780_v0 }
0x10b6   : > { %v11279_v50 = vpop.eup %11278  ;;  %11284 = vrsqrt.f32 %v7798_v39  ;;  %10415 = vmatpush3.bf16.msra.mxu0 %v10924_v45 }
0x10b7   : > { %v7831_v4 = vmul.f32 %v11279_v50, %v14754_v55  ;;  %10416 = vmatprep.subr.bf16.mxu0 %v15331_v3 }
0x10b8   : > { %v11281_v19 = vpop.eup %11280 }
0x10b9   : > { %v7832_v10 = vmul.f32 %v11281_v19, %v14757_v28  ;;  %v7855_v1 = vmul.f32 %v14782_v51, %v7831_v4 }
0x10ba   : > { %10417 = vmatpush3.bf16.msra.mxu0 %v10925_v53 }
0x10bb   : > { %v7856_v58 = vmul.f32 %v14782_v51, %v7832_v10  ;;  %v7879_v9 = vadd.f32 %v14792_v59, %v7855_v1 }
0x10bd   : > { %v7880_v49 = vadd.f32 %v14792_v59, %v7856_v58 }
0x10be   : > { %v11283_v55 = vpop.eup %11282 }
0x10bf   : > { %v7833_v12 = vmul.f32 %v11283_v55, %v14766_v21  ;;  %v7894_v8 = vpack.c.bf16 %v7880_v49, %v7879_v9 }
0x10c0   : > { %v11285_v28 = vpop.eup %11284 }
0x10c1   : > { %v7834_v34 = vmul.f32 %v11285_v28, %v14769_v52  ;;  %10395 = vmatmul.mubr.msk.bf16.gmra.mrb[208].mxu1 %vm711_vm1, %v7894_v8  ;;  %v7857_v7 = vmul.f32 %v14782_v51, %v7833_v12  ;;  %v14890_v52 = vld [vmem:[%s631_s5] ss:$0 sm:$0xff] }
0x10c2   : > { %10398 = vmatprep.mubr.msk.bf16.mxu1 %vm11440_vm2, %v15331_v3 }
0x10c3   : > { %v7858_v29 = vmul.f32 %v14782_v51, %v7834_v34  ;;  %v7881_v21 = vadd.f32 %v14792_v59, %v7857_v7 }
0x10c5   : > { %v7882_v54 = vadd.f32 %v14792_v59, %v7858_v29 }
0x10c7   : > { %v7895_v18 = vpack.c.bf16 %v7882_v54, %v7881_v21 }
0x10c9   : > { %10399 = vmatmul.mubr.msk.bf16.gmra.mrb[212].mxu1 %vm711_vm1, %v7895_v18 }
0x110b   : > { %v7976_v56 = vpop.f32.mrb[180].mxu1 }
0x110c   : > { %v14893_v62 = vadd.f32 %v14890_v52, %v7976_v56  ;;  %v10368_v51 = vpop.f32.mrb[181].mxu1 }
0x110d   : > { %v7979_v40 = vpop.f32.mrb[182].mxu1 }
0x110e   : > { %v14896_v46 = vmul.f32 0.70710677, %v14893_v62  ;;  %v14899_v59 = vadd.f32 %v14890_v52, %v7979_v40  ;;  %v10369_v16 = vpop.f32.mrb[183].mxu1 }
0x1110   : > { %v8083_v42 = vand.u32 2147483647, %v14896_v46  ;;  %v14903_v22 = vmul.f32 0.70710677, %v14899_v59  ;;  %vm8443_vm11 = vcmp.ge.f32.partialorder %v14896_v46, 0.0 }
0x1112   : > { %v8101_v24 = vmul.f32 0.3275911, %v8083_v42  ;;  %v8084_v20 = vand.u32 2147483647, %v14903_v22  ;;  %v8335_v14 = vsub.f32 0.0, %v8083_v42  ;;  %vm8444_vm12 = vcmp.ge.f32.partialorder %v14903_v22, 0.0 }
0x1114   : > { %v8119_v6 = vadd.f32 1.0, %v8101_v24  ;;  %v8102_v31 = vmul.f32 0.3275911, %v8084_v20  ;;  %v8336_v17 = vsub.f32 0.0, %v8084_v20  ;;  %v8353_v41 = vmul.f32 %v8335_v14, %v8083_v42 }
0x1116   : > { %11286 = vrcp.f32 %v8119_v6  ;;  %v8120_v25 = vadd.f32 1.0, %v8102_v31  ;;  %v8354_v11 = vmul.f32 %v8336_v17, %v8084_v20  ;;  %v8371_v26 = vmul.f32 1.442695, %v8353_v41 }
0x1118   : > { %11288 = vrcp.f32 %v8120_v25  ;;  %v8373_v13 = vmul.f32 1.442695, %v8354_v11 }
0x1119   : > { %11290 = vpow2.f32 %v8371_v26 }
0x111a   : > { %11292 = vpow2.f32 %v8373_v13 }
0x1120   : > { %v11287_v30 = vpop.eup %11286 }
0x1121   : > { %v8173_v27 = vmul.f32 1.0614054, %v11287_v30 }
0x1122   : > { %v11289_v33 = vpop.eup %11288 }
0x1123   : > { %v8191_v60 = vadd.f32 -1.4531521, %v8173_v27  ;;  %v8174_v36 = vmul.f32 1.0614054, %v11289_v33  ;;  %v11291_v7 = vpop.eup %11290 }
0x1124   : > { %v7984_v63 = vpop.f32.mrb[184].mxu1  ;;  %v11293_v40 = vpop.eup %11292 }
0x1125   : > { %v8209_v48 = vmul.f32 %v11287_v30, %v8191_v60  ;;  %v14907_v38 = vadd.f32 %v14890_v52, %v7984_v63  ;;  %v10372_v47 = vpop.f32.mrb[185].mxu1  ;;  %v8192_v43 = vadd.f32 -1.4531521, %v8174_v36 }
0x1126   : > { %v7987_v23 = vpop.f32.mrb[186].mxu1 }
0x1127   : > { %v8227_v15 = vadd.f32 1.4214138, %v8209_v48  ;;  %v14910_v2 = vmul.f32 0.70710677, %v14907_v38  ;;  %v14913_v61 = vadd.f32 %v14890_v52, %v7987_v23  ;;  %v10373_v57 = vpop.f32.mrb[187].mxu1  ;;  %v8210_v5 = vmul.f32 %v11289_v33, %v8192_v43 }
0x1129   : > { %v8245_v35 = vmul.f32 %v11287_v30, %v8227_v15  ;;  %v8085_v37 = vand.u32 2147483647, %v14910_v2  ;;  %v8228_v0 = vadd.f32 1.4214138, %v8210_v5  ;;  %v14917_v39 = vmul.f32 0.70710677, %v14913_v61 }
0x112a   : > { %vm8445_vm13 = vcmp.ge.f32.partialorder %v14910_v2, 0.0  ;;  %v8049_v2 = vmul.f32 0.5, %v14907_v38 }
0x112b   : > { %v8263_v32 = vadd.f32 -0.28449672, %v8245_v35  ;;  %v8103_v50 = vmul.f32 0.3275911, %v8085_v37  ;;  %v8246_v4 = vmul.f32 %v11289_v33, %v8228_v0  ;;  %v8086_v19 = vand.u32 2147483647, %v14917_v39 }
0x112c   : > { %v8337_v54 = vsub.f32 0.0, %v8085_v37  ;;  %v8048_v0 = vmul.f32 0.5, %v14899_v59  ;;  %vm8446_vm14 = vcmp.ge.f32.partialorder %v14917_v39, 0.0 }
0x112d   : > { %v8281_v10 = vmul.f32 %v11287_v30, %v8263_v32  ;;  %v8121_v1 = vadd.f32 1.0, %v8103_v50  ;;  %v8264_v44 = vadd.f32 -0.28449672, %v8246_v4  ;;  %v8104_v58 = vmul.f32 0.3275911, %v8086_v19 }
0x112e   : > { %v8355_v31 = vmul.f32 %v8337_v54, %v8085_v37  ;;  %v8047_v37 = vmul.f32 0.5, %v14893_v62 }
0x112f   : > { %v8299_v9 = vadd.f32 0.2548296, %v8281_v10  ;;  %11294 = vrcp.f32 %v8121_v1  ;;  %v8282_v55 = vmul.f32 %v11289_v33, %v8264_v44  ;;  %v8122_v12 = vadd.f32 1.0, %v8104_v58 }
0x1130   : > { %v7992_v49 = vpop.f32.mrb[188].mxu1  ;;  %v8375_v46 = vmul.f32 1.442695, %v8355_v31 }
0x1131   : > { %v14921_v8 = vadd.f32 %v14890_v52, %v7992_v49  ;;  %v10376_v45 = vpop.f32.mrb[189].mxu1  ;;  %v8317_v28 = vmul.f32 %v11287_v30, %v8299_v9  ;;  %v8300_v29 = vadd.f32 0.2548296, %v8282_v55  ;;  %11296 = vrcp.f32 %v8122_v12 }
0x1132   : > { %v7995_v34 = vpop.f32.mrb[190].mxu1  ;;  %v8338_v30 = vsub.f32 0.0, %v8086_v19 }
0x1133   : > { %v10377_v53 = vpop.f32.mrb[191].mxu1  ;;  %v8407_v21 = vmul.f32 %v11291_v7, %v8317_v28  ;;  %v14924_v18 = vmul.f32 0.70710677, %v14921_v8  ;;  %v14927_v56 = vadd.f32 %v14890_v52, %v7995_v34  ;;  %v8318_v51 = vmul.f32 %v11289_v33, %v8300_v29 }
0x1134   : > { %v8356_v5 = vmul.f32 %v8338_v30, %v8086_v19 }
0x1135   : > { %v8425_v16 = vsub.f32 1.0, %v8407_v21  ;;  %v8087_v42 = vand.u32 2147483647, %v14924_v18  ;;  %v8408_v24 = vmul.f32 %v11293_v40, %v8318_v51  ;;  %v14931_v20 = vmul.f32 0.70710677, %v14927_v56 }
0x1136   : > { %v8377_v9 = vmul.f32 1.442695, %v8356_v5  ;;  %vm8447_vm15 = vcmp.ge.f32.partialorder %v14924_v18, 0.0  ;;  %v8051_v18 = vmul.f32 0.5, %v14921_v8 }
0x1137   : > { %v8461_v6 = vsub.f32 0.0, %v8425_v16  ;;  %v8105_v25 = vmul.f32 0.3275911, %v8087_v42  ;;  %v8426_v17 = vsub.f32 1.0, %v8408_v24  ;;  %v8088_v41 = vand.u32 2147483647, %v14931_v20 }
0x1138   : > { %v8000_v14 = vpop.f32.mrb[192].mxu1  ;;  %v8339_v55 = vsub.f32 0.0, %v8087_v42  ;;  %vm8448_vm0 = vcmp.ge.f32.partialorder %v14931_v20, 0.0 }
0x1139   : > { %v10380_v27 = vpop.f32.mrb[193].mxu1  ;;  %v14935_v11 = vpop.eup %11294  ;;  %v8479_v33 = vsel %vm8443_vm11, %v8425_v16, %v8461_v6  ;;  %v8123_v60 = vadd.f32 1.0, %v8105_v25  ;;  %v8462_v36 = vsub.f32 0.0, %v8426_v17  ;;  %v8106_v48 = vmul.f32 0.3275911, %v8088_v41 }
0x113a   : > { %v8003_v26 = vpop.f32.mrb[194].mxu1  ;;  %v8175_v63 = vmul.f32 1.0614054, %v14935_v11  ;;  %v14939_v47 = vadd.f32 %v14890_v52, %v8000_v14  ;;  %v8497_v43 = vadd.f32 1.0, %v8479_v33  ;;  %v8340_v53 = vsub.f32 0.0, %v8088_v41 }
0x113b   : > { %11298 = vrcp.f32 %v8123_v60  ;;  %v10381_v13 = vpop.f32.mrb[195].mxu1  ;;  %v11297_v23 = vpop.eup %11296  ;;  %v8480_v15 = vsel %vm8444_vm12, %v8426_v17, %v8462_v36  ;;  %v8124_v35 = vadd.f32 1.0, %v8106_v48  ;;  %v14949_v22 = vadd.f32 %v14890_v52, %v8003_v26 }
0x113c   : > { %v8193_v57 = vadd.f32 -1.4531521, %v8175_v63  ;;  %v8498_v32 = vadd.f32 1.0, %v8480_v15  ;;  %v8176_v50 = vmul.f32 1.0614054, %v11297_v23  ;;  %v8515_v1 = vmul.f32 %v8497_v43, %v8047_v37 }
0x113d   : > { %11300 = vrcp.f32 %v8124_v35  ;;  %v14946_v10 = vmul.f32 0.70710677, %v14939_v47  ;;  %v14953_v12 = vmul.f32 0.70710677, %v14949_v22  ;;  %v8357_v40 = vmul.f32 %v8339_v55, %v8087_v42 }
0x113e   : > { %v8211_v4 = vmul.f32 %v14935_v11, %v8193_v57  ;;  %v8516_v44 = vmul.f32 %v8498_v32, %v8048_v0  ;;  %v8194_v58 = vadd.f32 -1.4531521, %v8176_v50  ;;  %11302 = vpow2.f32 %v8375_v46 }
0x113f   : > { %v8089_v62 = vand.u32 2147483647, %v14946_v10  ;;  %v8090_v7 = vand.u32 2147483647, %v14953_v12  ;;  %11304 = vpow2.f32 %v8377_v9  ;;  %v8358_v27 = vmul.f32 %v8340_v53, %v8088_v41 }
0x1140   : > { %v8229_v19 = vadd.f32 1.4214138, %v8211_v4  ;;  %v8549_v59 = vpack.c.bf16 %v8516_v44, %v8515_v1  ;;  %v8212_v49 = vmul.f32 %v11297_v23, %v8194_v58  ;;  %v8379_v60 = vmul.f32 1.442695, %v8357_v40 }
0x1141   : > { %v8107_v28 = vmul.f32 0.3275911, %v8089_v62  ;;  %v8108_v16 = vmul.f32 0.3275911, %v8090_v7  ;;  %v8341_v48 = vsub.f32 0.0, %v8089_v62  ;;  %v8342_v1 = vsub.f32 0.0, %v8090_v7 }
0x1142   : > { %v8247_v45 = vmul.f32 %v14935_v11, %v8229_v19  ;;  %v8230_v34 = vadd.f32 1.4214138, %v8212_v49  ;;  %10419 = vmatmul.mubr.bf16.vlgmr.msra.gmra.mrb[180].mxu0 %v8549_v59  ;;  %v8381_v57 = vmul.f32 1.442695, %v8358_v27  ;;  %vm8449_vm3 = vcmp.ge.f32.partialorder %v14946_v10, 0.0 }
0x1143   : > { %v8125_v21 = vadd.f32 1.0, %v8107_v28  ;;  %10422 = vmatprep.mubr.msk.bf16.mxu0 %vm11440_vm2, %v15331_v3  ;;  %v8126_v25 = vadd.f32 1.0, %v8108_v16  ;;  %v8359_v32 = vmul.f32 %v8341_v48, %v8089_v62  ;;  %vm8450_vm4 = vcmp.ge.f32.partialorder %v14953_v12, 0.0 }
0x1144   : > { %v8265_v29 = vadd.f32 -0.28449672, %v8247_v45  ;;  %v8248_v51 = vmul.f32 %v11297_v23, %v8230_v34  ;;  %v8053_v10 = vmul.f32 0.5, %v14939_v47 }
0x1145   : > { %v11299_v54 = vpop.eup %11298  ;;  %11306 = vrcp.f32 %v8125_v21  ;;  %v8383_v55 = vmul.f32 1.442695, %v8359_v32 }
0x1146   : > { %v8283_v24 = vmul.f32 %v14935_v11, %v8265_v29  ;;  %v8177_v6 = vmul.f32 1.0614054, %v11299_v54  ;;  %v8266_v31 = vadd.f32 -0.28449672, %v8248_v51  ;;  %11308 = vrcp.f32 %v8126_v25 }
0x1147   : > { %v14960_v14 = vpop.eup %11300  ;;  %11310 = vpow2.f32 %v8379_v60  ;;  %v8360_v29 = vmul.f32 %v8342_v1, %v8090_v7 }
0x1148   : > { %v8301_v17 = vadd.f32 0.2548296, %v8283_v24  ;;  %v8195_v30 = vadd.f32 -1.4531521, %v8177_v6  ;;  %v8284_v33 = vmul.f32 %v11297_v23, %v8266_v31  ;;  %v8178_v26 = vmul.f32 1.0614054, %v14960_v14  ;;  %v11303_v36 = vpop.eup %11302 }
0x1149   : > { %v11305_v41 = vpop.eup %11304  ;;  %11312 = vpow2.f32 %v8381_v57  ;;  %v8050_v6 = vmul.f32 0.5, %v14913_v61 }
0x114a   : > { %v8319_v42 = vmul.f32 %v14935_v11, %v8301_v17  ;;  %v8213_v63 = vmul.f32 %v11299_v54, %v8195_v30  ;;  %v8302_v43 = vadd.f32 0.2548296, %v8284_v33  ;;  %v8196_v46 = vadd.f32 -1.4531521, %v8178_v26 }
0x114b   : > { %11314 = vpow2.f32 %v8383_v55  ;;  %v8385_v33 = vmul.f32 1.442695, %v8360_v29 }
0x114c   : > { %v8409_v13 = vmul.f32 %v11303_v36, %v8319_v42  ;;  %v8231_v15 = vadd.f32 1.4214138, %v8213_v63  ;;  %v8320_v5 = vmul.f32 %v11297_v23, %v8302_v43  ;;  %v8214_v35 = vmul.f32 %v14960_v14, %v8196_v46 }
0x114d   : > { %11316 = vpow2.f32 %v8385_v33 }
0x114e   : > { %v8427_v37 = vsub.f32 1.0, %v8409_v13  ;;  %v8249_v0 = vmul.f32 %v11299_v54, %v8231_v15  ;;  %v8410_v50 = vmul.f32 %v11305_v41, %v8320_v5  ;;  %v8232_v4 = vadd.f32 1.4214138, %v8214_v35 }
0x114f   : > { %v14965_v44 = vpop.eup %11306 }
0x1150   : > { %v8463_v11 = vsub.f32 0.0, %v8427_v37  ;;  %v8267_v58 = vadd.f32 -0.28449672, %v8249_v0  ;;  %v8428_v19 = vsub.f32 1.0, %v8410_v50  ;;  %v8250_v23 = vmul.f32 %v14960_v14, %v8232_v4  ;;  %v11309_v45 = vpop.eup %11308 }
0x1151   : > { %v8179_v9 = vmul.f32 1.0614054, %v14965_v44  ;;  %v8180_v51 = vmul.f32 1.0614054, %v11309_v45  ;;  %v11311_v30 = vpop.eup %11310 }
0x1152   : > { %v8481_v59 = vsel %vm8445_vm13, %v8427_v37, %v8463_v11  ;;  %v8285_v49 = vmul.f32 %v11299_v54, %v8267_v58  ;;  %v8464_v62 = vsub.f32 0.0, %v8428_v19  ;;  %v8268_v28 = vadd.f32 -0.28449672, %v8250_v23 }
0x1153   : > { %v8197_v34 = vadd.f32 -1.4531521, %v8179_v9  ;;  %v8499_v53 = vadd.f32 1.0, %v8481_v59  ;;  %v8198_v17 = vadd.f32 -1.4531521, %v8180_v51  ;;  %v11313_v63 = vpop.eup %11312  ;;  %v8052_v11 = vmul.f32 0.5, %v14927_v56 }
0x1154   : > { %v8303_v21 = vadd.f32 0.2548296, %v8285_v49  ;;  %v8482_v40 = vsel %vm8446_vm14, %v8428_v19, %v8464_v62  ;;  %v8286_v16 = vmul.f32 %v14960_v14, %v8268_v28 }
0x1155   : > { %v8215_v24 = vmul.f32 %v14965_v44, %v8197_v34  ;;  %v8500_v31 = vadd.f32 1.0, %v8482_v40  ;;  %v8517_v39 = vmul.f32 %v8499_v53, %v8049_v2  ;;  %v8216_v36 = vmul.f32 %v11309_v45, %v8198_v17  ;;  %v11315_v50 = vpop.eup %11314 }
0x1156   : > { %v8321_v25 = vmul.f32 %v11299_v54, %v8303_v21  ;;  %v8304_v27 = vadd.f32 0.2548296, %v8286_v16 }
0x1157   : > { %v8233_v7 = vadd.f32 1.4214138, %v8215_v24  ;;  %v8518_v60 = vmul.f32 %v8500_v31, %v8050_v6  ;;  %v8234_v43 = vadd.f32 1.4214138, %v8216_v36  ;;  %v11317_v62 = vpop.eup %11316 }
0x1158   : > { %v8411_v26 = vmul.f32 %v11311_v30, %v8321_v25  ;;  %v8322_v38 = vmul.f32 %v14960_v14, %v8304_v27  ;;  %v8054_v30 = vmul.f32 0.5, %v14949_v22 }
0x1159   : > { %v8251_v42 = vmul.f32 %v14965_v44, %v8233_v7  ;;  %v8550_v61 = vpack.c.bf16 %v8518_v60, %v8517_v39  ;;  %v8252_v15 = vmul.f32 %v11309_v45, %v8234_v43 }
0x115a   : > { %v8429_v48 = vsub.f32 1.0, %v8411_v26  ;;  %v8412_v46 = vmul.f32 %v11313_v63, %v8322_v38 }
0x115b   : > { %v8269_v54 = vadd.f32 -0.28449672, %v8251_v42  ;;  %10423 = vmatmul.mubr.bf16.gmra.mrb[184].mxu0 %v8550_v61  ;;  %v8270_v35 = vadd.f32 -0.28449672, %v8252_v15 }
0x115c   : > { %v8465_v13 = vsub.f32 0.0, %v8429_v48  ;;  %v8430_v57 = vsub.f32 1.0, %v8412_v46  ;;  %10426 = vmatprep.mubr.msk.bf16.mxu0 %vm11440_vm2, %v15331_v3 }
0x115d   : > { %v8287_v5 = vmul.f32 %v14965_v44, %v8269_v54  ;;  %v8288_v32 = vmul.f32 %v11309_v45, %v8270_v35 }
0x115e   : > { %v8483_v14 = vsel %vm8447_vm15, %v8429_v48, %v8465_v13  ;;  %v8466_v41 = vsub.f32 0.0, %v8430_v57 }
0x115f   : > { %v8305_v37 = vadd.f32 0.2548296, %v8287_v5  ;;  %v8501_v0 = vadd.f32 1.0, %v8483_v14  ;;  %v8306_v19 = vadd.f32 0.2548296, %v8288_v32 }
0x1160   : > { %v8484_v4 = vsel %vm8448_vm0, %v8430_v57, %v8466_v41 }
0x1161   : > { %v8323_v1 = vmul.f32 %v14965_v44, %v8305_v37  ;;  %v8502_v58 = vadd.f32 1.0, %v8484_v4  ;;  %v8519_v9 = vmul.f32 %v8501_v0, %v8051_v18  ;;  %v8324_v49 = vmul.f32 %v11309_v45, %v8306_v19 }
0x1163   : > { %v8413_v23 = vmul.f32 %v11315_v50, %v8323_v1  ;;  %v8520_v59 = vmul.f32 %v8502_v58, %v8052_v11  ;;  %v8008_v55 = vpop.f32.mrb[196].mxu1  ;;  %v8414_v29 = vmul.f32 %v11317_v62, %v8324_v49 }
0x1164   : > { %v14986_v20 = vadd.f32 %v14890_v52, %v8008_v55  ;;  %v10384_v34 = vpop.f32.mrb[197].mxu1 }
0x1165   : > { %v8431_v28 = vsub.f32 1.0, %v8413_v23  ;;  %v8011_v53 = vpop.f32.mrb[198].mxu1  ;;  %v8551_v44 = vpack.c.bf16 %v8520_v59, %v8519_v9  ;;  %v8432_v45 = vsub.f32 1.0, %v8414_v29 }
0x1166   : > { %v14989_v8 = vmul.f32 0.70710677, %v14986_v20  ;;  %v14992_v56 = vadd.f32 %v14890_v52, %v8011_v53  ;;  %v10385_v51 = vpop.f32.mrb[199].mxu1 }
0x1167   : > { %v8467_v21 = vsub.f32 0.0, %v8431_v28  ;;  %10427 = vmatmul.mubr.bf16.gmra.mrb[188].mxu0 %v8551_v44  ;;  %v8468_v16 = vsub.f32 0.0, %v8432_v45 }
0x1168   : > { %v8091_v40 = vand.u32 2147483647, %v14989_v8  ;;  %10430 = vmatprep.mubr.msk.bf16.mxu0 %vm11440_vm2, %v15331_v3  ;;  %v14999_v24 = vmul.f32 0.70710677, %v14992_v56  ;;  %vm8451_vm5 = vcmp.ge.f32.partialorder %v14989_v8, 0.0 }
0x1169   : > { %v8485_v2 = vsel %vm8449_vm3, %v8431_v28, %v8467_v21  ;;  %v8486_v25 = vsel %vm8450_vm4, %v8432_v45, %v8468_v16 }
0x116a   : > { %v8503_v6 = vadd.f32 1.0, %v8485_v2  ;;  %v8109_v31 = vmul.f32 0.3275911, %v8091_v40  ;;  %v8092_v17 = vand.u32 2147483647, %v14999_v24  ;;  %v8504_v27 = vadd.f32 1.0, %v8486_v25 }
0x116b   : > { %v8343_v12 = vsub.f32 0.0, %v8091_v40  ;;  %vm8452_vm6 = vcmp.ge.f32.partialorder %v14999_v24, 0.0 }
0x116c   : > { %v8127_v7 = vadd.f32 1.0, %v8109_v31  ;;  %v8110_v33 = vmul.f32 0.3275911, %v8092_v17  ;;  %v8521_v39 = vmul.f32 %v8503_v6, %v8053_v10  ;;  %v8522_v60 = vmul.f32 %v8504_v27, %v8054_v30 }
0x116d   : > { %v8344_v42 = vsub.f32 0.0, %v8092_v17  ;;  %v8361_v48 = vmul.f32 %v8343_v12, %v8091_v40 }
0x116e   : > { %11318 = vrcp.f32 %v8127_v7  ;;  %v8128_v26 = vadd.f32 1.0, %v8110_v33  ;;  %v8552_v36 = vpack.c.bf16 %v8522_v60, %v8521_v39 }
0x116f   : > { %v8362_v5 = vmul.f32 %v8344_v42, %v8092_v17  ;;  %v8387_v35 = vmul.f32 1.442695, %v8361_v48 }
0x1170   : > { %11320 = vrcp.f32 %v8128_v26  ;;  %10431 = vmatmul.mubr.bf16.gmra.mrb[192].mxu0 %v8552_v36 }
0x1171   : > { %10434 = vmatprep.mubr.msk.bf16.mxu0 %vm11440_vm2, %v15331_v3  ;;  %v8389_v11 = vmul.f32 1.442695, %v8362_v5  ;;  %11322 = vpow2.f32 %v8387_v35 }
0x1178   : > { %v8016_v38 = vpop.f32.mrb[200].mxu1  ;;  %v11319_v63 = vpop.eup %11318 }
0x1179   : > { %v15008_v47 = vadd.f32 %v14890_v52, %v8016_v38  ;;  %v10388_v22 = vpop.f32.mrb[201].mxu1  ;;  %v8181_v61 = vmul.f32 1.0614054, %v11319_v63 }
0x117a   : > { %v8019_v43 = vpop.f32.mrb[202].mxu1  ;;  %v11321_v15 = vpop.eup %11320 }
0x117b   : > { %v15011_v46 = vmul.f32 0.70710677, %v15008_v47  ;;  %v15014_v54 = vadd.f32 %v14890_v52, %v8019_v43  ;;  %v10389_v13 = vpop.f32.mrb[203].mxu1  ;;  %v8199_v57 = vadd.f32 -1.4531521, %v8181_v61  ;;  %v11323_v7 = vpop.eup %11322 }
0x117c   : > { %v8182_v41 = vmul.f32 1.0614054, %v11321_v15 }
0x117d   : > { %v8093_v14 = vand.u32 2147483647, %v15011_v46  ;;  %v15018_v37 = vmul.f32 0.70710677, %v15014_v54  ;;  %v8217_v0 = vmul.f32 %v11319_v63, %v8199_v57  ;;  %vm8453_vm7 = vcmp.ge.f32.partialorder %v15011_v46, 0.0 }
0x117e   : > { %v8200_v50 = vadd.f32 -1.4531521, %v8182_v41 }
0x117f   : > { %v8111_v32 = vmul.f32 0.3275911, %v8093_v14  ;;  %v8094_v4 = vand.u32 2147483647, %v15018_v37  ;;  %v8235_v18 = vadd.f32 1.4214138, %v8217_v0 }
0x1180   : > { %v8024_v1 = vpop.f32.mrb[204].mxu1  ;;  %v8218_v9 = vmul.f32 %v11321_v15, %v8200_v50  ;;  %v8345_v31 = vsub.f32 0.0, %v8093_v14  ;;  %v8055_v0 = vmul.f32 0.5, %v14986_v20  ;;  %vm8454_vm8 = vcmp.ge.f32.partialorder %v15018_v37, 0.0 }
0x1181   : > { %v8129_v58 = vadd.f32 1.0, %v8111_v32  ;;  %v15022_v19 = vadd.f32 %v14890_v52, %v8024_v1  ;;  %v10392_v23 = vpop.f32.mrb[205].mxu1  ;;  %v8112_v59 = vmul.f32 0.3275911, %v8094_v4  ;;  %v8253_v55 = vmul.f32 %v11319_v63, %v8235_v18 }
0x1182   : > { %v8027_v49 = vpop.f32.mrb[206].mxu1  ;;  %v8236_v28 = vadd.f32 1.4214138, %v8218_v9  ;;  %v8346_v39 = vsub.f32 0.0, %v8094_v4  ;;  %v8363_v36 = vmul.f32 %v8345_v31, %v8093_v14  ;;  %v8056_v18 = vmul.f32 0.5, %v14992_v56 }
0x1183   : > { %11324 = vrcp.f32 %v8129_v58  ;;  %v10393_v62 = vpop.f32.mrb[207].mxu1  ;;  %v8130_v34 = vadd.f32 1.0, %v8112_v59  ;;  %v15025_v29 = vmul.f32 0.70710677, %v15022_v19  ;;  %v8271_v53 = vadd.f32 -0.28449672, %v8253_v55 }
0x1184   : > { %11326 = vpow2.f32 %v8389_v11  ;;  %v15028_v44 = vadd.f32 %v14890_v52, %v8027_v49  ;;  %v8254_v21 = vmul.f32 %v11321_v15, %v8236_v28  ;;  %v8364_v13 = vmul.f32 %v8346_v39, %v8094_v4 }
0x1185   : > { %11328 = vrcp.f32 %v8130_v34  ;;  %v8095_v51 = vand.u32 2147483647, %v15025_v29  ;;  %v8289_v45 = vmul.f32 %v11319_v63, %v8271_v53  ;;  %v8391_v5 = vmul.f32 1.442695, %v8363_v36 }
0x1186   : > { %v15032_v2 = vmul.f32 0.70710677, %v15028_v44  ;;  %v8272_v40 = vadd.f32 -0.28449672, %v8254_v21  ;;  %v8393_v4 = vmul.f32 1.442695, %v8364_v13 }
0x1187   : > { %v8113_v16 = vmul.f32 0.3275911, %v8095_v51  ;;  %v8307_v6 = vadd.f32 0.2548296, %v8289_v45  ;;  %v8347_v41 = vsub.f32 0.0, %v8095_v51  ;;  %vm8455_vm9 = vcmp.ge.f32.partialorder %v15025_v29, 0.0 }
0x1188   : > { %v8096_v25 = vand.u32 2147483647, %v15032_v2  ;;  %v8290_v17 = vmul.f32 %v11321_v15, %v8272_v40  ;;  %vm8456_vm10 = vcmp.ge.f32.partialorder %v15032_v2, 0.0 }
0x1189   : > { %v8131_v10 = vadd.f32 1.0, %v8113_v16  ;;  %v8325_v30 = vmul.f32 %v11319_v63, %v8307_v6  ;;  %v8365_v9 = vmul.f32 %v8347_v41, %v8095_v51 }
0x118a   : > { %v8114_v27 = vmul.f32 0.3275911, %v8096_v25  ;;  %v8308_v33 = vadd.f32 0.2548296, %v8290_v17  ;;  %v8348_v1 = vsub.f32 0.0, %v8096_v25 }
0x118b   : > { %11330 = vrcp.f32 %v8131_v10  ;;  %v8415_v26 = vmul.f32 %v11323_v7, %v8325_v30  ;;  %v8395_v30 = vmul.f32 1.442695, %v8365_v9 }
0x118c   : > { %v8132_v12 = vadd.f32 1.0, %v8114_v27  ;;  %v8326_v38 = vmul.f32 %v11321_v15, %v8308_v33  ;;  %v8366_v24 = vmul.f32 %v8348_v1, %v8096_v25 }
0x118d   : > { %v15035_v60 = vpop.eup %11324  ;;  %v8433_v48 = vsub.f32 1.0, %v8415_v26 }
0x118e   : > { %v8183_v42 = vmul.f32 1.0614054, %v15035_v60  ;;  %v11327_v22 = vpop.eup %11326  ;;  %11332 = vrcp.f32 %v8132_v12  ;;  %v8397_v36 = vmul.f32 1.442695, %v8366_v24 }
0x118f   : > { %v15038_v43 = vpop.eup %11328  ;;  %v8416_v61 = vmul.f32 %v11327_v22, %v8326_v38  ;;  %v8469_v57 = vsub.f32 0.0, %v8433_v48  ;;  %11334 = vpow2.f32 %v8391_v5 }
0x1190   : > { %v8201_v63 = vadd.f32 -1.4531521, %v8183_v42  ;;  %v8184_v35 = vmul.f32 1.0614054, %v15038_v43  ;;  %11336 = vpow2.f32 %v8393_v4 }
0x1191   : > { %v8434_v14 = vsub.f32 1.0, %v8416_v61  ;;  %v8487_v32 = vsel %vm8451_vm5, %v8433_v48, %v8469_v57  ;;  %11338 = vpow2.f32 %v8395_v30 }
0x1192   : > { %v8219_v15 = vmul.f32 %v15035_v60, %v8201_v63  ;;  %v8202_v50 = vadd.f32 -1.4531521, %v8184_v35  ;;  %v8505_v49 = vadd.f32 1.0, %v8487_v32 }
0x1193   : > { %v8470_v11 = vsub.f32 0.0, %v8434_v14 }
0x1194   : > { %v8237_v58 = vadd.f32 1.4214138, %v8219_v15  ;;  %v8220_v23 = vmul.f32 %v15038_v43, %v8202_v50  ;;  %v8032_v8 = vpop.f32.mrb[208].mxu1  ;;  %v8523_v27 = vmul.f32 %v8505_v49, %v8055_v0 }
0x1195   : > { %v15047_v59 = vpop.eup %11330  ;;  %v8488_v55 = vsel %vm8452_vm6, %v8434_v14, %v8470_v11  ;;  %v15051_v62 = vadd.f32 %v14890_v52, %v8032_v8  ;;  %v10396_v56 = vpop.f32.mrb[209].mxu1 }
0x1196   : > { %v8255_v20 = vmul.f32 %v15035_v60, %v8237_v58  ;;  %v8506_v28 = vadd.f32 1.0, %v8488_v55  ;;  %v8238_v34 = vadd.f32 1.4214138, %v8220_v23  ;;  %v8185_v53 = vmul.f32 1.0614054, %v15047_v59  ;;  %v8035_v21 = vpop.f32.mrb[210].mxu1 }
0x1197   : > { %v15055_v51 = vmul.f32 0.70710677, %v15051_v62  ;;  %v15058_v40 = vadd.f32 %v14890_v52, %v8035_v21  ;;  %v10397_v16 = vpop.f32.mrb[211].mxu1 }
0x1198   : > { %v8273_v45 = vadd.f32 -0.28449672, %v8255_v20  ;;  %v15060_v6 = vpop.eup %11332  ;;  %v8524_v31 = vmul.f32 %v8506_v28, %v8056_v18  ;;  %v8256_v17 = vmul.f32 %v15038_v43, %v8238_v34  ;;  %v8203_v10 = vadd.f32 -1.4531521, %v8185_v53 }
0x1199   : > { %v8186_v7 = vmul.f32 1.0614054, %v15060_v6  ;;  %v8097_v33 = vand.u32 2147483647, %v15055_v51  ;;  %v15068_v12 = vmul.f32 0.70710677, %v15058_v40  ;;  %v11335_v15 = vpop.eup %11334 }
0x119a   : > { %v8291_v25 = vmul.f32 %v15035_v60, %v8273_v45  ;;  %v8274_v39 = vadd.f32 -0.28449672, %v8256_v17  ;;  %v8221_v26 = vmul.f32 %v15047_v59, %v8203_v10  ;;  %v8553_v48 = vpack.c.bf16 %v8524_v31, %v8523_v27  ;;  %v11337_v9 = vpop.eup %11336 }
0x119b   : > { %v8204_v42 = vadd.f32 -1.4531521, %v8186_v7  ;;  %v8115_v22 = vmul.f32 0.3275911, %v8097_v33  ;;  %v15072_v13 = vand.u32 2147483647, %v15068_v12 }
0x119c   : > { %v8309_v38 = vadd.f32 0.2548296, %v8291_v25  ;;  %v8292_v61 = vmul.f32 %v15038_v43, %v8274_v39  ;;  %v8239_v63 = vadd.f32 1.4214138, %v8221_v26  ;;  %v8040_v57 = vpop.f32.mrb[212].mxu1  ;;  %10435 = vmatmul.mubr.bf16.gmra.mrb[196].mxu0 %v8553_v48  ;;  %v8349_v21 = vsub.f32 0.0, %v8097_v33 }
0x119d   : > { %v8222_v35 = vmul.f32 %v15060_v6, %v8204_v42  ;;  %v8133_v41 = vadd.f32 1.0, %v8115_v22  ;;  %v10400_v14 = vpop.f32.mrb[213].mxu1  ;;  %v8116_v50 = vmul.f32 0.3275911, %v15072_v13  ;;  %10438 = vmatprep.mubr.msk.bf16.mxu0 %vm11440_vm2, %v15331_v3  ;;  %v15083_v55 = vadd.f32 %v14890_v52, %v8040_v57 }
0x119e   : > { %v8327_v5 = vmul.f32 %v15035_v60, %v8309_v38  ;;  %v8310_v0 = vadd.f32 0.2548296, %v8292_v61  ;;  %v8257_v32 = vmul.f32 %v15047_v59, %v8239_v63  ;;  %v8043_v1 = vpop.f32.mrb[214].mxu1  ;;  %v8057_v16 = vmul.f32 0.5, %v15008_v47 }
0x119f   : > { %v8240_v11 = vadd.f32 1.4214138, %v8222_v35  ;;  %11340 = vrcp.f32 %v8133_v41  ;;  %v10401_v60 = vpop.f32.mrb[215].mxu1  ;;  %v8134_v23 = vadd.f32 1.0, %v8116_v50  ;;  %v15091_v45 = vmul.f32 0.70710677, %v15083_v55 }
0x11a0   : > { %v8417_v18 = vmul.f32 %v11335_v15, %v8327_v5  ;;  %v8328_v58 = vmul.f32 %v15038_v43, %v8310_v0  ;;  %v8275_v4 = vadd.f32 -0.28449672, %v8257_v32  ;;  %11342 = vpow2.f32 %v8397_v36 }
0x11a1   : > { %v8258_v49 = vmul.f32 %v15060_v6, %v8240_v11  ;;  %11344 = vrcp.f32 %v8134_v23  ;;  %v15088_v43 = vadd.f32 %v14890_v52, %v8043_v1  ;;  %v8058_v17 = vmul.f32 0.5, %v15014_v54  ;;  %v11339_v52 = vpop.eup %11338 }
0x11a2   : > { %v8435_v8 = vsub.f32 1.0, %v8417_v18  ;;  %v8418_v20 = vmul.f32 %v11337_v9, %v8328_v58  ;;  %v8293_v56 = vmul.f32 %v15047_v59, %v8275_v4  ;;  %v8099_v27 = vand.u32 2147483647, %v15091_v45 }
0x11a3   : > { %v8276_v34 = vadd.f32 -0.28449672, %v8258_v49  ;;  %v15100_v39 = vmul.f32 0.70710677, %v15088_v43  ;;  %v8367_v36 = vmul.f32 %v8349_v21, %v8097_v33  ;;  %v8059_v4 = vmul.f32 0.5, %v15022_v19 }
0x11a4   : > { %v8471_v28 = vsub.f32 0.0, %v8435_v8  ;;  %v8436_v53 = vsub.f32 1.0, %v8418_v20  ;;  %v8311_v24 = vadd.f32 0.2548296, %v8293_v56  ;;  %v8117_v38 = vmul.f32 0.3275911, %v8099_v27 }
0x11a5   : > { %v8294_v46 = vmul.f32 %v15060_v6, %v8276_v34  ;;  %v8100_v48 = vand.u32 2147483647, %v15100_v39  ;;  %v8399_v0 = vmul.f32 1.442695, %v8367_v36  ;;  %v8351_v29 = vsub.f32 0.0, %v8099_v27 }
0x11a6   : > { %v8489_v31 = vsel %vm8453_vm7, %v8435_v8, %v8471_v28  ;;  %v8472_v10 = vsub.f32 0.0, %v8436_v53  ;;  %v8329_v30 = vmul.f32 %v15047_v59, %v8311_v24  ;;  %v8350_v59 = vsub.f32 0.0, %v15072_v13 }
0x11a7   : > { %v8507_v25 = vadd.f32 1.0, %v8489_v31  ;;  %v8312_v7 = vadd.f32 0.2548296, %v8294_v46  ;;  %v8135_v57 = vadd.f32 1.0, %v8117_v38  ;;  %v8118_v14 = vmul.f32 0.3275911, %v8100_v48 }
0x11a8   : > { %v8490_v26 = vsel %vm8454_vm8, %v8436_v53, %v8472_v10  ;;  %v8419_v47 = vmul.f32 %v11339_v52, %v8329_v30  ;;  %v8368_v50 = vmul.f32 %v8350_v59, %v15072_v13  ;;  %v8060_v56 = vmul.f32 0.5, %v15028_v44 }
0x11a9   : > { %v11341_v42 = vpop.eup %11340  ;;  %v8508_v22 = vadd.f32 1.0, %v8490_v26  ;;  %v8330_v54 = vmul.f32 %v15060_v6, %v8312_v7  ;;  %v8525_v5 = vmul.f32 %v8507_v25, %v8057_v16  ;;  %11346 = vrcp.f32 %v8135_v57 }
0x11aa   : > { %v11343_v61 = vpop.eup %11342  ;;  %v8437_v63 = vsub.f32 1.0, %v8419_v47  ;;  %v8187_v37 = vmul.f32 1.0614054, %v11341_v42  ;;  %v8136_v1 = vadd.f32 1.0, %v8118_v14  ;;  %v8401_v20 = vmul.f32 1.442695, %v8368_v50 }
0x11ab   : > { %v8526_v35 = vmul.f32 %v8508_v22, %v8058_v17  ;;  %v8420_v41 = vmul.f32 %v11343_v61, %v8330_v54  ;;  %v11345_v32 = vpop.eup %11344  ;;  %v8369_v16 = vmul.f32 %v8351_v29, %v8099_v27  ;;  %v8352_v10 = vsub.f32 0.0, %v8100_v48 }
0x11ac   : > { %v8473_v33 = vsub.f32 0.0, %v8437_v63  ;;  %v8205_v15 = vadd.f32 -1.4531521, %v8187_v37  ;;  %v8188_v58 = vmul.f32 1.0614054, %v11345_v32  ;;  %11348 = vrcp.f32 %v8136_v1 }
0x11ad   : > { %v8438_v6 = vsub.f32 1.0, %v8420_v41  ;;  %v8554_v18 = vpack.c.bf16 %v8526_v35, %v8525_v5  ;;  %11350 = vpow2.f32 %v8399_v0  ;;  %v8403_v38 = vmul.f32 1.442695, %v8369_v16 }
0x11ae   : > { %v8491_v11 = vsel %vm8455_vm9, %v8437_v63, %v8473_v33  ;;  %v8223_v60 = vmul.f32 %v11341_v42, %v8205_v15  ;;  %v8206_v49 = vadd.f32 -1.4531521, %v8188_v58  ;;  %11352 = vpow2.f32 %v8401_v20 }
0x11af   : > { %v8474_v23 = vsub.f32 0.0, %v8438_v6  ;;  %10439 = vmatmul.mubr.bf16.gmra.mrb[200].mxu0 %v8554_v18  ;;  %v8509_v9 = vadd.f32 1.0, %v8491_v11  ;;  %v8370_v22 = vmul.f32 %v8352_v10, %v8100_v48  ;;  %11354 = vpow2.f32 %v8403_v38  ;;  %v11398_v38 = vld [vmem:[%s15299_s13 + $0x8] sm:$0xff] }
0x11b0   : > { %v8241_v8 = vadd.f32 1.4214138, %v8223_v60  ;;  %10442 = vmatprep.mubr.msk.bf16.mxu0 %vm11440_vm2, %v15331_v3  ;;  %v8224_v19 = vmul.f32 %v11345_v32, %v8206_v49  ;;  %vm8457_vm11 = vcmp.ge.f32.partialorder %v15055_v51, 0.0  ;;  %vm8458_vm12 = vcmp.ge.f32.partialorder %v15068_v12, 0.0 }
0x11b1   : > { %v8492_v13 = vsel %vm8456_vm10, %v8438_v6, %v8474_v23  ;;  %v8527_v53 = vmul.f32 %v8509_v9, %v8059_v4  ;;  %v8405_v41 = vmul.f32 1.442695, %v8370_v22  ;;  %v8061_v23 = vmul.f32 0.5, %v15051_v62 }
0x11b2   : > { %v8510_v28 = vadd.f32 1.0, %v8492_v13  ;;  %v8259_v34 = vmul.f32 %v11341_v42, %v8241_v8  ;;  %v8242_v21 = vadd.f32 1.4214138, %v8224_v19  ;;  %v8062_v8 = vmul.f32 0.5, %v15058_v40 }
0x11b3   : > { %v11347_v31 = vpop.eup %11346  ;;  %11356 = vpow2.f32 %v8405_v41  ;;  %vm8459_vm13 = vcmp.ge.f32.partialorder %v15091_v45, 0.0  ;;  %vm8460_vm14 = vcmp.ge.f32.partialorder %v15100_v39, 0.0  ;;  %v8064_v10 = vmul.f32 0.5, %v15088_v43 }
0x11b4   : > { %v8528_v2 = vmul.f32 %v8510_v28, %v8060_v56  ;;  %v8277_v24 = vadd.f32 -0.28449672, %v8259_v34  ;;  %v8260_v17 = vmul.f32 %v11345_v32, %v8242_v21  ;;  %v8189_v52 = vmul.f32 1.0614054, %v11347_v31 }
0x11b6   : > { %v8295_v46 = vmul.f32 %v11341_v42, %v8277_v24  ;;  %v8555_v30 = vpack.c.bf16 %v8528_v2, %v8527_v53  ;;  %v8278_v7 = vadd.f32 -0.28449672, %v8260_v17  ;;  %v8207_v26 = vadd.f32 -1.4531521, %v8189_v52  ;;  %v11349_v44 = vpop.eup %11348 }
0x11b7   : > { %v11351_v54 = vpop.eup %11350  ;;  %v8190_v59 = vmul.f32 1.0614054, %v11349_v44  ;;  %v8063_v17 = vmul.f32 0.5, %v15083_v55  ;;  %v11397_v55 = vld [vmem:[%s15299_s13] sm:$0xff] }
0x11b8   : > { %v8313_v25 = vadd.f32 0.2548296, %v8295_v46  ;;  %10443 = vmatmul.mubr.bf16.gmra.mrb[204].mxu0 %v8555_v30  ;;  %v8296_v36 = vmul.f32 %v11345_v32, %v8278_v7  ;;  %v8225_v27 = vmul.f32 %v11347_v31, %v8207_v26  ;;  %v11353_v14 = vpop.eup %11352 }
0x11b9   : > { %10446 = vmatprep.mubr.msk.bf16.mxu0 %vm11440_vm2, %v15331_v3  ;;  %v8208_v57 = vadd.f32 -1.4531521, %v8190_v59  ;;  %v11355_v20 = vpop.eup %11354 }
0x11ba   : > { %v8331_v47 = vmul.f32 %v11341_v42, %v8313_v25  ;;  %v8314_v63 = vadd.f32 0.2548296, %v8296_v36  ;;  %v8243_v37 = vadd.f32 1.4214138, %v8225_v27 }
0x11bb   : > { %v8226_v15 = vmul.f32 %v11349_v44, %v8208_v57 }
0x11bc   : > { %v8421_v61 = vmul.f32 %v11351_v54, %v8331_v47  ;;  %v8332_v35 = vmul.f32 %v11345_v32, %v8314_v63  ;;  %v8261_v33 = vmul.f32 %v11347_v31, %v8243_v37  ;;  %v11399_v63 = vld [vmem:[%s15299_s13 + $0x10] sm:$0xff] }
0x11bd   : > { %v8244_v48 = vadd.f32 1.4214138, %v8226_v15  ;;  %v11357_v24 = vpop.eup %11356 }
0x11be   : > { %v8439_v5 = vsub.f32 1.0, %v8421_v61  ;;  %v8422_v6 = vmul.f32 %v11353_v14, %v8332_v35  ;;  %v8279_v42 = vadd.f32 -0.28449672, %v8261_v33  ;;  %v11400_v35 = vld [vmem:[%s15299_s13 + $0x18] sm:$0xff] }
0x11bf   : > { %v8262_v11 = vmul.f32 %v11349_v44, %v8244_v48 }
0x11c0   : > { %v8475_v0 = vsub.f32 0.0, %v8439_v5  ;;  %v8440_v1 = vsub.f32 1.0, %v8422_v6  ;;  %v8297_v18 = vmul.f32 %v11347_v31, %v8279_v42  ;;  %v11401_v6 = vld [vmem:[%s15299_s13 + $0x20] sm:$0xff] }
0x11c1   : > { %v8280_v4 = vadd.f32 -0.28449672, %v8262_v11 }
0x11c2   : > { %v8493_v50 = vsel %vm8457_vm11, %v8439_v5, %v8475_v0  ;;  %v8476_v60 = vsub.f32 0.0, %v8440_v1  ;;  %v8315_v32 = vadd.f32 0.2548296, %v8297_v18 }
0x11c3   : > { %v8511_v58 = vadd.f32 1.0, %v8493_v50  ;;  %v8298_v13 = vmul.f32 %v11349_v44, %v8280_v4  ;;  %v11403_v4 = vld [vmem:[%s15299_s13 + $0x30] sm:$0xff] }
0x11c4   : > { %v8494_v9 = vsel %vm8458_vm12, %v8440_v1, %v8476_v60  ;;  %v8333_v51 = vmul.f32 %v11347_v31, %v8315_v32  ;;  %v11402_v1 = vld [vmem:[%s15299_s13 + $0x28] sm:$0xff] }
0x11c5   : > { %v8512_v49 = vadd.f32 1.0, %v8494_v9  ;;  %v8529_v29 = vmul.f32 %v8511_v58, %v8061_v23  ;;  %v8316_v34 = vadd.f32 0.2548296, %v8298_v13 }
0x11c6   : > { %v8423_v28 = vmul.f32 %v11355_v20, %v8333_v51 }
0x11c7   : > { %v8530_v56 = vmul.f32 %v8512_v49, %v8062_v8  ;;  %v8334_v53 = vmul.f32 %v11349_v44, %v8316_v34  ;;  %v11404_v49 = vld [vmem:[%s15299_s13 + $0x38] sm:$0xff] }
0x11c8   : > { %v8441_v19 = vsub.f32 1.0, %v8423_v28  ;;  %v11405_v28 = vld [vmem:[%s15299_s13 + $0x40] sm:$0xff] }
0x11c9   : > { %v8556_v2 = vpack.c.bf16 %v8530_v56, %v8529_v29  ;;  %v8424_v21 = vmul.f32 %v11357_v24, %v8334_v53 }
0x11ca   : > { %v8477_v12 = vsub.f32 0.0, %v8441_v19 }
0x11cb   : > { %10447 = vmatmul.mubr.bf16.gmra.mrb[208].mxu0 %v8556_v2  ;;  %v8442_v40 = vsub.f32 1.0, %v8424_v21  ;;  %v11406_v2 = vld [vmem:[%s15299_s13 + $0x48] sm:$0xff] }
0x11cc   : > { %10450 = vmatprep.mubr.msk.bf16.mxu0 %vm11440_vm2, %v15331_v3  ;;  %v8495_v62 = vsel %vm8459_vm13, %v8441_v19, %v8477_v12  ;;  %v15131_v3 = vld [vmem:[%s639_s20] ss:$0 sm:$0xff] }
0x11cd   : > { %v8478_v16 = vsub.f32 0.0, %v8442_v40  ;;  %v8513_v31 = vadd.f32 1.0, %v8495_v62 }
0x11cf   : > { %v8496_v46 = vsel %vm8460_vm14, %v8442_v40, %v8478_v16  ;;  %v8531_v52 = vmul.f32 %v8513_v31, %v8063_v17  ;;  %v11407_v16 = vld [vmem:[%s15299_s13 + $0x50] sm:$0xff] }
0x11d0   : > { %v8514_v30 = vadd.f32 1.0, %v8496_v46 }
0x11d2   : > { %v8532_v25 = vmul.f32 %v8514_v30, %v8064_v10  ;;  %v11408_v10 = vld [vmem:[%s15299_s13 + $0x58] sm:$0xff] }
0x11d4   : > { %v8557_v7 = vpack.c.bf16 %v8532_v25, %v8531_v52 }
0x11d6   : > { %10451 = vmatmul.mubr.bf16.gmra.mrb[212].mxu0 %v8557_v7 }
0x1215   : > { %v8647_v45 = vpop.f32.mrb[180].mxu0 }
0x1216   : > { %v8648_v26 = vadd.f32 %v15131_v3, %v8647_v45  ;;  %v10420_v39 = vpop.f32.mrb[181].mxu0 }
0x1217   : > { %v8650_v44 = vpop.f32.mrb[182].mxu0 }
0x1218   : > { %v8718_v43 = vadd.f32 %v11397_v55, %v8648_v26  ;;  %v8651_v47 = vadd.f32 %v15131_v3, %v8650_v44  ;;  %v10421_v36 = vpop.f32.mrb[183].mxu0  ;;  %v11409_v26 = vld [vmem:[%s15299_s13 + $0x60] sm:$0xff] }
0x121a   : > { %8736 = vst.msk [vmem:[%s15299_s13] sm:$0xff] %vm711_vm1, %v8718_v43  ;;  %v8719_v22 = vadd.f32 %v11398_v38, %v8651_v47  ;;  %v11410_v43 = vld [vmem:[%s15299_s13 + $0x68] sm:$0xff] }
0x121c   : > { %8737 = vst.msk [vmem:[%s15299_s13 + $0x8] sm:$0xff] %vm711_vm1, %v8719_v22 }
0x122e   : > { %v8655_v54 = vpop.f32.mrb[184].mxu0 }
0x122f   : > { %v8656_v27 = vadd.f32 %v15131_v3, %v8655_v54  ;;  %v10424_v59 = vpop.f32.mrb[185].mxu0 }
0x1230   : > { %v8658_v61 = vpop.f32.mrb[186].mxu0 }
0x1231   : > { %v8720_v37 = vadd.f32 %v11399_v63, %v8656_v27  ;;  %v8659_v57 = vadd.f32 %v15131_v3, %v8658_v61  ;;  %v10425_v5 = vpop.f32.mrb[187].mxu0  ;;  %v11411_v27 = vld [vmem:[%s15299_s13 + $0x70] sm:$0xff] }
0x1233   : > { %8738 = vst.msk [vmem:[%s15299_s13 + $0x10] sm:$0xff] %vm711_vm1, %v8720_v37  ;;  %v8721_v41 = vadd.f32 %v11400_v35, %v8659_v57  ;;  %v11412_v37 = vld [vmem:[%s15299_s13 + $0x78] sm:$0xff] }
0x1235   : > { %8739 = vst.msk [vmem:[%s15299_s13 + $0x18] sm:$0xff] %vm711_vm1, %v8721_v41 }
0x123a   : > { %v8663_v14 = vpop.f32.mrb[188].mxu0 }
0x123b   : > { %v8664_v33 = vadd.f32 %v15131_v3, %v8663_v14  ;;  %v10428_v15 = vpop.f32.mrb[189].mxu0 }
0x123c   : > { %v8666_v0 = vpop.f32.mrb[190].mxu0 }
0x123d   : > { %v8722_v42 = vadd.f32 %v11401_v6, %v8664_v33  ;;  %v8667_v48 = vadd.f32 %v15131_v3, %v8666_v0  ;;  %v10429_v50 = vpop.f32.mrb[191].mxu0  ;;  %v11413_v33 = vld [vmem:[%s15299_s13 + $0x80] sm:$0xff] }
0x123f   : > { %8740 = vst.msk [vmem:[%s15299_s13 + $0x20] sm:$0xff] %vm711_vm1, %v8722_v42  ;;  %v8723_v18 = vadd.f32 %v11402_v1, %v8667_v48  ;;  %v11414_v42 = vld [vmem:[%s15299_s13 + $0x88] sm:$0xff] }
0x1241   : > { %8741 = vst.msk [vmem:[%s15299_s13 + $0x28] sm:$0xff] %vm711_vm1, %v8723_v18 }
0x1243   : > { %v8671_v11 = vpop.f32.mrb[192].mxu0 }
0x1244   : > { %v8672_v60 = vadd.f32 %v15131_v3, %v8671_v11  ;;  %v10432_v58 = vpop.f32.mrb[193].mxu0 }
0x1245   : > { %v8674_v32 = vpop.f32.mrb[194].mxu0 }
0x1246   : > { %v8724_v23 = vadd.f32 %v11403_v4, %v8672_v60  ;;  %v8675_v9 = vadd.f32 %v15131_v3, %v8674_v32  ;;  %v10433_v8 = vpop.f32.mrb[195].mxu0 }
0x1248   : > { %8742 = vst.msk [vmem:[%s15299_s13 + $0x30] sm:$0xff] %vm711_vm1, %v8724_v23  ;;  %v8725_v51 = vadd.f32 %v11404_v49, %v8675_v9 }
0x124a   : > { %8743 = vst.msk [vmem:[%s15299_s13 + $0x38] sm:$0xff] %vm711_vm1, %v8725_v51 }
0x126f   : > { %v8679_v13 = vpop.f32.mrb[196].mxu0 }
0x1270   : > { %v8680_v20 = vadd.f32 %v15131_v3, %v8679_v13  ;;  %v10436_v29 = vpop.f32.mrb[197].mxu0 }
0x1271   : > { %v8682_v56 = vpop.f32.mrb[198].mxu0 }
0x1272   : > { %v8726_v34 = vadd.f32 %v11405_v28, %v8680_v20  ;;  %v8683_v19 = vadd.f32 %v15131_v3, %v8682_v56  ;;  %v10437_v53 = vpop.f32.mrb[199].mxu0 }
0x1274   : > { %8744 = vst.msk [vmem:[%s15299_s13 + $0x40] sm:$0xff] %vm711_vm1, %v8726_v34  ;;  %v8727_v24 = vadd.f32 %v11406_v2, %v8683_v19 }
0x1276   : > { %8745 = vst.msk [vmem:[%s15299_s13 + $0x48] sm:$0xff] %vm711_vm1, %v8727_v24 }
0x1282   : > { %v8687_v12 = vpop.f32.mrb[200].mxu0 }
0x1283   : > { %v8688_v21 = vadd.f32 %v15131_v3, %v8687_v12  ;;  %v10440_v62 = vpop.f32.mrb[201].mxu0 }
0x1284   : > { %v8690_v40 = vpop.f32.mrb[202].mxu0 }
0x1285   : > { %v8728_v31 = vadd.f32 %v11407_v16, %v8688_v21  ;;  %v8691_v46 = vadd.f32 %v15131_v3, %v8690_v40  ;;  %v10441_v17 = vpop.f32.mrb[203].mxu0 }
0x1287   : > { %8746 = vst.msk [vmem:[%s15299_s13 + $0x50] sm:$0xff] %vm711_vm1, %v8728_v31  ;;  %v8729_v30 = vadd.f32 %v11408_v10, %v8691_v46 }
0x1289   : > { %8747 = vst.msk [vmem:[%s15299_s13 + $0x58] sm:$0xff] %vm711_vm1, %v8729_v30 }
0x128b   : > { %v8695_v52 = vpop.f32.mrb[204].mxu0 }
0x128c   : > { %v8696_v25 = vadd.f32 %v15131_v3, %v8695_v52  ;;  %v10444_v7 = vpop.f32.mrb[205].mxu0 }
0x128d   : > { %v8698_v45 = vpop.f32.mrb[206].mxu0 }
0x128e   : > { %v8730_v39 = vadd.f32 %v11409_v26, %v8696_v25  ;;  %v8699_v44 = vadd.f32 %v15131_v3, %v8698_v45  ;;  %v10445_v55 = vpop.f32.mrb[207].mxu0 }
0x1290   : > { %8748 = vst.msk [vmem:[%s15299_s13 + $0x60] sm:$0xff] %vm711_vm1, %v8730_v39  ;;  %v8731_v47 = vadd.f32 %v11410_v43, %v8699_v44 }
0x1292   : > { %8749 = vst.msk [vmem:[%s15299_s13 + $0x68] sm:$0xff] %vm711_vm1, %v8731_v47 }
0x129e   : > { %v8703_v36 = vpop.f32.mrb[208].mxu0 }
0x129f   : > { %v8704_v38 = vadd.f32 %v15131_v3, %v8703_v36  ;;  %v10448_v22 = vpop.f32.mrb[209].mxu0 }
0x12a0   : > { %v8706_v54 = vpop.f32.mrb[210].mxu0 }
0x12a1   : > { %v8732_v59 = vadd.f32 %v11411_v27, %v8704_v38  ;;  %v8707_v61 = vadd.f32 %v15131_v3, %v8706_v54  ;;  %v10449_v63 = vpop.f32.mrb[211].mxu0 }
0x12a3   : > { %8750 = vst.msk [vmem:[%s15299_s13 + $0x70] sm:$0xff] %vm711_vm1, %v8732_v59  ;;  %v8733_v57 = vadd.f32 %v11412_v37, %v8707_v61 }
0x12a5   : > { %8751 = vst.msk [vmem:[%s15299_s13 + $0x78] sm:$0xff] %vm711_vm1, %v8733_v57 }
0x12a9   : > { %v8711_v5 = vpop.f32.mrb[212].mxu0 }
0x12aa   : > { %v8712_v35 = vadd.f32 %v15131_v3, %v8711_v5  ;;  %v10452_v41 = vpop.f32.mrb[213].mxu0 }
0x12ab   : > { %v8714_v14 = vpop.f32.mrb[214].mxu0 }
0x12ac   : > { %v8734_v15 = vadd.f32 %v11413_v33, %v8712_v35  ;;  %v8715_v0 = vadd.f32 %v15131_v3, %v8714_v14  ;;  %v10453_v6 = vpop.f32.mrb[215].mxu0 }
0x12ae   : > { %8752 = vst.msk [vmem:[%s15299_s13 + $0x80] sm:$0xff] %vm711_vm1, %v8734_v15  ;;  %v8735_v48 = vadd.f32 %v11414_v42, %v8715_v0 }
0x12b0   : > { %8753 = vst.msk [vmem:[%s15299_s13 + $0x88] sm:$0xff] %vm711_vm1, %v8735_v48 }
0x12b1 PF: > { %s15364_s3 = sld [smem:[#allocation5_spill]]  ;;  %s15365_s25 = sld [smem:[#allocation4_spill]] }
0x12b2   : > { %s15366_s26 = sld [smem:[#allocation6_spill]] }
0x12b7   : > { %s23_s27 = sadd.s32 1, %s15364_s3  }
0x12b8   : > { %p20_p6 = scmp.ge.s32.totalorder %s23_s27, 4  }
0x12ba   :  { %22 = sbr.rel (!%p20_p6) target bundleno = 4 (0x4), region = 142 }

</bundles_post_ra>
